<compile_context>
chip_gen: v7x
topology: tpu7x:2x2x1
jax: 0.10.0
libtpu: 0.0.40
codegen_flags: <defaults>
</compile_context>

<pallas_src>
import functools

import jax
import jax.numpy as jnp
from jax.experimental import pallas as pl
from jax.experimental.pallas import tpu as pltpu


# ----------------------------------------------------------------------------
# Pallas kernels
# ----------------------------------------------------------------------------

def _round_up(x, m):
    return ((x + m - 1) // m) * m


def _fused_matmul_kernel(*refs, apply_relu, has_residual):
    """Tiled matmul: acc += A@B over K; epilogue adds bias (+res), ReLU, store."""
    if has_residual:
        a_ref, b_ref, bias_ref, res_ref, o_ref, acc_ref = refs
    else:
        a_ref, b_ref, bias_ref, o_ref, acc_ref = refs
        res_ref = None

    k = pl.program_id(2)

    @pl.when(k == 0)
    def _():
        acc_ref[...] = jnp.zeros_like(acc_ref)

    acc_ref[...] += jnp.dot(a_ref[...], b_ref[...],
                            preferred_element_type=jnp.float32)

    @pl.when(k == pl.num_programs(2) - 1)
    def _():
        out = acc_ref[...] + bias_ref[...]
        if has_residual:
            out = out + res_ref[...]
        if apply_relu:
            out = jnp.maximum(out, 0.0)
        o_ref[...] = out.astype(o_ref.dtype)


def fused_matmul(a, b_bf16, bias, *, relu, residual=None,
                 tm_max=256, tn_max=256, tk_max=512):
    """out = relu?(A @ B + bias [+ residual]).

    a: (M, K) f32 (cast to bf16 here), b_bf16: (K, N) bf16 (BN scale pre-folded),
    bias: (N,) f32, residual: (M, N) f32 or None.  Returns f32 (M, N).
    Inputs are zero-padded to tile multiples; the Pallas store is lane-dense.
    """
    M, K = a.shape
    K2, N = b_bf16.shape
    assert K == K2

    tm = min(tm_max, _round_up(M, 16))     # bf16 second-minor tile = 16
    tn = min(tn_max, _round_up(N, 128))    # lane-dense output
    tk = min(tk_max, _round_up(K, 128))
    Mp, Np, Kp = _round_up(M, tm), _round_up(N, tn), _round_up(K, tk)

    a_p = jnp.pad(a.astype(jnp.bfloat16), ((0, Mp - M), (0, Kp - K)))
    b_p = jnp.pad(b_bf16, ((0, Kp - K), (0, Np - N)))
    bias_p = jnp.pad(bias.astype(jnp.float32), (0, Np - N)).reshape(1, Np)

    in_specs = [
        pl.BlockSpec((tm, tk), lambda i, j, k: (i, k)),
        pl.BlockSpec((tk, tn), lambda i, j, k: (k, j)),
        pl.BlockSpec((1, tn), lambda i, j, k: (0, j)),
    ]
    args = [a_p, b_p, bias_p]
    has_res = residual is not None
    if has_res:
        res_p = jnp.pad(residual.astype(jnp.float32),
                        ((0, Mp - M), (0, Np - N)))
        in_specs.append(pl.BlockSpec((tm, tn), lambda i, j, k: (i, j)))
        args.append(res_p)

    kern = functools.partial(_fused_matmul_kernel,
                             apply_relu=relu, has_residual=has_res)
    out = pl.pallas_call(
        kern,
        out_shape=jax.ShapeDtypeStruct((Mp, Np), jnp.float32),
        grid=(Mp // tm, Np // tn, Kp // tk),
        in_specs=in_specs,
        out_specs=pl.BlockSpec((tm, tn), lambda i, j, k: (i, j)),
        scratch_shapes=[pltpu.VMEM((tm, tn), jnp.float32)],
        compiler_params=pltpu.CompilerParams(
            dimension_semantics=("parallel", "parallel", "arbitrary")),
    )(*args)
    return out[:M, :N]


def _maxpool_relu_kernel(x_ref, o_ref):
    # x_ref: (N*Ho, 2, Wo, 2, C) -> o_ref: (N*Ho, Wo, C)
    x = x_ref[...]
    m = jnp.maximum(x[:, 0], x[:, 1])      # vertical max   -> (M, Wo, 2, C)
    m = jnp.max(m, axis=2)                 # horizontal max -> (M, Wo, C)
    o_ref[...] = jnp.maximum(m, 0.0)       # ReLU


def maxpool2x2_relu(x_nhwc):
    """2x2 max pool (stride 2, floor) + ReLU; single kernel, zero-copy reshape."""
    N, H, W, C = x_nhwc.shape
    Ho, Wo = H // 2, W // 2
    x = x_nhwc[:, :2 * Ho, :2 * Wo, :]                  # floor like nn.MaxPool2d
    x5 = x.reshape(N * Ho, 2, Wo, 2, C)                 # pure reshape (row-major)
    out = pl.pallas_call(
        _maxpool_relu_kernel,
        out_shape=jax.ShapeDtypeStruct((N * Ho, Wo, C), jnp.float32),
    )(x5)
    return out.reshape(N, Ho, Wo, C)


# ----------------------------------------------------------------------------
# JAX glue: im2col, BN folding (done once at parameter-prep time)
# ----------------------------------------------------------------------------

def im2col(x_nhwc, kh, kw, stride, pad):
    N, H, W, C = x_nhwc.shape
    xp = jnp.pad(x_nhwc, ((0, 0), (pad, pad), (pad, pad), (0, 0)))
    Ho = (H + 2 * pad - kh) // stride + 1
    Wo = (W + 2 * pad - kw) // stride + 1
    pieces = []
    for i in range(kh):
        for j in range(kw):
            pieces.append(xp[:, i:i + stride * Ho:stride,
                             j:j + stride * Wo:stride, :])
    p = jnp.stack(pieces, axis=3)                        # (N, Ho, Wo, kh*kw, C)
    return p.reshape(N * Ho * Wo, kh * kw * C), (N, Ho, Wo)


def prepare_conv_bn(w, b, bn, eps=1e-5):
    """Fold BN (eval) scale into the matmul weights once; bias stays f32."""
    gamma, beta, mean, var = bn
    cout, cin, kh, kw = w.shape
    scale = gamma / jnp.sqrt(var + eps)
    bias = (b - mean) * scale + beta
    wmat = jnp.transpose(w, (2, 3, 1, 0)).reshape(kh * kw * cin, cout)
    wmat = (wmat * scale[None, :]).astype(jnp.bfloat16)
    return dict(wmat=wmat, bias=bias.astype(jnp.float32))


def conv_bn(x_nhwc, cp, *, kh, kw, stride, pad, relu, residual=None):
    patches, (N, Ho, Wo) = im2col(x_nhwc, kh, kw, stride, pad)
    cout = cp["wmat"].shape[1]
    res2d = residual.reshape(N * Ho * Wo, cout) if residual is not None else None
    out = fused_matmul(patches, cp["wmat"], cp["bias"], relu=relu, residual=res2d)
    return out.reshape(N, Ho, Wo, cout)


# ----------------------------------------------------------------------------
# Parameter construction (PyTorch-like raw params, then folded "fast" params)
# ----------------------------------------------------------------------------

def init_conv(key, cout, cin, kh, kw):
    k1, k2 = jax.random.split(key)
    w = jax.random.normal(k1, (cout, cin, kh, kw), jnp.float32) * 0.05
    b = jax.random.normal(k2, (cout,), jnp.float32) * 0.01
    return w, b


def init_bn(key, c):
    k1, k2, k3, k4 = jax.random.split(key, 4)
    gamma = 1.0 + 0.1 * jax.random.normal(k1, (c,), jnp.float32)
    beta = 0.1 * jax.random.normal(k2, (c,), jnp.float32)
    mean = 0.1 * jax.random.normal(k3, (c,), jnp.float32)
    var = 1.0 + 0.1 * jax.random.uniform(k4, (c,), jnp.float32)
    return gamma, beta, mean, var


def init_resblock(key, cin, cout):
    ks = jax.random.split(key, 6)
    w1, b1 = init_conv(ks[0], cout, cin, 3, 3)
    bn1 = init_bn(ks[1], cout)
    w2, b2 = init_conv(ks[2], cout, cout, 3, 3)
    bn2 = init_bn(ks[3], cout)
    ws, bs = init_conv(ks[4], cout, cin, 3, 3)
    bns = init_bn(ks[5], cout)
    return dict(w1=w1, b1=b1, bn1=bn1, w2=w2, b2=b2, bn2=bn2,
                ws=ws, bs=bs, bns=bns)


def init_resnet(key, in_channels=1):
    ks = jax.random.split(key, 7)
    params = {}
    params["conv0_w"], params["conv0_b"] = init_conv(ks[0], 32, in_channels, 5, 5)
    params["bn0"] = init_bn(ks[1], 32)
    params["block1"] = init_resblock(ks[2], 32, 64)
    params["block2"] = init_resblock(ks[3], 64, 128)
    params["block3"] = init_resblock(ks[4], 128, 256)
    params["block4"] = init_resblock(ks[5], 256, 512)
    kf1, kf2 = jax.random.split(ks[6])
    params["fc_w"] = jax.random.normal(kf1, (2, 512), jnp.float32) * 0.05
    params["fc_b"] = jax.random.normal(kf2, (2,), jnp.float32) * 0.01
    return params


def prepare_resnet(params):
    fp = {"conv0": prepare_conv_bn(params["conv0_w"], params["conv0_b"],
                                   params["bn0"])}
    for name in ("block1", "block2", "block3", "block4"):
        p = params[name]
        fp[name] = dict(
            conv1=prepare_conv_bn(p["w1"], p["b1"], p["bn1"]),
            conv2=prepare_conv_bn(p["w2"], p["b2"], p["bn2"]),
            convs=prepare_conv_bn(p["ws"], p["bs"], p["bns"]),
        )
    fp["fc_w"] = params["fc_w"]
    fp["fc_b"] = params["fc_b"]
    return fp


# ----------------------------------------------------------------------------
# Forward pass
# ----------------------------------------------------------------------------

def res_block(x, bp, *, stride):
    shortcut = conv_bn(x, bp["convs"], kh=3, kw=3, stride=stride, pad=1,
                       relu=False)
    out = conv_bn(x, bp["conv1"], kh=3, kw=3, stride=stride, pad=1, relu=True)
    # second conv: residual add + ReLU fused into the matmul epilogue
    out = conv_bn(out, bp["conv2"], kh=3, kw=3, stride=1, pad=1, relu=True,
                  residual=shortcut)
    return out


@jax.jit
def resnet_forward(fp, x_nchw):
    # NCHW -> NHWC
    x = jnp.transpose(x_nchw, (0, 2, 3, 1)).astype(jnp.float32)
    # stem: Conv(5, s=3, p=0) + BN, then MaxPool(2) + ReLU (fused kernel)
    out = conv_bn(x, fp["conv0"], kh=5, kw=5, stride=3, pad=0, relu=False)
    out = maxpool2x2_relu(out)
    # residual stages
    out = res_block(out, fp["block1"], stride=2)
    out = res_block(out, fp["block2"], stride=2)
    out = res_block(out, fp["block3"], stride=2)
    out = res_block(out, fp["block4"], stride=2)
    # dropout (eval -> identity); tiny tail in plain XLA (below launch overhead)
    pooled = jnp.mean(out, axis=(1, 2))                   # (N, 512)
    logits = pooled @ fp["fc_w"].T + fp["fc_b"]           # (N, 2)
    return logits


# ----------------------------------------------------------------------------
# Main
# ----------------------------------------------------------------------------

if __name__ == "__main__":
    key = jax.random.PRNGKey(0)
    k_param, k_x = jax.random.split(key)

    raw_params = init_resnet(k_param, in_channels=1)
    fast_params = prepare_resnet(raw_params)   # BN-fold + weight reshape, once

    # small but architecture-consistent input: 64x64 survives the stride chain
    # (64 -> 20 -> 10 -> 5 -> 3 -> 2 -> 1)
    x = jax.random.normal(k_x, (2, 1, 64, 64), jnp.float32)   # NCHW like PyTorch

    out = resnet_forward(fast_params, x)
    out = jax.block_until_ready(out)
    assert out.shape == (2, 2) and out.dtype == jnp.float32
    print("KERNEL_OK")
</pallas_src>

<mosaic_0001>
module attributes {stable_mosaic.version = 11 : i64} {
  func.func @_fused_matmul_kernel(%arg0: i32, %arg1: i32, %arg2: i32, %arg3: memref<256x128xbf16, #tpu.memory_space<vmem>>, %arg4: memref<128x128xbf16, #tpu.memory_space<vmem>>, %arg5: memref<1x128xf32, #tpu.memory_space<vmem>>, %arg6: memref<256x128xf32, #tpu.memory_space<vmem>>, %arg7: memref<256x128xf32, #tpu.memory_space<vmem>>) attributes {dimension_semantics = [#tpu.dimension_semantics<parallel>, #tpu.dimension_semantics<parallel>, #tpu.dimension_semantics<arbitrary>], iteration_bounds = array<i64: 4, 1, 1>, scalar_prefetch = 0 : i64, scratch_operands = 1 : i64, tpu.core_type = #tpu.core_type<tc>, window_params = [{transform_indices = @transform_0, window_bounds = array<i64: 256, 128>}, {transform_indices = @transform_1, window_bounds = array<i64: 128, 128>}, {transform_indices = @transform_2, window_bounds = array<i64: 1, 128>}, {transform_indices = @transform_3, window_bounds = array<i64: 256, 128>}]} {
    %c0_i32 = arith.constant 0 : i32
    %0 = arith.cmpi eq, %arg2, %c0_i32 : i32
    %1 = arith.extui %0 : i1 to i32
    %c0_i32_0 = arith.constant 0 : i32
    %2 = arith.cmpi ne, %1, %c0_i32_0 : i32
    scf.if %2 {
      %cst_10 = arith.constant 0.000000e+00 : f32
      %12 = vector.broadcast %cst_10 : f32 to vector<256x128xf32>
      %c0_11 = arith.constant 0 : index
      %c0_12 = arith.constant 0 : index
      %13 = vector.load %arg7[%c0_11, %c0_12] : memref<256x128xf32, #tpu.memory_space<vmem>>, vector<256x128xf32>
      tpu.vector_store %arg7[%c0_11, %c0_12], %12 {strides = array<i32>} : memref<256x128xf32, #tpu.memory_space<vmem>>, vector<256x128xf32>,
    } else {
    }
    %c0 = arith.constant 0 : index
    %c0_1 = arith.constant 0 : index
    %3 = vector.load %arg7[%c0, %c0_1] : memref<256x128xf32, #tpu.memory_space<vmem>>, vector<256x128xf32>
    %c0_2 = arith.constant 0 : index
    %c0_3 = arith.constant 0 : index
    %4 = vector.load %arg3[%c0_2, %c0_3] : memref<256x128xbf16, #tpu.memory_space<vmem>>, vector<256x128xbf16>
    %c0_4 = arith.constant 0 : index
    %c0_5 = arith.constant 0 : index
    %5 = vector.load %arg4[%c0_4, %c0_5] : memref<128x128xbf16, #tpu.memory_space<vmem>>, vector<128x128xbf16>
    %cst = arith.constant dense<0.000000e+00> : vector<256x128xf32>
    %6 = tpu.matmul %4, %5, %cst {dimension_numbers = #tpu.dot_dimension_numbers<[1], [0], [0], [1], [0, 0, 1, 1], [], []>} : vector<256x128xbf16>, vector<128x128xbf16>, vector<256x128xf32> -> vector<256x128xf32>
    %7 = arith.addf %3, %6 : vector<256x128xf32>
    %c0_6 = arith.constant 0 : index
    %c0_7 = arith.constant 0 : index
    %8 = vector.load %arg7[%c0_6, %c0_7] : memref<256x128xf32, #tpu.memory_space<vmem>>, vector<256x128xf32>
    tpu.vector_store %arg7[%c0_6, %c0_7], %7 {strides = array<i32>} : memref<256x128xf32, #tpu.memory_space<vmem>>, vector<256x128xf32>,
    %c0_i32_8 = arith.constant 0 : i32
    %9 = arith.cmpi eq, %arg2, %c0_i32_8 : i32
    %10 = arith.extui %9 : i1 to i32
    %c0_i32_9 = arith.constant 0 : i32
    %11 = arith.cmpi ne, %10, %c0_i32_9 : i32
    scf.if %11 {
      %c0_10 = arith.constant 0 : index
      %c0_11 = arith.constant 0 : index
      %12 = vector.load %arg7[%c0_10, %c0_11] : memref<256x128xf32, #tpu.memory_space<vmem>>, vector<256x128xf32>
      %c0_12 = arith.constant 0 : index
      %c0_13 = arith.constant 0 : index
      %13 = vector.load %arg5[%c0_12, %c0_13] : memref<1x128xf32, #tpu.memory_space<vmem>>, vector<1x128xf32>
      %14 = vector.broadcast %13 : vector<1x128xf32> to vector<256x128xf32>
      %15 = arith.addf %12, %14 : vector<256x128xf32>
      %c0_14 = arith.constant 0 : index
      %c0_15 = arith.constant 0 : index
      %16 = vector.load %arg6[%c0_14, %c0_15] : memref<256x128xf32, #tpu.memory_space<vmem>>, vector<256x128xf32>
      tpu.vector_store %arg6[%c0_14, %c0_15], %15 {strides = array<i32>} : memref<256x128xf32, #tpu.memory_space<vmem>>, vector<256x128xf32>,
    } else {
    }
    return
  }
  func.func @transform_0(%arg0: i32, %arg1: i32, %arg2: i32) -> (i32, i32) {
    %c0_i32 = arith.constant 0 : i32
    return %arg0, %arg2 : i32, i32
  }
  func.func @transform_1(%arg0: i32, %arg1: i32, %arg2: i32) -> (i32, i32) {
    %c0_i32 = arith.constant 0 : i32
    return %arg2, %arg1 : i32, i32
  }
  func.func @transform_2(%arg0: i32, %arg1: i32, %arg2: i32) -> (i32, i32) {
    %c0_i32 = arith.constant 0 : i32
    %c0_i32_0 = arith.constant 0 : i32
    return %c0_i32, %arg1 : i32, i32
  }
  func.func @transform_3(%arg0: i32, %arg1: i32, %arg2: i32) -> (i32, i32) {
    %c0_i32 = arith.constant 0 : i32
    return %arg0, %arg1 : i32, i32
  }
}

module attributes {stable_mosaic.version = 11 : i64} {
  func.func @_maxpool_relu_kernel(%arg0: memref<20x2x10x2x32xf32, #tpu.memory_space<vmem>>, %arg1: memref<20x10x32xf32, #tpu.memory_space<vmem>>) attributes {dimension_semantics = [], scalar_prefetch = 0 : i64, scratch_operands = 0 : i64, tpu.core_type = #tpu.core_type<tc>} {
    %c0 = arith.constant 0 : index
    %c0_0 = arith.constant 0 : index
    %c0_1 = arith.constant 0 : index
    %c0_2 = arith.constant 0 : index
    %c0_3 = arith.constant 0 : index
    %0 = vector.load %arg0[%c0, %c0_0, %c0_1, %c0_2, %c0_3] : memref<20x2x10x2x32xf32, #tpu.memory_space<vmem>>, vector<20x2x10x2x32xf32>
    %1 = vector.extract_strided_slice %0 {offsets = [0, 0, 0, 0, 0], sizes = [20, 1, 10, 2, 32], strides = [1, 1, 1, 1, 1]} : vector<20x2x10x2x32xf32> to vector<20x1x10x2x32xf32>
    %2 = vector.shape_cast %1 : vector<20x1x10x2x32xf32> to vector<20x10x2x32xf32>
    %3 = vector.extract_strided_slice %0 {offsets = [0, 1, 0, 0, 0], sizes = [20, 1, 10, 2, 32], strides = [1, 1, 1, 1, 1]} : vector<20x2x10x2x32xf32> to vector<20x1x10x2x32xf32>
    %4 = vector.shape_cast %3 : vector<20x1x10x2x32xf32> to vector<20x10x2x32xf32>
    %5 = arith.maximumf %2, %4 : vector<20x10x2x32xf32>
    %cst = arith.constant dense<0xFF800000> : vector<20x10x32xf32>
    %6 = vector.multi_reduction <maximumf>, %5, %cst [2] : vector<20x10x2x32xf32> to vector<20x10x32xf32>
    %cst_4 = arith.constant 0.000000e+00 : f32
    %7 = vector.broadcast %cst_4 : f32 to vector<20x10x32xf32>
    %8 = arith.maximumf %6, %7 : vector<20x10x32xf32>
    %c0_5 = arith.constant 0 : index
    %c0_6 = arith.constant 0 : index
    %c0_7 = arith.constant 0 : index
    %9 = vector.load %arg1[%c0_5, %c0_6, %c0_7] : memref<20x10x32xf32, #tpu.memory_space<vmem>>, vector<20x10x32xf32>
    tpu.vector_store %arg1[%c0_5, %c0_6, %c0_7], %8 {strides = array<i32>} : memref<20x10x32xf32, #tpu.memory_space<vmem>>, vector<20x10x32xf32>,
    return
  }
}

module attributes {stable_mosaic.version = 11 : i64} {
  func.func @_fused_matmul_kernel(%arg0: i32, %arg1: i32, %arg2: i32, %arg3: memref<64x384xbf16, #tpu.memory_space<vmem>>, %arg4: memref<384x128xbf16, #tpu.memory_space<vmem>>, %arg5: memref<1x128xf32, #tpu.memory_space<vmem>>, %arg6: memref<64x128xf32, #tpu.memory_space<vmem>>, %arg7: memref<64x128xf32, #tpu.memory_space<vmem>>) attributes {dimension_semantics = [#tpu.dimension_semantics<parallel>, #tpu.dimension_semantics<parallel>, #tpu.dimension_semantics<arbitrary>], iteration_bounds = array<i64: 1, 1, 1>, scalar_prefetch = 0 : i64, scratch_operands = 1 : i64, tpu.core_type = #tpu.core_type<tc>, window_params = [{transform_indices = @transform_0, window_bounds = array<i64: 64, 384>}, {transform_indices = @transform_1, window_bounds = array<i64: 384, 128>}, {transform_indices = @transform_2, window_bounds = array<i64: 1, 128>}, {transform_indices = @transform_3, window_bounds = array<i64: 64, 128>}]} {
    %c0_i32 = arith.constant 0 : i32
    %0 = arith.cmpi eq, %arg2, %c0_i32 : i32
    %1 = arith.extui %0 : i1 to i32
    %c0_i32_0 = arith.constant 0 : i32
    %2 = arith.cmpi ne, %1, %c0_i32_0 : i32
    scf.if %2 {
      %cst_10 = arith.constant 0.000000e+00 : f32
      %12 = vector.broadcast %cst_10 : f32 to vector<64x128xf32>
      %c0_11 = arith.constant 0 : index
      %c0_12 = arith.constant 0 : index
      %13 = vector.load %arg7[%c0_11, %c0_12] : memref<64x128xf32, #tpu.memory_space<vmem>>, vector<64x128xf32>
      tpu.vector_store %arg7[%c0_11, %c0_12], %12 {strides = array<i32>} : memref<64x128xf32, #tpu.memory_space<vmem>>, vector<64x128xf32>,
    } else {
    }
    %c0 = arith.constant 0 : index
    %c0_1 = arith.constant 0 : index
    %3 = vector.load %arg7[%c0, %c0_1] : memref<64x128xf32, #tpu.memory_space<vmem>>, vector<64x128xf32>
    %c0_2 = arith.constant 0 : index
    %c0_3 = arith.constant 0 : index
    %4 = vector.load %arg3[%c0_2, %c0_3] : memref<64x384xbf16, #tpu.memory_space<vmem>>, vector<64x384xbf16>
    %c0_4 = arith.constant 0 : index
    %c0_5 = arith.constant 0 : index
    %5 = vector.load %arg4[%c0_4, %c0_5] : memref<384x128xbf16, #tpu.memory_space<vmem>>, vector<384x128xbf16>
    %cst = arith.constant dense<0.000000e+00> : vector<64x128xf32>
    %6 = tpu.matmul %4, %5, %cst {dimension_numbers = #tpu.dot_dimension_numbers<[1], [0], [0], [1], [0, 0, 1, 1], [], []>} : vector<64x384xbf16>, vector<384x128xbf16>, vector<64x128xf32> -> vector<64x128xf32>
    %7 = arith.addf %3, %6 : vector<64x128xf32>
    %c0_6 = arith.constant 0 : index
    %c0_7 = arith.constant 0 : index
    %8 = vector.load %arg7[%c0_6, %c0_7] : memref<64x128xf32, #tpu.memory_space<vmem>>, vector<64x128xf32>
    tpu.vector_store %arg7[%c0_6, %c0_7], %7 {strides = array<i32>} : memref<64x128xf32, #tpu.memory_space<vmem>>, vector<64x128xf32>,
    %c0_i32_8 = arith.constant 0 : i32
    %9 = arith.cmpi eq, %arg2, %c0_i32_8 : i32
    %10 = arith.extui %9 : i1 to i32
    %c0_i32_9 = arith.constant 0 : i32
    %11 = arith.cmpi ne, %10, %c0_i32_9 : i32
    scf.if %11 {
      %c0_10 = arith.constant 0 : index
      %c0_11 = arith.constant 0 : index
      %12 = vector.load %arg7[%c0_10, %c0_11] : memref<64x128xf32, #tpu.memory_space<vmem>>, vector<64x128xf32>
      %c0_12 = arith.constant 0 : index
      %c0_13 = arith.constant 0 : index
      %13 = vector.load %arg5[%c0_12, %c0_13] : memref<1x128xf32, #tpu.memory_space<vmem>>, vector<1x128xf32>
      %14 = vector.broadcast %13 : vector<1x128xf32> to vector<64x128xf32>
      %15 = arith.addf %12, %14 : vector<64x128xf32>
      %c0_14 = arith.constant 0 : index
      %c0_15 = arith.constant 0 : index
      %16 = vector.load %arg6[%c0_14, %c0_15] : memref<64x128xf32, #tpu.memory_space<vmem>>, vector<64x128xf32>
      tpu.vector_store %arg6[%c0_14, %c0_15], %15 {strides = array<i32>} : memref<64x128xf32, #tpu.memory_space<vmem>>, vector<64x128xf32>,
    } else {
    }
    return
  }
  func.func @transform_0(%arg0: i32, %arg1: i32, %arg2: i32) -> (i32, i32) {
    %c0_i32 = arith.constant 0 : i32
    return %arg0, %arg2 : i32, i32
  }
  func.func @transform_1(%arg0: i32, %arg1: i32, %arg2: i32) -> (i32, i32) {
    %c0_i32 = arith.constant 0 : i32
    return %arg2, %arg1 : i32, i32
  }
  func.func @transform_2(%arg0: i32, %arg1: i32, %arg2: i32) -> (i32, i32) {
    %c0_i32 = arith.constant 0 : i32
    %c0_i32_0 = arith.constant 0 : i32
    return %c0_i32, %arg1 : i32, i32
  }
  func.func @transform_3(%arg0: i32, %arg1: i32, %arg2: i32) -> (i32, i32) {
    %c0_i32 = arith.constant 0 : i32
    return %arg0, %arg1 : i32, i32
  }
}

module attributes {stable_mosaic.version = 11 : i64} {
  func.func @_fused_matmul_kernel(%arg0: i32, %arg1: i32, %arg2: i32, %arg3: memref<64x384xbf16, #tpu.memory_space<vmem>>, %arg4: memref<384x128xbf16, #tpu.memory_space<vmem>>, %arg5: memref<1x128xf32, #tpu.memory_space<vmem>>, %arg6: memref<64x128xf32, #tpu.memory_space<vmem>>, %arg7: memref<64x128xf32, #tpu.memory_space<vmem>>) attributes {dimension_semantics = [#tpu.dimension_semantics<parallel>, #tpu.dimension_semantics<parallel>, #tpu.dimension_semantics<arbitrary>], iteration_bounds = array<i64: 1, 1, 1>, scalar_prefetch = 0 : i64, scratch_operands = 1 : i64, tpu.core_type = #tpu.core_type<tc>, window_params = [{transform_indices = @transform_0, window_bounds = array<i64: 64, 384>}, {transform_indices = @transform_1, window_bounds = array<i64: 384, 128>}, {transform_indices = @transform_2, window_bounds = array<i64: 1, 128>}, {transform_indices = @transform_3, window_bounds = array<i64: 64, 128>}]} {
    %c0_i32 = arith.constant 0 : i32
    %0 = arith.cmpi eq, %arg2, %c0_i32 : i32
    %1 = arith.extui %0 : i1 to i32
    %c0_i32_0 = arith.constant 0 : i32
    %2 = arith.cmpi ne, %1, %c0_i32_0 : i32
    scf.if %2 {
      %cst_10 = arith.constant 0.000000e+00 : f32
      %12 = vector.broadcast %cst_10 : f32 to vector<64x128xf32>
      %c0_11 = arith.constant 0 : index
      %c0_12 = arith.constant 0 : index
      %13 = vector.load %arg7[%c0_11, %c0_12] : memref<64x128xf32, #tpu.memory_space<vmem>>, vector<64x128xf32>
      tpu.vector_store %arg7[%c0_11, %c0_12], %12 {strides = array<i32>} : memref<64x128xf32, #tpu.memory_space<vmem>>, vector<64x128xf32>,
    } else {
    }
    %c0 = arith.constant 0 : index
    %c0_1 = arith.constant 0 : index
    %3 = vector.load %arg7[%c0, %c0_1] : memref<64x128xf32, #tpu.memory_space<vmem>>, vector<64x128xf32>
    %c0_2 = arith.constant 0 : index
    %c0_3 = arith.constant 0 : index
    %4 = vector.load %arg3[%c0_2, %c0_3] : memref<64x384xbf16, #tpu.memory_space<vmem>>, vector<64x384xbf16>
    %c0_4 = arith.constant 0 : index
    %c0_5 = arith.constant 0 : index
    %5 = vector.load %arg4[%c0_4, %c0_5] : memref<384x128xbf16, #tpu.memory_space<vmem>>, vector<384x128xbf16>
    %cst = arith.constant dense<0.000000e+00> : vector<64x128xf32>
    %6 = tpu.matmul %4, %5, %cst {dimension_numbers = #tpu.dot_dimension_numbers<[1], [0], [0], [1], [0, 0, 1, 1], [], []>} : vector<64x384xbf16>, vector<384x128xbf16>, vector<64x128xf32> -> vector<64x128xf32>
    %7 = arith.addf %3, %6 : vector<64x128xf32>
    %c0_6 = arith.constant 0 : index
    %c0_7 = arith.constant 0 : index
    %8 = vector.load %arg7[%c0_6, %c0_7] : memref<64x128xf32, #tpu.memory_space<vmem>>, vector<64x128xf32>
    tpu.vector_store %arg7[%c0_6, %c0_7], %7 {strides = array<i32>} : memref<64x128xf32, #tpu.memory_space<vmem>>, vector<64x128xf32>,
    %c0_i32_8 = arith.constant 0 : i32
    %9 = arith.cmpi eq, %arg2, %c0_i32_8 : i32
    %10 = arith.extui %9 : i1 to i32
    %c0_i32_9 = arith.constant 0 : i32
    %11 = arith.cmpi ne, %10, %c0_i32_9 : i32
    scf.if %11 {
      %c0_10 = arith.constant 0 : index
      %c0_11 = arith.constant 0 : index
      %12 = vector.load %arg7[%c0_10, %c0_11] : memref<64x128xf32, #tpu.memory_space<vmem>>, vector<64x128xf32>
      %c0_12 = arith.constant 0 : index
      %c0_13 = arith.constant 0 : index
      %13 = vector.load %arg5[%c0_12, %c0_13] : memref<1x128xf32, #tpu.memory_space<vmem>>, vector<1x128xf32>
      %14 = vector.broadcast %13 : vector<1x128xf32> to vector<64x128xf32>
      %15 = arith.addf %12, %14 : vector<64x128xf32>
      %cst_14 = arith.constant 0.000000e+00 : f32
      %16 = vector.broadcast %cst_14 : f32 to vector<64x128xf32>
      %17 = arith.maximumf %15, %16 : vector<64x128xf32>
      %c0_15 = arith.constant 0 : index
      %c0_16 = arith.constant 0 : index
      %18 = vector.load %arg6[%c0_15, %c0_16] : memref<64x128xf32, #tpu.memory_space<vmem>>, vector<64x128xf32>
      tpu.vector_store %arg6[%c0_15, %c0_16], %17 {strides = array<i32>} : memref<64x128xf32, #tpu.memory_space<vmem>>, vector<64x128xf32>,
    } else {
    }
    return
  }
  func.func @transform_0(%arg0: i32, %arg1: i32, %arg2: i32) -> (i32, i32) {
    %c0_i32 = arith.constant 0 : i32
    return %arg0, %arg2 : i32, i32
  }
  func.func @transform_1(%arg0: i32, %arg1: i32, %arg2: i32) -> (i32, i32) {
    %c0_i32 = arith.constant 0 : i32
    return %arg2, %arg1 : i32, i32
  }
  func.func @transform_2(%arg0: i32, %arg1: i32, %arg2: i32) -> (i32, i32) {
    %c0_i32 = arith.constant 0 : i32
    %c0_i32_0 = arith.constant 0 : i32
    return %c0_i32, %arg1 : i32, i32
  }
  func.func @transform_3(%arg0: i32, %arg1: i32, %arg2: i32) -> (i32, i32) {
    %c0_i32 = arith.constant 0 : i32
    return %arg0, %arg1 : i32, i32
  }
}

module attributes {stable_mosaic.version = 11 : i64} {
  func.func @_fused_matmul_kernel(%arg0: i32, %arg1: i32, %arg2: i32, %arg3: memref<64x512xbf16, #tpu.memory_space<vmem>>, %arg4: memref<512x128xbf16, #tpu.memory_space<vmem>>, %arg5: memref<1x128xf32, #tpu.memory_space<vmem>>, %arg6: memref<64x128xf32, #tpu.memory_space<vmem>>, %arg7: memref<64x128xf32, #tpu.memory_space<vmem>>, %arg8: memref<64x128xf32, #tpu.memory_space<vmem>>) attributes {dimension_semantics = [#tpu.dimension_semantics<parallel>, #tpu.dimension_semantics<parallel>, #tpu.dimension_semantics<arbitrary>], iteration_bounds = array<i64: 1, 1, 2>, scalar_prefetch = 0 : i64, scratch_operands = 1 : i64, tpu.core_type = #tpu.core_type<tc>, window_params = [{transform_indices = @transform_0, window_bounds = array<i64: 64, 512>}, {transform_indices = @transform_1, window_bounds = array<i64: 512, 128>}, {transform_indices = @transform_2, window_bounds = array<i64: 1, 128>}, {transform_indices = @transform_3, window_bounds = array<i64: 64, 128>}, {transform_indices = @transform_4, window_bounds = array<i64: 64, 128>}]} {
    %c0_i32 = arith.constant 0 : i32
    %0 = arith.cmpi eq, %arg2, %c0_i32 : i32
    %1 = arith.extui %0 : i1 to i32
    %c0_i32_0 = arith.constant 0 : i32
    %2 = arith.cmpi ne, %1, %c0_i32_0 : i32
    scf.if %2 {
      %cst_9 = arith.constant 0.000000e+00 : f32
      %12 = vector.broadcast %cst_9 : f32 to vector<64x128xf32>
      %c0_10 = arith.constant 0 : index
      %c0_11 = arith.constant 0 : index
      %13 = vector.load %arg8[%c0_10, %c0_11] : memref<64x128xf32, #tpu.memory_space<vmem>>, vector<64x128xf32>
      tpu.vector_store %arg8[%c0_10, %c0_11], %12 {strides = array<i32>} : memref<64x128xf32, #tpu.memory_space<vmem>>, vector<64x128xf32>,
    } else {
    }
    %c0 = arith.constant 0 : index
    %c0_1 = arith.constant 0 : index
    %3 = vector.load %arg8[%c0, %c0_1] : memref<64x128xf32, #tpu.memory_space<vmem>>, vector<64x128xf32>
    %c0_2 = arith.constant 0 : index
    %c0_3 = arith.constant 0 : index
    %4 = vector.load %arg3[%c0_2, %c0_3] : memref<64x512xbf16, #tpu.memory_space<vmem>>, vector<64x512xbf16>
    %c0_4 = arith.constant 0 : index
    %c0_5 = arith.constant 0 : index
    %5 = vector.load %arg4[%c0_4, %c0_5] : memref<512x128xbf16, #tpu.memory_space<vmem>>, vector<512x128xbf16>
    %cst = arith.constant dense<0.000000e+00> : vector<64x128xf32>
    %6 = tpu.matmul %4, %5, %cst {dimension_numbers = #tpu.dot_dimension_numbers<[1], [0], [0], [1], [0, 0, 1, 1], [], []>} : vector<64x512xbf16>, vector<512x128xbf16>, vector<64x128xf32> -> vector<64x128xf32>
    %7 = arith.addf %3, %6 : vector<64x128xf32>
    %c0_6 = arith.constant 0 : index
    %c0_7 = arith.constant 0 : index
    %8 = vector.load %arg8[%c0_6, %c0_7] : memref<64x128xf32, #tpu.memory_space<vmem>>, vector<64x128xf32>
    tpu.vector_store %arg8[%c0_6, %c0_7], %7 {strides = array<i32>} : memref<64x128xf32, #tpu.memory_space<vmem>>, vector<64x128xf32>,
    %c1_i32 = arith.constant 1 : i32
    %9 = arith.cmpi eq, %arg2, %c1_i32 : i32
    %10 = arith.extui %9 : i1 to i32
    %c0_i32_8 = arith.constant 0 : i32
    %11 = arith.cmpi ne, %10, %c0_i32_8 : i32
    scf.if %11 {
      %c0_9 = arith.constant 0 : index
      %c0_10 = arith.constant 0 : index
      %12 = vector.load %arg8[%c0_9, %c0_10] : memref<64x128xf32, #tpu.memory_space<vmem>>, vector<64x128xf32>
      %c0_11 = arith.constant 0 : index
      %c0_12 = arith.constant 0 : index
      %13 = vector.load %arg5[%c0_11, %c0_12] : memref<1x128xf32, #tpu.memory_space<vmem>>, vector<1x128xf32>
      %14 = vector.broadcast %13 : vector<1x128xf32> to vector<64x128xf32>
      %15 = arith.addf %12, %14 : vector<64x128xf32>
      %c0_13 = arith.constant 0 : index
      %c0_14 = arith.constant 0 : index
      %16 = vector.load %arg6[%c0_13, %c0_14] : memref<64x128xf32, #tpu.memory_space<vmem>>, vector<64x128xf32>
      %17 = arith.addf %15, %16 : vector<64x128xf32>
      %cst_15 = arith.constant 0.000000e+00 : f32
      %18 = vector.broadcast %cst_15 : f32 to vector<64x128xf32>
      %19 = arith.maximumf %17, %18 : vector<64x128xf32>
      %c0_16 = arith.constant 0 : index
      %c0_17 = arith.constant 0 : index
      %20 = vector.load %arg7[%c0_16, %c0_17] : memref<64x128xf32, #tpu.memory_space<vmem>>, vector<64x128xf32>
      tpu.vector_store %arg7[%c0_16, %c0_17], %19 {strides = array<i32>} : memref<64x128xf32, #tpu.memory_space<vmem>>, vector<64x128xf32>,
    } else {
    }
    return
  }
  func.func @transform_0(%arg0: i32, %arg1: i32, %arg2: i32) -> (i32, i32) {
    %c0_i32 = arith.constant 0 : i32
    return %arg0, %arg2 : i32, i32
  }
  func.func @transform_1(%arg0: i32, %arg1: i32, %arg2: i32) -> (i32, i32) {
    %c0_i32 = arith.constant 0 : i32
    return %arg2, %arg1 : i32, i32
  }
  func.func @transform_2(%arg0: i32, %arg1: i32, %arg2: i32) -> (i32, i32) {
    %c0_i32 = arith.constant 0 : i32
    %c0_i32_0 = arith.constant 0 : i32
    return %c0_i32, %arg1 : i32, i32
  }
  func.func @transform_3(%arg0: i32, %arg1: i32, %arg2: i32) -> (i32, i32) {
    %c0_i32 = arith.constant 0 : i32
    return %arg0, %arg1 : i32, i32
  }
  func.func @transform_4(%arg0: i32, %arg1: i32, %arg2: i32) -> (i32, i32) {
    %c0_i32 = arith.constant 0 : i32
    return %arg0, %arg1 : i32, i32
  }
}

module attributes {stable_mosaic.version = 11 : i64} {
  func.func @_fused_matmul_kernel(%arg0: i32, %arg1: i32, %arg2: i32, %arg3: memref<32x512xbf16, #tpu.memory_space<vmem>>, %arg4: memref<512x128xbf16, #tpu.memory_space<vmem>>, %arg5: memref<1x128xf32, #tpu.memory_space<vmem>>, %arg6: memref<32x128xf32, #tpu.memory_space<vmem>>, %arg7: memref<32x128xf32, #tpu.memory_space<vmem>>) attributes {dimension_semantics = [#tpu.dimension_semantics<parallel>, #tpu.dimension_semantics<parallel>, #tpu.dimension_semantics<arbitrary>], iteration_bounds = array<i64: 1, 1, 2>, scalar_prefetch = 0 : i64, scratch_operands = 1 : i64, tpu.core_type = #tpu.core_type<tc>, window_params = [{transform_indices = @transform_0, window_bounds = array<i64: 32, 512>}, {transform_indices = @transform_1, window_bounds = array<i64: 512, 128>}, {transform_indices = @transform_2, window_bounds = array<i64: 1, 128>}, {transform_indices = @transform_3, window_bounds = array<i64: 32, 128>}]} {
    %c0_i32 = arith.constant 0 : i32
    %0 = arith.cmpi eq, %arg2, %c0_i32 : i32
    %1 = arith.extui %0 : i1 to i32
    %c0_i32_0 = arith.constant 0 : i32
    %2 = arith.cmpi ne, %1, %c0_i32_0 : i32
    scf.if %2 {
      %cst_9 = arith.constant 0.000000e+00 : f32
      %12 = vector.broadcast %cst_9 : f32 to vector<32x128xf32>
      %c0_10 = arith.constant 0 : index
      %c0_11 = arith.constant 0 : index
      %13 = vector.load %arg7[%c0_10, %c0_11] : memref<32x128xf32, #tpu.memory_space<vmem>>, vector<32x128xf32>
      tpu.vector_store %arg7[%c0_10, %c0_11], %12 {strides = array<i32>} : memref<32x128xf32, #tpu.memory_space<vmem>>, vector<32x128xf32>,
    } else {
    }
    %c0 = arith.constant 0 : index
    %c0_1 = arith.constant 0 : index
    %3 = vector.load %arg7[%c0, %c0_1] : memref<32x128xf32, #tpu.memory_space<vmem>>, vector<32x128xf32>
    %c0_2 = arith.constant 0 : index
    %c0_3 = arith.constant 0 : index
    %4 = vector.load %arg3[%c0_2, %c0_3] : memref<32x512xbf16, #tpu.memory_space<vmem>>, vector<32x512xbf16>
    %c0_4 = arith.constant 0 : index
    %c0_5 = arith.constant 0 : index
    %5 = vector.load %arg4[%c0_4, %c0_5] : memref<512x128xbf16, #tpu.memory_space<vmem>>, vector<512x128xbf16>
    %cst = arith.constant dense<0.000000e+00> : vector<32x128xf32>
    %6 = tpu.matmul %4, %5, %cst {dimension_numbers = #tpu.dot_dimension_numbers<[1], [0], [0], [1], [0, 0, 1, 1], [], []>} : vector<32x512xbf16>, vector<512x128xbf16>, vector<32x128xf32> -> vector<32x128xf32>
    %7 = arith.addf %3, %6 : vector<32x128xf32>
    %c0_6 = arith.constant 0 : index
    %c0_7 = arith.constant 0 : index
    %8 = vector.load %arg7[%c0_6, %c0_7] : memref<32x128xf32, #tpu.memory_space<vmem>>, vector<32x128xf32>
    tpu.vector_store %arg7[%c0_6, %c0_7], %7 {strides = array<i32>} : memref<32x128xf32, #tpu.memory_space<vmem>>, vector<32x128xf32>,
    %c1_i32 = arith.constant 1 : i32
    %9 = arith.cmpi eq, %arg2, %c1_i32 : i32
    %10 = arith.extui %9 : i1 to i32
    %c0_i32_8 = arith.constant 0 : i32
    %11 = arith.cmpi ne, %10, %c0_i32_8 : i32
    scf.if %11 {
      %c0_9 = arith.constant 0 : index
      %c0_10 = arith.constant 0 : index
      %12 = vector.load %arg7[%c0_9, %c0_10] : memref<32x128xf32, #tpu.memory_space<vmem>>, vector<32x128xf32>
      %c0_11 = arith.constant 0 : index
      %c0_12 = arith.constant 0 : index
      %13 = vector.load %arg5[%c0_11, %c0_12] : memref<1x128xf32, #tpu.memory_space<vmem>>, vector<1x128xf32>
      %14 = vector.broadcast %13 : vector<1x128xf32> to vector<32x128xf32>
      %15 = arith.addf %12, %14 : vector<32x128xf32>
      %cst_13 = arith.constant 0.000000e+00 : f32
      %16 = vector.broadcast %cst_13 : f32 to vector<32x128xf32>
      %17 = arith.maximumf %15, %16 : vector<32x128xf32>
      %c0_14 = arith.constant 0 : index
      %c0_15 = arith.constant 0 : index
      %18 = vector.load %arg6[%c0_14, %c0_15] : memref<32x128xf32, #tpu.memory_space<vmem>>, vector<32x128xf32>
      tpu.vector_store %arg6[%c0_14, %c0_15], %17 {strides = array<i32>} : memref<32x128xf32, #tpu.memory_space<vmem>>, vector<32x128xf32>,
    } else {
    }
    return
  }
  func.func @transform_0(%arg0: i32, %arg1: i32, %arg2: i32) -> (i32, i32) {
    %c0_i32 = arith.constant 0 : i32
    return %arg0, %arg2 : i32, i32
  }
  func.func @transform_1(%arg0: i32, %arg1: i32, %arg2: i32) -> (i32, i32) {
    %c0_i32 = arith.constant 0 : i32
    return %arg2, %arg1 : i32, i32
  }
  func.func @transform_2(%arg0: i32, %arg1: i32, %arg2: i32) -> (i32, i32) {
    %c0_i32 = arith.constant 0 : i32
    %c0_i32_0 = arith.constant 0 : i32
    return %c0_i32, %arg1 : i32, i32
  }
  func.func @transform_3(%arg0: i32, %arg1: i32, %arg2: i32) -> (i32, i32) {
    %c0_i32 = arith.constant 0 : i32
    return %arg0, %arg1 : i32, i32
  }
}

module attributes {stable_mosaic.version = 11 : i64} {
  func.func @_fused_matmul_kernel(%arg0: i32, %arg1: i32, %arg2: i32, %arg3: memref<32x512xbf16, #tpu.memory_space<vmem>>, %arg4: memref<512x128xbf16, #tpu.memory_space<vmem>>, %arg5: memref<1x128xf32, #tpu.memory_space<vmem>>, %arg6: memref<32x128xf32, #tpu.memory_space<vmem>>, %arg7: memref<32x128xf32, #tpu.memory_space<vmem>>) attributes {dimension_semantics = [#tpu.dimension_semantics<parallel>, #tpu.dimension_semantics<parallel>, #tpu.dimension_semantics<arbitrary>], iteration_bounds = array<i64: 1, 1, 2>, scalar_prefetch = 0 : i64, scratch_operands = 1 : i64, tpu.core_type = #tpu.core_type<tc>, window_params = [{transform_indices = @transform_0, window_bounds = array<i64: 32, 512>}, {transform_indices = @transform_1, window_bounds = array<i64: 512, 128>}, {transform_indices = @transform_2, window_bounds = array<i64: 1, 128>}, {transform_indices = @transform_3, window_bounds = array<i64: 32, 128>}]} {
    %c0_i32 = arith.constant 0 : i32
    %0 = arith.cmpi eq, %arg2, %c0_i32 : i32
    %1 = arith.extui %0 : i1 to i32
    %c0_i32_0 = arith.constant 0 : i32
    %2 = arith.cmpi ne, %1, %c0_i32_0 : i32
    scf.if %2 {
      %cst_9 = arith.constant 0.000000e+00 : f32
      %12 = vector.broadcast %cst_9 : f32 to vector<32x128xf32>
      %c0_10 = arith.constant 0 : index
      %c0_11 = arith.constant 0 : index
      %13 = vector.load %arg7[%c0_10, %c0_11] : memref<32x128xf32, #tpu.memory_space<vmem>>, vector<32x128xf32>
      tpu.vector_store %arg7[%c0_10, %c0_11], %12 {strides = array<i32>} : memref<32x128xf32, #tpu.memory_space<vmem>>, vector<32x128xf32>,
    } else {
    }
    %c0 = arith.constant 0 : index
    %c0_1 = arith.constant 0 : index
    %3 = vector.load %arg7[%c0, %c0_1] : memref<32x128xf32, #tpu.memory_space<vmem>>, vector<32x128xf32>
    %c0_2 = arith.constant 0 : index
    %c0_3 = arith.constant 0 : index
    %4 = vector.load %arg3[%c0_2, %c0_3] : memref<32x512xbf16, #tpu.memory_space<vmem>>, vector<32x512xbf16>
    %c0_4 = arith.constant 0 : index
    %c0_5 = arith.constant 0 : index
    %5 = vector.load %arg4[%c0_4, %c0_5] : memref<512x128xbf16, #tpu.memory_space<vmem>>, vector<512x128xbf16>
    %cst = arith.constant dense<0.000000e+00> : vector<32x128xf32>
    %6 = tpu.matmul %4, %5, %cst {dimension_numbers = #tpu.dot_dimension_numbers<[1], [0], [0], [1], [0, 0, 1, 1], [], []>} : vector<32x512xbf16>, vector<512x128xbf16>, vector<32x128xf32> -> vector<32x128xf32>
    %7 = arith.addf %3, %6 : vector<32x128xf32>
    %c0_6 = arith.constant 0 : index
    %c0_7 = arith.constant 0 : index
    %8 = vector.load %arg7[%c0_6, %c0_7] : memref<32x128xf32, #tpu.memory_space<vmem>>, vector<32x128xf32>
    tpu.vector_store %arg7[%c0_6, %c0_7], %7 {strides = array<i32>} : memref<32x128xf32, #tpu.memory_space<vmem>>, vector<32x128xf32>,
    %c1_i32 = arith.constant 1 : i32
    %9 = arith.cmpi eq, %arg2, %c1_i32 : i32
    %10 = arith.extui %9 : i1 to i32
    %c0_i32_8 = arith.constant 0 : i32
    %11 = arith.cmpi ne, %10, %c0_i32_8 : i32
    scf.if %11 {
      %c0_9 = arith.constant 0 : index
      %c0_10 = arith.constant 0 : index
      %12 = vector.load %arg7[%c0_9, %c0_10] : memref<32x128xf32, #tpu.memory_space<vmem>>, vector<32x128xf32>
      %c0_11 = arith.constant 0 : index
      %c0_12 = arith.constant 0 : index
      %13 = vector.load %arg5[%c0_11, %c0_12] : memref<1x128xf32, #tpu.memory_space<vmem>>, vector<1x128xf32>
      %14 = vector.broadcast %13 : vector<1x128xf32> to vector<32x128xf32>
      %15 = arith.addf %12, %14 : vector<32x128xf32>
      %c0_13 = arith.constant 0 : index
      %c0_14 = arith.constant 0 : index
      %16 = vector.load %arg6[%c0_13, %c0_14] : memref<32x128xf32, #tpu.memory_space<vmem>>, vector<32x128xf32>
      tpu.vector_store %arg6[%c0_13, %c0_14], %15 {strides = array<i32>} : memref<32x128xf32, #tpu.memory_space<vmem>>, vector<32x128xf32>,
    } else {
    }
    return
  }
  func.func @transform_0(%arg0: i32, %arg1: i32, %arg2: i32) -> (i32, i32) {
    %c0_i32 = arith.constant 0 : i32
    return %arg0, %arg2 : i32, i32
  }
  func.func @transform_1(%arg0: i32, %arg1: i32, %arg2: i32) -> (i32, i32) {
    %c0_i32 = arith.constant 0 : i32
    return %arg2, %arg1 : i32, i32
  }
  func.func @transform_2(%arg0: i32, %arg1: i32, %arg2: i32) -> (i32, i32) {
    %c0_i32 = arith.constant 0 : i32
    %c0_i32_0 = arith.constant 0 : i32
    return %c0_i32, %arg1 : i32, i32
  }
  func.func @transform_3(%arg0: i32, %arg1: i32, %arg2: i32) -> (i32, i32) {
    %c0_i32 = arith.constant 0 : i32
    return %arg0, %arg1 : i32, i32
  }
}

module attributes {stable_mosaic.version = 11 : i64} {
  func.func @_fused_matmul_kernel(%arg0: i32, %arg1: i32, %arg2: i32, %arg3: memref<32x512xbf16, #tpu.memory_space<vmem>>, %arg4: memref<512x128xbf16, #tpu.memory_space<vmem>>, %arg5: memref<1x128xf32, #tpu.memory_space<vmem>>, %arg6: memref<32x128xf32, #tpu.memory_space<vmem>>, %arg7: memref<32x128xf32, #tpu.memory_space<vmem>>, %arg8: memref<32x128xf32, #tpu.memory_space<vmem>>) attributes {dimension_semantics = [#tpu.dimension_semantics<parallel>, #tpu.dimension_semantics<parallel>, #tpu.dimension_semantics<arbitrary>], iteration_bounds = array<i64: 1, 1, 3>, scalar_prefetch = 0 : i64, scratch_operands = 1 : i64, tpu.core_type = #tpu.core_type<tc>, window_params = [{transform_indices = @transform_0, window_bounds = array<i64: 32, 512>}, {transform_indices = @transform_1, window_bounds = array<i64: 512, 128>}, {transform_indices = @transform_2, window_bounds = array<i64: 1, 128>}, {transform_indices = @transform_3, window_bounds = array<i64: 32, 128>}, {transform_indices = @transform_4, window_bounds = array<i64: 32, 128>}]} {
    %c0_i32 = arith.constant 0 : i32
    %0 = arith.cmpi eq, %arg2, %c0_i32 : i32
    %1 = arith.extui %0 : i1 to i32
    %c0_i32_0 = arith.constant 0 : i32
    %2 = arith.cmpi ne, %1, %c0_i32_0 : i32
    scf.if %2 {
      %cst_9 = arith.constant 0.000000e+00 : f32
      %12 = vector.broadcast %cst_9 : f32 to vector<32x128xf32>
      %c0_10 = arith.constant 0 : index
      %c0_11 = arith.constant 0 : index
      %13 = vector.load %arg8[%c0_10, %c0_11] : memref<32x128xf32, #tpu.memory_space<vmem>>, vector<32x128xf32>
      tpu.vector_store %arg8[%c0_10, %c0_11], %12 {strides = array<i32>} : memref<32x128xf32, #tpu.memory_space<vmem>>, vector<32x128xf32>,
    } else {
    }
    %c0 = arith.constant 0 : index
    %c0_1 = arith.constant 0 : index
    %3 = vector.load %arg8[%c0, %c0_1] : memref<32x128xf32, #tpu.memory_space<vmem>>, vector<32x128xf32>
    %c0_2 = arith.constant 0 : index
    %c0_3 = arith.constant 0 : index
    %4 = vector.load %arg3[%c0_2, %c0_3] : memref<32x512xbf16, #tpu.memory_space<vmem>>, vector<32x512xbf16>
    %c0_4 = arith.constant 0 : index
    %c0_5 = arith.constant 0 : index
    %5 = vector.load %arg4[%c0_4, %c0_5] : memref<512x128xbf16, #tpu.memory_space<vmem>>, vector<512x128xbf16>
    %cst = arith.constant dense<0.000000e+00> : vector<32x128xf32>
    %6 = tpu.matmul %4, %5, %cst {dimension_numbers = #tpu.dot_dimension_numbers<[1], [0], [0], [1], [0, 0, 1, 1], [], []>} : vector<32x512xbf16>, vector<512x128xbf16>, vector<32x128xf32> -> vector<32x128xf32>
    %7 = arith.addf %3, %6 : vector<32x128xf32>
    %c0_6 = arith.constant 0 : index
    %c0_7 = arith.constant 0 : index
    %8 = vector.load %arg8[%c0_6, %c0_7] : memref<32x128xf32, #tpu.memory_space<vmem>>, vector<32x128xf32>
    tpu.vector_store %arg8[%c0_6, %c0_7], %7 {strides = array<i32>} : memref<32x128xf32, #tpu.memory_space<vmem>>, vector<32x128xf32>,
    %c2_i32 = arith.constant 2 : i32
    %9 = arith.cmpi eq, %arg2, %c2_i32 : i32
    %10 = arith.extui %9 : i1 to i32
    %c0_i32_8 = arith.constant 0 : i32
    %11 = arith.cmpi ne, %10, %c0_i32_8 : i32
    scf.if %11 {
      %c0_9 = arith.constant 0 : index
      %c0_10 = arith.constant 0 : index
      %12 = vector.load %arg8[%c0_9, %c0_10] : memref<32x128xf32, #tpu.memory_space<vmem>>, vector<32x128xf32>
      %c0_11 = arith.constant 0 : index
      %c0_12 = arith.constant 0 : index
      %13 = vector.load %arg5[%c0_11, %c0_12] : memref<1x128xf32, #tpu.memory_space<vmem>>, vector<1x128xf32>
      %14 = vector.broadcast %13 : vector<1x128xf32> to vector<32x128xf32>
      %15 = arith.addf %12, %14 : vector<32x128xf32>
      %c0_13 = arith.constant 0 : index
      %c0_14 = arith.constant 0 : index
      %16 = vector.load %arg6[%c0_13, %c0_14] : memref<32x128xf32, #tpu.memory_space<vmem>>, vector<32x128xf32>
      %17 = arith.addf %15, %16 : vector<32x128xf32>
      %cst_15 = arith.constant 0.000000e+00 : f32
      %18 = vector.broadcast %cst_15 : f32 to vector<32x128xf32>
      %19 = arith.maximumf %17, %18 : vector<32x128xf32>
      %c0_16 = arith.constant 0 : index
      %c0_17 = arith.constant 0 : index
      %20 = vector.load %arg7[%c0_16, %c0_17] : memref<32x128xf32, #tpu.memory_space<vmem>>, vector<32x128xf32>
      tpu.vector_store %arg7[%c0_16, %c0_17], %19 {strides = array<i32>} : memref<32x128xf32, #tpu.memory_space<vmem>>, vector<32x128xf32>,
    } else {
    }
    return
  }
  func.func @transform_0(%arg0: i32, %arg1: i32, %arg2: i32) -> (i32, i32) {
    %c0_i32 = arith.constant 0 : i32
    return %arg0, %arg2 : i32, i32
  }
  func.func @transform_1(%arg0: i32, %arg1: i32, %arg2: i32) -> (i32, i32) {
    %c0_i32 = arith.constant 0 : i32
    return %arg2, %arg1 : i32, i32
  }
  func.func @transform_2(%arg0: i32, %arg1: i32, %arg2: i32) -> (i32, i32) {
    %c0_i32 = arith.constant 0 : i32
    %c0_i32_0 = arith.constant 0 : i32
    return %c0_i32, %arg1 : i32, i32
  }
  func.func @transform_3(%arg0: i32, %arg1: i32, %arg2: i32) -> (i32, i32) {
    %c0_i32 = arith.constant 0 : i32
    return %arg0, %arg1 : i32, i32
  }
  func.func @transform_4(%arg0: i32, %arg1: i32, %arg2: i32) -> (i32, i32) {
    %c0_i32 = arith.constant 0 : i32
    return %arg0, %arg1 : i32, i32
  }
}

module attributes {stable_mosaic.version = 11 : i64} {
  func.func @_fused_matmul_kernel(%arg0: i32, %arg1: i32, %arg2: i32, %arg3: memref<16x512xbf16, #tpu.memory_space<vmem>>, %arg4: memref<512x256xbf16, #tpu.memory_space<vmem>>, %arg5: memref<1x256xf32, #tpu.memory_space<vmem>>, %arg6: memref<16x256xf32, #tpu.memory_space<vmem>>, %arg7: memref<16x256xf32, #tpu.memory_space<vmem>>) attributes {dimension_semantics = [#tpu.dimension_semantics<parallel>, #tpu.dimension_semantics<parallel>, #tpu.dimension_semantics<arbitrary>], iteration_bounds = array<i64: 1, 1, 3>, scalar_prefetch = 0 : i64, scratch_operands = 1 : i64, tpu.core_type = #tpu.core_type<tc>, window_params = [{transform_indices = @transform_0, window_bounds = array<i64: 16, 512>}, {transform_indices = @transform_1, window_bounds = array<i64: 512, 256>}, {transform_indices = @transform_2, window_bounds = array<i64: 1, 256>}, {transform_indices = @transform_3, window_bounds = array<i64: 16, 256>}]} {
    %c0_i32 = arith.constant 0 : i32
    %0 = arith.cmpi eq, %arg2, %c0_i32 : i32
    %1 = arith.extui %0 : i1 to i32
    %c0_i32_0 = arith.constant 0 : i32
    %2 = arith.cmpi ne, %1, %c0_i32_0 : i32
    scf.if %2 {
      %cst_9 = arith.constant 0.000000e+00 : f32
      %12 = vector.broadcast %cst_9 : f32 to vector<16x256xf32>
      %c0_10 = arith.constant 0 : index
      %c0_11 = arith.constant 0 : index
      %13 = vector.load %arg7[%c0_10, %c0_11] : memref<16x256xf32, #tpu.memory_space<vmem>>, vector<16x256xf32>
      tpu.vector_store %arg7[%c0_10, %c0_11], %12 {strides = array<i32>} : memref<16x256xf32, #tpu.memory_space<vmem>>, vector<16x256xf32>,
    } else {
    }
    %c0 = arith.constant 0 : index
    %c0_1 = arith.constant 0 : index
    %3 = vector.load %arg7[%c0, %c0_1] : memref<16x256xf32, #tpu.memory_space<vmem>>, vector<16x256xf32>
    %c0_2 = arith.constant 0 : index
    %c0_3 = arith.constant 0 : index
    %4 = vector.load %arg3[%c0_2, %c0_3] : memref<16x512xbf16, #tpu.memory_space<vmem>>, vector<16x512xbf16>
    %c0_4 = arith.constant 0 : index
    %c0_5 = arith.constant 0 : index
    %5 = vector.load %arg4[%c0_4, %c0_5] : memref<512x256xbf16, #tpu.memory_space<vmem>>, vector<512x256xbf16>
    %cst = arith.constant dense<0.000000e+00> : vector<16x256xf32>
    %6 = tpu.matmul %4, %5, %cst {dimension_numbers = #tpu.dot_dimension_numbers<[1], [0], [0], [1], [0, 0, 1, 1], [], []>} : vector<16x512xbf16>, vector<512x256xbf16>, vector<16x256xf32> -> vector<16x256xf32>
    %7 = arith.addf %3, %6 : vector<16x256xf32>
    %c0_6 = arith.constant 0 : index
    %c0_7 = arith.constant 0 : index
    %8 = vector.load %arg7[%c0_6, %c0_7] : memref<16x256xf32, #tpu.memory_space<vmem>>, vector<16x256xf32>
    tpu.vector_store %arg7[%c0_6, %c0_7], %7 {strides = array<i32>} : memref<16x256xf32, #tpu.memory_space<vmem>>, vector<16x256xf32>,
    %c2_i32 = arith.constant 2 : i32
    %9 = arith.cmpi eq, %arg2, %c2_i32 : i32
    %10 = arith.extui %9 : i1 to i32
    %c0_i32_8 = arith.constant 0 : i32
    %11 = arith.cmpi ne, %10, %c0_i32_8 : i32
    scf.if %11 {
      %c0_9 = arith.constant 0 : index
      %c0_10 = arith.constant 0 : index
      %12 = vector.load %arg7[%c0_9, %c0_10] : memref<16x256xf32, #tpu.memory_space<vmem>>, vector<16x256xf32>
      %c0_11 = arith.constant 0 : index
      %c0_12 = arith.constant 0 : index
      %13 = vector.load %arg5[%c0_11, %c0_12] : memref<1x256xf32, #tpu.memory_space<vmem>>, vector<1x256xf32>
      %14 = vector.broadcast %13 : vector<1x256xf32> to vector<16x256xf32>
      %15 = arith.addf %12, %14 : vector<16x256xf32>
      %cst_13 = arith.constant 0.000000e+00 : f32
      %16 = vector.broadcast %cst_13 : f32 to vector<16x256xf32>
      %17 = arith.maximumf %15, %16 : vector<16x256xf32>
      %c0_14 = arith.constant 0 : index
      %c0_15 = arith.constant 0 : index
      %18 = vector.load %arg6[%c0_14, %c0_15] : memref<16x256xf32, #tpu.memory_space<vmem>>, vector<16x256xf32>
      tpu.vector_store %arg6[%c0_14, %c0_15], %17 {strides = array<i32>} : memref<16x256xf32, #tpu.memory_space<vmem>>, vector<16x256xf32>,
    } else {
    }
    return
  }
  func.func @transform_0(%arg0: i32, %arg1: i32, %arg2: i32) -> (i32, i32) {
    %c0_i32 = arith.constant 0 : i32
    return %arg0, %arg2 : i32, i32
  }
  func.func @transform_1(%arg0: i32, %arg1: i32, %arg2: i32) -> (i32, i32) {
    %c0_i32 = arith.constant 0 : i32
    return %arg2, %arg1 : i32, i32
  }
  func.func @transform_2(%arg0: i32, %arg1: i32, %arg2: i32) -> (i32, i32) {
    %c0_i32 = arith.constant 0 : i32
    %c0_i32_0 = arith.constant 0 : i32
    return %c0_i32, %arg1 : i32, i32
  }
  func.func @transform_3(%arg0: i32, %arg1: i32, %arg2: i32) -> (i32, i32) {
    %c0_i32 = arith.constant 0 : i32
    return %arg0, %arg1 : i32, i32
  }
}

module attributes {stable_mosaic.version = 11 : i64} {
  func.func @_fused_matmul_kernel(%arg0: i32, %arg1: i32, %arg2: i32, %arg3: memref<16x512xbf16, #tpu.memory_space<vmem>>, %arg4: memref<512x256xbf16, #tpu.memory_space<vmem>>, %arg5: memref<1x256xf32, #tpu.memory_space<vmem>>, %arg6: memref<16x256xf32, #tpu.memory_space<vmem>>, %arg7: memref<16x256xf32, #tpu.memory_space<vmem>>) attributes {dimension_semantics = [#tpu.dimension_semantics<parallel>, #tpu.dimension_semantics<parallel>, #tpu.dimension_semantics<arbitrary>], iteration_bounds = array<i64: 1, 1, 3>, scalar_prefetch = 0 : i64, scratch_operands = 1 : i64, tpu.core_type = #tpu.core_type<tc>, window_params = [{transform_indices = @transform_0, window_bounds = array<i64: 16, 512>}, {transform_indices = @transform_1, window_bounds = array<i64: 512, 256>}, {transform_indices = @transform_2, window_bounds = array<i64: 1, 256>}, {transform_indices = @transform_3, window_bounds = array<i64: 16, 256>}]} {
    %c0_i32 = arith.constant 0 : i32
    %0 = arith.cmpi eq, %arg2, %c0_i32 : i32
    %1 = arith.extui %0 : i1 to i32
    %c0_i32_0 = arith.constant 0 : i32
    %2 = arith.cmpi ne, %1, %c0_i32_0 : i32
    scf.if %2 {
      %cst_9 = arith.constant 0.000000e+00 : f32
      %12 = vector.broadcast %cst_9 : f32 to vector<16x256xf32>
      %c0_10 = arith.constant 0 : index
      %c0_11 = arith.constant 0 : index
      %13 = vector.load %arg7[%c0_10, %c0_11] : memref<16x256xf32, #tpu.memory_space<vmem>>, vector<16x256xf32>
      tpu.vector_store %arg7[%c0_10, %c0_11], %12 {strides = array<i32>} : memref<16x256xf32, #tpu.memory_space<vmem>>, vector<16x256xf32>,
    } else {
    }
    %c0 = arith.constant 0 : index
    %c0_1 = arith.constant 0 : index
    %3 = vector.load %arg7[%c0, %c0_1] : memref<16x256xf32, #tpu.memory_space<vmem>>, vector<16x256xf32>
    %c0_2 = arith.constant 0 : index
    %c0_3 = arith.constant 0 : index
    %4 = vector.load %arg3[%c0_2, %c0_3] : memref<16x512xbf16, #tpu.memory_space<vmem>>, vector<16x512xbf16>
    %c0_4 = arith.constant 0 : index
    %c0_5 = arith.constant 0 : index
    %5 = vector.load %arg4[%c0_4, %c0_5] : memref<512x256xbf16, #tpu.memory_space<vmem>>, vector<512x256xbf16>
    %cst = arith.constant dense<0.000000e+00> : vector<16x256xf32>
    %6 = tpu.matmul %4, %5, %cst {dimension_numbers = #tpu.dot_dimension_numbers<[1], [0], [0], [1], [0, 0, 1, 1], [], []>} : vector<16x512xbf16>, vector<512x256xbf16>, vector<16x256xf32> -> vector<16x256xf32>
    %7 = arith.addf %3, %6 : vector<16x256xf32>
    %c0_6 = arith.constant 0 : index
    %c0_7 = arith.constant 0 : index
    %8 = vector.load %arg7[%c0_6, %c0_7] : memref<16x256xf32, #tpu.memory_space<vmem>>, vector<16x256xf32>
    tpu.vector_store %arg7[%c0_6, %c0_7], %7 {strides = array<i32>} : memref<16x256xf32, #tpu.memory_space<vmem>>, vector<16x256xf32>,
    %c2_i32 = arith.constant 2 : i32
    %9 = arith.cmpi eq, %arg2, %c2_i32 : i32
    %10 = arith.extui %9 : i1 to i32
    %c0_i32_8 = arith.constant 0 : i32
    %11 = arith.cmpi ne, %10, %c0_i32_8 : i32
    scf.if %11 {
      %c0_9 = arith.constant 0 : index
      %c0_10 = arith.constant 0 : index
      %12 = vector.load %arg7[%c0_9, %c0_10] : memref<16x256xf32, #tpu.memory_space<vmem>>, vector<16x256xf32>
      %c0_11 = arith.constant 0 : index
      %c0_12 = arith.constant 0 : index
      %13 = vector.load %arg5[%c0_11, %c0_12] : memref<1x256xf32, #tpu.memory_space<vmem>>, vector<1x256xf32>
      %14 = vector.broadcast %13 : vector<1x256xf32> to vector<16x256xf32>
      %15 = arith.addf %12, %14 : vector<16x256xf32>
      %c0_13 = arith.constant 0 : index
      %c0_14 = arith.constant 0 : index
      %16 = vector.load %arg6[%c0_13, %c0_14] : memref<16x256xf32, #tpu.memory_space<vmem>>, vector<16x256xf32>
      tpu.vector_store %arg6[%c0_13, %c0_14], %15 {strides = array<i32>} : memref<16x256xf32, #tpu.memory_space<vmem>>, vector<16x256xf32>,
    } else {
    }
    return
  }
  func.func @transform_0(%arg0: i32, %arg1: i32, %arg2: i32) -> (i32, i32) {
    %c0_i32 = arith.constant 0 : i32
    return %arg0, %arg2 : i32, i32
  }
  func.func @transform_1(%arg0: i32, %arg1: i32, %arg2: i32) -> (i32, i32) {
    %c0_i32 = arith.constant 0 : i32
    return %arg2, %arg1 : i32, i32
  }
  func.func @transform_2(%arg0: i32, %arg1: i32, %arg2: i32) -> (i32, i32) {
    %c0_i32 = arith.constant 0 : i32
    %c0_i32_0 = arith.constant 0 : i32
    return %c0_i32, %arg1 : i32, i32
  }
  func.func @transform_3(%arg0: i32, %arg1: i32, %arg2: i32) -> (i32, i32) {
    %c0_i32 = arith.constant 0 : i32
    return %arg0, %arg1 : i32, i32
  }
}

module attributes {stable_mosaic.version = 11 : i64} {
  func.func @_fused_matmul_kernel(%arg0: i32, %arg1: i32, %arg2: i32, %arg3: memref<16x512xbf16, #tpu.memory_space<vmem>>, %arg4: memref<512x256xbf16, #tpu.memory_space<vmem>>, %arg5: memref<1x256xf32, #tpu.memory_space<vmem>>, %arg6: memref<16x256xf32, #tpu.memory_space<vmem>>, %arg7: memref<16x256xf32, #tpu.memory_space<vmem>>, %arg8: memref<16x256xf32, #tpu.memory_space<vmem>>) attributes {dimension_semantics = [#tpu.dimension_semantics<parallel>, #tpu.dimension_semantics<parallel>, #tpu.dimension_semantics<arbitrary>], iteration_bounds = array<i64: 1, 1, 5>, scalar_prefetch = 0 : i64, scratch_operands = 1 : i64, tpu.core_type = #tpu.core_type<tc>, window_params = [{transform_indices = @transform_0, window_bounds = array<i64: 16, 512>}, {transform_indices = @transform_1, window_bounds = array<i64: 512, 256>}, {transform_indices = @transform_2, window_bounds = array<i64: 1, 256>}, {transform_indices = @transform_3, window_bounds = array<i64: 16, 256>}, {transform_indices = @transform_4, window_bounds = array<i64: 16, 256>}]} {
    %c0_i32 = arith.constant 0 : i32
    %0 = arith.cmpi eq, %arg2, %c0_i32 : i32
    %1 = arith.extui %0 : i1 to i32
    %c0_i32_0 = arith.constant 0 : i32
    %2 = arith.cmpi ne, %1, %c0_i32_0 : i32
    scf.if %2 {
      %cst_9 = arith.constant 0.000000e+00 : f32
      %12 = vector.broadcast %cst_9 : f32 to vector<16x256xf32>
      %c0_10 = arith.constant 0 : index
      %c0_11 = arith.constant 0 : index
      %13 = vector.load %arg8[%c0_10, %c0_11] : memref<16x256xf32, #tpu.memory_space<vmem>>, vector<16x256xf32>
      tpu.vector_store %arg8[%c0_10, %c0_11], %12 {strides = array<i32>} : memref<16x256xf32, #tpu.memory_space<vmem>>, vector<16x256xf32>,
    } else {
    }
    %c0 = arith.constant 0 : index
    %c0_1 = arith.constant 0 : index
    %3 = vector.load %arg8[%c0, %c0_1] : memref<16x256xf32, #tpu.memory_space<vmem>>, vector<16x256xf32>
    %c0_2 = arith.constant 0 : index
    %c0_3 = arith.constant 0 : index
    %4 = vector.load %arg3[%c0_2, %c0_3] : memref<16x512xbf16, #tpu.memory_space<vmem>>, vector<16x512xbf16>
    %c0_4 = arith.constant 0 : index
    %c0_5 = arith.constant 0 : index
    %5 = vector.load %arg4[%c0_4, %c0_5] : memref<512x256xbf16, #tpu.memory_space<vmem>>, vector<512x256xbf16>
    %cst = arith.constant dense<0.000000e+00> : vector<16x256xf32>
    %6 = tpu.matmul %4, %5, %cst {dimension_numbers = #tpu.dot_dimension_numbers<[1], [0], [0], [1], [0, 0, 1, 1], [], []>} : vector<16x512xbf16>, vector<512x256xbf16>, vector<16x256xf32> -> vector<16x256xf32>
    %7 = arith.addf %3, %6 : vector<16x256xf32>
    %c0_6 = arith.constant 0 : index
    %c0_7 = arith.constant 0 : index
    %8 = vector.load %arg8[%c0_6, %c0_7] : memref<16x256xf32, #tpu.memory_space<vmem>>, vector<16x256xf32>
    tpu.vector_store %arg8[%c0_6, %c0_7], %7 {strides = array<i32>} : memref<16x256xf32, #tpu.memory_space<vmem>>, vector<16x256xf32>,
    %c4_i32 = arith.constant 4 : i32
    %9 = arith.cmpi eq, %arg2, %c4_i32 : i32
    %10 = arith.extui %9 : i1 to i32
    %c0_i32_8 = arith.constant 0 : i32
    %11 = arith.cmpi ne, %10, %c0_i32_8 : i32
    scf.if %11 {
      %c0_9 = arith.constant 0 : index
      %c0_10 = arith.constant 0 : index
      %12 = vector.load %arg8[%c0_9, %c0_10] : memref<16x256xf32, #tpu.memory_space<vmem>>, vector<16x256xf32>
      %c0_11 = arith.constant 0 : index
      %c0_12 = arith.constant 0 : index
      %13 = vector.load %arg5[%c0_11, %c0_12] : memref<1x256xf32, #tpu.memory_space<vmem>>, vector<1x256xf32>
      %14 = vector.broadcast %13 : vector<1x256xf32> to vector<16x256xf32>
      %15 = arith.addf %12, %14 : vector<16x256xf32>
      %c0_13 = arith.constant 0 : index
      %c0_14 = arith.constant 0 : index
      %16 = vector.load %arg6[%c0_13, %c0_14] : memref<16x256xf32, #tpu.memory_space<vmem>>, vector<16x256xf32>
      %17 = arith.addf %15, %16 : vector<16x256xf32>
      %cst_15 = arith.constant 0.000000e+00 : f32
      %18 = vector.broadcast %cst_15 : f32 to vector<16x256xf32>
      %19 = arith.maximumf %17, %18 : vector<16x256xf32>
      %c0_16 = arith.constant 0 : index
      %c0_17 = arith.constant 0 : index
      %20 = vector.load %arg7[%c0_16, %c0_17] : memref<16x256xf32, #tpu.memory_space<vmem>>, vector<16x256xf32>
      tpu.vector_store %arg7[%c0_16, %c0_17], %19 {strides = array<i32>} : memref<16x256xf32, #tpu.memory_space<vmem>>, vector<16x256xf32>,
    } else {
    }
    return
  }
  func.func @transform_0(%arg0: i32, %arg1: i32, %arg2: i32) -> (i32, i32) {
    %c0_i32 = arith.constant 0 : i32
    return %arg0, %arg2 : i32, i32
  }
  func.func @transform_1(%arg0: i32, %arg1: i32, %arg2: i32) -> (i32, i32) {
    %c0_i32 = arith.constant 0 : i32
    return %arg2, %arg1 : i32, i32
  }
  func.func @transform_2(%arg0: i32, %arg1: i32, %arg2: i32) -> (i32, i32) {
    %c0_i32 = arith.constant 0 : i32
    %c0_i32_0 = arith.constant 0 : i32
    return %c0_i32, %arg1 : i32, i32
  }
  func.func @transform_3(%arg0: i32, %arg1: i32, %arg2: i32) -> (i32, i32) {
    %c0_i32 = arith.constant 0 : i32
    return %arg0, %arg1 : i32, i32
  }
  func.func @transform_4(%arg0: i32, %arg1: i32, %arg2: i32) -> (i32, i32) {
    %c0_i32 = arith.constant 0 : i32
    return %arg0, %arg1 : i32, i32
  }
}

module attributes {stable_mosaic.version = 11 : i64} {
  func.func @_fused_matmul_kernel(%arg0: i32, %arg1: i32, %arg2: i32, %arg3: memref<16x512xbf16, #tpu.memory_space<vmem>>, %arg4: memref<512x256xbf16, #tpu.memory_space<vmem>>, %arg5: memref<1x256xf32, #tpu.memory_space<vmem>>, %arg6: memref<16x256xf32, #tpu.memory_space<vmem>>, %arg7: memref<16x256xf32, #tpu.memory_space<vmem>>) attributes {dimension_semantics = [#tpu.dimension_semantics<parallel>, #tpu.dimension_semantics<parallel>, #tpu.dimension_semantics<arbitrary>], iteration_bounds = array<i64: 1, 2, 5>, scalar_prefetch = 0 : i64, scratch_operands = 1 : i64, tpu.core_type = #tpu.core_type<tc>, window_params = [{transform_indices = @transform_0, window_bounds = array<i64: 16, 512>}, {transform_indices = @transform_1, window_bounds = array<i64: 512, 256>}, {transform_indices = @transform_2, window_bounds = array<i64: 1, 256>}, {transform_indices = @transform_3, window_bounds = array<i64: 16, 256>}]} {
    %c0_i32 = arith.constant 0 : i32
    %0 = arith.cmpi eq, %arg2, %c0_i32 : i32
    %1 = arith.extui %0 : i1 to i32
    %c0_i32_0 = arith.constant 0 : i32
    %2 = arith.cmpi ne, %1, %c0_i32_0 : i32
    scf.if %2 {
      %cst_9 = arith.constant 0.000000e+00 : f32
      %12 = vector.broadcast %cst_9 : f32 to vector<16x256xf32>
      %c0_10 = arith.constant 0 : index
      %c0_11 = arith.constant 0 : index
      %13 = vector.load %arg7[%c0_10, %c0_11] : memref<16x256xf32, #tpu.memory_space<vmem>>, vector<16x256xf32>
      tpu.vector_store %arg7[%c0_10, %c0_11], %12 {strides = array<i32>} : memref<16x256xf32, #tpu.memory_space<vmem>>, vector<16x256xf32>,
    } else {
    }
    %c0 = arith.constant 0 : index
    %c0_1 = arith.constant 0 : index
    %3 = vector.load %arg7[%c0, %c0_1] : memref<16x256xf32, #tpu.memory_space<vmem>>, vector<16x256xf32>
    %c0_2 = arith.constant 0 : index
    %c0_3 = arith.constant 0 : index
    %4 = vector.load %arg3[%c0_2, %c0_3] : memref<16x512xbf16, #tpu.memory_space<vmem>>, vector<16x512xbf16>
    %c0_4 = arith.constant 0 : index
    %c0_5 = arith.constant 0 : index
    %5 = vector.load %arg4[%c0_4, %c0_5] : memref<512x256xbf16, #tpu.memory_space<vmem>>, vector<512x256xbf16>
    %cst = arith.constant dense<0.000000e+00> : vector<16x256xf32>
    %6 = tpu.matmul %4, %5, %cst {dimension_numbers = #tpu.dot_dimension_numbers<[1], [0], [0], [1], [0, 0, 1, 1], [], []>} : vector<16x512xbf16>, vector<512x256xbf16>, vector<16x256xf32> -> vector<16x256xf32>
    %7 = arith.addf %3, %6 : vector<16x256xf32>
    %c0_6 = arith.constant 0 : index
    %c0_7 = arith.constant 0 : index
    %8 = vector.load %arg7[%c0_6, %c0_7] : memref<16x256xf32, #tpu.memory_space<vmem>>, vector<16x256xf32>
    tpu.vector_store %arg7[%c0_6, %c0_7], %7 {strides = array<i32>} : memref<16x256xf32, #tpu.memory_space<vmem>>, vector<16x256xf32>,
    %c4_i32 = arith.constant 4 : i32
    %9 = arith.cmpi eq, %arg2, %c4_i32 : i32
    %10 = arith.extui %9 : i1 to i32
    %c0_i32_8 = arith.constant 0 : i32
    %11 = arith.cmpi ne, %10, %c0_i32_8 : i32
    scf.if %11 {
      %c0_9 = arith.constant 0 : index
      %c0_10 = arith.constant 0 : index
      %12 = vector.load %arg7[%c0_9, %c0_10] : memref<16x256xf32, #tpu.memory_space<vmem>>, vector<16x256xf32>
      %c0_11 = arith.constant 0 : index
      %c0_12 = arith.constant 0 : index
      %13 = vector.load %arg5[%c0_11, %c0_12] : memref<1x256xf32, #tpu.memory_space<vmem>>, vector<1x256xf32>
      %14 = vector.broadcast %13 : vector<1x256xf32> to vector<16x256xf32>
      %15 = arith.addf %12, %14 : vector<16x256xf32>
      %cst_13 = arith.constant 0.000000e+00 : f32
      %16 = vector.broadcast %cst_13 : f32 to vector<16x256xf32>
      %17 = arith.maximumf %15, %16 : vector<16x256xf32>
      %c0_14 = arith.constant 0 : index
      %c0_15 = arith.constant 0 : index
      %18 = vector.load %arg6[%c0_14, %c0_15] : memref<16x256xf32, #tpu.memory_space<vmem>>, vector<16x256xf32>
      tpu.vector_store %arg6[%c0_14, %c0_15], %17 {strides = array<i32>} : memref<16x256xf32, #tpu.memory_space<vmem>>, vector<16x256xf32>,
    } else {
    }
    return
  }
  func.func @transform_0(%arg0: i32, %arg1: i32, %arg2: i32) -> (i32, i32) {
    %c0_i32 = arith.constant 0 : i32
    return %arg0, %arg2 : i32, i32
  }
  func.func @transform_1(%arg0: i32, %arg1: i32, %arg2: i32) -> (i32, i32) {
    %c0_i32 = arith.constant 0 : i32
    return %arg2, %arg1 : i32, i32
  }
  func.func @transform_2(%arg0: i32, %arg1: i32, %arg2: i32) -> (i32, i32) {
    %c0_i32 = arith.constant 0 : i32
    %c0_i32_0 = arith.constant 0 : i32
    return %c0_i32, %arg1 : i32, i32
  }
  func.func @transform_3(%arg0: i32, %arg1: i32, %arg2: i32) -> (i32, i32) {
    %c0_i32 = arith.constant 0 : i32
    return %arg0, %arg1 : i32, i32
  }
}

module attributes {stable_mosaic.version = 11 : i64} {
  func.func @_fused_matmul_kernel(%arg0: i32, %arg1: i32, %arg2: i32, %arg3: memref<16x512xbf16, #tpu.memory_space<vmem>>, %arg4: memref<512x256xbf16, #tpu.memory_space<vmem>>, %arg5: memref<1x256xf32, #tpu.memory_space<vmem>>, %arg6: memref<16x256xf32, #tpu.memory_space<vmem>>, %arg7: memref<16x256xf32, #tpu.memory_space<vmem>>) attributes {dimension_semantics = [#tpu.dimension_semantics<parallel>, #tpu.dimension_semantics<parallel>, #tpu.dimension_semantics<arbitrary>], iteration_bounds = array<i64: 1, 2, 5>, scalar_prefetch = 0 : i64, scratch_operands = 1 : i64, tpu.core_type = #tpu.core_type<tc>, window_params = [{transform_indices = @transform_0, window_bounds = array<i64: 16, 512>}, {transform_indices = @transform_1, window_bounds = array<i64: 512, 256>}, {transform_indices = @transform_2, window_bounds = array<i64: 1, 256>}, {transform_indices = @transform_3, window_bounds = array<i64: 16, 256>}]} {
    %c0_i32 = arith.constant 0 : i32
    %0 = arith.cmpi eq, %arg2, %c0_i32 : i32
    %1 = arith.extui %0 : i1 to i32
    %c0_i32_0 = arith.constant 0 : i32
    %2 = arith.cmpi ne, %1, %c0_i32_0 : i32
    scf.if %2 {
      %cst_9 = arith.constant 0.000000e+00 : f32
      %12 = vector.broadcast %cst_9 : f32 to vector<16x256xf32>
      %c0_10 = arith.constant 0 : index
      %c0_11 = arith.constant 0 : index
      %13 = vector.load %arg7[%c0_10, %c0_11] : memref<16x256xf32, #tpu.memory_space<vmem>>, vector<16x256xf32>
      tpu.vector_store %arg7[%c0_10, %c0_11], %12 {strides = array<i32>} : memref<16x256xf32, #tpu.memory_space<vmem>>, vector<16x256xf32>,
    } else {
    }
    %c0 = arith.constant 0 : index
    %c0_1 = arith.constant 0 : index
    %3 = vector.load %arg7[%c0, %c0_1] : memref<16x256xf32, #tpu.memory_space<vmem>>, vector<16x256xf32>
    %c0_2 = arith.constant 0 : index
    %c0_3 = arith.constant 0 : index
    %4 = vector.load %arg3[%c0_2, %c0_3] : memref<16x512xbf16, #tpu.memory_space<vmem>>, vector<16x512xbf16>
    %c0_4 = arith.constant 0 : index
    %c0_5 = arith.constant 0 : index
    %5 = vector.load %arg4[%c0_4, %c0_5] : memref<512x256xbf16, #tpu.memory_space<vmem>>, vector<512x256xbf16>
    %cst = arith.constant dense<0.000000e+00> : vector<16x256xf32>
    %6 = tpu.matmul %4, %5, %cst {dimension_numbers = #tpu.dot_dimension_numbers<[1], [0], [0], [1], [0, 0, 1, 1], [], []>} : vector<16x512xbf16>, vector<512x256xbf16>, vector<16x256xf32> -> vector<16x256xf32>
    %7 = arith.addf %3, %6 : vector<16x256xf32>
    %c0_6 = arith.constant 0 : index
    %c0_7 = arith.constant 0 : index
    %8 = vector.load %arg7[%c0_6, %c0_7] : memref<16x256xf32, #tpu.memory_space<vmem>>, vector<16x256xf32>
    tpu.vector_store %arg7[%c0_6, %c0_7], %7 {strides = array<i32>} : memref<16x256xf32, #tpu.memory_space<vmem>>, vector<16x256xf32>,
    %c4_i32 = arith.constant 4 : i32
    %9 = arith.cmpi eq, %arg2, %c4_i32 : i32
    %10 = arith.extui %9 : i1 to i32
    %c0_i32_8 = arith.constant 0 : i32
    %11 = arith.cmpi ne, %10, %c0_i32_8 : i32
    scf.if %11 {
      %c0_9 = arith.constant 0 : index
      %c0_10 = arith.constant 0 : index
      %12 = vector.load %arg7[%c0_9, %c0_10] : memref<16x256xf32, #tpu.memory_space<vmem>>, vector<16x256xf32>
      %c0_11 = arith.constant 0 : index
      %c0_12 = arith.constant 0 : index
      %13 = vector.load %arg5[%c0_11, %c0_12] : memref<1x256xf32, #tpu.memory_space<vmem>>, vector<1x256xf32>
      %14 = vector.broadcast %13 : vector<1x256xf32> to vector<16x256xf32>
      %15 = arith.addf %12, %14 : vector<16x256xf32>
      %c0_13 = arith.constant 0 : index
      %c0_14 = arith.constant 0 : index
      %16 = vector.load %arg6[%c0_13, %c0_14] : memref<16x256xf32, #tpu.memory_space<vmem>>, vector<16x256xf32>
      tpu.vector_store %arg6[%c0_13, %c0_14], %15 {strides = array<i32>} : memref<16x256xf32, #tpu.memory_space<vmem>>, vector<16x256xf32>,
    } else {
    }
    return
  }
  func.func @transform_0(%arg0: i32, %arg1: i32, %arg2: i32) -> (i32, i32) {
    %c0_i32 = arith.constant 0 : i32
    return %arg0, %arg2 : i32, i32
  }
  func.func @transform_1(%arg0: i32, %arg1: i32, %arg2: i32) -> (i32, i32) {
    %c0_i32 = arith.constant 0 : i32
    return %arg2, %arg1 : i32, i32
  }
  func.func @transform_2(%arg0: i32, %arg1: i32, %arg2: i32) -> (i32, i32) {
    %c0_i32 = arith.constant 0 : i32
    %c0_i32_0 = arith.constant 0 : i32
    return %c0_i32, %arg1 : i32, i32
  }
  func.func @transform_3(%arg0: i32, %arg1: i32, %arg2: i32) -> (i32, i32) {
    %c0_i32 = arith.constant 0 : i32
    return %arg0, %arg1 : i32, i32
  }
}

module attributes {stable_mosaic.version = 11 : i64} {
  func.func @_fused_matmul_kernel(%arg0: i32, %arg1: i32, %arg2: i32, %arg3: memref<16x512xbf16, #tpu.memory_space<vmem>>, %arg4: memref<512x256xbf16, #tpu.memory_space<vmem>>, %arg5: memref<1x256xf32, #tpu.memory_space<vmem>>, %arg6: memref<16x256xf32, #tpu.memory_space<vmem>>, %arg7: memref<16x256xf32, #tpu.memory_space<vmem>>, %arg8: memref<16x256xf32, #tpu.memory_space<vmem>>) attributes {dimension_semantics = [#tpu.dimension_semantics<parallel>, #tpu.dimension_semantics<parallel>, #tpu.dimension_semantics<arbitrary>], iteration_bounds = array<i64: 1, 2, 9>, scalar_prefetch = 0 : i64, scratch_operands = 1 : i64, tpu.core_type = #tpu.core_type<tc>, window_params = [{transform_indices = @transform_0, window_bounds = array<i64: 16, 512>}, {transform_indices = @transform_1, window_bounds = array<i64: 512, 256>}, {transform_indices = @transform_2, window_bounds = array<i64: 1, 256>}, {transform_indices = @transform_3, window_bounds = array<i64: 16, 256>}, {transform_indices = @transform_4, window_bounds = array<i64: 16, 256>}]} {
    %c0_i32 = arith.constant 0 : i32
    %0 = arith.cmpi eq, %arg2, %c0_i32 : i32
    %1 = arith.extui %0 : i1 to i32
    %c0_i32_0 = arith.constant 0 : i32
    %2 = arith.cmpi ne, %1, %c0_i32_0 : i32
    scf.if %2 {
      %cst_9 = arith.constant 0.000000e+00 : f32
      %12 = vector.broadcast %cst_9 : f32 to vector<16x256xf32>
      %c0_10 = arith.constant 0 : index
      %c0_11 = arith.constant 0 : index
      %13 = vector.load %arg8[%c0_10, %c0_11] : memref<16x256xf32, #tpu.memory_space<vmem>>, vector<16x256xf32>
      tpu.vector_store %arg8[%c0_10, %c0_11], %12 {strides = array<i32>} : memref<16x256xf32, #tpu.memory_space<vmem>>, vector<16x256xf32>,
    } else {
    }
    %c0 = arith.constant 0 : index
    %c0_1 = arith.constant 0 : index
    %3 = vector.load %arg8[%c0, %c0_1] : memref<16x256xf32, #tpu.memory_space<vmem>>, vector<16x256xf32>
    %c0_2 = arith.constant 0 : index
    %c0_3 = arith.constant 0 : index
    %4 = vector.load %arg3[%c0_2, %c0_3] : memref<16x512xbf16, #tpu.memory_space<vmem>>, vector<16x512xbf16>
    %c0_4 = arith.constant 0 : index
    %c0_5 = arith.constant 0 : index
    %5 = vector.load %arg4[%c0_4, %c0_5] : memref<512x256xbf16, #tpu.memory_space<vmem>>, vector<512x256xbf16>
    %cst = arith.constant dense<0.000000e+00> : vector<16x256xf32>
    %6 = tpu.matmul %4, %5, %cst {dimension_numbers = #tpu.dot_dimension_numbers<[1], [0], [0], [1], [0, 0, 1, 1], [], []>} : vector<16x512xbf16>, vector<512x256xbf16>, vector<16x256xf32> -> vector<16x256xf32>
    %7 = arith.addf %3, %6 : vector<16x256xf32>
    %c0_6 = arith.constant 0 : index
    %c0_7 = arith.constant 0 : index
    %8 = vector.load %arg8[%c0_6, %c0_7] : memref<16x256xf32, #tpu.memory_space<vmem>>, vector<16x256xf32>
    tpu.vector_store %arg8[%c0_6, %c0_7], %7 {strides = array<i32>} : memref<16x256xf32, #tpu.memory_space<vmem>>, vector<16x256xf32>,
    %c8_i32 = arith.constant 8 : i32
    %9 = arith.cmpi eq, %arg2, %c8_i32 : i32
    %10 = arith.extui %9 : i1 to i32
    %c0_i32_8 = arith.constant 0 : i32
    %11 = arith.cmpi ne, %10, %c0_i32_8 : i32
    scf.if %11 {
      %c0_9 = arith.constant 0 : index
      %c0_10 = arith.constant 0 : index
      %12 = vector.load %arg8[%c0_9, %c0_10] : memref<16x256xf32, #tpu.memory_space<vmem>>, vector<16x256xf32>
      %c0_11 = arith.constant 0 : index
      %c0_12 = arith.constant 0 : index
      %13 = vector.load %arg5[%c0_11, %c0_12] : memref<1x256xf32, #tpu.memory_space<vmem>>, vector<1x256xf32>
      %14 = vector.broadcast %13 : vector<1x256xf32> to vector<16x256xf32>
      %15 = arith.addf %12, %14 : vector<16x256xf32>
      %c0_13 = arith.constant 0 : index
      %c0_14 = arith.constant 0 : index
      %16 = vector.load %arg6[%c0_13, %c0_14] : memref<16x256xf32, #tpu.memory_space<vmem>>, vector<16x256xf32>
      %17 = arith.addf %15, %16 : vector<16x256xf32>
      %cst_15 = arith.constant 0.000000e+00 : f32
      %18 = vector.broadcast %cst_15 : f32 to vector<16x256xf32>
      %19 = arith.maximumf %17, %18 : vector<16x256xf32>
      %c0_16 = arith.constant 0 : index
      %c0_17 = arith.constant 0 : index
      %20 = vector.load %arg7[%c0_16, %c0_17] : memref<16x256xf32, #tpu.memory_space<vmem>>, vector<16x256xf32>
      tpu.vector_store %arg7[%c0_16, %c0_17], %19 {strides = array<i32>} : memref<16x256xf32, #tpu.memory_space<vmem>>, vector<16x256xf32>,
    } else {
    }
    return
  }
  func.func @transform_0(%arg0: i32, %arg1: i32, %arg2: i32) -> (i32, i32) {
    %c0_i32 = arith.constant 0 : i32
    return %arg0, %arg2 : i32, i32
  }
  func.func @transform_1(%arg0: i32, %arg1: i32, %arg2: i32) -> (i32, i32) {
    %c0_i32 = arith.constant 0 : i32
    return %arg2, %arg1 : i32, i32
  }
  func.func @transform_2(%arg0: i32, %arg1: i32, %arg2: i32) -> (i32, i32) {
    %c0_i32 = arith.constant 0 : i32
    %c0_i32_0 = arith.constant 0 : i32
    return %c0_i32, %arg1 : i32, i32
  }
  func.func @transform_3(%arg0: i32, %arg1: i32, %arg2: i32) -> (i32, i32) {
    %c0_i32 = arith.constant 0 : i32
    return %arg0, %arg1 : i32, i32
  }
  func.func @transform_4(%arg0: i32, %arg1: i32, %arg2: i32) -> (i32, i32) {
    %c0_i32 = arith.constant 0 : i32
    return %arg0, %arg1 : i32, i32
  }
}

</mosaic_0001>

<bundles_post_ra>
// kernel: resnet_forward.14
= control target key start
LH: loop header
LB: loop body
LE: loop exit
PB: predicated region body
PF: predicated region fallthrough
CT: control target
= control target key end

     0   :  { %s1180_s12 = smov 0   ;;  %s1182_s13 = smov 0   ;;  %s1330_s0 = inlined_call_operand.vmem [shape: bf16[1024,128], index: 0, kind: input, shape index: {}]   ;;  %s1331_s1 = inlined_call_operand.vmem [shape: bf16[128,128], index: 1, kind: input, shape index: {}]   ;;  %s1332_s2 = inlined_call_operand.vmem [shape: f32[1,128], index: 2, kind: input, shape index: {}]   ;;  %s1333_s3 = inlined_call_operand.vmem [shape: f32[1024,128], index: 3, kind: output, shape index: {}]  }
   0x1   :  { %s1184_s14 = smov 0  }
   0x2 LB: > { %s32_s15 = sadd.s32 1, %s1154_s13  ;;  %p968_p0 = scmp.ge.s32.totalorder %s1158_s14, 1  ;;  %s1158_s14 = sphi %s1184_s14, %s13_s14   ;;  %s1154_s13 = sphi %s1182_s13, %s1335_s13   ;;  %s1150_s12 = sphi %s1180_s12, %s1334_s12  }
   0x3   : > { %p34_p1 = scmp.ge.s32.totalorder %s32_s15, 4  ;;  %p188_p2 = scmp.lt.s32.totalorder %s1158_s14, 5 }
   0x5   : > { %s1337_s15 = smov (%p34_p1, %s32_s15), 0  ;;  %p189_p3 = pnand %p968_p0, %p188_p2 }
   0x6   : > { %v1112_v0 = vld [vmem:[%s1331_s1] sm:$0xff] (!%p189_p3)   ;;  %s969_s18 = sshll.u32 (!%p189_p3), %s1150_s12, 5  ;;  %v1113_v1 = vld [vmem:[%s1331_s1 + $0x8] sm:$0xff] (!%p189_p3)   ;;  %v1114_v2 = vld [vmem:[%s1331_s1 + $0x10] sm:$0xff] (!%p189_p3)  }
   0x7   : > { %192 = sbr.rel (%p189_p3) target bundleno = 281 (0x119), region = 32  ;;  %p230_p4 = scmp.lt.s32.totalorder (!%p189_p3), %s969_s18, 127  ;;  %1024 = vmatprep.subr.bf16.mxu0 (!%p189_p3), %v1112_v0  ;;  %1072 = vmatprep.subr.bf16.mxu1 (!%p189_p3), %v1112_v0  ;;  %v1115_v3 = vld [vmem:[%s1331_s1 + $0x18] sm:$0xff] (!%p189_p3)   ;;  %v1116_v6 = vld [vmem:[%s1331_s1 + $0x20] sm:$0xff] (!%p189_p3)   ;;  %v1117_v7 = vld [vmem:[%s1331_s1 + $0x28] sm:$0xff] (!%p189_p3)  }
   0x8   : > { %1025 = vmatpush3.bf16.msra.mxu0 (!%p189_p3), %v1112_v0  ;;  %1080 = vmatpush3.bf16.msra.mxu1 (!%p189_p3), %v1112_v0  ;;  %v1118_v8 = vld [vmem:[%s1331_s1 + $0x30] sm:$0xff] (!%p189_p3)   ;;  %v1119_v9 = vld [vmem:[%s1331_s1 + $0x38] sm:$0xff] (!%p189_p3)   ;;  %v1250_v24 = vld [vmem:[%s1332_s2] ss:$0 sm:$0xff] (!%p189_p3) }
   0x9   : > { %1026 = vmatprep.subr.bf16.mxu0 (!%p189_p3), %v1113_v1  ;;  %1073 = vmatprep.subr.bf16.mxu1 (!%p189_p3), %v1113_v1 }
   0xc   : > { %1027 = vmatpush3.bf16.msra.mxu0 (!%p189_p3), %v1113_v1  ;;  %1081 = vmatpush3.bf16.msra.mxu1 (!%p189_p3), %v1113_v1 }
   0xd   : > { %1028 = vmatprep.subr.bf16.mxu0 (!%p189_p3), %v1114_v2  ;;  %1074 = vmatprep.subr.bf16.mxu1 (!%p189_p3), %v1114_v2 }
   0xe   : > { %s1339_s18 = smov (!%p230_p4, %s969_s18), 127 }
   0xf   : > { %s970_s23 = sshll.u32 %s1339_s18, 2  ;;  %s972_s10 = sshll.u32 %s1339_s18, 3 }
  0x10   : > { %s1213_s26 = scalar_lea.vmem %s1330_s0, %s970_s23  ;;  %1029 = vmatpush3.bf16.msra.mxu0 %v1114_v2  ;;  %1082 = vmatpush3.bf16.msra.mxu1 %v1114_v2  ;;  %s1255_s19 = scalar_lea.vmem %s1333_s3, %s972_s10 }
  0x11   : > { %v1120_v4 = vld [vmem:[%s1213_s26] sm:$0xff]   ;;  %1030 = vmatprep.subr.bf16.mxu0 %v1115_v3  ;;  %1075 = vmatprep.subr.bf16.mxu1 %v1115_v3  ;;  %v1122_v10 = vld [vmem:[%s1213_s26 + $0x8] sm:$0xff]   ;;  %v1124_v12 = vld [vmem:[%s1213_s26 + $0x10] sm:$0xff]  }
  0x12   : > { %v1121_v5 = vld [vmem:[%s1213_s26 + $0x40] sm:$0xff]   ;;  %1040 = vmatprep.mubr.bf16.mxu0 %v1120_v4  ;;  %v1123_v11 = vld [vmem:[%s1213_s26 + $0x48] sm:$0xff]   ;;  %v1125_v13 = vld [vmem:[%s1213_s26 + $0x50] sm:$0xff]  }
  0x13   : > { %1056 = vmatprep.mubr.bf16.mxu1 %v1121_v5  ;;  %v1126_v14 = vld [vmem:[%s1213_s26 + $0x18] sm:$0xff]   ;;  %v1128_v16 = vld [vmem:[%s1213_s26 + $0x20] sm:$0xff]   ;;  %v1130_v18 = vld [vmem:[%s1213_s26 + $0x28] sm:$0xff]  }
  0x14   : > { %1031 = vmatpush3.bf16.msra.mxu0 %v1115_v3  ;;  %1083 = vmatpush3.bf16.msra.mxu1 %v1115_v3  ;;  %v1127_v15 = vld [vmem:[%s1213_s26 + $0x58] sm:$0xff]   ;;  %v1129_v17 = vld [vmem:[%s1213_s26 + $0x60] sm:$0xff]   ;;  %v1131_v19 = vld [vmem:[%s1213_s26 + $0x68] sm:$0xff]  }
  0x15   : > { %1032 = vmatprep.subr.bf16.mxu0 %v1116_v6  ;;  %1076 = vmatprep.subr.bf16.mxu1 %v1116_v6  ;;  %v1132_v20 = vld [vmem:[%s1213_s26 + $0x30] sm:$0xff]   ;;  %v1134_v22 = vld [vmem:[%s1213_s26 + $0x38] sm:$0xff]  }
  0x16   : > { %v1133_v21 = vld [vmem:[%s1213_s26 + $0x70] sm:$0xff]   ;;  %v1135_v23 = vld [vmem:[%s1213_s26 + $0x78] sm:$0xff]  }
  0x18   : > { %1033 = vmatpush3.bf16.msra.mxu0 %v1116_v6  ;;  %1084 = vmatpush3.bf16.msra.mxu1 %v1116_v6 }
  0x19   : > { %1034 = vmatprep.subr.bf16.mxu0 %v1117_v7  ;;  %1077 = vmatprep.subr.bf16.mxu1 %v1117_v7 }
  0x1c   : > { %1035 = vmatpush3.bf16.msra.mxu0 %v1117_v7  ;;  %1085 = vmatpush3.bf16.msra.mxu1 %v1117_v7 }
  0x1d   : > { %1036 = vmatprep.subr.bf16.mxu0 %v1118_v8  ;;  %1078 = vmatprep.subr.bf16.mxu1 %v1118_v8 }
  0x20   : > { %1037 = vmatpush3.bf16.msra.mxu0 %v1118_v8  ;;  %1086 = vmatpush3.bf16.msra.mxu1 %v1118_v8 }
  0x21   : > { %1038 = vmatprep.subr.bf16.mxu0 %v1119_v9  ;;  %1079 = vmatprep.subr.bf16.mxu1 %v1119_v9 }
  0x24   : > { %1039 = vmatpush3.bf16.msra.mxu0 %v1119_v9  ;;  %1087 = vmatpush3.bf16.msra.mxu1 %v1119_v9 }
  0x27   : > { %1041 = vmatmul.mubr.bf16.vlgmr.msra.gmra.mrb[0].mxu0 %v1122_v10  ;;  %1057 = vmatmul.mubr.bf16.vlgmr.msra.gmra.mrb[0].mxu1 %v1123_v11 }
  0x28   : > { %1044 = vmatprep.mubr.bf16.mxu0 %v1124_v12  ;;  %1060 = vmatprep.mubr.bf16.mxu1 %v1125_v13 }
  0x2f   : > { %1045 = vmatmul.mubr.bf16.gmra.mrb[4].mxu0 %v1126_v14  ;;  %1061 = vmatmul.mubr.bf16.gmra.mrb[4].mxu1 %v1127_v15 }
  0x30   : > { %1048 = vmatprep.mubr.bf16.mxu0 %v1128_v16  ;;  %1064 = vmatprep.mubr.bf16.mxu1 %v1129_v17 }
  0x37   : > { %1049 = vmatmul.mubr.bf16.gmra.mrb[8].mxu0 %v1130_v18  ;;  %1065 = vmatmul.mubr.bf16.gmra.mrb[8].mxu1 %v1131_v19 }
  0x38   : > { %1052 = vmatprep.mubr.bf16.mxu0 %v1132_v20  ;;  %1068 = vmatprep.mubr.bf16.mxu1 %v1133_v21 }
  0x3f   : > { %1053 = vmatmul.mubr.bf16.gmra.mrb[12].mxu0 %v1134_v22  ;;  %1069 = vmatmul.mubr.bf16.gmra.mrb[12].mxu1 %v1135_v23 }
  0xfa   : > { %v1042_v25 = vpop.f32.mrb[0].mxu0  ;;  %v1058_v26 = vpop.f32.mrb[0].mxu1 }
  0xfb   : > { %v789_v27 = vadd.f32 %v1042_v25, %v1250_v24  ;;  %v805_v28 = vadd.f32 %v1058_v26, %v1250_v24  ;;  %v554_v29 = vpop.f32.mrb[1].mxu0  ;;  %v618_v30 = vpop.f32.mrb[1].mxu1 }
  0xfc   : > { %v787_v31 = vadd.f32 %v1250_v24, %v554_v29  ;;  %v803_v32 = vadd.f32 %v1250_v24, %v618_v30  ;;  %v1043_v33 = vpop.f32.mrb[2].mxu0  ;;  %v1059_v34 = vpop.f32.mrb[2].mxu1 }
  0xfd   : > { %821 = vst [vmem:[%s1255_s19 + $0x10] sm:$0xff] %v789_v27  ;;  %837 = vst [vmem:[%s1255_s19 + $0x90] sm:$0xff] %v805_v28  ;;  %v790_v35 = vadd.f32 %v1043_v33, %v1250_v24  ;;  %v806_v36 = vadd.f32 %v1059_v34, %v1250_v24  ;;  %v557_v37 = vpop.f32.mrb[3].mxu0  ;;  %v621_v38 = vpop.f32.mrb[3].mxu1 }
  0xfe   : > { %819 = vst [vmem:[%s1255_s19] sm:$0xff] %v787_v31  ;;  %835 = vst [vmem:[%s1255_s19 + $0x80] sm:$0xff] %v803_v32  ;;  %v788_v39 = vadd.f32 %v1250_v24, %v557_v37  ;;  %v804_v40 = vadd.f32 %v1250_v24, %v621_v38 }
  0xff   : > { %822 = vst [vmem:[%s1255_s19 + $0x18] sm:$0xff] %v790_v35  ;;  %838 = vst [vmem:[%s1255_s19 + $0x98] sm:$0xff] %v806_v36 }
 0x100   : > { %820 = vst [vmem:[%s1255_s19 + $0x8] sm:$0xff] %v788_v39  ;;  %836 = vst [vmem:[%s1255_s19 + $0x88] sm:$0xff] %v804_v40 }
 0x102   : > { %v1046_v41 = vpop.f32.mrb[4].mxu0  ;;  %v1062_v42 = vpop.f32.mrb[4].mxu1 }
 0x103   : > { %v793_v43 = vadd.f32 %v1046_v41, %v1250_v24  ;;  %v809_v44 = vadd.f32 %v1062_v42, %v1250_v24  ;;  %v570_v45 = vpop.f32.mrb[5].mxu0  ;;  %v634_v46 = vpop.f32.mrb[5].mxu1 }
 0x104   : > { %v791_v47 = vadd.f32 %v1250_v24, %v570_v45  ;;  %v807_v48 = vadd.f32 %v1250_v24, %v634_v46  ;;  %v1047_v49 = vpop.f32.mrb[6].mxu0  ;;  %v1063_v50 = vpop.f32.mrb[6].mxu1 }
 0x105   : > { %825 = vst [vmem:[%s1255_s19 + $0x30] sm:$0xff] %v793_v43  ;;  %841 = vst [vmem:[%s1255_s19 + $0xb0] sm:$0xff] %v809_v44  ;;  %v794_v51 = vadd.f32 %v1047_v49, %v1250_v24  ;;  %v810_v52 = vadd.f32 %v1063_v50, %v1250_v24  ;;  %v573_v53 = vpop.f32.mrb[7].mxu0  ;;  %v637_v54 = vpop.f32.mrb[7].mxu1 }
 0x106   : > { %823 = vst [vmem:[%s1255_s19 + $0x20] sm:$0xff] %v791_v47  ;;  %839 = vst [vmem:[%s1255_s19 + $0xa0] sm:$0xff] %v807_v48  ;;  %v792_v55 = vadd.f32 %v1250_v24, %v573_v53  ;;  %v808_v56 = vadd.f32 %v1250_v24, %v637_v54 }
 0x107   : > { %826 = vst [vmem:[%s1255_s19 + $0x38] sm:$0xff] %v794_v51  ;;  %842 = vst [vmem:[%s1255_s19 + $0xb8] sm:$0xff] %v810_v52 }
 0x108   : > { %824 = vst [vmem:[%s1255_s19 + $0x28] sm:$0xff] %v792_v55  ;;  %840 = vst [vmem:[%s1255_s19 + $0xa8] sm:$0xff] %v808_v56 }
 0x10a   : > { %v1050_v57 = vpop.f32.mrb[8].mxu0  ;;  %v1066_v58 = vpop.f32.mrb[8].mxu1 }
 0x10b   : > { %v797_v59 = vadd.f32 %v1050_v57, %v1250_v24  ;;  %v813_v60 = vadd.f32 %v1066_v58, %v1250_v24  ;;  %v586_v61 = vpop.f32.mrb[9].mxu0  ;;  %v650_v62 = vpop.f32.mrb[9].mxu1 }
 0x10c   : > { %v795_v63 = vadd.f32 %v1250_v24, %v586_v61  ;;  %v811_v0 = vadd.f32 %v1250_v24, %v650_v62  ;;  %v1051_v1 = vpop.f32.mrb[10].mxu0  ;;  %v1067_v2 = vpop.f32.mrb[10].mxu1 }
 0x10d   : > { %829 = vst [vmem:[%s1255_s19 + $0x50] sm:$0xff] %v797_v59  ;;  %845 = vst [vmem:[%s1255_s19 + $0xd0] sm:$0xff] %v813_v60  ;;  %v798_v3 = vadd.f32 %v1051_v1, %v1250_v24  ;;  %v814_v4 = vadd.f32 %v1067_v2, %v1250_v24  ;;  %v589_v5 = vpop.f32.mrb[11].mxu0  ;;  %v653_v6 = vpop.f32.mrb[11].mxu1 }
 0x10e   : > { %827 = vst [vmem:[%s1255_s19 + $0x40] sm:$0xff] %v795_v63  ;;  %843 = vst [vmem:[%s1255_s19 + $0xc0] sm:$0xff] %v811_v0  ;;  %v796_v7 = vadd.f32 %v1250_v24, %v589_v5  ;;  %v812_v8 = vadd.f32 %v1250_v24, %v653_v6 }
 0x10f   : > { %830 = vst [vmem:[%s1255_s19 + $0x58] sm:$0xff] %v798_v3  ;;  %846 = vst [vmem:[%s1255_s19 + $0xd8] sm:$0xff] %v814_v4 }
 0x110   : > { %828 = vst [vmem:[%s1255_s19 + $0x48] sm:$0xff] %v796_v7  ;;  %844 = vst [vmem:[%s1255_s19 + $0xc8] sm:$0xff] %v812_v8 }
 0x112   : > { %v1054_v9 = vpop.f32.mrb[12].mxu0  ;;  %v1070_v10 = vpop.f32.mrb[12].mxu1 }
 0x113   : > { %v801_v11 = vadd.f32 %v1054_v9, %v1250_v24  ;;  %v817_v12 = vadd.f32 %v1070_v10, %v1250_v24  ;;  %v602_v13 = vpop.f32.mrb[13].mxu0  ;;  %v666_v14 = vpop.f32.mrb[13].mxu1 }
 0x114   : > { %v799_v15 = vadd.f32 %v1250_v24, %v602_v13  ;;  %v815_v16 = vadd.f32 %v1250_v24, %v666_v14  ;;  %v1055_v17 = vpop.f32.mrb[14].mxu0  ;;  %v1071_v18 = vpop.f32.mrb[14].mxu1 }
 0x115   : > { %833 = vst [vmem:[%s1255_s19 + $0x70] sm:$0xff] %v801_v11  ;;  %849 = vst [vmem:[%s1255_s19 + $0xf0] sm:$0xff] %v817_v12  ;;  %v802_v19 = vadd.f32 %v1055_v17, %v1250_v24  ;;  %v818_v20 = vadd.f32 %v1071_v18, %v1250_v24  ;;  %v605_v21 = vpop.f32.mrb[15].mxu0  ;;  %v669_v22 = vpop.f32.mrb[15].mxu1 }
 0x116   : > { %831 = vst [vmem:[%s1255_s19 + $0x60] sm:$0xff] %v799_v15  ;;  %847 = vst [vmem:[%s1255_s19 + $0xe0] sm:$0xff] %v815_v16  ;;  %v800_v23 = vadd.f32 %v1250_v24, %v605_v21  ;;  %v816_v25 = vadd.f32 %v1250_v24, %v669_v22 }
 0x117   : > { %834 = vst [vmem:[%s1255_s19 + $0x78] sm:$0xff] %v802_v19  ;;  %850 = vst [vmem:[%s1255_s19 + $0xf8] sm:$0xff] %v818_v20 }
 0x118   : > { %832 = vst [vmem:[%s1255_s19 + $0x68] sm:$0xff] %v800_v23  ;;  %848 = vst [vmem:[%s1255_s19 + $0xe8] sm:$0xff] %v816_v25 }
 0x119 PF: > { %s13_s14 = sadd.s32 1, %s1158_s14   ;;  %s1334_s12 = smov %s1154_s13 }
 0x11a   : > { %p10_p5 = scmp.ge.s32.totalorder %s13_s14, 6   ;;  %s1335_s13 = smov %s1337_s15 }
 0x11c   :  { %12 = sbr.rel (!%p10_p5) target bundleno = 2 (0x2), region = 76 }

// kernel: resnet_forward.16
= control target key start
LH: loop header
LB: loop body
LE: loop exit
PB: predicated region body
PF: predicated region fallthrough
CT: control target
= control target key end

     0   :  { %s799_s1 = inlined_call_operand.vmem [shape: bf16[384,128], index: 1, kind: input, shape index: {}]   ;;  %s800_s0 = inlined_call_operand.vmem [shape: bf16[64,384], index: 0, kind: input, shape index: {}]   ;;  %s801_s2 = inlined_call_operand.vmem [shape: f32[1,128], index: 2, kind: input, shape index: {}]   ;;  %s802_s3 = inlined_call_operand.vmem [shape: f32[64,128], index: 3, kind: output, shape index: {}]  }
   0x1   :  { %v604_v0 = vld [vmem:[%s799_s1 + $0x40] sm:$0xff]   ;;  %v607_v3 = vld [vmem:[%s799_s1 + $0x48] sm:$0xff]   ;;  %v610_v6 = vld [vmem:[%s799_s1 + $0x50] sm:$0xff]  }
   0x2   :  { %v605_v1 = vld [vmem:[%s799_s1] sm:$0xff]   ;;  %528 = vmatprep.subr.bf16.mxu0 %v604_v0  ;;  %v608_v4 = vld [vmem:[%s799_s1 + $0x8] sm:$0xff]   ;;  %v611_v7 = vld [vmem:[%s799_s1 + $0x10] sm:$0xff]  }
   0x3   :  { %v606_v2 = vld [vmem:[%s799_s1 + $0x80] sm:$0xff]   ;;  %529 = vmatpush3.bf16.msra.mxu0 %v605_v1  ;;  %v609_v5 = vld [vmem:[%s799_s1 + $0x88] sm:$0xff]   ;;  %v612_v8 = vld [vmem:[%s799_s1 + $0x90] sm:$0xff]  }
   0x4   :  { %580 = vmatprep.subr.bf16.mxu1 %v606_v2  ;;  %530 = vmatprep.subr.bf16.mxu0 %v607_v3  ;;  %v613_v9 = vld [vmem:[%s799_s1 + $0x58] sm:$0xff]   ;;  %v616_v12 = vld [vmem:[%s799_s1 + $0x60] sm:$0xff]   ;;  %v619_v15 = vld [vmem:[%s799_s1 + $0x68] sm:$0xff]  }
   0x5   :  { %581 = vmatpush3.bf16.msra.mxu1 %v606_v2  ;;  %v614_v10 = vld [vmem:[%s799_s1 + $0x18] sm:$0xff]   ;;  %v618_v13 = vld [vmem:[%s799_s1 + $0xa0] sm:$0xff]   ;;  %v621_v16 = vld [vmem:[%s799_s1 + $0xa8] sm:$0xff]  }
   0x6   :  { %582 = vmatprep.subr.bf16.mxu1 %v609_v5  ;;  %v615_v11 = vld [vmem:[%s799_s1 + $0x98] sm:$0xff]   ;;  %v617_v14 = vld [vmem:[%s799_s1 + $0x20] sm:$0xff]   ;;  %v620_v17 = vld [vmem:[%s799_s1 + $0x28] sm:$0xff]  }
   0x7   :  { %531 = vmatpush3.bf16.msra.mxu0 %v608_v4  ;;  %v622_v18 = vld [vmem:[%s799_s1 + $0x70] sm:$0xff]   ;;  %v625_v21 = vld [vmem:[%s799_s1 + $0x78] sm:$0xff]   ;;  %v628_v26 = vld [vmem:[%s800_s0] ss:$12 sps:$4 sm:$0xff]  }
   0x8   :  { %532 = vmatprep.subr.bf16.mxu0 %v610_v6  ;;  %v623_v19 = vld [vmem:[%s799_s1 + $0x30] sm:$0xff]   ;;  %v627_v22 = vld [vmem:[%s799_s1 + $0xb8] sm:$0xff]   ;;  %v632_v28 = vld [vmem:[%s800_s0 + $0x20] ss:$12 sps:$4 sm:$0xff]  }
   0x9   :  { %583 = vmatpush3.bf16.msra.mxu1 %v609_v5  ;;  %v624_v20 = vld [vmem:[%s799_s1 + $0xb0] sm:$0xff]   ;;  %v626_v25 = vld [vmem:[%s799_s1 + $0x38] sm:$0xff]   ;;  %v527_v43 = vld [vmem:[%s801_s2] ss:$0 sm:$0xff] }
   0xa   :  { %584 = vmatprep.subr.bf16.mxu1 %v612_v8  ;;  %v630_v23 = vld [vmem:[%s800_s0 + $0x4] ss:$12 sps:$4 sm:$0xff]   ;;  %v631_v24 = vld [vmem:[%s800_s0 + $0x8] ss:$12 sps:$4 sm:$0xff]   ;;  %v641_v34 = vld [vmem:[%s800_s0 + $0x4c] ss:$12 sps:$4 sm:$0xff]  }
   0xb   :  { %533 = vmatpush3.bf16.msra.mxu0 %v611_v7  ;;  %339 = vmatprep.mubr.bf16.mxu0 %v630_v23  ;;  %v633_v27 = vld [vmem:[%s800_s0 + $0x1c] ss:$12 sps:$4 sm:$0xff]   ;;  %v639_v29 = vld [vmem:[%s800_s0 + $0x38] ss:$12 sps:$4 sm:$0xff]   ;;  %v636_v31 = vld [vmem:[%s800_s0 + $0x34] ss:$12 sps:$4 sm:$0xff]  }
   0xc   :  { %534 = vmatprep.subr.bf16.mxu0 %v613_v9  ;;  %596 = vmatprep.mubr.bf16.mxu1 %v631_v24  ;;  %v635_v30 = vld [vmem:[%s800_s0 + $0x18] ss:$12 sps:$4 sm:$0xff]   ;;  %v640_v32 = vld [vmem:[%s800_s0 + $0x50] ss:$12 sps:$4 sm:$0xff]   ;;  %v643_v35 = vld [vmem:[%s800_s0 + $0x48] ss:$12 sps:$4 sm:$0xff]  }
   0xd   :  { %585 = vmatpush3.bf16.msra.mxu1 %v612_v8  ;;  %v638_v33 = vld [vmem:[%s800_s0 + $0x30] ss:$12 sps:$4 sm:$0xff]  }
   0xe   :  { %586 = vmatprep.subr.bf16.mxu1 %v615_v11 }
   0xf   :  { %535 = vmatpush3.bf16.msra.mxu0 %v614_v10 }
  0x10   :  { %536 = vmatprep.subr.bf16.mxu0 %v616_v12 }
  0x11   :  { %587 = vmatpush3.bf16.msra.mxu1 %v615_v11 }
  0x12   :  { %588 = vmatprep.subr.bf16.mxu1 %v618_v13 }
  0x13   :  { %537 = vmatpush3.bf16.msra.mxu0 %v617_v14 }
  0x14   :  { %538 = vmatprep.subr.bf16.mxu0 %v619_v15 }
  0x15   :  { %589 = vmatpush3.bf16.msra.mxu1 %v618_v13 }
  0x16   :  { %590 = vmatprep.subr.bf16.mxu1 %v621_v16 }
  0x17   :  { %539 = vmatpush3.bf16.msra.mxu0 %v620_v17 }
  0x18   :  { %540 = vmatprep.subr.bf16.mxu0 %v622_v18 }
  0x19   :  { %591 = vmatpush3.bf16.msra.mxu1 %v621_v16 }
  0x1a   :  { %592 = vmatprep.subr.bf16.mxu1 %v624_v20 }
  0x1b   :  { %541 = vmatpush3.bf16.msra.mxu0 %v623_v19 }
  0x1c   :  { %542 = vmatprep.subr.bf16.mxu0 %v625_v21 }
  0x1d   :  { %593 = vmatpush3.bf16.msra.mxu1 %v624_v20 }
  0x1e   :  { %594 = vmatprep.subr.bf16.mxu1 %v627_v22 }
  0x1f   :  { %543 = vmatpush3.bf16.msra.mxu0 %v626_v25 }
  0x21   :  { %595 = vmatpush3.bf16.msra.mxu1 %v627_v22 }
  0x22   :  { %340 = vmatmul.mubr.bf16.vlgmr.msra.gmra.mrb[0].mxu0 %v628_v26 }
  0x23   :  { %347 = vmatprep.mubr.bf16.mxu0 %v633_v27 }
  0x24   :  { %597 = vmatmul.mubr.bf16.vlgmr.msra.gmra.mrb[0].mxu1 %v632_v28 }
  0x25   :  { %600 = vmatprep.mubr.bf16.mxu1 %v639_v29 }
  0x2a   :  { %348 = vmatmul.mubr.bf16.gmra.mrb[4].mxu0 %v635_v30 }
  0x2b   :  { %355 = vmatprep.mubr.bf16.mxu0 %v636_v31 }
  0x2c   :  { %601 = vmatmul.mubr.bf16.gmra.mrb[4].mxu1 %v640_v32 }
  0x32   :  { %356 = vmatmul.mubr.bf16.gmra.mrb[8].mxu0 %v638_v33 }
  0x33   :  { %363 = vmatprep.mubr.bf16.mxu0 %v641_v34 }
  0x3a   :  { %364 = vmatmul.mubr.bf16.gmra.mrb[12].mxu0 %v643_v35 }
  0xf5   :  { %v544_v36 = vpop.f32.mrb[0].mxu0 }
  0xf6   :  { %v545_v37 = vpop.f32.mrb[1].mxu0 }
  0xf7   :  { %v546_v38 = vadd.f32 %v545_v37, %v544_v36  ;;  %v547_v39 = vpop.f32.mrb[2].mxu0  ;;  %v598_v40 = vpop.f32.mrb[0].mxu1 }
  0xf8   :  { %v548_v41 = vpop.f32.mrb[3].mxu0  ;;  %v406_v42 = vpop.f32.mrb[1].mxu1 }
  0xf9   :  { %v549_v44 = vadd.f32 %v548_v41, %v547_v39  ;;  %v407_v45 = vadd.f32 %v546_v38, %v406_v42  ;;  %v599_v46 = vpop.f32.mrb[2].mxu1 }
  0xfa   :  { %v409_v47 = vpop.f32.mrb[3].mxu1 }
  0xfb   :  { %v471_v48 = vadd.f32 %v527_v43, %v407_v45  ;;  %v410_v49 = vadd.f32 %v549_v44, %v409_v47 }
  0xfd   :  { %479 = vst [vmem:[%s802_s3] sm:$0xff] %v471_v48  ;;  %v472_v50 = vadd.f32 %v527_v43, %v410_v49  ;;  %v550_v51 = vpop.f32.mrb[4].mxu0 }
  0xfe   :  { %v551_v52 = vpop.f32.mrb[5].mxu0 }
  0xff   :  { %480 = vst [vmem:[%s802_s3 + $0x8] sm:$0xff] %v472_v50  ;;  %v552_v53 = vadd.f32 %v551_v52, %v550_v51  ;;  %v553_v54 = vpop.f32.mrb[6].mxu0  ;;  %v602_v55 = vpop.f32.mrb[4].mxu1 }
 0x100   :  { %v554_v56 = vpop.f32.mrb[7].mxu0  ;;  %v422_v57 = vpop.f32.mrb[5].mxu1 }
 0x101   :  { %v415_v58 = vadd.f32 %v598_v40, %v552_v53  ;;  %v555_v59 = vadd.f32 %v554_v56, %v553_v54  ;;  %v603_v60 = vpop.f32.mrb[6].mxu1 }
 0x102   :  { %v425_v61 = vpop.f32.mrb[7].mxu1 }
 0x103   :  { %v473_v62 = vadd.f32 %v527_v43, %v415_v58  ;;  %v418_v63 = vadd.f32 %v599_v46, %v555_v59 }
 0x105   :  { %481 = vst [vmem:[%s802_s3 + $0x10] sm:$0xff] %v473_v62  ;;  %v474_v0 = vadd.f32 %v527_v43, %v418_v63  ;;  %v556_v1 = vpop.f32.mrb[8].mxu0 }
 0x106   :  { %v557_v2 = vpop.f32.mrb[9].mxu0 }
 0x107   :  { %482 = vst [vmem:[%s802_s3 + $0x18] sm:$0xff] %v474_v0  ;;  %v558_v3 = vadd.f32 %v557_v2, %v556_v1  ;;  %v559_v4 = vpop.f32.mrb[10].mxu0 }
 0x108   :  { %v560_v5 = vpop.f32.mrb[11].mxu0 }
 0x109   :  { %v561_v6 = vadd.f32 %v560_v5, %v559_v4  ;;  %v423_v7 = vadd.f32 %v558_v3, %v422_v57 }
 0x10b   :  { %v475_v8 = vadd.f32 %v527_v43, %v423_v7  ;;  %v426_v9 = vadd.f32 %v561_v6, %v425_v61 }
 0x10d   :  { %483 = vst [vmem:[%s802_s3 + $0x20] sm:$0xff] %v475_v8  ;;  %v476_v10 = vadd.f32 %v527_v43, %v426_v9  ;;  %v562_v11 = vpop.f32.mrb[12].mxu0 }
 0x10e   :  { %v563_v12 = vpop.f32.mrb[13].mxu0 }
 0x10f   :  { %484 = vst [vmem:[%s802_s3 + $0x28] sm:$0xff] %v476_v10  ;;  %v564_v13 = vadd.f32 %v563_v12, %v562_v11  ;;  %v565_v14 = vpop.f32.mrb[14].mxu0 }
 0x110   :  { %v566_v15 = vpop.f32.mrb[15].mxu0 }
 0x111   :  { %v431_v16 = vadd.f32 %v602_v55, %v564_v13  ;;  %v567_v17 = vadd.f32 %v566_v15, %v565_v14 }
 0x113   :  { %v477_v18 = vadd.f32 %v527_v43, %v431_v16  ;;  %v434_v19 = vadd.f32 %v603_v60, %v567_v17 }
 0x115   :  { %485 = vst [vmem:[%s802_s3 + $0x30] sm:$0xff] %v477_v18  ;;  %v478_v20 = vadd.f32 %v527_v43, %v434_v19 }
 0x117   :  { %486 = vst [vmem:[%s802_s3 + $0x38] sm:$0xff] %v478_v20 }

// kernel: resnet_forward.15
= control target key start
LH: loop header
LB: loop body
LE: loop exit
PB: predicated region body
PF: predicated region fallthrough
CT: control target
= control target key end

     0   :  { %vm608_vm0 = vcmask 254976   ;;  %vm2409_vm1 = vcmask 1041409   ;;  %vm2411_vm2 = vcmask 1042434   ;;  %vm2413_vm3 = vcmask 1043459   ;;  %s4562_s0 = inlined_call_operand.vmem [shape: f32[20,2,10,2,32], index: 0, kind: input, shape index: {}]   ;;  %s4563_s1 = inlined_call_operand.vmem [shape: f32[20,10,32], index: 1, kind: output, shape index: {}]  }
   0x1   :  { %v8_v0 = vld [vmem:[%s4562_s0] sm:$0x3]  ;;  %v9_v1 = vld [vmem:[%s4562_s0 + $0x2] sm:$0x3]  ;;  %v10_v2 = vld [vmem:[%s4562_s0 + $0x4] sm:$0x3] }
   0x2   :  { %v11_v3 = vld [vmem:[%s4562_s0 + $0x6] sm:$0x3]  ;;  %v12_v4 = vld [vmem:[%s4562_s0 + $0x8] sm:$0x3]  ;;  %v13_v5 = vld [vmem:[%s4562_s0 + $0xa] sm:$0x3] }
   0x3   :  { %v14_v6 = vld [vmem:[%s4562_s0 + $0xc] sm:$0x3]  ;;  %v15_v7 = vld [vmem:[%s4562_s0 + $0xe] sm:$0x3]  ;;  %v18_v8 = vld [vmem:[%s4562_s0 + $0x14] sm:$0x3] }
   0x4   :  { %v19_v9 = vld [vmem:[%s4562_s0 + $0x16] sm:$0x3]  ;;  %v20_v10 = vld [vmem:[%s4562_s0 + $0x18] sm:$0x3]  ;;  %v21_v11 = vld [vmem:[%s4562_s0 + $0x1a] sm:$0x3]  ;;  %v408_v12 = vmax.f32 %v8_v0, %v18_v8 }
   0x5   :  { %v22_v13 = vld [vmem:[%s4562_s0 + $0x1c] sm:$0x3]  ;;  %v23_v14 = vld [vmem:[%s4562_s0 + $0x1e] sm:$0x3]  ;;  %v24_v15 = vld [vmem:[%s4562_s0 + $0x20] sm:$0x3]  ;;  %v409_v16 = vmax.f32 %v9_v1, %v19_v9  ;;  %v410_v17 = vmax.f32 %v10_v2, %v20_v10  ;;  %v411_v18 = vmax.f32 %v11_v3, %v21_v11 }
   0x6   :  { %v25_v19 = vld [vmem:[%s4562_s0 + $0x22] sm:$0x3]  ;;  %v412_v20 = vmax.f32 %v12_v4, %v22_v13  ;;  %v413_v21 = vmax.f32 %v13_v5, %v23_v14  ;;  %v414_v22 = vmax.f32 %v14_v6, %v24_v15  ;;  %v609_v23 = vsel %vm608_vm0, %v408_v12, -inf  ;;  %v16_v12 = vld [vmem:[%s4562_s0 + $0x10] sm:$0x3] }
   0x7   :  { %v415_v24 = vmax.f32 %v15_v7, %v25_v19  ;;  %v610_v25 = vrot.slane %v609_v23, 4  ;;  %v616_v26 = vsel %vm608_vm0, %v409_v16, -inf  ;;  %v623_v27 = vsel %vm608_vm0, %v410_v17, -inf  ;;  %v26_v13 = vld [vmem:[%s4562_s0 + $0x24] sm:$0x3] }
   0x8   :  { %v617_v28 = vrot.slane %v616_v26, 4  ;;  %v624_v29 = vrot.slane %v623_v27, 4  ;;  %v630_v30 = vsel %vm608_vm0, %v411_v18, -inf  ;;  %v637_v31 = vsel %vm608_vm0, %v412_v20, -inf  ;;  %v17_v18 = vld [vmem:[%s4562_s0 + $0x12] sm:$0x3] }
   0x9   :  { %v611_v32 = vmax.f32 %v609_v23, %v610_v25  ;;  %v631_v33 = vrot.slane %v630_v30, 4  ;;  %v638_v34 = vrot.slane %v637_v31, 4  ;;  %v644_v35 = vsel %vm608_vm0, %v413_v21, -inf  ;;  %v27_v19 = vld [vmem:[%s4562_s0 + $0x26] sm:$0x3] }
   0xa   :  { %v618_v36 = vmax.f32 %v616_v26, %v617_v28  ;;  %v625_v37 = vmax.f32 %v623_v27, %v624_v29  ;;  %v645_v38 = vrot.slane %v644_v35, 4  ;;  %v651_v39 = vsel %vm608_vm0, %v414_v22, -inf  ;;  %v28_v20 = vld [vmem:[%s4562_s0 + $0x28] sm:$0x3]  ;;  %v29_v21 = vld [vmem:[%s4562_s0 + $0x2a] sm:$0x3] }
   0xb   :  { %v612_v40 = vrot.slane %v611_v32, 2  ;;  %v632_v41 = vmax.f32 %v630_v30, %v631_v33  ;;  %v639_v42 = vmax.f32 %v637_v31, %v638_v34  ;;  %v652_v43 = vrot.slane %v651_v39, 4  ;;  %v30_v25 = vld [vmem:[%s4562_s0 + $0x2c] sm:$0x3]  ;;  %v38_v26 = vld [vmem:[%s4562_s0 + $0x3c] sm:$0x3] }
   0xc   :  { %v619_v44 = vrot.slane %v618_v36, 2  ;;  %v626_v45 = vrot.slane %v625_v37, 2  ;;  %v646_v46 = vmax.f32 %v644_v35, %v645_v38  ;;  %v658_v47 = vsel %vm608_vm0, %v415_v24, -inf  ;;  %v31_v30 = vld [vmem:[%s4562_s0 + $0x2e] sm:$0x3] }
   0xd   :  { %v613_v48 = vmax.f32 %v611_v32, %v612_v40  ;;  %v633_v49 = vrot.slane %v632_v41, 2  ;;  %v640_v50 = vrot.slane %v639_v42, 2  ;;  %v653_v51 = vmax.f32 %v651_v39, %v652_v43  ;;  %v39_v31 = vld [vmem:[%s4562_s0 + $0x3e] sm:$0x3]  ;;  %v32_v34 = vld [vmem:[%s4562_s0 + $0x30] sm:$0x3] }
   0xe   :  { %v620_v52 = vmax.f32 %v618_v36, %v619_v44  ;;  %v627_v53 = vmax.f32 %v625_v37, %v626_v45  ;;  %v647_v54 = vrot.slane %v646_v46, 2  ;;  %v659_v55 = vrot.slane %v658_v47, 4  ;;  %v33_v35 = vld [vmem:[%s4562_s0 + $0x32] sm:$0x3]  ;;  %v40_v36 = vld [vmem:[%s4562_s0 + $0x40] sm:$0x3] }
   0xf   :  { %v614_v56 = vrot.slane %v613_v48, 1  ;;  %v634_v57 = vmax.f32 %v632_v41, %v633_v49  ;;  %v641_v58 = vmax.f32 %v639_v42, %v640_v50  ;;  %v654_v59 = vrot.slane %v653_v51, 2  ;;  %v2772_v40 = vld [vmem:[%s4562_s0 + $0x34] sm:$0x3]  ;;  %v41_v41 = vld [vmem:[%s4562_s0 + $0x42] sm:$0x3] }
  0x10   :  { %v621_v60 = vrot.slane %v620_v52, 1  ;;  %v628_v61 = vrot.slane %v627_v53, 1  ;;  %v648_v62 = vmax.f32 %v646_v46, %v647_v54  ;;  %v660_v63 = vmax.f32 %v658_v47, %v659_v55  ;;  %v2781_v44 = vld [vmem:[%s4562_s0 + $0x36] sm:$0x3]  ;;  %v42_v45 = vld [vmem:[%s4562_s0 + $0x44] sm:$0x3] }
  0x11   :  { %v615_v0 = vmax.f32 %v613_v48, %v614_v56  ;;  %v635_v1 = vrot.slane %v634_v57, 1  ;;  %v642_v2 = vrot.slane %v641_v58, 1  ;;  %v655_v3 = vmax.f32 %v653_v51, %v654_v59  ;;  %v43_v46 = vld [vmem:[%s4562_s0 + $0x46] sm:$0x3] }
  0x12   :  { %v622_v4 = vmax.f32 %v620_v52, %v621_v60  ;;  %v629_v5 = vmax.f32 %v627_v53, %v628_v61  ;;  %v649_v6 = vrot.slane %v648_v62, 1  ;;  %v661_v7 = vrot.slane %v660_v63, 2  ;;  %v2794_v52 = vld [vmem:[%s4562_s0 + $0x48] sm:$0x3]  ;;  %v2799_v53 = vld [vmem:[%s4562_s0 + $0x4a] sm:$0x3] }
  0x13   :  { %v636_v8 = vmax.f32 %v634_v57, %v635_v1  ;;  %v643_v9 = vmax.f32 %v641_v58, %v642_v2  ;;  %v656_v10 = vrot.slane %v655_v3, 1  ;;  %v2009_v11 = vmax.f32 %v615_v0, 0.0 }
  0x14   :  { %v650_v14 = vmax.f32 %v648_v62, %v649_v6  ;;  %v662_v15 = vmax.f32 %v660_v63, %v661_v7  ;;  %v2010_v16 = vmax.f32 %v622_v4, 0.0  ;;  %v2011_v17 = vmax.f32 %v629_v5, 0.0 }
  0x15   :  { %v657_v22 = vmax.f32 %v655_v3, %v656_v10  ;;  %v2012_v23 = vmax.f32 %v636_v8, 0.0  ;;  %v2013_v24 = vmax.f32 %v643_v9, 0.0  ;;  %vm2415_vm4 = vcmask 1044484  }
  0x16   :  { %v663_v27 = vrot.slane %v662_v15, 1  ;;  %v2014_v28 = vmax.f32 %v650_v14, 0.0  ;;  %v2410_v29 = vsel %vm2409_vm1, %v2010_v16, %v2009_v11  ;;  %vm2417_vm5 = vcmask 1045509  }
  0x17   :  { %v2015_v32 = vmax.f32 %v657_v22, 0.0  ;;  %v2412_v33 = vsel %vm2411_vm2, %v2011_v17, %v2410_v29  ;;  %vm2419_vm6 = vcmask 1046534   ;;  %vm2421_vm7 = vcmask 1047559  }
  0x18   :  { %v664_v37 = vmax.f32 %v662_v15, %v663_v27  ;;  %v2414_v38 = vsel %vm2413_vm3, %v2012_v23, %v2412_v33  ;;  %vm2616_vm8 = vcmask 261120   ;;  %v416_v39 = vmax.f32 %v16_v12, %v26_v13 }
  0x19   :  { %v2416_v42 = vsel %vm2415_vm4, %v2013_v24, %v2414_v38  ;;  %v417_v43 = vmax.f32 %v17_v18, %v27_v19  ;;  %v418_v47 = vmax.f32 %v28_v20, %v38_v26  ;;  %v419_v48 = vmax.f32 %v29_v21, %v39_v31 }
  0x1a   :  { %v2016_v49 = vmax.f32 %v664_v37, 0.0  ;;  %v2418_v50 = vsel %vm2417_vm5, %v2014_v28, %v2416_v42  ;;  %v665_v51 = vsel %vm608_vm0, %v416_v39, -inf  ;;  %v420_v54 = vmax.f32 %v30_v25, %v40_v36 }
  0x1b   :  { %v2420_v55 = vsel %vm2419_vm6, %v2015_v32, %v2418_v50  ;;  %v666_v56 = vrot.slane %v665_v51, 4  ;;  %v672_v57 = vsel %vm608_vm0, %v417_v43, -inf  ;;  %v421_v58 = vmax.f32 %v31_v30, %v41_v41 }
  0x1c   :  { %v2422_v59 = vsel %vm2421_vm7, %v2016_v49, %v2420_v55  ;;  %v673_v60 = vrot.slane %v672_v57, 4  ;;  %v422_v61 = vmax.f32 %v32_v34, %v42_v45  ;;  %v423_v62 = vmax.f32 %v33_v35, %v43_v46 }
  0x1d   :  { %2617 = vst.msk [vmem:[%s4563_s1] sm:$0xff] %vm2616_vm8, %v2422_v59  ;;  %v667_v63 = vmax.f32 %v665_v51, %v666_v56  ;;  %v424_v0 = vmax.f32 %v2772_v40, %v2794_v52  ;;  %v425_v1 = vmax.f32 %v2781_v44, %v2799_v53  ;;  %v679_v2 = vsel %vm608_vm0, %v418_v47, -inf  ;;  %v36_v51 = vld [vmem:[%s4562_s0 + $0x38] sm:$0x3]  ;;  %v37_v56 = vld [vmem:[%s4562_s0 + $0x3a] sm:$0x3] }
  0x1e   :  { %v674_v3 = vmax.f32 %v672_v57, %v673_v60  ;;  %v680_v4 = vrot.slane %v679_v2, 4  ;;  %v686_v5 = vsel %vm608_vm0, %v419_v48, -inf  ;;  %v693_v6 = vsel %vm608_vm0, %v420_v54, -inf  ;;  %v46_v57 = vld [vmem:[%s4562_s0 + $0x4c] sm:$0x3] }
  0x1f   :  { %v668_v7 = vrot.slane %v667_v63, 2  ;;  %v687_v8 = vrot.slane %v686_v5, 4  ;;  %v694_v9 = vrot.slane %v693_v6, 4  ;;  %v700_v10 = vsel %vm608_vm0, %v421_v58, -inf  ;;  %v47_v58 = vld [vmem:[%s4562_s0 + $0x4e] sm:$0x3] }
  0x20   :  { %v675_v11 = vrot.slane %v674_v3, 2  ;;  %v681_v12 = vmax.f32 %v679_v2, %v680_v4  ;;  %v701_v13 = vrot.slane %v700_v10, 4  ;;  %v707_v14 = vsel %vm608_vm0, %v422_v61, -inf }
  0x21   :  { %v669_v15 = vmax.f32 %v667_v63, %v668_v7  ;;  %v688_v16 = vmax.f32 %v686_v5, %v687_v8  ;;  %v695_v17 = vmax.f32 %v693_v6, %v694_v9  ;;  %v708_v18 = vrot.slane %v707_v14, 4  ;;  %v48_v63 = vld [vmem:[%s4562_s0 + $0x50] sm:$0x3]  ;;  %v58_v5 = vld [vmem:[%s4562_s0 + $0x64] sm:$0x3] }
  0x22   :  { %v676_v19 = vmax.f32 %v674_v3, %v675_v11  ;;  %v682_v20 = vrot.slane %v681_v12, 2  ;;  %v702_v21 = vmax.f32 %v700_v10, %v701_v13  ;;  %v714_v22 = vsel %vm608_vm0, %v423_v62, -inf  ;;  %v50_v10 = vld [vmem:[%s4562_s0 + $0x54] sm:$0x3] }
  0x23   :  { %v670_v23 = vrot.slane %v669_v15, 1  ;;  %v689_v24 = vrot.slane %v688_v16, 2  ;;  %v696_v25 = vrot.slane %v695_v17, 2  ;;  %v709_v26 = vmax.f32 %v707_v14, %v708_v18  ;;  %v60_v18 = vld [vmem:[%s4562_s0 + $0x68] sm:$0x3] }
  0x24   :  { %v677_v27 = vrot.slane %v676_v19, 1  ;;  %v683_v28 = vmax.f32 %v681_v12, %v682_v20  ;;  %v703_v29 = vrot.slane %v702_v21, 2  ;;  %v715_v30 = vrot.slane %v714_v22, 4 }
  0x25   :  { %v671_v31 = vmax.f32 %v669_v15, %v670_v23  ;;  %v690_v32 = vmax.f32 %v688_v16, %v689_v24  ;;  %v697_v33 = vmax.f32 %v695_v17, %v696_v25  ;;  %v710_v34 = vrot.slane %v709_v26, 2  ;;  %v51_v15 = vld [vmem:[%s4562_s0 + $0x56] sm:$0x3]  ;;  %v52_v16 = vld [vmem:[%s4562_s0 + $0x58] sm:$0x3] }
  0x26   :  { %v678_v35 = vmax.f32 %v676_v19, %v677_v27  ;;  %v684_v36 = vrot.slane %v683_v28, 1  ;;  %v704_v37 = vmax.f32 %v702_v21, %v703_v29  ;;  %v716_v38 = vmax.f32 %v714_v22, %v715_v30  ;;  %v59_v17 = vld [vmem:[%s4562_s0 + $0x66] sm:$0x3]  ;;  %v53_v22 = vld [vmem:[%s4562_s0 + $0x5a] sm:$0x3] }
  0x27   :  { %v2017_v39 = vmax.f32 %v671_v31, 0.0  ;;  %v691_v40 = vrot.slane %v690_v32, 1  ;;  %v698_v41 = vrot.slane %v697_v33, 1  ;;  %v711_v42 = vmax.f32 %v709_v26, %v710_v34  ;;  %v61_v23 = vld [vmem:[%s4562_s0 + $0x6a] sm:$0x3] }
  0x28   :  { %v2018_v43 = vmax.f32 %v678_v35, 0.0  ;;  %v685_v44 = vmax.f32 %v683_v28, %v684_v36  ;;  %v705_v45 = vrot.slane %v704_v37, 1  ;;  %v717_v46 = vrot.slane %v716_v38, 2  ;;  %v62_v29 = vld [vmem:[%s4562_s0 + $0x6c] sm:$0x3] }
  0x29   :  { %v692_v47 = vmax.f32 %v690_v32, %v691_v40  ;;  %v699_v48 = vmax.f32 %v697_v33, %v698_v41  ;;  %v712_v49 = vrot.slane %v711_v42, 1  ;;  %v721_v50 = vsel %vm608_vm0, %v424_v0, -inf  ;;  %v63_v30 = vld [vmem:[%s4562_s0 + $0x6e] sm:$0x3]  ;;  %v2882_v33 = vld [vmem:[%s4562_s0 + $0x5c] sm:$0x3] }
  0x2a   :  { %v2423_v52 = vsel %vm2409_vm1, %v2018_v43, %v2017_v39  ;;  %v706_v53 = vmax.f32 %v704_v37, %v705_v45  ;;  %v718_v54 = vmax.f32 %v716_v38, %v717_v46  ;;  %v722_v55 = vrot.slane %v721_v50, 4  ;;  %v64_v34 = vld [vmem:[%s4562_s0 + $0x70] sm:$0x3]  ;;  %v2891_v41 = vld [vmem:[%s4562_s0 + $0x5e] sm:$0x3] }
  0x2b   :  { %2618 = vst.msk [vmem:[%s4563_s1 + $0x8] sm:$0x3] %vm608_vm0, %v2423_v52  ;;  %v713_v59 = vmax.f32 %v711_v42, %v712_v49  ;;  %v728_v60 = vsel %vm608_vm0, %v425_v1, -inf  ;;  %v2019_v61 = vmax.f32 %v685_v44, 0.0  ;;  %v2020_v62 = vmax.f32 %v692_v47, 0.0 }
  0x2c   :  { %v719_v0 = vrot.slane %v718_v54, 1  ;;  %v723_v2 = vmax.f32 %v721_v50, %v722_v55  ;;  %v729_v3 = vrot.slane %v728_v60, 4  ;;  %v2021_v4 = vmax.f32 %v699_v48, 0.0  ;;  %v49_v1 = vld [vmem:[%s4562_s0 + $0x52] sm:$0x3] }
  0x2d   :  { %v2022_v6 = vmax.f32 %v706_v53, 0.0  ;;  %v2023_v7 = vmax.f32 %v713_v59, 0.0  ;;  %v2424_v8 = vsel %vm2409_vm1, %v2020_v62, %v2019_v61  ;;  %v426_v9 = vmax.f32 %v36_v51, %v46_v57  ;;  %v2896_v42 = vld [vmem:[%s4562_s0 + $0x72] sm:$0x3] }
  0x2e   :  { %v720_v11 = vmax.f32 %v718_v54, %v719_v0  ;;  %v724_v12 = vrot.slane %v723_v2, 2  ;;  %v730_v13 = vmax.f32 %v728_v60, %v729_v3  ;;  %v2425_v14 = vsel %vm2411_vm2, %v2021_v4, %v2424_v8 }
  0x2f   :  { %v2426_v19 = vsel %vm2413_vm3, %v2022_v6, %v2425_v14  ;;  %v427_v20 = vmax.f32 %v37_v56, %v47_v58  ;;  %v735_v21 = vsel %vm608_vm0, %v426_v9, -inf  ;;  %v428_v24 = vmax.f32 %v48_v63, %v58_v5 }
  0x30   :  { %v725_v25 = vmax.f32 %v723_v2, %v724_v12  ;;  %v731_v26 = vrot.slane %v730_v13, 2  ;;  %v2024_v27 = vmax.f32 %v720_v11, 0.0  ;;  %v2427_v28 = vsel %vm2415_vm4, %v2023_v7, %v2426_v19 }
  0x31   :  { %v736_v31 = vrot.slane %v735_v21, 4  ;;  %v742_v32 = vsel %vm608_vm0, %v427_v20, -inf  ;;  %v429_v35 = vmax.f32 %v49_v1, %v59_v17  ;;  %v430_v36 = vmax.f32 %v50_v10, %v60_v18 }
  0x32   :  { %v726_v37 = vrot.slane %v725_v25, 1  ;;  %v732_v38 = vmax.f32 %v730_v13, %v731_v26  ;;  %v2428_v39 = vsel %vm2417_vm5, %v2024_v27, %v2427_v28  ;;  %v743_v40 = vrot.slane %v742_v32, 4 }
  0x33   :  { %v737_v43 = vmax.f32 %v735_v21, %v736_v31  ;;  %v431_v44 = vmax.f32 %v51_v15, %v61_v23  ;;  %v432_v45 = vmax.f32 %v52_v16, %v62_v29  ;;  %v433_v46 = vmax.f32 %v53_v22, %v63_v30 }
  0x34   :  { %v727_v47 = vmax.f32 %v725_v25, %v726_v37  ;;  %v733_v48 = vrot.slane %v732_v38, 1  ;;  %v744_v49 = vmax.f32 %v742_v32, %v743_v40  ;;  %v434_v50 = vmax.f32 %v2882_v33, %v64_v34  ;;  %v66_v40 = vld [vmem:[%s4562_s0 + $0x74] sm:$0x3] }
  0x35   :  { %v738_v51 = vrot.slane %v737_v43, 2  ;;  %v435_v52 = vmax.f32 %v2891_v41, %v2896_v42  ;;  %v749_v53 = vsel %vm608_vm0, %v428_v24, -inf  ;;  %v756_v54 = vsel %vm608_vm0, %v429_v35, -inf  ;;  %v56_v35 = vld [vmem:[%s4562_s0 + $0x60] sm:$0x3] }
  0x36   :  { %v734_v55 = vmax.f32 %v732_v38, %v733_v48  ;;  %v2025_v56 = vmax.f32 %v727_v47, 0.0  ;;  %v745_v57 = vrot.slane %v744_v49, 2  ;;  %v750_v58 = vrot.slane %v749_v53, 4 }
  0x37   :  { %v739_v59 = vmax.f32 %v737_v43, %v738_v51  ;;  %v757_v60 = vrot.slane %v756_v54, 4  ;;  %v763_v61 = vsel %vm608_vm0, %v430_v36, -inf  ;;  %v770_v62 = vsel %vm608_vm0, %v431_v44, -inf }
  0x38   :  { %v2026_v63 = vmax.f32 %v734_v55, 0.0  ;;  %v2429_v0 = vsel %vm2419_vm6, %v2025_v56, %v2428_v39  ;;  %v746_v2 = vmax.f32 %v744_v49, %v745_v57  ;;  %v751_v3 = vmax.f32 %v749_v53, %v750_v58  ;;  %v57_v49 = vld [vmem:[%s4562_s0 + $0x62] sm:$0x3] }
  0x39   :  { %v740_v4 = vrot.slane %v739_v59, 1  ;;  %v758_v5 = vmax.f32 %v756_v54, %v757_v60  ;;  %v764_v6 = vrot.slane %v763_v61, 4  ;;  %v771_v7 = vrot.slane %v770_v62, 4 }
  0x3a   :  { %v2430_v8 = vsel %vm2421_vm7, %v2026_v63, %v2429_v0  ;;  %v747_v9 = vrot.slane %v746_v2, 1  ;;  %v752_v1 = vrot.slane %v751_v3, 2  ;;  %v777_v10 = vsel %vm608_vm0, %v432_v45, -inf  ;;  %v69_v0 = vld [vmem:[%s4562_s0 + $0x7a] sm:$0x3] }
  0x3b   :  { %2619 = vst.msk [vmem:[%s4563_s1 + $0x10] sm:$0xff] %vm2616_vm8, %v2430_v8  ;;  %v741_v11 = vmax.f32 %v739_v59, %v740_v4  ;;  %v759_v12 = vrot.slane %v758_v5, 2  ;;  %v765_v13 = vmax.f32 %v763_v61, %v764_v6  ;;  %v772_v14 = vmax.f32 %v770_v62, %v771_v7  ;;  %v68_v59 = vld [vmem:[%s4562_s0 + $0x78] sm:$0x3]  ;;  %v70_v7 = vld [vmem:[%s4562_s0 + $0x7c] sm:$0x3] }
  0x3c   :  { %v748_v15 = vmax.f32 %v746_v2, %v747_v9  ;;  %v753_v16 = vmax.f32 %v751_v3, %v752_v1  ;;  %v778_v17 = vrot.slane %v777_v10, 4  ;;  %v784_v18 = vsel %vm608_vm0, %v433_v46, -inf  ;;  %v78_v2 = vld [vmem:[%s4562_s0 + $0x8c] sm:$0x3]  ;;  %v71_v8 = vld [vmem:[%s4562_s0 + $0x7e] sm:$0x3] }
  0x3d   :  { %v2027_v19 = vmax.f32 %v741_v11, 0.0  ;;  %v760_v20 = vmax.f32 %v758_v5, %v759_v12  ;;  %v766_v21 = vrot.slane %v765_v13, 2  ;;  %v773_v22 = vrot.slane %v772_v14, 2  ;;  %v72_v12 = vld [vmem:[%s4562_s0 + $0x80] sm:$0x3] }
  0x3e   :  { %v2028_v23 = vmax.f32 %v748_v15, 0.0  ;;  %v754_v24 = vrot.slane %v753_v16, 1  ;;  %v779_v25 = vmax.f32 %v777_v10, %v778_v17  ;;  %v785_v26 = vrot.slane %v784_v18, 4  ;;  %v80_v15 = vld [vmem:[%s4562_s0 + $0x90] sm:$0x3] }
  0x3f   :  { %v761_v27 = vrot.slane %v760_v20, 1  ;;  %v767_v28 = vmax.f32 %v765_v13, %v766_v21  ;;  %v774_v29 = vmax.f32 %v772_v14, %v773_v22  ;;  %v791_v30 = vsel %vm608_vm0, %v434_v50, -inf  ;;  %v67_v50 = vld [vmem:[%s4562_s0 + $0x76] sm:$0x3]  ;;  %v73_v13 = vld [vmem:[%s4562_s0 + $0x82] sm:$0x3] }
  0x40   :  { %v2431_v31 = vsel %vm2409_vm1, %v2028_v23, %v2027_v19  ;;  %v755_v32 = vmax.f32 %v753_v16, %v754_v24  ;;  %v780_v33 = vrot.slane %v779_v25, 2  ;;  %v786_v34 = vmax.f32 %v784_v18, %v785_v26  ;;  %v79_v14 = vld [vmem:[%s4562_s0 + $0x8e] sm:$0x3]  ;;  %v74_v19 = vld [vmem:[%s4562_s0 + $0x84] sm:$0x3] }
  0x41   :  { %2620 = vst.msk [vmem:[%s4563_s1 + $0x18] sm:$0x3] %vm608_vm0, %v2431_v31  ;;  %v762_v36 = vmax.f32 %v760_v20, %v761_v27  ;;  %v768_v37 = vrot.slane %v767_v28, 1  ;;  %v775_v38 = vrot.slane %v774_v29, 1  ;;  %v792_v39 = vrot.slane %v791_v30, 4 }
  0x42   :  { %v781_v41 = vmax.f32 %v779_v25, %v780_v33  ;;  %v787_v42 = vrot.slane %v786_v34, 2  ;;  %v798_v43 = vsel %vm608_vm0, %v435_v52, -inf  ;;  %v2029_v44 = vmax.f32 %v755_v32, 0.0  ;;  %v2970_v20 = vld [vmem:[%s4562_s0 + $0x86] sm:$0x3] }
  0x43   :  { %v769_v45 = vmax.f32 %v767_v28, %v768_v37  ;;  %v776_v46 = vmax.f32 %v774_v29, %v775_v38  ;;  %v793_v47 = vmax.f32 %v791_v30, %v792_v39  ;;  %v799_v48 = vrot.slane %v798_v43, 4  ;;  %v81_v21 = vld [vmem:[%s4562_s0 + $0x92] sm:$0x3]  ;;  %v82_v27 = vld [vmem:[%s4562_s0 + $0x94] sm:$0x3] }
  0x44   :  { %v782_v51 = vrot.slane %v781_v41, 1  ;;  %v788_v53 = vmax.f32 %v786_v34, %v787_v42  ;;  %v2030_v54 = vmax.f32 %v762_v36, 0.0  ;;  %v436_v55 = vmax.f32 %v56_v35, %v66_v40  ;;  %v83_v28 = vld [vmem:[%s4562_s0 + $0x96] sm:$0x3]  ;;  %v84_v31 = vld [vmem:[%s4562_s0 + $0x98] sm:$0x3] }
  0x45   :  { %v794_v56 = vrot.slane %v793_v47, 2  ;;  %v800_v57 = vmax.f32 %v798_v43, %v799_v48  ;;  %v2031_v52 = vmax.f32 %v769_v45, 0.0  ;;  %v2032_v58 = vmax.f32 %v776_v46, 0.0  ;;  %v2988_v32 = vld [vmem:[%s4562_s0 + $0x9a] sm:$0x3] }
  0x46   :  { %v783_v60 = vmax.f32 %v781_v41, %v782_v51  ;;  %v789_v61 = vrot.slane %v788_v53, 1  ;;  %v2432_v62 = vsel %vm2409_vm1, %v2030_v54, %v2029_v44  ;;  %v437_v63 = vmax.f32 %v57_v49, %v67_v50 }
  0x47   :  { %v795_v3 = vmax.f32 %v793_v47, %v794_v56  ;;  %v801_v4 = vrot.slane %v800_v57, 2  ;;  %v2433_v5 = vsel %vm2411_vm2, %v2031_v52, %v2432_v62  ;;  %v805_v6 = vsel %vm608_vm0, %v436_v55, -inf }
  0x48   :  { %v790_v9 = vmax.f32 %v788_v53, %v789_v61  ;;  %v2033_v1 = vmax.f32 %v783_v60, 0.0  ;;  %v2434_v10 = vsel %vm2413_vm3, %v2032_v58, %v2433_v5  ;;  %v806_v11 = vrot.slane %v805_v6, 4 }
  0x49   :  { %v796_v16 = vrot.slane %v795_v3, 1  ;;  %v802_v17 = vmax.f32 %v800_v57, %v801_v4  ;;  %v812_v18 = vsel %vm608_vm0, %v437_v63, -inf  ;;  %v438_v22 = vmax.f32 %v68_v59, %v78_v2 }
  0x4a   :  { %v2034_v23 = vmax.f32 %v790_v9, 0.0  ;;  %v2435_v24 = vsel %vm2415_vm4, %v2033_v1, %v2434_v10  ;;  %v807_v25 = vmax.f32 %v805_v6, %v806_v11  ;;  %v813_v26 = vrot.slane %v812_v18, 4 }
  0x4b   :  { %v797_v29 = vmax.f32 %v795_v3, %v796_v16  ;;  %v803_v30 = vrot.slane %v802_v17, 1  ;;  %v439_v33 = vmax.f32 %v69_v0, %v79_v14  ;;  %v440_v34 = vmax.f32 %v70_v7, %v80_v15 }
  0x4c   :  { %v2436_v35 = vsel %vm2417_vm5, %v2034_v23, %v2435_v24  ;;  %v808_v36 = vrot.slane %v807_v25, 2  ;;  %v814_v37 = vmax.f32 %v812_v18, %v813_v26  ;;  %v441_v38 = vmax.f32 %v71_v8, %v81_v21 }
  0x4d   :  { %v804_v39 = vmax.f32 %v802_v17, %v803_v30  ;;  %v2035_v40 = vmax.f32 %v797_v29, 0.0  ;;  %v442_v41 = vmax.f32 %v72_v12, %v82_v27  ;;  %v443_v42 = vmax.f32 %v73_v13, %v83_v28 }
  0x4e   :  { %v809_v43 = vmax.f32 %v807_v25, %v808_v36  ;;  %v815_v44 = vrot.slane %v814_v37, 2  ;;  %v444_v45 = vmax.f32 %v74_v19, %v84_v31  ;;  %v445_v46 = vmax.f32 %v2970_v20, %v2988_v32  ;;  %v76_v31 = vld [vmem:[%s4562_s0 + $0x88] sm:$0x3]  ;;  %v86_v36 = vld [vmem:[%s4562_s0 + $0x9c] sm:$0x3] }
  0x4f   :  { %v2036_v47 = vmax.f32 %v804_v39, 0.0  ;;  %v2437_v48 = vsel %vm2419_vm6, %v2035_v40, %v2436_v35  ;;  %v819_v49 = vsel %vm608_vm0, %v438_v22, -inf  ;;  %v826_v50 = vsel %vm608_vm0, %v439_v33, -inf }
  0x50   :  { %v810_v51 = vrot.slane %v809_v43, 1  ;;  %v816_v53 = vmax.f32 %v814_v37, %v815_v44  ;;  %v820_v54 = vrot.slane %v819_v49, 4  ;;  %v827_v55 = vrot.slane %v826_v50, 4 }
  0x51   :  { %v2438_v56 = vsel %vm2421_vm7, %v2036_v47, %v2437_v48  ;;  %v833_v57 = vsel %vm608_vm0, %v440_v34, -inf  ;;  %v840_v52 = vsel %vm608_vm0, %v441_v38, -inf  ;;  %v847_v58 = vsel %vm608_vm0, %v442_v41, -inf }
  0x52   :  { %2621 = vst.msk [vmem:[%s4563_s1 + $0x20] sm:$0xff] %vm2616_vm8, %v2438_v56  ;;  %v811_v59 = vmax.f32 %v809_v43, %v810_v51  ;;  %v817_v60 = vrot.slane %v816_v53, 1  ;;  %v821_v61 = vmax.f32 %v819_v49, %v820_v54  ;;  %v828_v62 = vmax.f32 %v826_v50, %v827_v55  ;;  %v88_v51 = vld [vmem:[%s4562_s0 + $0xa0] sm:$0x3]  ;;  %v98_v54 = vld [vmem:[%s4562_s0 + $0xb4] sm:$0x3] }
  0x53   :  { %v834_v63 = vrot.slane %v833_v57, 4  ;;  %v841_v0 = vrot.slane %v840_v52, 4  ;;  %v848_v2 = vrot.slane %v847_v58, 4  ;;  %v854_v3 = vsel %vm608_vm0, %v443_v42, -inf }
  0x54   :  { %v818_v4 = vmax.f32 %v816_v53, %v817_v60  ;;  %v2037_v5 = vmax.f32 %v811_v59, 0.0  ;;  %v822_v6 = vrot.slane %v821_v61, 2  ;;  %v829_v7 = vrot.slane %v828_v62, 2  ;;  %v89_v53 = vld [vmem:[%s4562_s0 + $0xa2] sm:$0x3] }
  0x55   :  { %v835_v8 = vmax.f32 %v833_v57, %v834_v63  ;;  %v842_v9 = vmax.f32 %v840_v52, %v841_v0  ;;  %v849_v1 = vmax.f32 %v847_v58, %v848_v2  ;;  %v855_v10 = vrot.slane %v854_v3, 4  ;;  %v90_v58 = vld [vmem:[%s4562_s0 + $0xa4] sm:$0x3]  ;;  %v91_v63 = vld [vmem:[%s4562_s0 + $0xa6] sm:$0x3] }
  0x56   :  { %v2038_v11 = vmax.f32 %v818_v4, 0.0  ;;  %v823_v12 = vmax.f32 %v821_v61, %v822_v6  ;;  %v830_v13 = vmax.f32 %v828_v62, %v829_v7  ;;  %v861_v14 = vsel %vm608_vm0, %v444_v45, -inf  ;;  %v77_v45 = vld [vmem:[%s4562_s0 + $0x8a] sm:$0x3]  ;;  %v92_v0 = vld [vmem:[%s4562_s0 + $0xa8] sm:$0x3] }
  0x57   :  { %v836_v15 = vrot.slane %v835_v8, 2  ;;  %v843_v16 = vrot.slane %v842_v9, 2  ;;  %v850_v17 = vrot.slane %v849_v1, 2  ;;  %v856_v18 = vmax.f32 %v854_v3, %v855_v10  ;;  %v99_v2 = vld [vmem:[%s4562_s0 + $0xb6] sm:$0x3] }
  0x58   :  { %v2439_v19 = vsel %vm2409_vm1, %v2038_v11, %v2037_v5  ;;  %v824_v20 = vrot.slane %v823_v12, 1  ;;  %v831_v21 = vrot.slane %v830_v13, 1  ;;  %v862_v22 = vrot.slane %v861_v14, 4  ;;  %v93_v6 = vld [vmem:[%s4562_s0 + $0xaa] sm:$0x3] }
  0x59   :  { %2622 = vst.msk [vmem:[%s4563_s1 + $0x28] sm:$0x3] %vm608_vm0, %v2439_v19  ;;  %v837_v23 = vmax.f32 %v835_v8, %v836_v15  ;;  %v844_v24 = vmax.f32 %v842_v9, %v843_v16  ;;  %v851_v25 = vmax.f32 %v849_v1, %v850_v17  ;;  %v857_v26 = vrot.slane %v856_v18, 2  ;;  %v3054_v7 = vld [vmem:[%s4562_s0 + $0xac] sm:$0x3] }
  0x5a   :  { %v825_v27 = vmax.f32 %v823_v12, %v824_v20  ;;  %v832_v28 = vmax.f32 %v830_v13, %v831_v21  ;;  %v863_v29 = vmax.f32 %v861_v14, %v862_v22  ;;  %v868_v30 = vsel %vm608_vm0, %v445_v46, -inf  ;;  %v87_v46 = vld [vmem:[%s4562_s0 + $0x9e] sm:$0x3]  ;;  %v100_v8 = vld [vmem:[%s4562_s0 + $0xb8] sm:$0x3] }
  0x5b   :  { %v838_v32 = vrot.slane %v837_v23, 1  ;;  %v845_v33 = vrot.slane %v844_v24, 1  ;;  %v852_v34 = vrot.slane %v851_v25, 1  ;;  %v858_v35 = vmax.f32 %v856_v18, %v857_v26  ;;  %v101_v13 = vld [vmem:[%s4562_s0 + $0xba] sm:$0x3] }
  0x5c   :  { %v864_v37 = vrot.slane %v863_v29, 2  ;;  %v869_v38 = vrot.slane %v868_v30, 4  ;;  %v2039_v39 = vmax.f32 %v825_v27, 0.0  ;;  %v2040_v40 = vmax.f32 %v832_v28, 0.0  ;;  %v102_v14 = vld [vmem:[%s4562_s0 + $0xbc] sm:$0x3] }
  0x5d   :  { %v839_v41 = vmax.f32 %v837_v23, %v838_v32  ;;  %v846_v42 = vmax.f32 %v844_v24, %v845_v33  ;;  %v853_v43 = vmax.f32 %v851_v25, %v852_v34  ;;  %v859_v44 = vrot.slane %v858_v35, 1  ;;  %v103_v18 = vld [vmem:[%s4562_s0 + $0xbe] sm:$0x3]  ;;  %v104_v19 = vld [vmem:[%s4562_s0 + $0xc0] sm:$0x3] }
  0x5e   :  { %v865_v47 = vmax.f32 %v863_v29, %v864_v37  ;;  %v870_v48 = vmax.f32 %v868_v30, %v869_v38  ;;  %v2440_v49 = vsel %vm2409_vm1, %v2040_v40, %v2039_v39  ;;  %v446_v50 = vmax.f32 %v76_v31, %v86_v36  ;;  %v3078_v24 = vld [vmem:[%s4562_s0 + $0xae] sm:$0x3]  ;;  %v3083_v25 = vld [vmem:[%s4562_s0 + $0xc2] sm:$0x3] }
  0x5f   :  { %v860_v55 = vmax.f32 %v858_v35, %v859_v44  ;;  %v2041_v56 = vmax.f32 %v839_v41, 0.0  ;;  %v2042_v57 = vmax.f32 %v846_v42, 0.0  ;;  %v2043_v52 = vmax.f32 %v853_v43, 0.0 }
  0x60   :  { %v866_v59 = vrot.slane %v865_v47, 1  ;;  %v871_v60 = vrot.slane %v870_v48, 2  ;;  %v447_v61 = vmax.f32 %v77_v45, %v87_v46  ;;  %v875_v62 = vsel %vm608_vm0, %v446_v50, -inf }
  0x61   :  { %v2044_v3 = vmax.f32 %v860_v55, 0.0  ;;  %v2441_v4 = vsel %vm2411_vm2, %v2041_v56, %v2440_v49  ;;  %v876_v5 = vrot.slane %v875_v62, 4  ;;  %v448_v9 = vmax.f32 %v88_v51, %v98_v54 }
  0x62   :  { %v867_v1 = vmax.f32 %v865_v47, %v866_v59  ;;  %v872_v10 = vmax.f32 %v870_v48, %v871_v60  ;;  %v2442_v11 = vsel %vm2413_vm3, %v2042_v57, %v2441_v4  ;;  %v882_v12 = vsel %vm608_vm0, %v447_v61, -inf }
  0x63   :  { %v2443_v15 = vsel %vm2415_vm4, %v2043_v52, %v2442_v11  ;;  %v877_v16 = vmax.f32 %v875_v62, %v876_v5  ;;  %v883_v17 = vrot.slane %v882_v12, 4  ;;  %v449_v20 = vmax.f32 %v89_v53, %v99_v2 }
  0x64   :  { %v873_v21 = vrot.slane %v872_v10, 1  ;;  %v2045_v22 = vmax.f32 %v867_v1, 0.0  ;;  %v2444_v23 = vsel %vm2417_vm5, %v2044_v3, %v2443_v15  ;;  %v450_v26 = vmax.f32 %v90_v58, %v100_v8 }
  0x65   :  { %v878_v27 = vrot.slane %v877_v16, 2  ;;  %v884_v28 = vmax.f32 %v882_v12, %v883_v17  ;;  %v451_v29 = vmax.f32 %v91_v63, %v101_v13  ;;  %v452_v30 = vmax.f32 %v92_v0, %v102_v14 }
  0x66   :  { %v874_v31 = vmax.f32 %v872_v10, %v873_v21  ;;  %v2445_v32 = vsel %vm2419_vm6, %v2045_v22, %v2444_v23  ;;  %v453_v33 = vmax.f32 %v93_v6, %v103_v18  ;;  %v454_v34 = vmax.f32 %v3054_v7, %v104_v19  ;;  %v96_v19 = vld [vmem:[%s4562_s0 + $0xb0] sm:$0x3] }
  0x67   :  { %v879_v35 = vmax.f32 %v877_v16, %v878_v27  ;;  %v885_v36 = vrot.slane %v884_v28, 2  ;;  %v455_v37 = vmax.f32 %v3078_v24, %v3083_v25  ;;  %v889_v38 = vsel %vm608_vm0, %v448_v9, -inf  ;;  %v97_v24 = vld [vmem:[%s4562_s0 + $0xb2] sm:$0x3]  ;;  %v106_v25 = vld [vmem:[%s4562_s0 + $0xc4] sm:$0x3] }
  0x68   :  { %v2046_v39 = vmax.f32 %v874_v31, 0.0  ;;  %v890_v40 = vrot.slane %v889_v38, 4  ;;  %v896_v41 = vsel %vm608_vm0, %v449_v20, -inf  ;;  %v903_v42 = vsel %vm608_vm0, %v450_v26, -inf }
  0x69   :  { %v880_v43 = vrot.slane %v879_v35, 1  ;;  %v886_v44 = vmax.f32 %v884_v28, %v885_v36  ;;  %v897_v45 = vrot.slane %v896_v41, 4  ;;  %v904_v46 = vrot.slane %v903_v42, 4 }
  0x6a   :  { %v2446_v47 = vsel %vm2421_vm7, %v2046_v39, %v2445_v32  ;;  %v891_v48 = vmax.f32 %v889_v38, %v890_v40  ;;  %v910_v49 = vsel %vm608_vm0, %v451_v29, -inf  ;;  %v917_v50 = vsel %vm608_vm0, %v452_v30, -inf  ;;  %v107_v30 = vld [vmem:[%s4562_s0 + $0xc6] sm:$0x3] }
  0x6b   :  { %2623 = vst.msk [vmem:[%s4563_s1 + $0x30] sm:$0xff] %vm2616_vm8, %v2446_v47  ;;  %v881_v51 = vmax.f32 %v879_v35, %v880_v43  ;;  %v887_v53 = vrot.slane %v886_v44, 1  ;;  %v898_v54 = vmax.f32 %v896_v41, %v897_v45  ;;  %v905_v55 = vmax.f32 %v903_v42, %v904_v46  ;;  %v108_v43 = vld [vmem:[%s4562_s0 + $0xc8] sm:$0x3] }
  0x6c   :  { %v892_v56 = vrot.slane %v891_v48, 2  ;;  %v911_v57 = vrot.slane %v910_v49, 4  ;;  %v918_v52 = vrot.slane %v917_v50, 4  ;;  %v924_v58 = vsel %vm608_vm0, %v453_v33, -inf }
  0x6d   :  { %v888_v59 = vmax.f32 %v886_v44, %v887_v53  ;;  %v2047_v60 = vmax.f32 %v881_v51, 0.0  ;;  %v899_v61 = vrot.slane %v898_v54, 2  ;;  %v906_v62 = vrot.slane %v905_v55, 2  ;;  %v109_v44 = vld [vmem:[%s4562_s0 + $0xca] sm:$0x3] }
  0x6e   :  { %v893_v63 = vmax.f32 %v891_v48, %v892_v56  ;;  %v912_v0 = vmax.f32 %v910_v49, %v911_v57  ;;  %v919_v2 = vmax.f32 %v917_v50, %v918_v52  ;;  %v925_v3 = vrot.slane %v924_v58, 4  ;;  %v110_v49 = vld [vmem:[%s4562_s0 + $0xcc] sm:$0x3]  ;;  %v111_v50 = vld [vmem:[%s4562_s0 + $0xce] sm:$0x3] }
  0x6f   :  { %v2048_v4 = vmax.f32 %v888_v59, 0.0  ;;  %v900_v5 = vmax.f32 %v898_v54, %v899_v61  ;;  %v907_v6 = vmax.f32 %v905_v55, %v906_v62  ;;  %v931_v7 = vsel %vm608_vm0, %v454_v34, -inf  ;;  %v118_v51 = vld [vmem:[%s4562_s0 + $0xdc] sm:$0x3]  ;;  %v112_v57 = vld [vmem:[%s4562_s0 + $0xd0] sm:$0x3] }
  0x70   :  { %v894_v8 = vrot.slane %v893_v63, 1  ;;  %v913_v9 = vrot.slane %v912_v0, 2  ;;  %v920_v1 = vrot.slane %v919_v2, 2  ;;  %v926_v10 = vmax.f32 %v924_v58, %v925_v3  ;;  %v113_v52 = vld [vmem:[%s4562_s0 + $0xd2] sm:$0x3] }
  0x71   :  { %v2447_v11 = vsel %vm2409_vm1, %v2048_v4, %v2047_v60  ;;  %v901_v12 = vrot.slane %v900_v5, 1  ;;  %v908_v13 = vrot.slane %v907_v6, 1  ;;  %v932_v14 = vrot.slane %v931_v7, 4  ;;  %v119_v58 = vld [vmem:[%s4562_s0 + $0xde] sm:$0x3] }
  0x72   :  { %2624 = vst.msk [vmem:[%s4563_s1 + $0x38] sm:$0x3] %vm608_vm0, %v2447_v11  ;;  %v895_v15 = vmax.f32 %v893_v63, %v894_v8  ;;  %v914_v16 = vmax.f32 %v912_v0, %v913_v9  ;;  %v921_v17 = vmax.f32 %v919_v2, %v920_v1  ;;  %v927_v18 = vrot.slane %v926_v10, 2  ;;  %v3151_v63 = vld [vmem:[%s4562_s0 + $0xd4] sm:$0x3] }
  0x73   :  { %v902_v20 = vmax.f32 %v900_v5, %v901_v12  ;;  %v909_v21 = vmax.f32 %v907_v6, %v908_v13  ;;  %v933_v22 = vmax.f32 %v931_v7, %v932_v14  ;;  %v938_v23 = vsel %vm608_vm0, %v455_v37, -inf  ;;  %v3156_v0 = vld [vmem:[%s4562_s0 + $0xd6] sm:$0x3]  ;;  %v120_v2 = vld [vmem:[%s4562_s0 + $0xe0] sm:$0x3] }
  0x74   :  { %v915_v26 = vrot.slane %v914_v16, 1  ;;  %v922_v27 = vrot.slane %v921_v17, 1  ;;  %v928_v28 = vmax.f32 %v926_v10, %v927_v18  ;;  %v939_v29 = vrot.slane %v938_v23, 4  ;;  %v121_v3 = vld [vmem:[%s4562_s0 + $0xe2] sm:$0x3] }
  0x75   :  { %v934_v31 = vrot.slane %v933_v22, 2  ;;  %v2049_v32 = vmax.f32 %v895_v15, 0.0  ;;  %v2050_v33 = vmax.f32 %v902_v20, 0.0  ;;  %v2051_v34 = vmax.f32 %v909_v21, 0.0  ;;  %v122_v7 = vld [vmem:[%s4562_s0 + $0xe4] sm:$0x3] }
  0x76   :  { %v916_v35 = vmax.f32 %v914_v16, %v915_v26  ;;  %v923_v36 = vmax.f32 %v921_v17, %v922_v27  ;;  %v929_v37 = vrot.slane %v928_v28, 1  ;;  %v940_v38 = vmax.f32 %v938_v23, %v939_v29  ;;  %v123_v8 = vld [vmem:[%s4562_s0 + $0xe6] sm:$0x3]  ;;  %v124_v12 = vld [vmem:[%s4562_s0 + $0xe8] sm:$0x3] }
  0x77   :  { %v935_v39 = vmax.f32 %v933_v22, %v934_v31  ;;  %v2448_v40 = vsel %vm2409_vm1, %v2050_v33, %v2049_v32  ;;  %v456_v41 = vmax.f32 %v96_v19, %v106_v25  ;;  %v457_v42 = vmax.f32 %v97_v24, %v107_v30  ;;  %v3178_v13 = vld [vmem:[%s4562_s0 + $0xea] sm:$0x3] }
  0x78   :  { %v930_v45 = vmax.f32 %v928_v28, %v929_v37  ;;  %v941_v46 = vrot.slane %v940_v38, 2  ;;  %v2052_v47 = vmax.f32 %v916_v35, 0.0  ;;  %v2053_v48 = vmax.f32 %v923_v36, 0.0 }
  0x79   :  { %v936_v53 = vrot.slane %v935_v39, 1  ;;  %v2449_v54 = vsel %vm2411_vm2, %v2051_v34, %v2448_v40  ;;  %v945_v55 = vsel %vm608_vm0, %v456_v41, -inf  ;;  %v952_v56 = vsel %vm608_vm0, %v457_v42, -inf }
  0x7a   :  { %v942_v59 = vmax.f32 %v940_v38, %v941_v46  ;;  %v2054_v60 = vmax.f32 %v930_v45, 0.0  ;;  %v2450_v61 = vsel %vm2413_vm3, %v2052_v47, %v2449_v54  ;;  %v946_v62 = vrot.slane %v945_v55, 4 }
  0x7b   :  { %v937_v4 = vmax.f32 %v935_v39, %v936_v53  ;;  %v2451_v5 = vsel %vm2415_vm4, %v2053_v48, %v2450_v61  ;;  %v953_v6 = vrot.slane %v952_v56, 4  ;;  %v458_v9 = vmax.f32 %v108_v43, %v118_v51 }
  0x7c   :  { %v943_v1 = vrot.slane %v942_v59, 1  ;;  %v2452_v10 = vsel %vm2417_vm5, %v2054_v60, %v2451_v5  ;;  %v947_v11 = vmax.f32 %v945_v55, %v946_v62  ;;  %v459_v14 = vmax.f32 %v109_v44, %v119_v58 }
  0x7d   :  { %v2055_v15 = vmax.f32 %v937_v4, 0.0  ;;  %v954_v16 = vmax.f32 %v952_v56, %v953_v6  ;;  %v460_v17 = vmax.f32 %v110_v49, %v120_v2  ;;  %v461_v18 = vmax.f32 %v111_v50, %v121_v3 }
  0x7e   :  { %v944_v19 = vmax.f32 %v942_v59, %v943_v1  ;;  %v948_v20 = vrot.slane %v947_v11, 2  ;;  %v462_v21 = vmax.f32 %v112_v57, %v122_v7  ;;  %v463_v22 = vmax.f32 %v113_v52, %v123_v8 }
  0x7f   :  { %v2453_v23 = vsel %vm2419_vm6, %v2055_v15, %v2452_v10  ;;  %v955_v24 = vrot.slane %v954_v16, 2  ;;  %v464_v25 = vmax.f32 %v3151_v63, %v124_v12  ;;  %v465_v26 = vmax.f32 %v3156_v0, %v3178_v13  ;;  %v116_v15 = vld [vmem:[%s4562_s0 + $0xd8] sm:$0x3] }
  0x80   :  { %v2056_v27 = vmax.f32 %v944_v19, 0.0  ;;  %v949_v28 = vmax.f32 %v947_v11, %v948_v20  ;;  %v959_v29 = vsel %vm608_vm0, %v458_v9, -inf  ;;  %v966_v30 = vsel %vm608_vm0, %v459_v14, -inf }
  0x81   :  { %v956_v31 = vmax.f32 %v954_v16, %v955_v24  ;;  %v960_v32 = vrot.slane %v959_v29, 4  ;;  %v967_v33 = vrot.slane %v966_v30, 4  ;;  %v973_v34 = vsel %vm608_vm0, %v460_v17, -inf  ;;  %v126_v16 = vld [vmem:[%s4562_s0 + $0xec] sm:$0x3] }
  0x82   :  { %v2454_v35 = vsel %vm2421_vm7, %v2056_v27, %v2453_v23  ;;  %v950_v36 = vrot.slane %v949_v28, 1  ;;  %v974_v37 = vrot.slane %v973_v34, 4  ;;  %v980_v38 = vsel %vm608_vm0, %v461_v18, -inf }
  0x83   :  { %2625 = vst.msk [vmem:[%s4563_s1 + $0x40] sm:$0xff] %vm2616_vm8, %v2454_v35  ;;  %v957_v39 = vrot.slane %v956_v31, 1  ;;  %v961_v40 = vmax.f32 %v959_v29, %v960_v32  ;;  %v968_v41 = vmax.f32 %v966_v30, %v967_v33  ;;  %v981_v42 = vrot.slane %v980_v38, 4  ;;  %v129_v32 = vld [vmem:[%s4562_s0 + $0xf2] sm:$0x3] }
  0x84   :  { %v951_v43 = vmax.f32 %v949_v28, %v950_v36  ;;  %v975_v44 = vmax.f32 %v973_v34, %v974_v37  ;;  %v987_v45 = vsel %vm608_vm0, %v462_v21, -inf  ;;  %v994_v46 = vsel %vm608_vm0, %v463_v22, -inf  ;;  %v117_v21 = vld [vmem:[%s4562_s0 + $0xda] sm:$0x3]  ;;  %v130_v37 = vld [vmem:[%s4562_s0 + $0xf4] sm:$0x3] }
  0x85   :  { %v958_v47 = vmax.f32 %v956_v31, %v957_v39  ;;  %v962_v48 = vrot.slane %v961_v40, 2  ;;  %v969_v49 = vrot.slane %v968_v41, 2  ;;  %v982_v50 = vmax.f32 %v980_v38, %v981_v42  ;;  %v128_v31 = vld [vmem:[%s4562_s0 + $0xf0] sm:$0x3]  ;;  %v131_v38 = vld [vmem:[%s4562_s0 + $0xf6] sm:$0x3] }
  0x86   :  { %v2057_v51 = vmax.f32 %v951_v43, 0.0  ;;  %v976_v53 = vrot.slane %v975_v44, 2  ;;  %v988_v54 = vrot.slane %v987_v45, 4  ;;  %v995_v55 = vrot.slane %v994_v46, 4  ;;  %v138_v39 = vld [vmem:[%s4562_s0 + $0x104] sm:$0x3] }
  0x87   :  { %v2058_v56 = vmax.f32 %v958_v47, 0.0  ;;  %v963_v57 = vmax.f32 %v961_v40, %v962_v48  ;;  %v970_v52 = vmax.f32 %v968_v41, %v969_v49  ;;  %v983_v58 = vrot.slane %v982_v50, 2  ;;  %v139_v40 = vld [vmem:[%s4562_s0 + $0x106] sm:$0x3] }
  0x88   :  { %v977_v59 = vmax.f32 %v975_v44, %v976_v53  ;;  %v989_v60 = vmax.f32 %v987_v45, %v988_v54  ;;  %v996_v61 = vmax.f32 %v994_v46, %v995_v55  ;;  %v1001_v62 = vsel %vm608_vm0, %v464_v25, -inf  ;;  %v132_v45 = vld [vmem:[%s4562_s0 + $0xf8] sm:$0x3]  ;;  %v140_v46 = vld [vmem:[%s4562_s0 + $0x108] sm:$0x3] }
  0x89   :  { %v2455_v63 = vsel %vm2409_vm1, %v2058_v56, %v2057_v51  ;;  %v964_v0 = vrot.slane %v963_v57, 1  ;;  %v971_v2 = vrot.slane %v970_v52, 1  ;;  %v984_v3 = vmax.f32 %v982_v50, %v983_v58  ;;  %v133_v51 = vld [vmem:[%s4562_s0 + $0xfa] sm:$0x3]  ;;  %v3248_v53 = vld [vmem:[%s4562_s0 + $0xfc] sm:$0x3] }
  0x8a   :  { %2626 = vst.msk [vmem:[%s4563_s1 + $0x48] sm:$0x3] %vm608_vm0, %v2455_v63  ;;  %v978_v4 = vrot.slane %v977_v59, 1  ;;  %v990_v5 = vrot.slane %v989_v60, 2  ;;  %v997_v6 = vrot.slane %v996_v61, 2  ;;  %v1002_v7 = vrot.slane %v1001_v62, 4 }
  0x8b   :  { %v965_v8 = vmax.f32 %v963_v57, %v964_v0  ;;  %v972_v9 = vmax.f32 %v970_v52, %v971_v2  ;;  %v985_v1 = vrot.slane %v984_v3, 1  ;;  %v1008_v10 = vsel %vm608_vm0, %v465_v26, -inf  ;;  %v127_v26 = vld [vmem:[%s4562_s0 + $0xee] sm:$0x3]  ;;  %v3253_v54 = vld [vmem:[%s4562_s0 + $0xfe] sm:$0x3] }
  0x8c   :  { %v979_v11 = vmax.f32 %v977_v59, %v978_v4  ;;  %v991_v12 = vmax.f32 %v989_v60, %v990_v5  ;;  %v998_v13 = vmax.f32 %v996_v61, %v997_v6  ;;  %v1003_v14 = vmax.f32 %v1001_v62, %v1002_v7  ;;  %v141_v55 = vld [vmem:[%s4562_s0 + $0x10a] sm:$0x3]  ;;  %v142_v52 = vld [vmem:[%s4562_s0 + $0x10c] sm:$0x3]  ;;  %v143_v58 = vld [vmem:[%s4562_s0 + $0x10e] sm:$0x3] }
  0x8d   :  { %v986_v17 = vmax.f32 %v984_v3, %v985_v1  ;;  %v1009_v18 = vrot.slane %v1008_v10, 4  ;;  %v2059_v19 = vmax.f32 %v965_v8, 0.0  ;;  %v2060_v20 = vmax.f32 %v972_v9, 0.0  ;;  %v144_v2 = vld [vmem:[%s4562_s0 + $0x110] sm:$0x3] }
  0x8e   :  { %v992_v22 = vrot.slane %v991_v12, 1  ;;  %v999_v23 = vrot.slane %v998_v13, 1  ;;  %v1004_v24 = vrot.slane %v1003_v14, 2  ;;  %v2061_v25 = vmax.f32 %v979_v11, 0.0  ;;  %v3272_v3 = vld [vmem:[%s4562_s0 + $0x112] sm:$0x3] }
  0x8f   :  { %v1010_v27 = vmax.f32 %v1008_v10, %v1009_v18  ;;  %v2062_v28 = vmax.f32 %v986_v17, 0.0  ;;  %v2456_v29 = vsel %vm2409_vm1, %v2060_v20, %v2059_v19  ;;  %v466_v30 = vmax.f32 %v116_v15, %v126_v16 }
  0x90   :  { %v993_v33 = vmax.f32 %v991_v12, %v992_v22  ;;  %v1000_v34 = vmax.f32 %v998_v13, %v999_v23  ;;  %v1005_v35 = vmax.f32 %v1003_v14, %v1004_v24  ;;  %v2457_v36 = vsel %vm2411_vm2, %v2061_v25, %v2456_v29 }
  0x91   :  { %v1011_v41 = vrot.slane %v1010_v27, 2  ;;  %v2458_v42 = vsel %vm2413_vm3, %v2062_v28, %v2457_v36  ;;  %v467_v43 = vmax.f32 %v117_v21, %v127_v26  ;;  %v1015_v44 = vsel %vm608_vm0, %v466_v30, -inf }
  0x92   :  { %v1006_v47 = vrot.slane %v1005_v35, 1  ;;  %v2063_v48 = vmax.f32 %v993_v33, 0.0  ;;  %v2064_v49 = vmax.f32 %v1000_v34, 0.0  ;;  %v1016_v50 = vrot.slane %v1015_v44, 4 }
  0x93   :  { %v1012_v56 = vmax.f32 %v1010_v27, %v1011_v41  ;;  %v1022_v57 = vsel %vm608_vm0, %v467_v43, -inf  ;;  %v468_v59 = vmax.f32 %v128_v31, %v138_v39  ;;  %v469_v60 = vmax.f32 %v129_v32, %v139_v40 }
  0x94   :  { %v1007_v61 = vmax.f32 %v1005_v35, %v1006_v47  ;;  %v2459_v62 = vsel %vm2415_vm4, %v2063_v48, %v2458_v42  ;;  %v1017_v63 = vmax.f32 %v1015_v44, %v1016_v50  ;;  %v1023_v0 = vrot.slane %v1022_v57, 4 }
  0x95   :  { %v1013_v4 = vrot.slane %v1012_v56, 1  ;;  %v2460_v5 = vsel %vm2417_vm5, %v2064_v49, %v2459_v62  ;;  %v470_v6 = vmax.f32 %v130_v37, %v140_v46  ;;  %v471_v7 = vmax.f32 %v131_v38, %v141_v55 }
  0x96   :  { %v2065_v8 = vmax.f32 %v1007_v61, 0.0  ;;  %v1018_v9 = vrot.slane %v1017_v63, 2  ;;  %v1024_v1 = vmax.f32 %v1022_v57, %v1023_v0  ;;  %v472_v10 = vmax.f32 %v132_v45, %v142_v52 }
  0x97   :  { %v1014_v11 = vmax.f32 %v1012_v56, %v1013_v4  ;;  %v473_v12 = vmax.f32 %v133_v51, %v143_v58  ;;  %v474_v13 = vmax.f32 %v3248_v53, %v144_v2  ;;  %v475_v14 = vmax.f32 %v3253_v54, %v3272_v3 }
  0x98   :  { %v2461_v15 = vsel %vm2419_vm6, %v2065_v8, %v2460_v5  ;;  %v1019_v16 = vmax.f32 %v1017_v63, %v1018_v9  ;;  %v1025_v17 = vrot.slane %v1024_v1, 2  ;;  %v1029_v18 = vsel %vm608_vm0, %v468_v59, -inf  ;;  %v136_v63 = vld [vmem:[%s4562_s0 + $0x100] sm:$0x3]  ;;  %v137_v5 = vld [vmem:[%s4562_s0 + $0x102] sm:$0x3] }
  0x99   :  { %v2066_v19 = vmax.f32 %v1014_v11, 0.0  ;;  %v1030_v20 = vrot.slane %v1029_v18, 4  ;;  %v1036_v21 = vsel %vm608_vm0, %v469_v60, -inf  ;;  %v1043_v22 = vsel %vm608_vm0, %v470_v6, -inf  ;;  %v146_v6 = vld [vmem:[%s4562_s0 + $0x114] sm:$0x3] }
  0x9a   :  { %v1020_v23 = vrot.slane %v1019_v16, 1  ;;  %v1026_v24 = vmax.f32 %v1024_v1, %v1025_v17  ;;  %v1037_v25 = vrot.slane %v1036_v21, 4  ;;  %v1044_v26 = vrot.slane %v1043_v22, 4 }
  0x9b   :  { %v2462_v27 = vsel %vm2421_vm7, %v2066_v19, %v2461_v15  ;;  %v1031_v28 = vmax.f32 %v1029_v18, %v1030_v20  ;;  %v1050_v29 = vsel %vm608_vm0, %v471_v7, -inf  ;;  %v1057_v30 = vsel %vm608_vm0, %v472_v10, -inf  ;;  %v147_v10 = vld [vmem:[%s4562_s0 + $0x116] sm:$0x3] }
  0x9c   :  { %2627 = vst.msk [vmem:[%s4563_s1 + $0x50] sm:$0xff] %vm2616_vm8, %v2462_v27  ;;  %v1021_v31 = vmax.f32 %v1019_v16, %v1020_v23  ;;  %v1027_v32 = vrot.slane %v1026_v24, 1  ;;  %v1038_v33 = vmax.f32 %v1036_v21, %v1037_v25  ;;  %v1045_v34 = vmax.f32 %v1043_v22, %v1044_v26  ;;  %v148_v23 = vld [vmem:[%s4562_s0 + $0x118] sm:$0x3] }
  0x9d   :  { %v1032_v35 = vrot.slane %v1031_v28, 2  ;;  %v1051_v36 = vrot.slane %v1050_v29, 4  ;;  %v1058_v37 = vrot.slane %v1057_v30, 4  ;;  %v1064_v38 = vsel %vm608_vm0, %v473_v12, -inf }
  0x9e   :  { %v1028_v39 = vmax.f32 %v1026_v24, %v1027_v32  ;;  %v2067_v40 = vmax.f32 %v1021_v31, 0.0  ;;  %v1039_v41 = vrot.slane %v1038_v33, 2  ;;  %v1046_v42 = vrot.slane %v1045_v34, 2  ;;  %v149_v24 = vld [vmem:[%s4562_s0 + $0x11a] sm:$0x3] }
  0x9f   :  { %v1033_v43 = vmax.f32 %v1031_v28, %v1032_v35  ;;  %v1052_v44 = vmax.f32 %v1050_v29, %v1051_v36  ;;  %v1059_v45 = vmax.f32 %v1057_v30, %v1058_v37  ;;  %v1065_v46 = vrot.slane %v1064_v38, 4  ;;  %v150_v29 = vld [vmem:[%s4562_s0 + $0x11c] sm:$0x3]  ;;  %v151_v30 = vld [vmem:[%s4562_s0 + $0x11e] sm:$0x3] }
  0xa0   :  { %v2068_v47 = vmax.f32 %v1028_v39, 0.0  ;;  %v1040_v48 = vmax.f32 %v1038_v33, %v1039_v41  ;;  %v1047_v49 = vmax.f32 %v1045_v34, %v1046_v42  ;;  %v1071_v50 = vsel %vm608_vm0, %v474_v13, -inf  ;;  %v158_v31 = vld [vmem:[%s4562_s0 + $0x12c] sm:$0x3]  ;;  %v152_v36 = vld [vmem:[%s4562_s0 + $0x120] sm:$0x3] }
  0xa1   :  { %v1034_v51 = vrot.slane %v1033_v43, 1  ;;  %v1053_v53 = vrot.slane %v1052_v44, 2  ;;  %v1060_v54 = vrot.slane %v1059_v45, 2  ;;  %v1066_v55 = vmax.f32 %v1064_v38, %v1065_v46  ;;  %v153_v37 = vld [vmem:[%s4562_s0 + $0x122] sm:$0x3] }
  0xa2   :  { %v2463_v56 = vsel %vm2409_vm1, %v2068_v47, %v2067_v40  ;;  %v1041_v57 = vrot.slane %v1040_v48, 1  ;;  %v1048_v52 = vrot.slane %v1047_v49, 1  ;;  %v1072_v58 = vrot.slane %v1071_v50, 4  ;;  %v159_v38 = vld [vmem:[%s4562_s0 + $0x12e] sm:$0x3] }
  0xa3   :  { %2628 = vst.msk [vmem:[%s4563_s1 + $0x58] sm:$0x3] %vm608_vm0, %v2463_v56  ;;  %v1035_v59 = vmax.f32 %v1033_v43, %v1034_v51  ;;  %v1054_v60 = vmax.f32 %v1052_v44, %v1053_v53  ;;  %v1061_v61 = vmax.f32 %v1059_v45, %v1060_v54  ;;  %v1067_v62 = vrot.slane %v1066_v55, 2  ;;  %v3341_v43 = vld [vmem:[%s4562_s0 + $0x124] sm:$0x3] }
  0xa4   :  { %v1042_v0 = vmax.f32 %v1040_v48, %v1041_v57  ;;  %v1049_v2 = vmax.f32 %v1047_v49, %v1048_v52  ;;  %v1073_v3 = vmax.f32 %v1071_v50, %v1072_v58  ;;  %v1078_v4 = vsel %vm608_vm0, %v475_v14, -inf  ;;  %v3346_v44 = vld [vmem:[%s4562_s0 + $0x126] sm:$0x3]  ;;  %v160_v45 = vld [vmem:[%s4562_s0 + $0x130] sm:$0x3] }
  0xa5   :  { %v1055_v7 = vrot.slane %v1054_v60, 1  ;;  %v1062_v8 = vrot.slane %v1061_v61, 1  ;;  %v1068_v9 = vmax.f32 %v1066_v55, %v1067_v62  ;;  %v1079_v1 = vrot.slane %v1078_v4, 4  ;;  %v161_v46 = vld [vmem:[%s4562_s0 + $0x132] sm:$0x3] }
  0xa6   :  { %v1074_v11 = vrot.slane %v1073_v3, 2  ;;  %v2069_v12 = vmax.f32 %v1035_v59, 0.0  ;;  %v2070_v13 = vmax.f32 %v1042_v0, 0.0  ;;  %v2071_v14 = vmax.f32 %v1049_v2, 0.0  ;;  %v162_v50 = vld [vmem:[%s4562_s0 + $0x134] sm:$0x3] }
  0xa7   :  { %v1056_v15 = vmax.f32 %v1054_v60, %v1055_v7  ;;  %v1063_v16 = vmax.f32 %v1061_v61, %v1062_v8  ;;  %v1069_v17 = vrot.slane %v1068_v9, 1  ;;  %v1080_v18 = vmax.f32 %v1078_v4, %v1079_v1  ;;  %v163_v51 = vld [vmem:[%s4562_s0 + $0x136] sm:$0x3]  ;;  %v164_v57 = vld [vmem:[%s4562_s0 + $0x138] sm:$0x3] }
  0xa8   :  { %v1075_v19 = vmax.f32 %v1073_v3, %v1074_v11  ;;  %v2464_v20 = vsel %vm2409_vm1, %v2070_v13, %v2069_v12  ;;  %v476_v21 = vmax.f32 %v136_v63, %v146_v6  ;;  %v477_v22 = vmax.f32 %v137_v5, %v147_v10  ;;  %v3368_v52 = vld [vmem:[%s4562_s0 + $0x13a] sm:$0x3] }
  0xa9   :  { %v1070_v25 = vmax.f32 %v1068_v9, %v1069_v17  ;;  %v1081_v26 = vrot.slane %v1080_v18, 2  ;;  %v2072_v27 = vmax.f32 %v1056_v15, 0.0  ;;  %v2073_v28 = vmax.f32 %v1063_v16, 0.0 }
  0xaa   :  { %v1076_v32 = vrot.slane %v1075_v19, 1  ;;  %v2465_v33 = vsel %vm2411_vm2, %v2071_v14, %v2464_v20  ;;  %v1085_v34 = vsel %vm608_vm0, %v476_v21, -inf  ;;  %v1092_v35 = vsel %vm608_vm0, %v477_v22, -inf }
  0xab   :  { %v1082_v39 = vmax.f32 %v1080_v18, %v1081_v26  ;;  %v2074_v40 = vmax.f32 %v1070_v25, 0.0  ;;  %v2466_v41 = vsel %vm2413_vm3, %v2072_v27, %v2465_v33  ;;  %v1086_v42 = vrot.slane %v1085_v34, 4 }
  0xac   :  { %v1077_v47 = vmax.f32 %v1075_v19, %v1076_v32  ;;  %v2467_v48 = vsel %vm2415_vm4, %v2073_v28, %v2466_v41  ;;  %v1093_v49 = vrot.slane %v1092_v35, 4  ;;  %v478_v53 = vmax.f32 %v148_v23, %v158_v31 }
  0xad   :  { %v1083_v54 = vrot.slane %v1082_v39, 1  ;;  %v2468_v55 = vsel %vm2417_vm5, %v2074_v40, %v2467_v48  ;;  %v1087_v56 = vmax.f32 %v1085_v34, %v1086_v42  ;;  %v479_v58 = vmax.f32 %v149_v24, %v159_v38 }
  0xae   :  { %v2075_v59 = vmax.f32 %v1077_v47, 0.0  ;;  %v1094_v60 = vmax.f32 %v1092_v35, %v1093_v49  ;;  %v480_v61 = vmax.f32 %v150_v29, %v160_v45  ;;  %v481_v62 = vmax.f32 %v151_v30, %v161_v46 }
  0xaf   :  { %v1084_v63 = vmax.f32 %v1082_v39, %v1083_v54  ;;  %v1088_v0 = vrot.slane %v1087_v56, 2  ;;  %v482_v2 = vmax.f32 %v152_v36, %v162_v50  ;;  %v483_v3 = vmax.f32 %v153_v37, %v163_v51 }
  0xb0   :  { %v2469_v4 = vsel %vm2419_vm6, %v2075_v59, %v2468_v55  ;;  %v1095_v5 = vrot.slane %v1094_v60, 2  ;;  %v484_v6 = vmax.f32 %v3341_v43, %v164_v57  ;;  %v485_v7 = vmax.f32 %v3346_v44, %v3368_v52  ;;  %v156_v59 = vld [vmem:[%s4562_s0 + $0x128] sm:$0x3] }
  0xb1   :  { %v2076_v8 = vmax.f32 %v1084_v63, 0.0  ;;  %v1089_v9 = vmax.f32 %v1087_v56, %v1088_v0  ;;  %v1099_v1 = vsel %vm608_vm0, %v478_v53, -inf  ;;  %v1106_v10 = vsel %vm608_vm0, %v479_v58, -inf }
  0xb2   :  { %v1096_v11 = vmax.f32 %v1094_v60, %v1095_v5  ;;  %v1100_v12 = vrot.slane %v1099_v1, 4  ;;  %v1107_v13 = vrot.slane %v1106_v10, 4  ;;  %v1113_v14 = vsel %vm608_vm0, %v480_v61, -inf  ;;  %v166_v60 = vld [vmem:[%s4562_s0 + $0x13c] sm:$0x3] }
  0xb3   :  { %v2470_v15 = vsel %vm2421_vm7, %v2076_v8, %v2469_v4  ;;  %v1090_v16 = vrot.slane %v1089_v9, 1  ;;  %v1114_v17 = vrot.slane %v1113_v14, 4  ;;  %v1120_v18 = vsel %vm608_vm0, %v481_v62, -inf }
  0xb4   :  { %2629 = vst.msk [vmem:[%s4563_s1 + $0x60] sm:$0xff] %vm2616_vm8, %v2470_v15  ;;  %v1097_v19 = vrot.slane %v1096_v11, 1  ;;  %v1101_v20 = vmax.f32 %v1099_v1, %v1100_v12  ;;  %v1108_v21 = vmax.f32 %v1106_v10, %v1107_v13  ;;  %v1121_v22 = vrot.slane %v1120_v18, 4  ;;  %v169_v12 = vld [vmem:[%s4562_s0 + $0x142] sm:$0x3] }
  0xb5   :  { %v1091_v23 = vmax.f32 %v1089_v9, %v1090_v16  ;;  %v1115_v24 = vmax.f32 %v1113_v14, %v1114_v17  ;;  %v1127_v25 = vsel %vm608_vm0, %v482_v2, -inf  ;;  %v1134_v26 = vsel %vm608_vm0, %v483_v3, -inf  ;;  %v157_v2 = vld [vmem:[%s4562_s0 + $0x12a] sm:$0x3]  ;;  %v170_v17 = vld [vmem:[%s4562_s0 + $0x144] sm:$0x3] }
  0xb6   :  { %v1098_v27 = vmax.f32 %v1096_v11, %v1097_v19  ;;  %v1102_v28 = vrot.slane %v1101_v20, 2  ;;  %v1109_v29 = vrot.slane %v1108_v21, 2  ;;  %v1122_v30 = vmax.f32 %v1120_v18, %v1121_v22  ;;  %v168_v11 = vld [vmem:[%s4562_s0 + $0x140] sm:$0x3]  ;;  %v171_v18 = vld [vmem:[%s4562_s0 + $0x146] sm:$0x3] }
  0xb7   :  { %v2077_v31 = vmax.f32 %v1091_v23, 0.0  ;;  %v1116_v32 = vrot.slane %v1115_v24, 2  ;;  %v1128_v33 = vrot.slane %v1127_v25, 4  ;;  %v1135_v34 = vrot.slane %v1134_v26, 4  ;;  %v178_v19 = vld [vmem:[%s4562_s0 + $0x154] sm:$0x3] }
  0xb8   :  { %v2078_v35 = vmax.f32 %v1098_v27, 0.0  ;;  %v1103_v36 = vmax.f32 %v1101_v20, %v1102_v28  ;;  %v1110_v37 = vmax.f32 %v1108_v21, %v1109_v29  ;;  %v1123_v38 = vrot.slane %v1122_v30, 2  ;;  %v179_v20 = vld [vmem:[%s4562_s0 + $0x156] sm:$0x3] }
  0xb9   :  { %v1117_v39 = vmax.f32 %v1115_v24, %v1116_v32  ;;  %v1129_v40 = vmax.f32 %v1127_v25, %v1128_v33  ;;  %v1136_v41 = vmax.f32 %v1134_v26, %v1135_v34  ;;  %v1141_v42 = vsel %vm608_vm0, %v484_v6, -inf  ;;  %v172_v25 = vld [vmem:[%s4562_s0 + $0x148] sm:$0x3]  ;;  %v180_v26 = vld [vmem:[%s4562_s0 + $0x158] sm:$0x3] }
  0xba   :  { %v2471_v43 = vsel %vm2409_vm1, %v2078_v35, %v2077_v31  ;;  %v1104_v44 = vrot.slane %v1103_v36, 1  ;;  %v1111_v45 = vrot.slane %v1110_v37, 1  ;;  %v1124_v46 = vmax.f32 %v1122_v30, %v1123_v38  ;;  %v173_v31 = vld [vmem:[%s4562_s0 + $0x14a] sm:$0x3]  ;;  %v3438_v32 = vld [vmem:[%s4562_s0 + $0x14c] sm:$0x3] }
  0xbb   :  { %2630 = vst.msk [vmem:[%s4563_s1 + $0x68] sm:$0x3] %vm608_vm0, %v2471_v43  ;;  %v1118_v47 = vrot.slane %v1117_v39, 1  ;;  %v1130_v48 = vrot.slane %v1129_v40, 2  ;;  %v1137_v49 = vrot.slane %v1136_v41, 2  ;;  %v1142_v50 = vrot.slane %v1141_v42, 4 }
  0xbc   :  { %v1105_v51 = vmax.f32 %v1103_v36, %v1104_v44  ;;  %v1112_v53 = vmax.f32 %v1110_v37, %v1111_v45  ;;  %v1125_v54 = vrot.slane %v1124_v46, 1  ;;  %v1148_v55 = vsel %vm608_vm0, %v485_v7, -inf  ;;  %v167_v7 = vld [vmem:[%s4562_s0 + $0x13e] sm:$0x3]  ;;  %v3443_v33 = vld [vmem:[%s4562_s0 + $0x14e] sm:$0x3] }
  0xbd   :  { %v1119_v56 = vmax.f32 %v1117_v39, %v1118_v47  ;;  %v1131_v57 = vmax.f32 %v1129_v40, %v1130_v48  ;;  %v1138_v52 = vmax.f32 %v1136_v41, %v1137_v49  ;;  %v1143_v58 = vmax.f32 %v1141_v42, %v1142_v50  ;;  %v181_v34 = vld [vmem:[%s4562_s0 + $0x15a] sm:$0x3]  ;;  %v182_v37 = vld [vmem:[%s4562_s0 + $0x15c] sm:$0x3]  ;;  %v183_v38 = vld [vmem:[%s4562_s0 + $0x15e] sm:$0x3] }
  0xbe   :  { %v1126_v61 = vmax.f32 %v1124_v46, %v1125_v54  ;;  %v1149_v62 = vrot.slane %v1148_v55, 4  ;;  %v2079_v63 = vmax.f32 %v1105_v51, 0.0  ;;  %v2080_v0 = vmax.f32 %v1112_v53, 0.0  ;;  %v184_v45 = vld [vmem:[%s4562_s0 + $0x160] sm:$0x3] }
  0xbf   :  { %v1132_v3 = vrot.slane %v1131_v57, 1  ;;  %v1139_v4 = vrot.slane %v1138_v52, 1  ;;  %v1144_v5 = vrot.slane %v1143_v58, 2  ;;  %v2081_v6 = vmax.f32 %v1119_v56, 0.0  ;;  %v3462_v46 = vld [vmem:[%s4562_s0 + $0x162] sm:$0x3] }
  0xc0   :  { %v1150_v8 = vmax.f32 %v1148_v55, %v1149_v62  ;;  %v2082_v9 = vmax.f32 %v1126_v61, 0.0  ;;  %v2472_v1 = vsel %vm2409_vm1, %v2080_v0, %v2079_v63  ;;  %v486_v10 = vmax.f32 %v156_v59, %v166_v60 }
  0xc1   :  { %v1133_v13 = vmax.f32 %v1131_v57, %v1132_v3  ;;  %v1140_v14 = vmax.f32 %v1138_v52, %v1139_v4  ;;  %v1145_v15 = vmax.f32 %v1143_v58, %v1144_v5  ;;  %v2473_v16 = vsel %vm2411_vm2, %v2081_v6, %v2472_v1 }
  0xc2   :  { %v1151_v21 = vrot.slane %v1150_v8, 2  ;;  %v2474_v22 = vsel %vm2413_vm3, %v2082_v9, %v2473_v16  ;;  %v487_v23 = vmax.f32 %v157_v2, %v167_v7  ;;  %v1155_v24 = vsel %vm608_vm0, %v486_v10, -inf }
  0xc3   :  { %v1146_v27 = vrot.slane %v1145_v15, 1  ;;  %v2083_v28 = vmax.f32 %v1133_v13, 0.0  ;;  %v2084_v29 = vmax.f32 %v1140_v14, 0.0  ;;  %v1156_v30 = vrot.slane %v1155_v24, 4 }
  0xc4   :  { %v1152_v35 = vmax.f32 %v1150_v8, %v1151_v21  ;;  %v1162_v36 = vsel %vm608_vm0, %v487_v23, -inf  ;;  %v488_v39 = vmax.f32 %v168_v11, %v178_v19  ;;  %v489_v40 = vmax.f32 %v169_v12, %v179_v20 }
  0xc5   :  { %v1147_v41 = vmax.f32 %v1145_v15, %v1146_v27  ;;  %v2475_v42 = vsel %vm2415_vm4, %v2083_v28, %v2474_v22  ;;  %v1157_v43 = vmax.f32 %v1155_v24, %v1156_v30  ;;  %v1163_v44 = vrot.slane %v1162_v36, 4 }
  0xc6   :  { %v1153_v47 = vrot.slane %v1152_v35, 1  ;;  %v2476_v48 = vsel %vm2417_vm5, %v2084_v29, %v2475_v42  ;;  %v490_v49 = vmax.f32 %v170_v17, %v180_v26  ;;  %v491_v50 = vmax.f32 %v171_v18, %v181_v34 }
  0xc7   :  { %v2085_v51 = vmax.f32 %v1147_v41, 0.0  ;;  %v1158_v53 = vrot.slane %v1157_v43, 2  ;;  %v1164_v54 = vmax.f32 %v1162_v36, %v1163_v44  ;;  %v492_v55 = vmax.f32 %v172_v25, %v182_v37 }
  0xc8   :  { %v1154_v56 = vmax.f32 %v1152_v35, %v1153_v47  ;;  %v493_v57 = vmax.f32 %v173_v31, %v183_v38  ;;  %v494_v52 = vmax.f32 %v3438_v32, %v184_v45  ;;  %v495_v58 = vmax.f32 %v3443_v33, %v3462_v46 }
  0xc9   :  { %v2477_v59 = vsel %vm2419_vm6, %v2085_v51, %v2476_v48  ;;  %v1159_v60 = vmax.f32 %v1157_v43, %v1158_v53  ;;  %v1165_v61 = vrot.slane %v1164_v54, 2  ;;  %v1169_v62 = vsel %vm608_vm0, %v488_v39, -inf  ;;  %v176_v43 = vld [vmem:[%s4562_s0 + $0x150] sm:$0x3]  ;;  %v177_v48 = vld [vmem:[%s4562_s0 + $0x152] sm:$0x3] }
  0xca   :  { %v2086_v63 = vmax.f32 %v1154_v56, 0.0  ;;  %v1170_v0 = vrot.slane %v1169_v62, 4  ;;  %v1176_v2 = vsel %vm608_vm0, %v489_v40, -inf  ;;  %v1183_v3 = vsel %vm608_vm0, %v490_v49, -inf  ;;  %v186_v49 = vld [vmem:[%s4562_s0 + $0x164] sm:$0x3] }
  0xcb   :  { %v1160_v4 = vrot.slane %v1159_v60, 1  ;;  %v1166_v5 = vmax.f32 %v1164_v54, %v1165_v61  ;;  %v1177_v6 = vrot.slane %v1176_v2, 4  ;;  %v1184_v7 = vrot.slane %v1183_v3, 4 }
  0xcc   :  { %v2478_v8 = vsel %vm2421_vm7, %v2086_v63, %v2477_v59  ;;  %v1171_v9 = vmax.f32 %v1169_v62, %v1170_v0  ;;  %v1190_v1 = vsel %vm608_vm0, %v491_v50, -inf  ;;  %v1197_v10 = vsel %vm608_vm0, %v492_v55, -inf  ;;  %v187_v55 = vld [vmem:[%s4562_s0 + $0x166] sm:$0x3] }
  0xcd   :  { %2631 = vst.msk [vmem:[%s4563_s1 + $0x70] sm:$0xff] %vm2616_vm8, %v2478_v8  ;;  %v1161_v11 = vmax.f32 %v1159_v60, %v1160_v4  ;;  %v1167_v12 = vrot.slane %v1166_v5, 1  ;;  %v1178_v13 = vmax.f32 %v1176_v2, %v1177_v6  ;;  %v1185_v14 = vmax.f32 %v1183_v3, %v1184_v7  ;;  %v188_v4 = vld [vmem:[%s4562_s0 + $0x168] sm:$0x3] }
  0xce   :  { %v1172_v15 = vrot.slane %v1171_v9, 2  ;;  %v1191_v16 = vrot.slane %v1190_v1, 4  ;;  %v1198_v17 = vrot.slane %v1197_v10, 4  ;;  %v1204_v18 = vsel %vm608_vm0, %v493_v57, -inf }
  0xcf   :  { %v1168_v19 = vmax.f32 %v1166_v5, %v1167_v12  ;;  %v2087_v20 = vmax.f32 %v1161_v11, 0.0  ;;  %v1179_v21 = vrot.slane %v1178_v13, 2  ;;  %v1186_v22 = vrot.slane %v1185_v14, 2  ;;  %v189_v5 = vld [vmem:[%s4562_s0 + $0x16a] sm:$0x3] }
  0xd0   :  { %v1173_v23 = vmax.f32 %v1171_v9, %v1172_v15  ;;  %v1192_v24 = vmax.f32 %v1190_v1, %v1191_v16  ;;  %v1199_v25 = vmax.f32 %v1197_v10, %v1198_v17  ;;  %v1205_v26 = vrot.slane %v1204_v18, 4  ;;  %v190_v1 = vld [vmem:[%s4562_s0 + $0x16c] sm:$0x3]  ;;  %v191_v10 = vld [vmem:[%s4562_s0 + $0x16e] sm:$0x3] }
  0xd1   :  { %v2088_v27 = vmax.f32 %v1168_v19, 0.0  ;;  %v1180_v28 = vmax.f32 %v1178_v13, %v1179_v21  ;;  %v1187_v29 = vmax.f32 %v1185_v14, %v1186_v22  ;;  %v1211_v30 = vsel %vm608_vm0, %v494_v52, -inf  ;;  %v198_v11 = vld [vmem:[%s4562_s0 + $0x17c] sm:$0x3]  ;;  %v192_v16 = vld [vmem:[%s4562_s0 + $0x170] sm:$0x3] }
  0xd2   :  { %v1174_v31 = vrot.slane %v1173_v23, 1  ;;  %v1193_v32 = vrot.slane %v1192_v24, 2  ;;  %v1200_v33 = vrot.slane %v1199_v25, 2  ;;  %v1206_v34 = vmax.f32 %v1204_v18, %v1205_v26  ;;  %v193_v17 = vld [vmem:[%s4562_s0 + $0x172] sm:$0x3] }
  0xd3   :  { %v2479_v35 = vsel %vm2409_vm1, %v2088_v27, %v2087_v20  ;;  %v1181_v36 = vrot.slane %v1180_v28, 1  ;;  %v1188_v37 = vrot.slane %v1187_v29, 1  ;;  %v1212_v38 = vrot.slane %v1211_v30, 4  ;;  %v199_v18 = vld [vmem:[%s4562_s0 + $0x17e] sm:$0x3] }
  0xd4   :  { %2632 = vst.msk [vmem:[%s4563_s1 + $0x78] sm:$0x3] %vm608_vm0, %v2479_v35  ;;  %v1175_v39 = vmax.f32 %v1173_v23, %v1174_v31  ;;  %v1194_v40 = vmax.f32 %v1192_v24, %v1193_v32  ;;  %v1201_v41 = vmax.f32 %v1199_v25, %v1200_v33  ;;  %v1207_v42 = vrot.slane %v1206_v34, 2  ;;  %v3531_v23 = vld [vmem:[%s4562_s0 + $0x174] sm:$0x3] }
  0xd5   :  { %v1182_v44 = vmax.f32 %v1180_v28, %v1181_v36  ;;  %v1189_v45 = vmax.f32 %v1187_v29, %v1188_v37  ;;  %v1213_v46 = vmax.f32 %v1211_v30, %v1212_v38  ;;  %v1218_v47 = vsel %vm608_vm0, %v495_v58, -inf  ;;  %v3536_v24 = vld [vmem:[%s4562_s0 + $0x176] sm:$0x3]  ;;  %v200_v25 = vld [vmem:[%s4562_s0 + $0x180] sm:$0x3] }
  0xd6   :  { %v1195_v50 = vrot.slane %v1194_v40, 1  ;;  %v1202_v51 = vrot.slane %v1201_v41, 1  ;;  %v1208_v53 = vmax.f32 %v1206_v34, %v1207_v42  ;;  %v1219_v54 = vrot.slane %v1218_v47, 4  ;;  %v201_v26 = vld [vmem:[%s4562_s0 + $0x182] sm:$0x3] }
  0xd7   :  { %v1214_v56 = vrot.slane %v1213_v46, 2  ;;  %v2089_v57 = vmax.f32 %v1175_v39, 0.0  ;;  %v2090_v52 = vmax.f32 %v1182_v44, 0.0  ;;  %v2091_v58 = vmax.f32 %v1189_v45, 0.0  ;;  %v202_v30 = vld [vmem:[%s4562_s0 + $0x184] sm:$0x3] }
  0xd8   :  { %v1196_v59 = vmax.f32 %v1194_v40, %v1195_v50  ;;  %v1203_v60 = vmax.f32 %v1201_v41, %v1202_v51  ;;  %v1209_v61 = vrot.slane %v1208_v53, 1  ;;  %v1220_v62 = vmax.f32 %v1218_v47, %v1219_v54  ;;  %v203_v31 = vld [vmem:[%s4562_s0 + $0x186] sm:$0x3]  ;;  %v204_v36 = vld [vmem:[%s4562_s0 + $0x188] sm:$0x3] }
  0xd9   :  { %v1215_v63 = vmax.f32 %v1213_v46, %v1214_v56  ;;  %v2480_v0 = vsel %vm2409_vm1, %v2090_v52, %v2089_v57  ;;  %v496_v2 = vmax.f32 %v176_v43, %v186_v49  ;;  %v497_v3 = vmax.f32 %v177_v48, %v187_v55  ;;  %v3558_v37 = vld [vmem:[%s4562_s0 + $0x18a] sm:$0x3] }
  0xda   :  { %v1210_v6 = vmax.f32 %v1208_v53, %v1209_v61  ;;  %v1221_v7 = vrot.slane %v1220_v62, 2  ;;  %v2092_v8 = vmax.f32 %v1196_v59, 0.0  ;;  %v2093_v9 = vmax.f32 %v1203_v60, 0.0 }
  0xdb   :  { %v1216_v12 = vrot.slane %v1215_v63, 1  ;;  %v2481_v13 = vsel %vm2411_vm2, %v2091_v58, %v2480_v0  ;;  %v1225_v14 = vsel %vm608_vm0, %v496_v2, -inf  ;;  %v1232_v15 = vsel %vm608_vm0, %v497_v3, -inf }
  0xdc   :  { %v1222_v19 = vmax.f32 %v1220_v62, %v1221_v7  ;;  %v2094_v20 = vmax.f32 %v1210_v6, 0.0  ;;  %v2482_v21 = vsel %vm2413_vm3, %v2092_v8, %v2481_v13  ;;  %v1226_v22 = vrot.slane %v1225_v14, 4 }
  0xdd   :  { %v1217_v27 = vmax.f32 %v1215_v63, %v1216_v12  ;;  %v2483_v28 = vsel %vm2415_vm4, %v2093_v9, %v2482_v21  ;;  %v1233_v29 = vrot.slane %v1232_v15, 4  ;;  %v498_v32 = vmax.f32 %v188_v4, %v198_v11 }
  0xde   :  { %v1223_v33 = vrot.slane %v1222_v19, 1  ;;  %v2484_v34 = vsel %vm2417_vm5, %v2094_v20, %v2483_v28  ;;  %v1227_v35 = vmax.f32 %v1225_v14, %v1226_v22  ;;  %v499_v38 = vmax.f32 %v189_v5, %v199_v18 }
  0xdf   :  { %v2095_v39 = vmax.f32 %v1217_v27, 0.0  ;;  %v1234_v40 = vmax.f32 %v1232_v15, %v1233_v29  ;;  %v500_v41 = vmax.f32 %v190_v1, %v200_v25  ;;  %v501_v42 = vmax.f32 %v191_v10, %v201_v26 }
  0xe0   :  { %v1224_v43 = vmax.f32 %v1222_v19, %v1223_v33  ;;  %v1228_v44 = vrot.slane %v1227_v35, 2  ;;  %v502_v45 = vmax.f32 %v192_v16, %v202_v30  ;;  %v503_v46 = vmax.f32 %v193_v17, %v203_v31 }
  0xe1   :  { %v2485_v47 = vsel %vm2419_vm6, %v2095_v39, %v2484_v34  ;;  %v1235_v48 = vrot.slane %v1234_v40, 2  ;;  %v504_v49 = vmax.f32 %v3531_v23, %v204_v36  ;;  %v505_v50 = vmax.f32 %v3536_v24, %v3558_v37  ;;  %v196_v39 = vld [vmem:[%s4562_s0 + $0x178] sm:$0x3] }
  0xe2   :  { %v2096_v51 = vmax.f32 %v1224_v43, 0.0  ;;  %v1229_v53 = vmax.f32 %v1227_v35, %v1228_v44  ;;  %v1239_v54 = vsel %vm608_vm0, %v498_v32, -inf  ;;  %v1246_v55 = vsel %vm608_vm0, %v499_v38, -inf }
  0xe3   :  { %v1236_v56 = vmax.f32 %v1234_v40, %v1235_v48  ;;  %v1240_v57 = vrot.slane %v1239_v54, 4  ;;  %v1247_v52 = vrot.slane %v1246_v55, 4  ;;  %v1253_v58 = vsel %vm608_vm0, %v500_v41, -inf  ;;  %v206_v40 = vld [vmem:[%s4562_s0 + $0x18c] sm:$0x3] }
  0xe4   :  { %v2486_v59 = vsel %vm2421_vm7, %v2096_v51, %v2485_v47  ;;  %v1230_v60 = vrot.slane %v1229_v53, 1  ;;  %v1254_v61 = vrot.slane %v1253_v58, 4  ;;  %v1260_v62 = vsel %vm608_vm0, %v501_v42, -inf }
  0xe5   :  { %2633 = vst.msk [vmem:[%s4563_s1 + $0x80] sm:$0xff] %vm2616_vm8, %v2486_v59  ;;  %v1237_v63 = vrot.slane %v1236_v56, 1  ;;  %v1241_v0 = vmax.f32 %v1239_v54, %v1240_v57  ;;  %v1248_v2 = vmax.f32 %v1246_v55, %v1247_v52  ;;  %v1261_v3 = vrot.slane %v1260_v62, 4  ;;  %v209_v57 = vld [vmem:[%s4562_s0 + $0x192] sm:$0x3] }
  0xe6   :  { %v1231_v4 = vmax.f32 %v1229_v53, %v1230_v60  ;;  %v1255_v5 = vmax.f32 %v1253_v58, %v1254_v61  ;;  %v1267_v6 = vsel %vm608_vm0, %v502_v45, -inf  ;;  %v1274_v7 = vsel %vm608_vm0, %v503_v46, -inf  ;;  %v197_v45 = vld [vmem:[%s4562_s0 + $0x17a] sm:$0x3]  ;;  %v210_v61 = vld [vmem:[%s4562_s0 + $0x194] sm:$0x3] }
  0xe7   :  { %v1238_v8 = vmax.f32 %v1236_v56, %v1237_v63  ;;  %v1242_v9 = vrot.slane %v1241_v0, 2  ;;  %v1249_v1 = vrot.slane %v1248_v2, 2  ;;  %v1262_v10 = vmax.f32 %v1260_v62, %v1261_v3  ;;  %v208_v56 = vld [vmem:[%s4562_s0 + $0x190] sm:$0x3]  ;;  %v211_v62 = vld [vmem:[%s4562_s0 + $0x196] sm:$0x3] }
  0xe8   :  { %v2097_v11 = vmax.f32 %v1231_v4, 0.0  ;;  %v1256_v12 = vrot.slane %v1255_v5, 2  ;;  %v1268_v13 = vrot.slane %v1267_v6, 4  ;;  %v1275_v14 = vrot.slane %v1274_v7, 4  ;;  %v218_v63 = vld [vmem:[%s4562_s0 + $0x1a4] sm:$0x3] }
  0xe9   :  { %v2098_v15 = vmax.f32 %v1238_v8, 0.0  ;;  %v1243_v16 = vmax.f32 %v1241_v0, %v1242_v9  ;;  %v1250_v17 = vmax.f32 %v1248_v2, %v1249_v1  ;;  %v1263_v18 = vrot.slane %v1262_v10, 2  ;;  %v219_v0 = vld [vmem:[%s4562_s0 + $0x1a6] sm:$0x3] }
  0xea   :  { %v1257_v19 = vmax.f32 %v1255_v5, %v1256_v12  ;;  %v1269_v20 = vmax.f32 %v1267_v6, %v1268_v13  ;;  %v1276_v21 = vmax.f32 %v1274_v7, %v1275_v14  ;;  %v1281_v22 = vsel %vm608_vm0, %v504_v49, -inf  ;;  %v212_v6 = vld [vmem:[%s4562_s0 + $0x198] sm:$0x3]  ;;  %v220_v7 = vld [vmem:[%s4562_s0 + $0x1a8] sm:$0x3] }
  0xeb   :  { %v2487_v23 = vsel %vm2409_vm1, %v2098_v15, %v2097_v11  ;;  %v1244_v24 = vrot.slane %v1243_v16, 1  ;;  %v1251_v25 = vrot.slane %v1250_v17, 1  ;;  %v1264_v26 = vmax.f32 %v1262_v10, %v1263_v18  ;;  %v213_v11 = vld [vmem:[%s4562_s0 + $0x19a] sm:$0x3]  ;;  %v3628_v12 = vld [vmem:[%s4562_s0 + $0x19c] sm:$0x3] }
  0xec   :  { %2634 = vst.msk [vmem:[%s4563_s1 + $0x88] sm:$0x3] %vm608_vm0, %v2487_v23  ;;  %v1258_v27 = vrot.slane %v1257_v19, 1  ;;  %v1270_v28 = vrot.slane %v1269_v20, 2  ;;  %v1277_v29 = vrot.slane %v1276_v21, 2  ;;  %v1282_v30 = vrot.slane %v1281_v22, 4 }
  0xed   :  { %v1245_v31 = vmax.f32 %v1243_v16, %v1244_v24  ;;  %v1252_v32 = vmax.f32 %v1250_v17, %v1251_v25  ;;  %v1265_v33 = vrot.slane %v1264_v26, 1  ;;  %v1288_v34 = vsel %vm608_vm0, %v505_v50, -inf  ;;  %v207_v50 = vld [vmem:[%s4562_s0 + $0x18e] sm:$0x3]  ;;  %v3633_v13 = vld [vmem:[%s4562_s0 + $0x19e] sm:$0x3] }
  0xee   :  { %v1259_v35 = vmax.f32 %v1257_v19, %v1258_v27  ;;  %v1271_v36 = vmax.f32 %v1269_v20, %v1270_v28  ;;  %v1278_v37 = vmax.f32 %v1276_v21, %v1277_v29  ;;  %v1283_v38 = vmax.f32 %v1281_v22, %v1282_v30  ;;  %v221_v14 = vld [vmem:[%s4562_s0 + $0x1aa] sm:$0x3]  ;;  %v222_v17 = vld [vmem:[%s4562_s0 + $0x1ac] sm:$0x3]  ;;  %v223_v18 = vld [vmem:[%s4562_s0 + $0x1ae] sm:$0x3] }
  0xef   :  { %v1266_v41 = vmax.f32 %v1264_v26, %v1265_v33  ;;  %v1289_v42 = vrot.slane %v1288_v34, 4  ;;  %v2099_v43 = vmax.f32 %v1245_v31, 0.0  ;;  %v2100_v44 = vmax.f32 %v1252_v32, 0.0  ;;  %v224_v25 = vld [vmem:[%s4562_s0 + $0x1b0] sm:$0x3] }
  0xf0   :  { %v1272_v46 = vrot.slane %v1271_v36, 1  ;;  %v1279_v47 = vrot.slane %v1278_v37, 1  ;;  %v1284_v48 = vrot.slane %v1283_v38, 2  ;;  %v2101_v49 = vmax.f32 %v1259_v35, 0.0  ;;  %v3652_v26 = vld [vmem:[%s4562_s0 + $0x1b2] sm:$0x3] }
  0xf1   :  { %v1290_v51 = vmax.f32 %v1288_v34, %v1289_v42  ;;  %v2102_v53 = vmax.f32 %v1266_v41, 0.0  ;;  %v2488_v54 = vsel %vm2409_vm1, %v2100_v44, %v2099_v43  ;;  %v506_v55 = vmax.f32 %v196_v39, %v206_v40 }
  0xf2   :  { %v1273_v52 = vmax.f32 %v1271_v36, %v1272_v46  ;;  %v1280_v58 = vmax.f32 %v1278_v37, %v1279_v47  ;;  %v1285_v59 = vmax.f32 %v1283_v38, %v1284_v48  ;;  %v2489_v60 = vsel %vm2411_vm2, %v2101_v49, %v2488_v54 }
  0xf3   :  { %v1291_v2 = vrot.slane %v1290_v51, 2  ;;  %v2490_v3 = vsel %vm2413_vm3, %v2102_v53, %v2489_v60  ;;  %v507_v4 = vmax.f32 %v197_v45, %v207_v50  ;;  %v1295_v5 = vsel %vm608_vm0, %v506_v55, -inf }
  0xf4   :  { %v1286_v8 = vrot.slane %v1285_v59, 1  ;;  %v2103_v9 = vmax.f32 %v1273_v52, 0.0  ;;  %v2104_v1 = vmax.f32 %v1280_v58, 0.0  ;;  %v1296_v10 = vrot.slane %v1295_v5, 4 }
  0xf5   :  { %v1292_v15 = vmax.f32 %v1290_v51, %v1291_v2  ;;  %v1302_v16 = vsel %vm608_vm0, %v507_v4, -inf  ;;  %v508_v19 = vmax.f32 %v208_v56, %v218_v63  ;;  %v509_v20 = vmax.f32 %v209_v57, %v219_v0 }
  0xf6   :  { %v1287_v21 = vmax.f32 %v1285_v59, %v1286_v8  ;;  %v2491_v22 = vsel %vm2415_vm4, %v2103_v9, %v2490_v3  ;;  %v1297_v23 = vmax.f32 %v1295_v5, %v1296_v10  ;;  %v1303_v24 = vrot.slane %v1302_v16, 4 }
  0xf7   :  { %v1293_v27 = vrot.slane %v1292_v15, 1  ;;  %v2492_v28 = vsel %vm2417_vm5, %v2104_v1, %v2491_v22  ;;  %v510_v29 = vmax.f32 %v210_v61, %v220_v7  ;;  %v511_v30 = vmax.f32 %v211_v62, %v221_v14 }
  0xf8   :  { %v2105_v31 = vmax.f32 %v1287_v21, 0.0  ;;  %v1298_v32 = vrot.slane %v1297_v23, 2  ;;  %v1304_v33 = vmax.f32 %v1302_v16, %v1303_v24  ;;  %v512_v34 = vmax.f32 %v212_v6, %v222_v17 }
  0xf9   :  { %v1294_v35 = vmax.f32 %v1292_v15, %v1293_v27  ;;  %v513_v36 = vmax.f32 %v213_v11, %v223_v18  ;;  %v514_v37 = vmax.f32 %v3628_v12, %v224_v25  ;;  %v515_v38 = vmax.f32 %v3633_v13, %v3652_v26 }
  0xfa   :  { %v2493_v39 = vsel %vm2419_vm6, %v2105_v31, %v2492_v28  ;;  %v1299_v40 = vmax.f32 %v1297_v23, %v1298_v32  ;;  %v1305_v41 = vrot.slane %v1304_v33, 2  ;;  %v1309_v42 = vsel %vm608_vm0, %v508_v19, -inf  ;;  %v216_v23 = vld [vmem:[%s4562_s0 + $0x1a0] sm:$0x3]  ;;  %v217_v28 = vld [vmem:[%s4562_s0 + $0x1a2] sm:$0x3] }
  0xfb   :  { %v2106_v43 = vmax.f32 %v1294_v35, 0.0  ;;  %v1310_v44 = vrot.slane %v1309_v42, 4  ;;  %v1316_v45 = vsel %vm608_vm0, %v509_v20, -inf  ;;  %v1323_v46 = vsel %vm608_vm0, %v510_v29, -inf  ;;  %v226_v29 = vld [vmem:[%s4562_s0 + $0x1b4] sm:$0x3] }
  0xfc   :  { %v1300_v47 = vrot.slane %v1299_v40, 1  ;;  %v1306_v48 = vmax.f32 %v1304_v33, %v1305_v41  ;;  %v1317_v49 = vrot.slane %v1316_v45, 4  ;;  %v1324_v50 = vrot.slane %v1323_v46, 4 }
  0xfd   :  { %v2494_v51 = vsel %vm2421_vm7, %v2106_v43, %v2493_v39  ;;  %v1311_v53 = vmax.f32 %v1309_v42, %v1310_v44  ;;  %v1330_v54 = vsel %vm608_vm0, %v511_v30, -inf  ;;  %v1337_v55 = vsel %vm608_vm0, %v512_v34, -inf  ;;  %v227_v34 = vld [vmem:[%s4562_s0 + $0x1b6] sm:$0x3] }
  0xfe   :  { %2635 = vst.msk [vmem:[%s4563_s1 + $0x90] sm:$0xff] %vm2616_vm8, %v2494_v51  ;;  %v1301_v56 = vmax.f32 %v1299_v40, %v1300_v47  ;;  %v1307_v57 = vrot.slane %v1306_v48, 1  ;;  %v1318_v52 = vmax.f32 %v1316_v45, %v1317_v49  ;;  %v1325_v58 = vmax.f32 %v1323_v46, %v1324_v50  ;;  %v228_v47 = vld [vmem:[%s4562_s0 + $0x1b8] sm:$0x3] }
  0xff   :  { %v1312_v59 = vrot.slane %v1311_v53, 2  ;;  %v1331_v60 = vrot.slane %v1330_v54, 4  ;;  %v1338_v61 = vrot.slane %v1337_v55, 4  ;;  %v1344_v62 = vsel %vm608_vm0, %v513_v36, -inf }
 0x100   :  { %v1308_v63 = vmax.f32 %v1306_v48, %v1307_v57  ;;  %v2107_v0 = vmax.f32 %v1301_v56, 0.0  ;;  %v1319_v2 = vrot.slane %v1318_v52, 2  ;;  %v1326_v3 = vrot.slane %v1325_v58, 2  ;;  %v229_v48 = vld [vmem:[%s4562_s0 + $0x1ba] sm:$0x3] }
 0x101   :  { %v1313_v4 = vmax.f32 %v1311_v53, %v1312_v59  ;;  %v1332_v5 = vmax.f32 %v1330_v54, %v1331_v60  ;;  %v1339_v6 = vmax.f32 %v1337_v55, %v1338_v61  ;;  %v1345_v7 = vrot.slane %v1344_v62, 4  ;;  %v230_v54 = vld [vmem:[%s4562_s0 + $0x1bc] sm:$0x3]  ;;  %v231_v55 = vld [vmem:[%s4562_s0 + $0x1be] sm:$0x3] }
 0x102   :  { %v2108_v8 = vmax.f32 %v1308_v63, 0.0  ;;  %v1320_v9 = vmax.f32 %v1318_v52, %v1319_v2  ;;  %v1327_v1 = vmax.f32 %v1325_v58, %v1326_v3  ;;  %v1351_v10 = vsel %vm608_vm0, %v514_v37, -inf  ;;  %v238_v56 = vld [vmem:[%s4562_s0 + $0x1cc] sm:$0x3]  ;;  %v232_v60 = vld [vmem:[%s4562_s0 + $0x1c0] sm:$0x3] }
 0x103   :  { %v1314_v11 = vrot.slane %v1313_v4, 1  ;;  %v1333_v12 = vrot.slane %v1332_v5, 2  ;;  %v1340_v13 = vrot.slane %v1339_v6, 2  ;;  %v1346_v14 = vmax.f32 %v1344_v62, %v1345_v7  ;;  %v233_v61 = vld [vmem:[%s4562_s0 + $0x1c2] sm:$0x3] }
 0x104   :  { %v2495_v15 = vsel %vm2409_vm1, %v2108_v8, %v2107_v0  ;;  %v1321_v16 = vrot.slane %v1320_v9, 1  ;;  %v1328_v17 = vrot.slane %v1327_v1, 1  ;;  %v1352_v18 = vrot.slane %v1351_v10, 4  ;;  %v239_v62 = vld [vmem:[%s4562_s0 + $0x1ce] sm:$0x3] }
 0x105   :  { %2636 = vst.msk [vmem:[%s4563_s1 + $0x98] sm:$0x3] %vm608_vm0, %v2495_v15  ;;  %v1315_v19 = vmax.f32 %v1313_v4, %v1314_v11  ;;  %v1334_v20 = vmax.f32 %v1332_v5, %v1333_v12  ;;  %v1341_v21 = vmax.f32 %v1339_v6, %v1340_v13  ;;  %v1347_v22 = vrot.slane %v1346_v14, 2  ;;  %v3721_v4 = vld [vmem:[%s4562_s0 + $0x1c4] sm:$0x3] }
 0x106   :  { %v1322_v24 = vmax.f32 %v1320_v9, %v1321_v16  ;;  %v1329_v25 = vmax.f32 %v1327_v1, %v1328_v17  ;;  %v1353_v26 = vmax.f32 %v1351_v10, %v1352_v18  ;;  %v1358_v27 = vsel %vm608_vm0, %v515_v38, -inf  ;;  %v3726_v5 = vld [vmem:[%s4562_s0 + $0x1c6] sm:$0x3]  ;;  %v240_v6 = vld [vmem:[%s4562_s0 + $0x1d0] sm:$0x3] }
 0x107   :  { %v1335_v30 = vrot.slane %v1334_v20, 1  ;;  %v1342_v31 = vrot.slane %v1341_v21, 1  ;;  %v1348_v32 = vmax.f32 %v1346_v14, %v1347_v22  ;;  %v1359_v33 = vrot.slane %v1358_v27, 4  ;;  %v241_v7 = vld [vmem:[%s4562_s0 + $0x1d2] sm:$0x3] }
 0x108   :  { %v1354_v35 = vrot.slane %v1353_v26, 2  ;;  %v2109_v36 = vmax.f32 %v1315_v19, 0.0  ;;  %v2110_v37 = vmax.f32 %v1322_v24, 0.0  ;;  %v2111_v38 = vmax.f32 %v1329_v25, 0.0  ;;  %v242_v10 = vld [vmem:[%s4562_s0 + $0x1d4] sm:$0x3] }
 0x109   :  { %v1336_v39 = vmax.f32 %v1334_v20, %v1335_v30  ;;  %v1343_v40 = vmax.f32 %v1341_v21, %v1342_v31  ;;  %v1349_v41 = vrot.slane %v1348_v32, 1  ;;  %v1360_v42 = vmax.f32 %v1358_v27, %v1359_v33  ;;  %v243_v11 = vld [vmem:[%s4562_s0 + $0x1d6] sm:$0x3]  ;;  %v244_v16 = vld [vmem:[%s4562_s0 + $0x1d8] sm:$0x3] }
 0x10a   :  { %v1355_v43 = vmax.f32 %v1353_v26, %v1354_v35  ;;  %v2496_v44 = vsel %vm2409_vm1, %v2110_v37, %v2109_v36  ;;  %v516_v45 = vmax.f32 %v216_v23, %v226_v29  ;;  %v517_v46 = vmax.f32 %v217_v28, %v227_v34  ;;  %v3748_v17 = vld [vmem:[%s4562_s0 + $0x1da] sm:$0x3] }
 0x10b   :  { %v1350_v49 = vmax.f32 %v1348_v32, %v1349_v41  ;;  %v1361_v50 = vrot.slane %v1360_v42, 2  ;;  %v2112_v51 = vmax.f32 %v1336_v39, 0.0  ;;  %v2113_v53 = vmax.f32 %v1343_v40, 0.0 }
 0x10c   :  { %v1356_v57 = vrot.slane %v1355_v43, 1  ;;  %v2497_v52 = vsel %vm2411_vm2, %v2111_v38, %v2496_v44  ;;  %v1365_v58 = vsel %vm608_vm0, %v516_v45, -inf  ;;  %v1372_v59 = vsel %vm608_vm0, %v517_v46, -inf }
 0x10d   :  { %v1362_v63 = vmax.f32 %v1360_v42, %v1361_v50  ;;  %v2114_v0 = vmax.f32 %v1350_v49, 0.0  ;;  %v2498_v2 = vsel %vm2413_vm3, %v2112_v51, %v2497_v52  ;;  %v1366_v3 = vrot.slane %v1365_v58, 4 }
 0x10e   :  { %v1357_v8 = vmax.f32 %v1355_v43, %v1356_v57  ;;  %v2499_v9 = vsel %vm2415_vm4, %v2113_v53, %v2498_v2  ;;  %v1373_v1 = vrot.slane %v1372_v59, 4  ;;  %v518_v12 = vmax.f32 %v228_v47, %v238_v56 }
 0x10f   :  { %v1363_v13 = vrot.slane %v1362_v63, 1  ;;  %v2500_v14 = vsel %vm2417_vm5, %v2114_v0, %v2499_v9  ;;  %v1367_v15 = vmax.f32 %v1365_v58, %v1366_v3  ;;  %v519_v18 = vmax.f32 %v229_v48, %v239_v62 }
 0x110   :  { %v2115_v19 = vmax.f32 %v1357_v8, 0.0  ;;  %v1374_v20 = vmax.f32 %v1372_v59, %v1373_v1  ;;  %v520_v21 = vmax.f32 %v230_v54, %v240_v6  ;;  %v521_v22 = vmax.f32 %v231_v55, %v241_v7 }
 0x111   :  { %v1364_v23 = vmax.f32 %v1362_v63, %v1363_v13  ;;  %v1368_v24 = vrot.slane %v1367_v15, 2  ;;  %v522_v25 = vmax.f32 %v232_v60, %v242_v10  ;;  %v523_v26 = vmax.f32 %v233_v61, %v243_v11 }
 0x112   :  { %v2501_v27 = vsel %vm2419_vm6, %v2115_v19, %v2500_v14  ;;  %v1375_v28 = vrot.slane %v1374_v20, 2  ;;  %v524_v29 = vmax.f32 %v3721_v4, %v244_v16  ;;  %v525_v30 = vmax.f32 %v3726_v5, %v3748_v17  ;;  %v236_v19 = vld [vmem:[%s4562_s0 + $0x1c8] sm:$0x3] }
 0x113   :  { %v2116_v31 = vmax.f32 %v1364_v23, 0.0  ;;  %v1369_v32 = vmax.f32 %v1367_v15, %v1368_v24  ;;  %v1379_v33 = vsel %vm608_vm0, %v518_v12, -inf  ;;  %v1386_v34 = vsel %vm608_vm0, %v519_v18, -inf }
 0x114   :  { %v1376_v35 = vmax.f32 %v1374_v20, %v1375_v28  ;;  %v1380_v36 = vrot.slane %v1379_v33, 4  ;;  %v1387_v37 = vrot.slane %v1386_v34, 4  ;;  %v1393_v38 = vsel %vm608_vm0, %v520_v21, -inf  ;;  %v246_v20 = vld [vmem:[%s4562_s0 + $0x1dc] sm:$0x3] }
 0x115   :  { %v2502_v39 = vsel %vm2421_vm7, %v2116_v31, %v2501_v27  ;;  %v1370_v40 = vrot.slane %v1369_v32, 1  ;;  %v1394_v41 = vrot.slane %v1393_v38, 4  ;;  %v1400_v42 = vsel %vm608_vm0, %v521_v22, -inf }
 0x116   :  { %2637 = vst.msk [vmem:[%s4563_s1 + $0xa0] sm:$0xff] %vm2616_vm8, %v2502_v39  ;;  %v1377_v43 = vrot.slane %v1376_v35, 1  ;;  %v1381_v44 = vmax.f32 %v1379_v33, %v1380_v36  ;;  %v1388_v45 = vmax.f32 %v1386_v34, %v1387_v37  ;;  %v1401_v46 = vrot.slane %v1400_v42, 4  ;;  %v249_v36 = vld [vmem:[%s4562_s0 + $0x1e2] sm:$0x3] }
 0x117   :  { %v1371_v47 = vmax.f32 %v1369_v32, %v1370_v40  ;;  %v1395_v48 = vmax.f32 %v1393_v38, %v1394_v41  ;;  %v1407_v49 = vsel %vm608_vm0, %v522_v25, -inf  ;;  %v1414_v50 = vsel %vm608_vm0, %v523_v26, -inf  ;;  %v237_v25 = vld [vmem:[%s4562_s0 + $0x1ca] sm:$0x3]  ;;  %v250_v41 = vld [vmem:[%s4562_s0 + $0x1e4] sm:$0x3] }
 0x118   :  { %v1378_v51 = vmax.f32 %v1376_v35, %v1377_v43  ;;  %v1382_v53 = vrot.slane %v1381_v44, 2  ;;  %v1389_v54 = vrot.slane %v1388_v45, 2  ;;  %v1402_v55 = vmax.f32 %v1400_v42, %v1401_v46  ;;  %v248_v35 = vld [vmem:[%s4562_s0 + $0x1e0] sm:$0x3]  ;;  %v251_v42 = vld [vmem:[%s4562_s0 + $0x1e6] sm:$0x3] }
 0x119   :  { %v2117_v56 = vmax.f32 %v1371_v47, 0.0  ;;  %v1396_v57 = vrot.slane %v1395_v48, 2  ;;  %v1408_v52 = vrot.slane %v1407_v49, 4  ;;  %v1415_v58 = vrot.slane %v1414_v50, 4  ;;  %v258_v43 = vld [vmem:[%s4562_s0 + $0x1f4] sm:$0x3] }
 0x11a   :  { %v2118_v59 = vmax.f32 %v1378_v51, 0.0  ;;  %v1383_v60 = vmax.f32 %v1381_v44, %v1382_v53  ;;  %v1390_v61 = vmax.f32 %v1388_v45, %v1389_v54  ;;  %v1403_v62 = vrot.slane %v1402_v55, 2  ;;  %v259_v44 = vld [vmem:[%s4562_s0 + $0x1f6] sm:$0x3] }
 0x11b   :  { %v1397_v63 = vmax.f32 %v1395_v48, %v1396_v57  ;;  %v1409_v0 = vmax.f32 %v1407_v49, %v1408_v52  ;;  %v1416_v2 = vmax.f32 %v1414_v50, %v1415_v58  ;;  %v1421_v3 = vsel %vm608_vm0, %v524_v29, -inf  ;;  %v252_v49 = vld [vmem:[%s4562_s0 + $0x1e8] sm:$0x3]  ;;  %v260_v50 = vld [vmem:[%s4562_s0 + $0x1f8] sm:$0x3] }
 0x11c   :  { %v2503_v4 = vsel %vm2409_vm1, %v2118_v59, %v2117_v56  ;;  %v1384_v5 = vrot.slane %v1383_v60, 1  ;;  %v1391_v6 = vrot.slane %v1390_v61, 1  ;;  %v1404_v7 = vmax.f32 %v1402_v55, %v1403_v62  ;;  %v253_v56 = vld [vmem:[%s4562_s0 + $0x1ea] sm:$0x3]  ;;  %v3818_v57 = vld [vmem:[%s4562_s0 + $0x1ec] sm:$0x3] }
 0x11d   :  { %2638 = vst.msk [vmem:[%s4563_s1 + $0xa8] sm:$0x3] %vm608_vm0, %v2503_v4  ;;  %v1398_v8 = vrot.slane %v1397_v63, 1  ;;  %v1410_v9 = vrot.slane %v1409_v0, 2  ;;  %v1417_v1 = vrot.slane %v1416_v2, 2  ;;  %v1422_v10 = vrot.slane %v1421_v3, 4 }
 0x11e   :  { %v1385_v11 = vmax.f32 %v1383_v60, %v1384_v5  ;;  %v1392_v12 = vmax.f32 %v1390_v61, %v1391_v6  ;;  %v1405_v13 = vrot.slane %v1404_v7, 1  ;;  %v1428_v14 = vsel %vm608_vm0, %v525_v30, -inf  ;;  %v247_v30 = vld [vmem:[%s4562_s0 + $0x1de] sm:$0x3]  ;;  %v3823_v52 = vld [vmem:[%s4562_s0 + $0x1ee] sm:$0x3] }
 0x11f   :  { %v1399_v15 = vmax.f32 %v1397_v63, %v1398_v8  ;;  %v1411_v16 = vmax.f32 %v1409_v0, %v1410_v9  ;;  %v1418_v17 = vmax.f32 %v1416_v2, %v1417_v1  ;;  %v1423_v18 = vmax.f32 %v1421_v3, %v1422_v10  ;;  %v261_v58 = vld [vmem:[%s4562_s0 + $0x1fa] sm:$0x3]  ;;  %v262_v61 = vld [vmem:[%s4562_s0 + $0x1fc] sm:$0x3]  ;;  %v263_v62 = vld [vmem:[%s4562_s0 + $0x1fe] sm:$0x3] }
 0x120   :  { %v1406_v21 = vmax.f32 %v1404_v7, %v1405_v13  ;;  %v1429_v22 = vrot.slane %v1428_v14, 4  ;;  %v2119_v23 = vmax.f32 %v1385_v11, 0.0  ;;  %v2120_v24 = vmax.f32 %v1392_v12, 0.0  ;;  %v264_v6 = vld [vmem:[%s4562_s0 + $0x200] sm:$0x3] }
 0x121   :  { %v1412_v26 = vrot.slane %v1411_v16, 1  ;;  %v1419_v27 = vrot.slane %v1418_v17, 1  ;;  %v1424_v28 = vrot.slane %v1423_v18, 2  ;;  %v2121_v29 = vmax.f32 %v1399_v15, 0.0  ;;  %v3842_v7 = vld [vmem:[%s4562_s0 + $0x202] sm:$0x3] }
 0x122   :  { %v1430_v31 = vmax.f32 %v1428_v14, %v1429_v22  ;;  %v2122_v32 = vmax.f32 %v1406_v21, 0.0  ;;  %v2504_v33 = vsel %vm2409_vm1, %v2120_v24, %v2119_v23  ;;  %v526_v34 = vmax.f32 %v236_v19, %v246_v20 }
 0x123   :  { %v1413_v37 = vmax.f32 %v1411_v16, %v1412_v26  ;;  %v1420_v38 = vmax.f32 %v1418_v17, %v1419_v27  ;;  %v1425_v39 = vmax.f32 %v1423_v18, %v1424_v28  ;;  %v2505_v40 = vsel %vm2411_vm2, %v2121_v29, %v2504_v33 }
 0x124   :  { %v1431_v45 = vrot.slane %v1430_v31, 2  ;;  %v2506_v46 = vsel %vm2413_vm3, %v2122_v32, %v2505_v40  ;;  %v527_v47 = vmax.f32 %v237_v25, %v247_v30  ;;  %v1435_v48 = vsel %vm608_vm0, %v526_v34, -inf }
 0x125   :  { %v1426_v51 = vrot.slane %v1425_v39, 1  ;;  %v2123_v53 = vmax.f32 %v1413_v37, 0.0  ;;  %v2124_v54 = vmax.f32 %v1420_v38, 0.0  ;;  %v1436_v55 = vrot.slane %v1435_v48, 4 }
 0x126   :  { %v1432_v59 = vmax.f32 %v1430_v31, %v1431_v45  ;;  %v1442_v60 = vsel %vm608_vm0, %v527_v47, -inf  ;;  %v528_v63 = vmax.f32 %v248_v35, %v258_v43  ;;  %v529_v0 = vmax.f32 %v249_v36, %v259_v44 }
 0x127   :  { %v1427_v2 = vmax.f32 %v1425_v39, %v1426_v51  ;;  %v2507_v3 = vsel %vm2415_vm4, %v2123_v53, %v2506_v46  ;;  %v1437_v4 = vmax.f32 %v1435_v48, %v1436_v55  ;;  %v1443_v5 = vrot.slane %v1442_v60, 4 }
 0x128   :  { %v1433_v8 = vrot.slane %v1432_v59, 1  ;;  %v2508_v9 = vsel %vm2417_vm5, %v2124_v54, %v2507_v3  ;;  %v530_v1 = vmax.f32 %v250_v41, %v260_v50  ;;  %v531_v10 = vmax.f32 %v251_v42, %v261_v58 }
 0x129   :  { %v2125_v11 = vmax.f32 %v1427_v2, 0.0  ;;  %v1438_v12 = vrot.slane %v1437_v4, 2  ;;  %v1444_v13 = vmax.f32 %v1442_v60, %v1443_v5  ;;  %v532_v14 = vmax.f32 %v252_v49, %v262_v61 }
 0x12a   :  { %v1434_v15 = vmax.f32 %v1432_v59, %v1433_v8  ;;  %v533_v16 = vmax.f32 %v253_v56, %v263_v62  ;;  %v534_v17 = vmax.f32 %v3818_v57, %v264_v6  ;;  %v535_v18 = vmax.f32 %v3823_v52, %v3842_v7 }
 0x12b   :  { %v2509_v19 = vsel %vm2419_vm6, %v2125_v11, %v2508_v9  ;;  %v1439_v20 = vmax.f32 %v1437_v4, %v1438_v12  ;;  %v1445_v21 = vrot.slane %v1444_v13, 2  ;;  %v1449_v22 = vsel %vm608_vm0, %v528_v63, -inf  ;;  %v256_v4 = vld [vmem:[%s4562_s0 + $0x1f0] sm:$0x3]  ;;  %v257_v9 = vld [vmem:[%s4562_s0 + $0x1f2] sm:$0x3] }
 0x12c   :  { %v2126_v23 = vmax.f32 %v1434_v15, 0.0  ;;  %v1450_v24 = vrot.slane %v1449_v22, 4  ;;  %v1456_v25 = vsel %vm608_vm0, %v529_v0, -inf  ;;  %v1463_v26 = vsel %vm608_vm0, %v530_v1, -inf  ;;  %v266_v1 = vld [vmem:[%s4562_s0 + $0x204] sm:$0x3] }
 0x12d   :  { %v1440_v27 = vrot.slane %v1439_v20, 1  ;;  %v1446_v28 = vmax.f32 %v1444_v13, %v1445_v21  ;;  %v1457_v29 = vrot.slane %v1456_v25, 4  ;;  %v1464_v30 = vrot.slane %v1463_v26, 4 }
 0x12e   :  { %v2510_v31 = vsel %vm2421_vm7, %v2126_v23, %v2509_v19  ;;  %v1451_v32 = vmax.f32 %v1449_v22, %v1450_v24  ;;  %v1470_v33 = vsel %vm608_vm0, %v531_v10, -inf  ;;  %v1477_v34 = vsel %vm608_vm0, %v532_v14, -inf  ;;  %v267_v14 = vld [vmem:[%s4562_s0 + $0x206] sm:$0x3] }
 0x12f   :  { %2639 = vst.msk [vmem:[%s4563_s1 + $0xb0] sm:$0xff] %vm2616_vm8, %v2510_v31  ;;  %v1441_v35 = vmax.f32 %v1439_v20, %v1440_v27  ;;  %v1447_v36 = vrot.slane %v1446_v28, 1  ;;  %v1458_v37 = vmax.f32 %v1456_v25, %v1457_v29  ;;  %v1465_v38 = vmax.f32 %v1463_v26, %v1464_v30  ;;  %v268_v27 = vld [vmem:[%s4562_s0 + $0x208] sm:$0x3] }
 0x130   :  { %v1452_v39 = vrot.slane %v1451_v32, 2  ;;  %v1471_v40 = vrot.slane %v1470_v33, 4  ;;  %v1478_v41 = vrot.slane %v1477_v34, 4  ;;  %v1484_v42 = vsel %vm608_vm0, %v533_v16, -inf }
 0x131   :  { %v1448_v43 = vmax.f32 %v1446_v28, %v1447_v36  ;;  %v2127_v44 = vmax.f32 %v1441_v35, 0.0  ;;  %v1459_v45 = vrot.slane %v1458_v37, 2  ;;  %v1466_v46 = vrot.slane %v1465_v38, 2  ;;  %v269_v28 = vld [vmem:[%s4562_s0 + $0x20a] sm:$0x3] }
 0x132   :  { %v1453_v47 = vmax.f32 %v1451_v32, %v1452_v39  ;;  %v1472_v48 = vmax.f32 %v1470_v33, %v1471_v40  ;;  %v1479_v49 = vmax.f32 %v1477_v34, %v1478_v41  ;;  %v1485_v50 = vrot.slane %v1484_v42, 4  ;;  %v270_v33 = vld [vmem:[%s4562_s0 + $0x20c] sm:$0x3]  ;;  %v271_v34 = vld [vmem:[%s4562_s0 + $0x20e] sm:$0x3] }
 0x133   :  { %v2128_v51 = vmax.f32 %v1448_v43, 0.0  ;;  %v1460_v53 = vmax.f32 %v1458_v37, %v1459_v45  ;;  %v1467_v54 = vmax.f32 %v1465_v38, %v1466_v46  ;;  %v1491_v55 = vsel %vm608_vm0, %v534_v17, -inf  ;;  %v278_v35 = vld [vmem:[%s4562_s0 + $0x21c] sm:$0x3]  ;;  %v272_v40 = vld [vmem:[%s4562_s0 + $0x210] sm:$0x3] }
 0x134   :  { %v1454_v56 = vrot.slane %v1453_v47, 1  ;;  %v1473_v57 = vrot.slane %v1472_v48, 2  ;;  %v1480_v52 = vrot.slane %v1479_v49, 2  ;;  %v1486_v58 = vmax.f32 %v1484_v42, %v1485_v50  ;;  %v273_v41 = vld [vmem:[%s4562_s0 + $0x212] sm:$0x3] }
 0x135   :  { %v2511_v59 = vsel %vm2409_vm1, %v2128_v51, %v2127_v44  ;;  %v1461_v60 = vrot.slane %v1460_v53, 1  ;;  %v1468_v61 = vrot.slane %v1467_v54, 1  ;;  %v1492_v62 = vrot.slane %v1491_v55, 4  ;;  %v279_v42 = vld [vmem:[%s4562_s0 + $0x21e] sm:$0x3] }
 0x136   :  { %2640 = vst.msk [vmem:[%s4563_s1 + $0xb8] sm:$0x3] %vm608_vm0, %v2511_v59  ;;  %v1455_v63 = vmax.f32 %v1453_v47, %v1454_v56  ;;  %v1474_v0 = vmax.f32 %v1472_v48, %v1473_v57  ;;  %v1481_v2 = vmax.f32 %v1479_v49, %v1480_v52  ;;  %v1487_v3 = vrot.slane %v1486_v58, 2  ;;  %v3911_v47 = vld [vmem:[%s4562_s0 + $0x214] sm:$0x3] }
 0x137   :  { %v1462_v5 = vmax.f32 %v1460_v53, %v1461_v60  ;;  %v1469_v6 = vmax.f32 %v1467_v54, %v1468_v61  ;;  %v1493_v7 = vmax.f32 %v1491_v55, %v1492_v62  ;;  %v1498_v8 = vsel %vm608_vm0, %v535_v18, -inf  ;;  %v3916_v48 = vld [vmem:[%s4562_s0 + $0x216] sm:$0x3]  ;;  %v280_v49 = vld [vmem:[%s4562_s0 + $0x220] sm:$0x3] }
 0x138   :  { %v1475_v10 = vrot.slane %v1474_v0, 1  ;;  %v1482_v11 = vrot.slane %v1481_v2, 1  ;;  %v1488_v12 = vmax.f32 %v1486_v58, %v1487_v3  ;;  %v1499_v13 = vrot.slane %v1498_v8, 4  ;;  %v281_v50 = vld [vmem:[%s4562_s0 + $0x222] sm:$0x3] }
 0x139   :  { %v1494_v15 = vrot.slane %v1493_v7, 2  ;;  %v2129_v16 = vmax.f32 %v1455_v63, 0.0  ;;  %v2130_v17 = vmax.f32 %v1462_v5, 0.0  ;;  %v2131_v18 = vmax.f32 %v1469_v6, 0.0  ;;  %v282_v55 = vld [vmem:[%s4562_s0 + $0x224] sm:$0x3] }
 0x13a   :  { %v1476_v19 = vmax.f32 %v1474_v0, %v1475_v10  ;;  %v1483_v20 = vmax.f32 %v1481_v2, %v1482_v11  ;;  %v1489_v21 = vrot.slane %v1488_v12, 1  ;;  %v1500_v22 = vmax.f32 %v1498_v8, %v1499_v13  ;;  %v283_v56 = vld [vmem:[%s4562_s0 + $0x226] sm:$0x3]  ;;  %v284_v60 = vld [vmem:[%s4562_s0 + $0x228] sm:$0x3] }
 0x13b   :  { %v1495_v23 = vmax.f32 %v1493_v7, %v1494_v15  ;;  %v2512_v24 = vsel %vm2409_vm1, %v2130_v17, %v2129_v16  ;;  %v536_v25 = vmax.f32 %v256_v4, %v266_v1  ;;  %v537_v26 = vmax.f32 %v257_v9, %v267_v14  ;;  %v3938_v61 = vld [vmem:[%s4562_s0 + $0x22a] sm:$0x3] }
 0x13c   :  { %v1490_v29 = vmax.f32 %v1488_v12, %v1489_v21  ;;  %v1501_v30 = vrot.slane %v1500_v22, 2  ;;  %v2132_v31 = vmax.f32 %v1476_v19, 0.0  ;;  %v2133_v32 = vmax.f32 %v1483_v20, 0.0 }
 0x13d   :  { %v1496_v36 = vrot.slane %v1495_v23, 1  ;;  %v2513_v37 = vsel %vm2411_vm2, %v2131_v18, %v2512_v24  ;;  %v1505_v38 = vsel %vm608_vm0, %v536_v25, -inf  ;;  %v1512_v39 = vsel %vm608_vm0, %v537_v26, -inf }
 0x13e   :  { %v1502_v43 = vmax.f32 %v1500_v22, %v1501_v30  ;;  %v2134_v44 = vmax.f32 %v1490_v29, 0.0  ;;  %v2514_v45 = vsel %vm2413_vm3, %v2132_v31, %v2513_v37  ;;  %v1506_v46 = vrot.slane %v1505_v38, 4 }
 0x13f   :  { %v1497_v51 = vmax.f32 %v1495_v23, %v1496_v36  ;;  %v2515_v53 = vsel %vm2415_vm4, %v2133_v32, %v2514_v45  ;;  %v1513_v54 = vrot.slane %v1512_v39, 4  ;;  %v538_v57 = vmax.f32 %v268_v27, %v278_v35 }
 0x140   :  { %v1503_v52 = vrot.slane %v1502_v43, 1  ;;  %v2516_v58 = vsel %vm2417_vm5, %v2134_v44, %v2515_v53  ;;  %v1507_v59 = vmax.f32 %v1505_v38, %v1506_v46  ;;  %v539_v62 = vmax.f32 %v269_v28, %v279_v42 }
 0x141   :  { %v2135_v63 = vmax.f32 %v1497_v51, 0.0  ;;  %v1514_v0 = vmax.f32 %v1512_v39, %v1513_v54  ;;  %v540_v2 = vmax.f32 %v270_v33, %v280_v49  ;;  %v541_v3 = vmax.f32 %v271_v34, %v281_v50 }
 0x142   :  { %v1504_v4 = vmax.f32 %v1502_v43, %v1503_v52  ;;  %v1508_v5 = vrot.slane %v1507_v59, 2  ;;  %v542_v6 = vmax.f32 %v272_v40, %v282_v55  ;;  %v543_v7 = vmax.f32 %v273_v41, %v283_v56 }
 0x143   :  { %v2517_v8 = vsel %vm2419_vm6, %v2135_v63, %v2516_v58  ;;  %v1515_v9 = vrot.slane %v1514_v0, 2  ;;  %v544_v1 = vmax.f32 %v3911_v47, %v284_v60  ;;  %v545_v10 = vmax.f32 %v3916_v48, %v3938_v61  ;;  %v276_v63 = vld [vmem:[%s4562_s0 + $0x218] sm:$0x3] }
 0x144   :  { %v2136_v11 = vmax.f32 %v1504_v4, 0.0  ;;  %v1509_v12 = vmax.f32 %v1507_v59, %v1508_v5  ;;  %v1519_v13 = vsel %vm608_vm0, %v538_v57, -inf  ;;  %v1526_v14 = vsel %vm608_vm0, %v539_v62, -inf }
 0x145   :  { %v1516_v15 = vmax.f32 %v1514_v0, %v1515_v9  ;;  %v1520_v16 = vrot.slane %v1519_v13, 4  ;;  %v1527_v17 = vrot.slane %v1526_v14, 4  ;;  %v1533_v18 = vsel %vm608_vm0, %v540_v2, -inf  ;;  %v286_v0 = vld [vmem:[%s4562_s0 + $0x22c] sm:$0x3] }
 0x146   :  { %v2518_v19 = vsel %vm2421_vm7, %v2136_v11, %v2517_v8  ;;  %v1510_v20 = vrot.slane %v1509_v12, 1  ;;  %v1534_v21 = vrot.slane %v1533_v18, 4  ;;  %v1540_v22 = vsel %vm608_vm0, %v541_v3, -inf }
 0x147   :  { %2641 = vst.msk [vmem:[%s4563_s1 + $0xc0] sm:$0xff] %vm2616_vm8, %v2518_v19  ;;  %v1517_v23 = vrot.slane %v1516_v15, 1  ;;  %v1521_v24 = vmax.f32 %v1519_v13, %v1520_v16  ;;  %v1528_v25 = vmax.f32 %v1526_v14, %v1527_v17  ;;  %v1541_v26 = vrot.slane %v1540_v22, 4  ;;  %v289_v16 = vld [vmem:[%s4562_s0 + $0x232] sm:$0x3] }
 0x148   :  { %v1511_v27 = vmax.f32 %v1509_v12, %v1510_v20  ;;  %v1535_v28 = vmax.f32 %v1533_v18, %v1534_v21  ;;  %v1547_v29 = vsel %vm608_vm0, %v542_v6, -inf  ;;  %v1554_v30 = vsel %vm608_vm0, %v543_v7, -inf  ;;  %v277_v6 = vld [vmem:[%s4562_s0 + $0x21a] sm:$0x3]  ;;  %v290_v21 = vld [vmem:[%s4562_s0 + $0x234] sm:$0x3] }
 0x149   :  { %v1518_v31 = vmax.f32 %v1516_v15, %v1517_v23  ;;  %v1522_v32 = vrot.slane %v1521_v24, 2  ;;  %v1529_v33 = vrot.slane %v1528_v25, 2  ;;  %v1542_v34 = vmax.f32 %v1540_v22, %v1541_v26  ;;  %v288_v15 = vld [vmem:[%s4562_s0 + $0x230] sm:$0x3]  ;;  %v291_v22 = vld [vmem:[%s4562_s0 + $0x236] sm:$0x3] }
 0x14a   :  { %v2137_v35 = vmax.f32 %v1511_v27, 0.0  ;;  %v1536_v36 = vrot.slane %v1535_v28, 2  ;;  %v1548_v37 = vrot.slane %v1547_v29, 4  ;;  %v1555_v38 = vrot.slane %v1554_v30, 4  ;;  %v298_v23 = vld [vmem:[%s4562_s0 + $0x244] sm:$0x3] }
 0x14b   :  { %v2138_v39 = vmax.f32 %v1518_v31, 0.0  ;;  %v1523_v40 = vmax.f32 %v1521_v24, %v1522_v32  ;;  %v1530_v41 = vmax.f32 %v1528_v25, %v1529_v33  ;;  %v1543_v42 = vrot.slane %v1542_v34, 2  ;;  %v299_v24 = vld [vmem:[%s4562_s0 + $0x246] sm:$0x3] }
 0x14c   :  { %v1537_v43 = vmax.f32 %v1535_v28, %v1536_v36  ;;  %v1549_v44 = vmax.f32 %v1547_v29, %v1548_v37  ;;  %v1556_v45 = vmax.f32 %v1554_v30, %v1555_v38  ;;  %v1561_v46 = vsel %vm608_vm0, %v544_v1, -inf  ;;  %v292_v29 = vld [vmem:[%s4562_s0 + $0x238] sm:$0x3]  ;;  %v300_v30 = vld [vmem:[%s4562_s0 + $0x248] sm:$0x3] }
 0x14d   :  { %v2519_v47 = vsel %vm2409_vm1, %v2138_v39, %v2137_v35  ;;  %v1524_v48 = vrot.slane %v1523_v40, 1  ;;  %v1531_v49 = vrot.slane %v1530_v41, 1  ;;  %v1544_v50 = vmax.f32 %v1542_v34, %v1543_v42  ;;  %v293_v35 = vld [vmem:[%s4562_s0 + $0x23a] sm:$0x3]  ;;  %v4008_v36 = vld [vmem:[%s4562_s0 + $0x23c] sm:$0x3] }
 0x14e   :  { %2642 = vst.msk [vmem:[%s4563_s1 + $0xc8] sm:$0x3] %vm608_vm0, %v2519_v47  ;;  %v1538_v51 = vrot.slane %v1537_v43, 1  ;;  %v1550_v53 = vrot.slane %v1549_v44, 2  ;;  %v1557_v54 = vrot.slane %v1556_v45, 2  ;;  %v1562_v55 = vrot.slane %v1561_v46, 4 }
 0x14f   :  { %v1525_v56 = vmax.f32 %v1523_v40, %v1524_v48  ;;  %v1532_v57 = vmax.f32 %v1530_v41, %v1531_v49  ;;  %v1545_v52 = vrot.slane %v1544_v50, 1  ;;  %v1568_v58 = vsel %vm608_vm0, %v545_v10, -inf  ;;  %v287_v10 = vld [vmem:[%s4562_s0 + $0x22e] sm:$0x3]  ;;  %v4013_v37 = vld [vmem:[%s4562_s0 + $0x23e] sm:$0x3] }
 0x150   :  { %v1539_v59 = vmax.f32 %v1537_v43, %v1538_v51  ;;  %v1551_v60 = vmax.f32 %v1549_v44, %v1550_v53  ;;  %v1558_v61 = vmax.f32 %v1556_v45, %v1557_v54  ;;  %v1563_v62 = vmax.f32 %v1561_v46, %v1562_v55  ;;  %v301_v38 = vld [vmem:[%s4562_s0 + $0x24a] sm:$0x3]  ;;  %v302_v41 = vld [vmem:[%s4562_s0 + $0x24c] sm:$0x3]  ;;  %v303_v42 = vld [vmem:[%s4562_s0 + $0x24e] sm:$0x3] }
 0x151   :  { %v1546_v2 = vmax.f32 %v1544_v50, %v1545_v52  ;;  %v1569_v3 = vrot.slane %v1568_v58, 4  ;;  %v2139_v4 = vmax.f32 %v1525_v56, 0.0  ;;  %v2140_v5 = vmax.f32 %v1532_v57, 0.0  ;;  %v304_v49 = vld [vmem:[%s4562_s0 + $0x250] sm:$0x3] }
 0x152   :  { %v1552_v7 = vrot.slane %v1551_v60, 1  ;;  %v1559_v8 = vrot.slane %v1558_v61, 1  ;;  %v1564_v9 = vrot.slane %v1563_v62, 2  ;;  %v2141_v1 = vmax.f32 %v1539_v59, 0.0  ;;  %v4032_v50 = vld [vmem:[%s4562_s0 + $0x252] sm:$0x3] }
 0x153   :  { %v1570_v11 = vmax.f32 %v1568_v58, %v1569_v3  ;;  %v2142_v12 = vmax.f32 %v1546_v2, 0.0  ;;  %v2520_v13 = vsel %vm2409_vm1, %v2140_v5, %v2139_v4  ;;  %v546_v14 = vmax.f32 %v276_v63, %v286_v0 }
 0x154   :  { %v1553_v17 = vmax.f32 %v1551_v60, %v1552_v7  ;;  %v1560_v18 = vmax.f32 %v1558_v61, %v1559_v8  ;;  %v1565_v19 = vmax.f32 %v1563_v62, %v1564_v9  ;;  %v2521_v20 = vsel %vm2411_vm2, %v2141_v1, %v2520_v13 }
 0x155   :  { %v1571_v25 = vrot.slane %v1570_v11, 2  ;;  %v2522_v26 = vsel %vm2413_vm3, %v2142_v12, %v2521_v20  ;;  %v547_v27 = vmax.f32 %v277_v6, %v287_v10  ;;  %v1575_v28 = vsel %vm608_vm0, %v546_v14, -inf }
 0x156   :  { %v1566_v31 = vrot.slane %v1565_v19, 1  ;;  %v2143_v32 = vmax.f32 %v1553_v17, 0.0  ;;  %v2144_v33 = vmax.f32 %v1560_v18, 0.0  ;;  %v1576_v34 = vrot.slane %v1575_v28, 4 }
 0x157   :  { %v1572_v39 = vmax.f32 %v1570_v11, %v1571_v25  ;;  %v1582_v40 = vsel %vm608_vm0, %v547_v27, -inf  ;;  %v548_v43 = vmax.f32 %v288_v15, %v298_v23  ;;  %v549_v44 = vmax.f32 %v289_v16, %v299_v24 }
 0x158   :  { %v1567_v45 = vmax.f32 %v1565_v19, %v1566_v31  ;;  %v2523_v46 = vsel %vm2415_vm4, %v2143_v32, %v2522_v26  ;;  %v1577_v47 = vmax.f32 %v1575_v28, %v1576_v34  ;;  %v1583_v48 = vrot.slane %v1582_v40, 4 }
 0x159   :  { %v1573_v51 = vrot.slane %v1572_v39, 1  ;;  %v2524_v53 = vsel %vm2417_vm5, %v2144_v33, %v2523_v46  ;;  %v550_v54 = vmax.f32 %v290_v21, %v300_v30  ;;  %v551_v55 = vmax.f32 %v291_v22, %v301_v38 }
 0x15a   :  { %v2145_v56 = vmax.f32 %v1567_v45, 0.0  ;;  %v1578_v57 = vrot.slane %v1577_v47, 2  ;;  %v1584_v52 = vmax.f32 %v1582_v40, %v1583_v48  ;;  %v552_v58 = vmax.f32 %v292_v29, %v302_v41 }
 0x15b   :  { %v1574_v59 = vmax.f32 %v1572_v39, %v1573_v51  ;;  %v553_v60 = vmax.f32 %v293_v35, %v303_v42  ;;  %v554_v61 = vmax.f32 %v4008_v36, %v304_v49  ;;  %v555_v62 = vmax.f32 %v4013_v37, %v4032_v50 }
 0x15c   :  { %v2525_v63 = vsel %vm2419_vm6, %v2145_v56, %v2524_v53  ;;  %v1579_v0 = vmax.f32 %v1577_v47, %v1578_v57  ;;  %v1585_v2 = vrot.slane %v1584_v52, 2  ;;  %v1589_v3 = vsel %vm608_vm0, %v548_v43, -inf  ;;  %v296_v47 = vld [vmem:[%s4562_s0 + $0x240] sm:$0x3]  ;;  %v297_v53 = vld [vmem:[%s4562_s0 + $0x242] sm:$0x3] }
 0x15d   :  { %v2146_v4 = vmax.f32 %v1574_v59, 0.0  ;;  %v1590_v5 = vrot.slane %v1589_v3, 4  ;;  %v1596_v6 = vsel %vm608_vm0, %v549_v44, -inf  ;;  %v1603_v7 = vsel %vm608_vm0, %v550_v54, -inf  ;;  %v306_v54 = vld [vmem:[%s4562_s0 + $0x254] sm:$0x3] }
 0x15e   :  { %v1580_v8 = vrot.slane %v1579_v0, 1  ;;  %v1586_v9 = vmax.f32 %v1584_v52, %v1585_v2  ;;  %v1597_v1 = vrot.slane %v1596_v6, 4  ;;  %v1604_v10 = vrot.slane %v1603_v7, 4 }
 0x15f   :  { %v2526_v11 = vsel %vm2421_vm7, %v2146_v4, %v2525_v63  ;;  %v1591_v12 = vmax.f32 %v1589_v3, %v1590_v5  ;;  %v1610_v13 = vsel %vm608_vm0, %v551_v55, -inf  ;;  %v1617_v14 = vsel %vm608_vm0, %v552_v58, -inf  ;;  %v307_v58 = vld [vmem:[%s4562_s0 + $0x256] sm:$0x3] }
 0x160   :  { %2643 = vst.msk [vmem:[%s4563_s1 + $0xd0] sm:$0xff] %vm2616_vm8, %v2526_v11  ;;  %v1581_v15 = vmax.f32 %v1579_v0, %v1580_v8  ;;  %v1587_v16 = vrot.slane %v1586_v9, 1  ;;  %v1598_v17 = vmax.f32 %v1596_v6, %v1597_v1  ;;  %v1605_v18 = vmax.f32 %v1603_v7, %v1604_v10  ;;  %v308_v8 = vld [vmem:[%s4562_s0 + $0x258] sm:$0x3] }
 0x161   :  { %v1592_v19 = vrot.slane %v1591_v12, 2  ;;  %v1611_v20 = vrot.slane %v1610_v13, 4  ;;  %v1618_v21 = vrot.slane %v1617_v14, 4  ;;  %v1624_v22 = vsel %vm608_vm0, %v553_v60, -inf }
 0x162   :  { %v1588_v23 = vmax.f32 %v1586_v9, %v1587_v16  ;;  %v2147_v24 = vmax.f32 %v1581_v15, 0.0  ;;  %v1599_v25 = vrot.slane %v1598_v17, 2  ;;  %v1606_v26 = vrot.slane %v1605_v18, 2  ;;  %v309_v9 = vld [vmem:[%s4562_s0 + $0x25a] sm:$0x3] }
 0x163   :  { %v1593_v27 = vmax.f32 %v1591_v12, %v1592_v19  ;;  %v1612_v28 = vmax.f32 %v1610_v13, %v1611_v20  ;;  %v1619_v29 = vmax.f32 %v1617_v14, %v1618_v21  ;;  %v1625_v30 = vrot.slane %v1624_v22, 4  ;;  %v310_v13 = vld [vmem:[%s4562_s0 + $0x25c] sm:$0x3]  ;;  %v311_v14 = vld [vmem:[%s4562_s0 + $0x25e] sm:$0x3] }
 0x164   :  { %v2148_v31 = vmax.f32 %v1588_v23, 0.0  ;;  %v1600_v32 = vmax.f32 %v1598_v17, %v1599_v25  ;;  %v1607_v33 = vmax.f32 %v1605_v18, %v1606_v26  ;;  %v1631_v34 = vsel %vm608_vm0, %v554_v61, -inf  ;;  %v318_v15 = vld [vmem:[%s4562_s0 + $0x26c] sm:$0x3]  ;;  %v312_v20 = vld [vmem:[%s4562_s0 + $0x260] sm:$0x3] }
 0x165   :  { %v1594_v35 = vrot.slane %v1593_v27, 1  ;;  %v1613_v36 = vrot.slane %v1612_v28, 2  ;;  %v1620_v37 = vrot.slane %v1619_v29, 2  ;;  %v1626_v38 = vmax.f32 %v1624_v22, %v1625_v30  ;;  %v313_v21 = vld [vmem:[%s4562_s0 + $0x262] sm:$0x3] }
 0x166   :  { %v2527_v39 = vsel %vm2409_vm1, %v2148_v31, %v2147_v24  ;;  %v1601_v40 = vrot.slane %v1600_v32, 1  ;;  %v1608_v41 = vrot.slane %v1607_v33, 1  ;;  %v1632_v42 = vrot.slane %v1631_v34, 4  ;;  %v319_v22 = vld [vmem:[%s4562_s0 + $0x26e] sm:$0x3] }
 0x167   :  { %2644 = vst.msk [vmem:[%s4563_s1 + $0xd8] sm:$0x3] %vm608_vm0, %v2527_v39  ;;  %v1595_v43 = vmax.f32 %v1593_v27, %v1594_v35  ;;  %v1614_v44 = vmax.f32 %v1612_v28, %v1613_v36  ;;  %v1621_v45 = vmax.f32 %v1619_v29, %v1620_v37  ;;  %v1627_v46 = vrot.slane %v1626_v38, 2  ;;  %v4101_v27 = vld [vmem:[%s4562_s0 + $0x264] sm:$0x3] }
 0x168   :  { %v1602_v48 = vmax.f32 %v1600_v32, %v1601_v40  ;;  %v1609_v49 = vmax.f32 %v1607_v33, %v1608_v41  ;;  %v1633_v50 = vmax.f32 %v1631_v34, %v1632_v42  ;;  %v1638_v51 = vsel %vm608_vm0, %v555_v62, -inf  ;;  %v4106_v28 = vld [vmem:[%s4562_s0 + $0x266] sm:$0x3]  ;;  %v320_v29 = vld [vmem:[%s4562_s0 + $0x270] sm:$0x3] }
 0x169   :  { %v1615_v55 = vrot.slane %v1614_v44, 1  ;;  %v1622_v56 = vrot.slane %v1621_v45, 1  ;;  %v1628_v57 = vmax.f32 %v1626_v38, %v1627_v46  ;;  %v1639_v52 = vrot.slane %v1638_v51, 4  ;;  %v321_v30 = vld [vmem:[%s4562_s0 + $0x272] sm:$0x3] }
 0x16a   :  { %v1634_v59 = vrot.slane %v1633_v50, 2  ;;  %v2149_v60 = vmax.f32 %v1595_v43, 0.0  ;;  %v2150_v61 = vmax.f32 %v1602_v48, 0.0  ;;  %v2151_v62 = vmax.f32 %v1609_v49, 0.0  ;;  %v322_v34 = vld [vmem:[%s4562_s0 + $0x274] sm:$0x3] }
 0x16b   :  { %v1616_v63 = vmax.f32 %v1614_v44, %v1615_v55  ;;  %v1623_v0 = vmax.f32 %v1621_v45, %v1622_v56  ;;  %v1629_v2 = vrot.slane %v1628_v57, 1  ;;  %v1640_v3 = vmax.f32 %v1638_v51, %v1639_v52  ;;  %v323_v35 = vld [vmem:[%s4562_s0 + $0x276] sm:$0x3]  ;;  %v324_v40 = vld [vmem:[%s4562_s0 + $0x278] sm:$0x3] }
 0x16c   :  { %v1635_v4 = vmax.f32 %v1633_v50, %v1634_v59  ;;  %v2528_v5 = vsel %vm2409_vm1, %v2150_v61, %v2149_v60  ;;  %v556_v6 = vmax.f32 %v296_v47, %v306_v54  ;;  %v557_v7 = vmax.f32 %v297_v53, %v307_v58  ;;  %v4128_v41 = vld [vmem:[%s4562_s0 + $0x27a] sm:$0x3] }
 0x16d   :  { %v1630_v1 = vmax.f32 %v1628_v57, %v1629_v2  ;;  %v1641_v10 = vrot.slane %v1640_v3, 2  ;;  %v2152_v11 = vmax.f32 %v1616_v63, 0.0  ;;  %v2153_v12 = vmax.f32 %v1623_v0, 0.0 }
 0x16e   :  { %v1636_v16 = vrot.slane %v1635_v4, 1  ;;  %v2529_v17 = vsel %vm2411_vm2, %v2151_v62, %v2528_v5  ;;  %v1645_v18 = vsel %vm608_vm0, %v556_v6, -inf  ;;  %v1652_v19 = vsel %vm608_vm0, %v557_v7, -inf }
 0x16f   :  { %v1642_v23 = vmax.f32 %v1640_v3, %v1641_v10  ;;  %v2154_v24 = vmax.f32 %v1630_v1, 0.0  ;;  %v2530_v25 = vsel %vm2413_vm3, %v2152_v11, %v2529_v17  ;;  %v1646_v26 = vrot.slane %v1645_v18, 4 }
 0x170   :  { %v1637_v31 = vmax.f32 %v1635_v4, %v1636_v16  ;;  %v2531_v32 = vsel %vm2415_vm4, %v2153_v12, %v2530_v25  ;;  %v1653_v33 = vrot.slane %v1652_v19, 4  ;;  %v558_v36 = vmax.f32 %v308_v8, %v318_v15 }
 0x171   :  { %v1643_v37 = vrot.slane %v1642_v23, 1  ;;  %v2532_v38 = vsel %vm2417_vm5, %v2154_v24, %v2531_v32  ;;  %v1647_v39 = vmax.f32 %v1645_v18, %v1646_v26  ;;  %v559_v42 = vmax.f32 %v309_v9, %v319_v22 }
 0x172   :  { %v2155_v43 = vmax.f32 %v1637_v31, 0.0  ;;  %v1654_v44 = vmax.f32 %v1652_v19, %v1653_v33  ;;  %v560_v45 = vmax.f32 %v310_v13, %v320_v29  ;;  %v561_v46 = vmax.f32 %v311_v14, %v321_v30 }
 0x173   :  { %v1644_v47 = vmax.f32 %v1642_v23, %v1643_v37  ;;  %v1648_v48 = vrot.slane %v1647_v39, 2  ;;  %v562_v49 = vmax.f32 %v312_v20, %v322_v34  ;;  %v563_v50 = vmax.f32 %v313_v21, %v323_v35 }
 0x174   :  { %v2533_v51 = vsel %vm2419_vm6, %v2155_v43, %v2532_v38  ;;  %v1655_v53 = vrot.slane %v1654_v44, 2  ;;  %v564_v54 = vmax.f32 %v4101_v27, %v324_v40  ;;  %v565_v55 = vmax.f32 %v4106_v28, %v4128_v41  ;;  %v316_v43 = vld [vmem:[%s4562_s0 + $0x268] sm:$0x3] }
 0x175   :  { %v2156_v56 = vmax.f32 %v1644_v47, 0.0  ;;  %v1649_v57 = vmax.f32 %v1647_v39, %v1648_v48  ;;  %v1659_v52 = vsel %vm608_vm0, %v558_v36, -inf  ;;  %v1666_v58 = vsel %vm608_vm0, %v559_v42, -inf }
 0x176   :  { %v1656_v59 = vmax.f32 %v1654_v44, %v1655_v53  ;;  %v1660_v60 = vrot.slane %v1659_v52, 4  ;;  %v1667_v61 = vrot.slane %v1666_v58, 4  ;;  %v1673_v62 = vsel %vm608_vm0, %v560_v45, -inf  ;;  %v326_v44 = vld [vmem:[%s4562_s0 + $0x27c] sm:$0x3] }
 0x177   :  { %v2534_v63 = vsel %vm2421_vm7, %v2156_v56, %v2533_v51  ;;  %v1650_v0 = vrot.slane %v1649_v57, 1  ;;  %v1674_v2 = vrot.slane %v1673_v62, 4  ;;  %v1680_v3 = vsel %vm608_vm0, %v561_v46, -inf }
 0x178   :  { %2645 = vst.msk [vmem:[%s4563_s1 + $0xe0] sm:$0xff] %vm2616_vm8, %v2534_v63  ;;  %v1657_v4 = vrot.slane %v1656_v59, 1  ;;  %v1661_v5 = vmax.f32 %v1659_v52, %v1660_v60  ;;  %v1668_v6 = vmax.f32 %v1666_v58, %v1667_v61  ;;  %v1681_v7 = vrot.slane %v1680_v3, 4  ;;  %v329_v60 = vld [vmem:[%s4562_s0 + $0x282] sm:$0x3] }
 0x179   :  { %v1651_v8 = vmax.f32 %v1649_v57, %v1650_v0  ;;  %v1675_v9 = vmax.f32 %v1673_v62, %v1674_v2  ;;  %v1687_v1 = vsel %vm608_vm0, %v562_v49, -inf  ;;  %v1694_v10 = vsel %vm608_vm0, %v563_v50, -inf  ;;  %v317_v49 = vld [vmem:[%s4562_s0 + $0x26a] sm:$0x3]  ;;  %v330_v2 = vld [vmem:[%s4562_s0 + $0x284] sm:$0x3] }
 0x17a   :  { %v1658_v11 = vmax.f32 %v1656_v59, %v1657_v4  ;;  %v1662_v12 = vrot.slane %v1661_v5, 2  ;;  %v1669_v13 = vrot.slane %v1668_v6, 2  ;;  %v1682_v14 = vmax.f32 %v1680_v3, %v1681_v7  ;;  %v328_v59 = vld [vmem:[%s4562_s0 + $0x280] sm:$0x3]  ;;  %v331_v3 = vld [vmem:[%s4562_s0 + $0x286] sm:$0x3] }
 0x17b   :  { %v2157_v15 = vmax.f32 %v1651_v8, 0.0  ;;  %v1676_v16 = vrot.slane %v1675_v9, 2  ;;  %v1688_v17 = vrot.slane %v1687_v1, 4  ;;  %v1695_v18 = vrot.slane %v1694_v10, 4  ;;  %v338_v4 = vld [vmem:[%s4562_s0 + $0x294] sm:$0x3] }
 0x17c   :  { %v2158_v19 = vmax.f32 %v1658_v11, 0.0  ;;  %v1663_v20 = vmax.f32 %v1661_v5, %v1662_v12  ;;  %v1670_v21 = vmax.f32 %v1668_v6, %v1669_v13  ;;  %v1683_v22 = vrot.slane %v1682_v14, 2  ;;  %v339_v5 = vld [vmem:[%s4562_s0 + $0x296] sm:$0x3] }
 0x17d   :  { %v1677_v23 = vmax.f32 %v1675_v9, %v1676_v16  ;;  %v1689_v24 = vmax.f32 %v1687_v1, %v1688_v17  ;;  %v1696_v25 = vmax.f32 %v1694_v10, %v1695_v18  ;;  %v1701_v26 = vsel %vm608_vm0, %v564_v54, -inf  ;;  %v332_v1 = vld [vmem:[%s4562_s0 + $0x288] sm:$0x3]  ;;  %v340_v10 = vld [vmem:[%s4562_s0 + $0x298] sm:$0x3] }
 0x17e   :  { %v2535_v27 = vsel %vm2409_vm1, %v2158_v19, %v2157_v15  ;;  %v1664_v28 = vrot.slane %v1663_v20, 1  ;;  %v1671_v29 = vrot.slane %v1670_v21, 1  ;;  %v1684_v30 = vmax.f32 %v1682_v14, %v1683_v22  ;;  %v333_v15 = vld [vmem:[%s4562_s0 + $0x28a] sm:$0x3]  ;;  %v4198_v16 = vld [vmem:[%s4562_s0 + $0x28c] sm:$0x3] }
 0x17f   :  { %2646 = vst.msk [vmem:[%s4563_s1 + $0xe8] sm:$0x3] %vm608_vm0, %v2535_v27  ;;  %v1678_v31 = vrot.slane %v1677_v23, 1  ;;  %v1690_v32 = vrot.slane %v1689_v24, 2  ;;  %v1697_v33 = vrot.slane %v1696_v25, 2  ;;  %v1702_v34 = vrot.slane %v1701_v26, 4 }
 0x180   :  { %v1665_v35 = vmax.f32 %v1663_v20, %v1664_v28  ;;  %v1672_v36 = vmax.f32 %v1670_v21, %v1671_v29  ;;  %v1685_v37 = vrot.slane %v1684_v30, 1  ;;  %v1708_v38 = vsel %vm608_vm0, %v565_v55, -inf  ;;  %v327_v55 = vld [vmem:[%s4562_s0 + $0x27e] sm:$0x3]  ;;  %v4203_v17 = vld [vmem:[%s4562_s0 + $0x28e] sm:$0x3] }
 0x181   :  { %v1679_v39 = vmax.f32 %v1677_v23, %v1678_v31  ;;  %v1691_v40 = vmax.f32 %v1689_v24, %v1690_v32  ;;  %v1698_v41 = vmax.f32 %v1696_v25, %v1697_v33  ;;  %v1703_v42 = vmax.f32 %v1701_v26, %v1702_v34  ;;  %v341_v18 = vld [vmem:[%s4562_s0 + $0x29a] sm:$0x3]  ;;  %v342_v21 = vld [vmem:[%s4562_s0 + $0x29c] sm:$0x3]  ;;  %v343_v22 = vld [vmem:[%s4562_s0 + $0x29e] sm:$0x3] }
 0x182   :  { %v1686_v45 = vmax.f32 %v1684_v30, %v1685_v37  ;;  %v1709_v46 = vrot.slane %v1708_v38, 4  ;;  %v2159_v47 = vmax.f32 %v1665_v35, 0.0  ;;  %v2160_v48 = vmax.f32 %v1672_v36, 0.0  ;;  %v344_v29 = vld [vmem:[%s4562_s0 + $0x2a0] sm:$0x3] }
 0x183   :  { %v1692_v50 = vrot.slane %v1691_v40, 1  ;;  %v1699_v51 = vrot.slane %v1698_v41, 1  ;;  %v1704_v53 = vrot.slane %v1703_v42, 2  ;;  %v2161_v54 = vmax.f32 %v1679_v39, 0.0  ;;  %v4222_v30 = vld [vmem:[%s4562_s0 + $0x2a2] sm:$0x3] }
 0x184   :  { %v1710_v56 = vmax.f32 %v1708_v38, %v1709_v46  ;;  %v2162_v57 = vmax.f32 %v1686_v45, 0.0  ;;  %v2536_v52 = vsel %vm2409_vm1, %v2160_v48, %v2159_v47  ;;  %v566_v58 = vmax.f32 %v316_v43, %v326_v44 }
 0x185   :  { %v1693_v61 = vmax.f32 %v1691_v40, %v1692_v50  ;;  %v1700_v62 = vmax.f32 %v1698_v41, %v1699_v51  ;;  %v1705_v63 = vmax.f32 %v1703_v42, %v1704_v53  ;;  %v2537_v0 = vsel %vm2411_vm2, %v2161_v54, %v2536_v52 }
 0x186   :  { %v1711_v6 = vrot.slane %v1710_v56, 2  ;;  %v2538_v7 = vsel %vm2413_vm3, %v2162_v57, %v2537_v0  ;;  %v567_v8 = vmax.f32 %v317_v49, %v327_v55  ;;  %v1715_v9 = vsel %vm608_vm0, %v566_v58, -inf }
 0x187   :  { %v1706_v11 = vrot.slane %v1705_v63, 1  ;;  %v2163_v12 = vmax.f32 %v1693_v61, 0.0  ;;  %v2164_v13 = vmax.f32 %v1700_v62, 0.0  ;;  %v1716_v14 = vrot.slane %v1715_v9, 4 }
 0x188   :  { %v1712_v19 = vmax.f32 %v1710_v56, %v1711_v6  ;;  %v1722_v20 = vsel %vm608_vm0, %v567_v8, -inf  ;;  %v568_v23 = vmax.f32 %v328_v59, %v338_v4  ;;  %v569_v24 = vmax.f32 %v329_v60, %v339_v5 }
 0x189   :  { %v1707_v25 = vmax.f32 %v1705_v63, %v1706_v11  ;;  %v2539_v26 = vsel %vm2415_vm4, %v2163_v12, %v2538_v7  ;;  %v1717_v27 = vmax.f32 %v1715_v9, %v1716_v14  ;;  %v1723_v28 = vrot.slane %v1722_v20, 4 }
 0x18a   :  { %v1713_v31 = vrot.slane %v1712_v19, 1  ;;  %v2540_v32 = vsel %vm2417_vm5, %v2164_v13, %v2539_v26  ;;  %v570_v33 = vmax.f32 %v330_v2, %v340_v10  ;;  %v571_v34 = vmax.f32 %v331_v3, %v341_v18 }
 0x18b   :  { %v2165_v35 = vmax.f32 %v1707_v25, 0.0  ;;  %v1718_v36 = vrot.slane %v1717_v27, 2  ;;  %v1724_v37 = vmax.f32 %v1722_v20, %v1723_v28  ;;  %v572_v38 = vmax.f32 %v332_v1, %v342_v21 }
 0x18c   :  { %v1714_v39 = vmax.f32 %v1712_v19, %v1713_v31  ;;  %v573_v40 = vmax.f32 %v333_v15, %v343_v22  ;;  %v574_v41 = vmax.f32 %v4198_v16, %v344_v29  ;;  %v575_v42 = vmax.f32 %v4203_v17, %v4222_v30 }
 0x18d   :  { %v2541_v43 = vsel %vm2419_vm6, %v2165_v35, %v2540_v32  ;;  %v1719_v44 = vmax.f32 %v1717_v27, %v1718_v36  ;;  %v1725_v45 = vrot.slane %v1724_v37, 2  ;;  %v1729_v46 = vsel %vm608_vm0, %v568_v23, -inf  ;;  %v336_v27 = vld [vmem:[%s4562_s0 + $0x290] sm:$0x3]  ;;  %v337_v32 = vld [vmem:[%s4562_s0 + $0x292] sm:$0x3] }
 0x18e   :  { %v2166_v47 = vmax.f32 %v1714_v39, 0.0  ;;  %v1730_v48 = vrot.slane %v1729_v46, 4  ;;  %v1736_v49 = vsel %vm608_vm0, %v569_v24, -inf  ;;  %v1743_v50 = vsel %vm608_vm0, %v570_v33, -inf  ;;  %v346_v33 = vld [vmem:[%s4562_s0 + $0x2a4] sm:$0x3] }
 0x18f   :  { %v1720_v51 = vrot.slane %v1719_v44, 1  ;;  %v1726_v53 = vmax.f32 %v1724_v37, %v1725_v45  ;;  %v1737_v54 = vrot.slane %v1736_v49, 4  ;;  %v1744_v55 = vrot.slane %v1743_v50, 4 }
 0x190   :  { %v2542_v56 = vsel %vm2421_vm7, %v2166_v47, %v2541_v43  ;;  %v1731_v57 = vmax.f32 %v1729_v46, %v1730_v48  ;;  %v1750_v52 = vsel %vm608_vm0, %v571_v34, -inf  ;;  %v1757_v58 = vsel %vm608_vm0, %v572_v38, -inf  ;;  %v347_v38 = vld [vmem:[%s4562_s0 + $0x2a6] sm:$0x3] }
 0x191   :  { %2647 = vst.msk [vmem:[%s4563_s1 + $0xf0] sm:$0xff] %vm2616_vm8, %v2542_v56  ;;  %v1721_v59 = vmax.f32 %v1719_v44, %v1720_v51  ;;  %v1727_v60 = vrot.slane %v1726_v53, 1  ;;  %v1738_v61 = vmax.f32 %v1736_v49, %v1737_v54  ;;  %v1745_v62 = vmax.f32 %v1743_v50, %v1744_v55  ;;  %v348_v51 = vld [vmem:[%s4562_s0 + $0x2a8] sm:$0x3] }
 0x192   :  { %v1732_v63 = vrot.slane %v1731_v57, 2  ;;  %v1751_v0 = vrot.slane %v1750_v52, 4  ;;  %v1758_v2 = vrot.slane %v1757_v58, 4  ;;  %v1764_v3 = vsel %vm608_vm0, %v573_v40, -inf }
 0x193   :  { %v1728_v4 = vmax.f32 %v1726_v53, %v1727_v60  ;;  %v2167_v5 = vmax.f32 %v1721_v59, 0.0  ;;  %v1739_v6 = vrot.slane %v1738_v61, 2  ;;  %v1746_v7 = vrot.slane %v1745_v62, 2  ;;  %v349_v53 = vld [vmem:[%s4562_s0 + $0x2aa] sm:$0x3] }
 0x194   :  { %v1733_v8 = vmax.f32 %v1731_v57, %v1732_v63  ;;  %v1752_v9 = vmax.f32 %v1750_v52, %v1751_v0  ;;  %v1759_v1 = vmax.f32 %v1757_v58, %v1758_v2  ;;  %v1765_v10 = vrot.slane %v1764_v3, 4  ;;  %v350_v52 = vld [vmem:[%s4562_s0 + $0x2ac] sm:$0x3]  ;;  %v351_v58 = vld [vmem:[%s4562_s0 + $0x2ae] sm:$0x3] }
 0x195   :  { %v2168_v11 = vmax.f32 %v1728_v4, 0.0  ;;  %v1740_v12 = vmax.f32 %v1738_v61, %v1739_v6  ;;  %v1747_v13 = vmax.f32 %v1745_v62, %v1746_v7  ;;  %v1771_v14 = vsel %vm608_vm0, %v574_v41, -inf  ;;  %v358_v59 = vld [vmem:[%s4562_s0 + $0x2bc] sm:$0x3]  ;;  %v352_v0 = vld [vmem:[%s4562_s0 + $0x2b0] sm:$0x3] }
 0x196   :  { %v1734_v15 = vrot.slane %v1733_v8, 1  ;;  %v1753_v16 = vrot.slane %v1752_v9, 2  ;;  %v1760_v17 = vrot.slane %v1759_v1, 2  ;;  %v1766_v18 = vmax.f32 %v1764_v3, %v1765_v10  ;;  %v353_v2 = vld [vmem:[%s4562_s0 + $0x2b2] sm:$0x3] }
 0x197   :  { %v2543_v19 = vsel %vm2409_vm1, %v2168_v11, %v2167_v5  ;;  %v1741_v20 = vrot.slane %v1740_v12, 1  ;;  %v1748_v21 = vrot.slane %v1747_v13, 1  ;;  %v1772_v22 = vrot.slane %v1771_v14, 4  ;;  %v359_v3 = vld [vmem:[%s4562_s0 + $0x2be] sm:$0x3] }
 0x198   :  { %2648 = vst.msk [vmem:[%s4563_s1 + $0xf8] sm:$0x3] %vm608_vm0, %v2543_v19  ;;  %v1735_v23 = vmax.f32 %v1733_v8, %v1734_v15  ;;  %v1754_v24 = vmax.f32 %v1752_v9, %v1753_v16  ;;  %v1761_v25 = vmax.f32 %v1759_v1, %v1760_v17  ;;  %v1767_v26 = vrot.slane %v1766_v18, 2  ;;  %v4291_v8 = vld [vmem:[%s4562_s0 + $0x2b4] sm:$0x3] }
 0x199   :  { %v1742_v28 = vmax.f32 %v1740_v12, %v1741_v20  ;;  %v1749_v29 = vmax.f32 %v1747_v13, %v1748_v21  ;;  %v1773_v30 = vmax.f32 %v1771_v14, %v1772_v22  ;;  %v1778_v31 = vsel %vm608_vm0, %v575_v42, -inf  ;;  %v4296_v9 = vld [vmem:[%s4562_s0 + $0x2b6] sm:$0x3]  ;;  %v360_v1 = vld [vmem:[%s4562_s0 + $0x2c0] sm:$0x3] }
 0x19a   :  { %v1755_v34 = vrot.slane %v1754_v24, 1  ;;  %v1762_v35 = vrot.slane %v1761_v25, 1  ;;  %v1768_v36 = vmax.f32 %v1766_v18, %v1767_v26  ;;  %v1779_v37 = vrot.slane %v1778_v31, 4  ;;  %v361_v10 = vld [vmem:[%s4562_s0 + $0x2c2] sm:$0x3] }
 0x19b   :  { %v1774_v39 = vrot.slane %v1773_v30, 2  ;;  %v2169_v40 = vmax.f32 %v1735_v23, 0.0  ;;  %v2170_v41 = vmax.f32 %v1742_v28, 0.0  ;;  %v2171_v42 = vmax.f32 %v1749_v29, 0.0  ;;  %v362_v14 = vld [vmem:[%s4562_s0 + $0x2c4] sm:$0x3] }
 0x19c   :  { %v1756_v43 = vmax.f32 %v1754_v24, %v1755_v34  ;;  %v1763_v44 = vmax.f32 %v1761_v25, %v1762_v35  ;;  %v1769_v45 = vrot.slane %v1768_v36, 1  ;;  %v1780_v46 = vmax.f32 %v1778_v31, %v1779_v37  ;;  %v363_v15 = vld [vmem:[%s4562_s0 + $0x2c6] sm:$0x3]  ;;  %v364_v20 = vld [vmem:[%s4562_s0 + $0x2c8] sm:$0x3] }
 0x19d   :  { %v1775_v47 = vmax.f32 %v1773_v30, %v1774_v39  ;;  %v2544_v48 = vsel %vm2409_vm1, %v2170_v41, %v2169_v40  ;;  %v576_v49 = vmax.f32 %v336_v27, %v346_v33  ;;  %v577_v50 = vmax.f32 %v337_v32, %v347_v38  ;;  %v4318_v21 = vld [vmem:[%s4562_s0 + $0x2ca] sm:$0x3] }
 0x19e   :  { %v1770_v54 = vmax.f32 %v1768_v36, %v1769_v45  ;;  %v1781_v55 = vrot.slane %v1780_v46, 2  ;;  %v2172_v56 = vmax.f32 %v1756_v43, 0.0  ;;  %v2173_v57 = vmax.f32 %v1763_v44, 0.0 }
 0x19f   :  { %v1776_v60 = vrot.slane %v1775_v47, 1  ;;  %v2545_v61 = vsel %vm2411_vm2, %v2171_v42, %v2544_v48  ;;  %v1785_v62 = vsel %vm608_vm0, %v576_v49, -inf  ;;  %v1792_v63 = vsel %vm608_vm0, %v577_v50, -inf }
 0x1a0   :  { %v1782_v4 = vmax.f32 %v1780_v46, %v1781_v55  ;;  %v2174_v5 = vmax.f32 %v1770_v54, 0.0  ;;  %v2546_v6 = vsel %vm2413_vm3, %v2172_v56, %v2545_v61  ;;  %v1786_v7 = vrot.slane %v1785_v62, 4 }
 0x1a1   :  { %v1777_v11 = vmax.f32 %v1775_v47, %v1776_v60  ;;  %v2547_v12 = vsel %vm2415_vm4, %v2173_v57, %v2546_v6  ;;  %v1793_v13 = vrot.slane %v1792_v63, 4  ;;  %v578_v16 = vmax.f32 %v348_v51, %v358_v59 }
 0x1a2   :  { %v1783_v17 = vrot.slane %v1782_v4, 1  ;;  %v2548_v18 = vsel %vm2417_vm5, %v2174_v5, %v2547_v12  ;;  %v1787_v19 = vmax.f32 %v1785_v62, %v1786_v7  ;;  %v579_v22 = vmax.f32 %v349_v53, %v359_v3 }
 0x1a3   :  { %v2175_v23 = vmax.f32 %v1777_v11, 0.0  ;;  %v1794_v24 = vmax.f32 %v1792_v63, %v1793_v13  ;;  %v580_v25 = vmax.f32 %v350_v52, %v360_v1  ;;  %v581_v26 = vmax.f32 %v351_v58, %v361_v10 }
 0x1a4   :  { %v1784_v27 = vmax.f32 %v1782_v4, %v1783_v17  ;;  %v1788_v28 = vrot.slane %v1787_v19, 2  ;;  %v582_v29 = vmax.f32 %v352_v0, %v362_v14  ;;  %v583_v30 = vmax.f32 %v353_v2, %v363_v15 }
 0x1a5   :  { %v2549_v31 = vsel %vm2419_vm6, %v2175_v23, %v2548_v18  ;;  %v1795_v32 = vrot.slane %v1794_v24, 2  ;;  %v584_v33 = vmax.f32 %v4291_v8, %v364_v20  ;;  %v585_v34 = vmax.f32 %v4296_v9, %v4318_v21  ;;  %v356_v23 = vld [vmem:[%s4562_s0 + $0x2b8] sm:$0x3] }
 0x1a6   :  { %v2176_v35 = vmax.f32 %v1784_v27, 0.0  ;;  %v1789_v36 = vmax.f32 %v1787_v19, %v1788_v28  ;;  %v1799_v37 = vsel %vm608_vm0, %v578_v16, -inf  ;;  %v1806_v38 = vsel %vm608_vm0, %v579_v22, -inf }
 0x1a7   :  { %v1796_v39 = vmax.f32 %v1794_v24, %v1795_v32  ;;  %v1800_v40 = vrot.slane %v1799_v37, 4  ;;  %v1807_v41 = vrot.slane %v1806_v38, 4  ;;  %v1813_v42 = vsel %vm608_vm0, %v580_v25, -inf  ;;  %v366_v24 = vld [vmem:[%s4562_s0 + $0x2cc] sm:$0x3] }
 0x1a8   :  { %v2550_v43 = vsel %vm2421_vm7, %v2176_v35, %v2549_v31  ;;  %v1790_v44 = vrot.slane %v1789_v36, 1  ;;  %v1814_v45 = vrot.slane %v1813_v42, 4  ;;  %v1820_v46 = vsel %vm608_vm0, %v581_v26, -inf }
 0x1a9   :  { %2649 = vst.msk [vmem:[%s4563_s1 + $0x100] sm:$0xff] %vm2616_vm8, %v2550_v43  ;;  %v1797_v47 = vrot.slane %v1796_v39, 1  ;;  %v1801_v48 = vmax.f32 %v1799_v37, %v1800_v40  ;;  %v1808_v49 = vmax.f32 %v1806_v38, %v1807_v41  ;;  %v1821_v50 = vrot.slane %v1820_v46, 4  ;;  %v369_v40 = vld [vmem:[%s4562_s0 + $0x2d2] sm:$0x3] }
 0x1aa   :  { %v1791_v51 = vmax.f32 %v1789_v36, %v1790_v44  ;;  %v1815_v53 = vmax.f32 %v1813_v42, %v1814_v45  ;;  %v1827_v54 = vsel %vm608_vm0, %v582_v29, -inf  ;;  %v1834_v55 = vsel %vm608_vm0, %v583_v30, -inf  ;;  %v357_v29 = vld [vmem:[%s4562_s0 + $0x2ba] sm:$0x3]  ;;  %v370_v45 = vld [vmem:[%s4562_s0 + $0x2d4] sm:$0x3] }
 0x1ab   :  { %v1798_v56 = vmax.f32 %v1796_v39, %v1797_v47  ;;  %v1802_v57 = vrot.slane %v1801_v48, 2  ;;  %v1809_v52 = vrot.slane %v1808_v49, 2  ;;  %v1822_v58 = vmax.f32 %v1820_v46, %v1821_v50  ;;  %v368_v39 = vld [vmem:[%s4562_s0 + $0x2d0] sm:$0x3]  ;;  %v371_v46 = vld [vmem:[%s4562_s0 + $0x2d6] sm:$0x3] }
 0x1ac   :  { %v2177_v59 = vmax.f32 %v1791_v51, 0.0  ;;  %v1816_v60 = vrot.slane %v1815_v53, 2  ;;  %v1828_v61 = vrot.slane %v1827_v54, 4  ;;  %v1835_v62 = vrot.slane %v1834_v55, 4  ;;  %v378_v47 = vld [vmem:[%s4562_s0 + $0x2e4] sm:$0x3] }
 0x1ad   :  { %v2178_v63 = vmax.f32 %v1798_v56, 0.0  ;;  %v1803_v0 = vmax.f32 %v1801_v48, %v1802_v57  ;;  %v1810_v2 = vmax.f32 %v1808_v49, %v1809_v52  ;;  %v1823_v3 = vrot.slane %v1822_v58, 2  ;;  %v379_v48 = vld [vmem:[%s4562_s0 + $0x2e6] sm:$0x3] }
 0x1ae   :  { %v1817_v4 = vmax.f32 %v1815_v53, %v1816_v60  ;;  %v1829_v5 = vmax.f32 %v1827_v54, %v1828_v61  ;;  %v1836_v6 = vmax.f32 %v1834_v55, %v1835_v62  ;;  %v1841_v7 = vsel %vm608_vm0, %v584_v33, -inf  ;;  %v372_v54 = vld [vmem:[%s4562_s0 + $0x2d8] sm:$0x3]  ;;  %v380_v55 = vld [vmem:[%s4562_s0 + $0x2e8] sm:$0x3] }
 0x1af   :  { %v2551_v8 = vsel %vm2409_vm1, %v2178_v63, %v2177_v59  ;;  %v1804_v9 = vrot.slane %v1803_v0, 1  ;;  %v1811_v1 = vrot.slane %v1810_v2, 1  ;;  %v1824_v10 = vmax.f32 %v1822_v58, %v1823_v3  ;;  %v373_v59 = vld [vmem:[%s4562_s0 + $0x2da] sm:$0x3]  ;;  %v4388_v60 = vld [vmem:[%s4562_s0 + $0x2dc] sm:$0x3] }
 0x1b0   :  { %2650 = vst.msk [vmem:[%s4563_s1 + $0x108] sm:$0x3] %vm608_vm0, %v2551_v8  ;;  %v1818_v11 = vrot.slane %v1817_v4, 1  ;;  %v1830_v12 = vrot.slane %v1829_v5, 2  ;;  %v1837_v13 = vrot.slane %v1836_v6, 2  ;;  %v1842_v14 = vrot.slane %v1841_v7, 4 }
 0x1b1   :  { %v1805_v15 = vmax.f32 %v1803_v0, %v1804_v9  ;;  %v1812_v16 = vmax.f32 %v1810_v2, %v1811_v1  ;;  %v1825_v17 = vrot.slane %v1824_v10, 1  ;;  %v1848_v18 = vsel %vm608_vm0, %v585_v34, -inf  ;;  %v367_v34 = vld [vmem:[%s4562_s0 + $0x2ce] sm:$0x3]  ;;  %v4393_v61 = vld [vmem:[%s4562_s0 + $0x2de] sm:$0x3] }
 0x1b2   :  { %v1819_v19 = vmax.f32 %v1817_v4, %v1818_v11  ;;  %v1831_v20 = vmax.f32 %v1829_v5, %v1830_v12  ;;  %v1838_v21 = vmax.f32 %v1836_v6, %v1837_v13  ;;  %v1843_v22 = vmax.f32 %v1841_v7, %v1842_v14  ;;  %v381_v62 = vld [vmem:[%s4562_s0 + $0x2ea] sm:$0x3]  ;;  %v382_v2 = vld [vmem:[%s4562_s0 + $0x2ec] sm:$0x3]  ;;  %v383_v3 = vld [vmem:[%s4562_s0 + $0x2ee] sm:$0x3] }
 0x1b3   :  { %v1826_v25 = vmax.f32 %v1824_v10, %v1825_v17  ;;  %v1849_v26 = vrot.slane %v1848_v18, 4  ;;  %v2179_v27 = vmax.f32 %v1805_v15, 0.0  ;;  %v2180_v28 = vmax.f32 %v1812_v16, 0.0  ;;  %v384_v1 = vld [vmem:[%s4562_s0 + $0x2f0] sm:$0x3] }
 0x1b4   :  { %v1832_v30 = vrot.slane %v1831_v20, 1  ;;  %v1839_v31 = vrot.slane %v1838_v21, 1  ;;  %v1844_v32 = vrot.slane %v1843_v22, 2  ;;  %v2181_v33 = vmax.f32 %v1819_v19, 0.0  ;;  %v4412_v10 = vld [vmem:[%s4562_s0 + $0x2f2] sm:$0x3] }
 0x1b5   :  { %v1850_v35 = vmax.f32 %v1848_v18, %v1849_v26  ;;  %v2182_v36 = vmax.f32 %v1826_v25, 0.0  ;;  %v2552_v37 = vsel %vm2409_vm1, %v2180_v28, %v2179_v27  ;;  %v586_v38 = vmax.f32 %v356_v23, %v366_v24 }
 0x1b6   :  { %v1833_v41 = vmax.f32 %v1831_v20, %v1832_v30  ;;  %v1840_v42 = vmax.f32 %v1838_v21, %v1839_v31  ;;  %v1845_v43 = vmax.f32 %v1843_v22, %v1844_v32  ;;  %v2553_v44 = vsel %vm2411_vm2, %v2181_v33, %v2552_v37 }
 0x1b7   :  { %v1851_v49 = vrot.slane %v1850_v35, 2  ;;  %v2554_v50 = vsel %vm2413_vm3, %v2182_v36, %v2553_v44  ;;  %v587_v51 = vmax.f32 %v357_v29, %v367_v34  ;;  %v1855_v53 = vsel %vm608_vm0, %v586_v38, -inf }
 0x1b8   :  { %v1846_v56 = vrot.slane %v1845_v43, 1  ;;  %v2183_v57 = vmax.f32 %v1833_v41, 0.0  ;;  %v2184_v52 = vmax.f32 %v1840_v42, 0.0  ;;  %v1856_v58 = vrot.slane %v1855_v53, 4 }
 0x1b9   :  { %v1852_v63 = vmax.f32 %v1850_v35, %v1851_v49  ;;  %v1862_v0 = vsel %vm608_vm0, %v587_v51, -inf  ;;  %v588_v4 = vmax.f32 %v368_v39, %v378_v47  ;;  %v589_v5 = vmax.f32 %v369_v40, %v379_v48 }
 0x1ba   :  { %v1847_v6 = vmax.f32 %v1845_v43, %v1846_v56  ;;  %v2555_v7 = vsel %vm2415_vm4, %v2183_v57, %v2554_v50  ;;  %v1857_v8 = vmax.f32 %v1855_v53, %v1856_v58  ;;  %v1863_v9 = vrot.slane %v1862_v0, 4 }
 0x1bb   :  { %v1853_v11 = vrot.slane %v1852_v63, 1  ;;  %v2556_v12 = vsel %vm2417_vm5, %v2184_v52, %v2555_v7  ;;  %v590_v13 = vmax.f32 %v370_v45, %v380_v55  ;;  %v591_v14 = vmax.f32 %v371_v46, %v381_v62 }
 0x1bc   :  { %v2185_v15 = vmax.f32 %v1847_v6, 0.0  ;;  %v1858_v16 = vrot.slane %v1857_v8, 2  ;;  %v1864_v17 = vmax.f32 %v1862_v0, %v1863_v9  ;;  %v592_v18 = vmax.f32 %v372_v54, %v382_v2 }
 0x1bd   :  { %v1854_v19 = vmax.f32 %v1852_v63, %v1853_v11  ;;  %v593_v20 = vmax.f32 %v373_v59, %v383_v3  ;;  %v594_v21 = vmax.f32 %v4388_v60, %v384_v1  ;;  %v595_v22 = vmax.f32 %v4393_v61, %v4412_v10 }
 0x1be   :  { %v2557_v23 = vsel %vm2419_vm6, %v2185_v15, %v2556_v12  ;;  %v1859_v24 = vmax.f32 %v1857_v8, %v1858_v16  ;;  %v1865_v25 = vrot.slane %v1864_v17, 2  ;;  %v1869_v26 = vsel %vm608_vm0, %v588_v4, -inf  ;;  %v376_v8 = vld [vmem:[%s4562_s0 + $0x2e0] sm:$0x3]  ;;  %v377_v12 = vld [vmem:[%s4562_s0 + $0x2e2] sm:$0x3] }
 0x1bf   :  { %v2186_v27 = vmax.f32 %v1854_v19, 0.0  ;;  %v1870_v28 = vrot.slane %v1869_v26, 4  ;;  %v1876_v29 = vsel %vm608_vm0, %v589_v5, -inf  ;;  %v1883_v30 = vsel %vm608_vm0, %v590_v13, -inf  ;;  %v386_v13 = vld [vmem:[%s4562_s0 + $0x2f4] sm:$0x3] }
 0x1c0   :  { %v1860_v31 = vrot.slane %v1859_v24, 1  ;;  %v1866_v32 = vmax.f32 %v1864_v17, %v1865_v25  ;;  %v1877_v33 = vrot.slane %v1876_v29, 4  ;;  %v1884_v34 = vrot.slane %v1883_v30, 4 }
 0x1c1   :  { %v2558_v35 = vsel %vm2421_vm7, %v2186_v27, %v2557_v23  ;;  %v1871_v36 = vmax.f32 %v1869_v26, %v1870_v28  ;;  %v1890_v37 = vsel %vm608_vm0, %v591_v14, -inf  ;;  %v1897_v38 = vsel %vm608_vm0, %v592_v18, -inf  ;;  %v387_v18 = vld [vmem:[%s4562_s0 + $0x2f6] sm:$0x3] }
 0x1c2   :  { %2651 = vst.msk [vmem:[%s4563_s1 + $0x110] sm:$0xff] %vm2616_vm8, %v2558_v35  ;;  %v1861_v39 = vmax.f32 %v1859_v24, %v1860_v31  ;;  %v1867_v40 = vrot.slane %v1866_v32, 1  ;;  %v1878_v41 = vmax.f32 %v1876_v29, %v1877_v33  ;;  %v1885_v42 = vmax.f32 %v1883_v30, %v1884_v34  ;;  %v388_v31 = vld [vmem:[%s4562_s0 + $0x2f8] sm:$0x3] }
 0x1c3   :  { %v1872_v43 = vrot.slane %v1871_v36, 2  ;;  %v1891_v44 = vrot.slane %v1890_v37, 4  ;;  %v1898_v45 = vrot.slane %v1897_v38, 4  ;;  %v1904_v46 = vsel %vm608_vm0, %v593_v20, -inf }
 0x1c4   :  { %v1868_v47 = vmax.f32 %v1866_v32, %v1867_v40  ;;  %v2187_v48 = vmax.f32 %v1861_v39, 0.0  ;;  %v1879_v49 = vrot.slane %v1878_v41, 2  ;;  %v1886_v50 = vrot.slane %v1885_v42, 2  ;;  %v389_v32 = vld [vmem:[%s4562_s0 + $0x2fa] sm:$0x3] }
 0x1c5   :  { %v1873_v51 = vmax.f32 %v1871_v36, %v1872_v43  ;;  %v1892_v53 = vmax.f32 %v1890_v37, %v1891_v44  ;;  %v1899_v54 = vmax.f32 %v1897_v38, %v1898_v45  ;;  %v1905_v55 = vrot.slane %v1904_v46, 4  ;;  %v390_v37 = vld [vmem:[%s4562_s0 + $0x2fc] sm:$0x3]  ;;  %v391_v38 = vld [vmem:[%s4562_s0 + $0x2fe] sm:$0x3] }
 0x1c6   :  { %v2188_v56 = vmax.f32 %v1868_v47, 0.0  ;;  %v1880_v57 = vmax.f32 %v1878_v41, %v1879_v49  ;;  %v1887_v52 = vmax.f32 %v1885_v42, %v1886_v50  ;;  %v1911_v58 = vsel %vm608_vm0, %v594_v21, -inf  ;;  %v398_v39 = vld [vmem:[%s4562_s0 + $0x30c] sm:$0x3]  ;;  %v392_v44 = vld [vmem:[%s4562_s0 + $0x300] sm:$0x3] }
 0x1c7   :  { %v1874_v59 = vrot.slane %v1873_v51, 1  ;;  %v1893_v60 = vrot.slane %v1892_v53, 2  ;;  %v1900_v61 = vrot.slane %v1899_v54, 2  ;;  %v1906_v62 = vmax.f32 %v1904_v46, %v1905_v55  ;;  %v393_v45 = vld [vmem:[%s4562_s0 + $0x302] sm:$0x3] }
 0x1c8   :  { %v2559_v63 = vsel %vm2409_vm1, %v2188_v56, %v2187_v48  ;;  %v1881_v0 = vrot.slane %v1880_v57, 1  ;;  %v1888_v2 = vrot.slane %v1887_v52, 1  ;;  %v1912_v3 = vrot.slane %v1911_v58, 4  ;;  %v399_v46 = vld [vmem:[%s4562_s0 + $0x30e] sm:$0x3] }
 0x1c9   :  { %2652 = vst.msk [vmem:[%s4563_s1 + $0x118] sm:$0x3] %vm608_vm0, %v2559_v63  ;;  %v1875_v4 = vmax.f32 %v1873_v51, %v1874_v59  ;;  %v1894_v5 = vmax.f32 %v1892_v53, %v1893_v60  ;;  %v1901_v6 = vmax.f32 %v1899_v54, %v1900_v61  ;;  %v1907_v7 = vrot.slane %v1906_v62, 2  ;;  %v4481_v51 = vld [vmem:[%s4562_s0 + $0x304] sm:$0x3] }
 0x1ca   :  { %v1882_v9 = vmax.f32 %v1880_v57, %v1881_v0  ;;  %v1889_v1 = vmax.f32 %v1887_v52, %v1888_v2  ;;  %v1913_v10 = vmax.f32 %v1911_v58, %v1912_v3  ;;  %v1918_v11 = vsel %vm608_vm0, %v595_v22, -inf  ;;  %v4486_v53 = vld [vmem:[%s4562_s0 + $0x306] sm:$0x3]  ;;  %v400_v54 = vld [vmem:[%s4562_s0 + $0x310] sm:$0x3] }
 0x1cb   :  { %v1895_v14 = vrot.slane %v1894_v5, 1  ;;  %v1902_v15 = vrot.slane %v1901_v6, 1  ;;  %v1908_v16 = vmax.f32 %v1906_v62, %v1907_v7  ;;  %v1919_v17 = vrot.slane %v1918_v11, 4  ;;  %v401_v55 = vld [vmem:[%s4562_s0 + $0x312] sm:$0x3] }
 0x1cc   :  { %v1914_v19 = vrot.slane %v1913_v10, 2  ;;  %v2189_v20 = vmax.f32 %v1875_v4, 0.0  ;;  %v2190_v21 = vmax.f32 %v1882_v9, 0.0  ;;  %v2191_v22 = vmax.f32 %v1889_v1, 0.0  ;;  %v402_v58 = vld [vmem:[%s4562_s0 + $0x314] sm:$0x3] }
 0x1cd   :  { %v1896_v23 = vmax.f32 %v1894_v5, %v1895_v14  ;;  %v1903_v24 = vmax.f32 %v1901_v6, %v1902_v15  ;;  %v1909_v25 = vrot.slane %v1908_v16, 1  ;;  %v1920_v26 = vmax.f32 %v1918_v11, %v1919_v17  ;;  %v403_v59 = vld [vmem:[%s4562_s0 + $0x316] sm:$0x3]  ;;  %v404_v0 = vld [vmem:[%s4562_s0 + $0x318] sm:$0x3] }
 0x1ce   :  { %v1915_v27 = vmax.f32 %v1913_v10, %v1914_v19  ;;  %v2560_v28 = vsel %vm2409_vm1, %v2190_v21, %v2189_v20  ;;  %v596_v29 = vmax.f32 %v376_v8, %v386_v13  ;;  %v597_v30 = vmax.f32 %v377_v12, %v387_v18  ;;  %v4508_v2 = vld [vmem:[%s4562_s0 + $0x31a] sm:$0x3] }
 0x1cf   :  { %v1910_v33 = vmax.f32 %v1908_v16, %v1909_v25  ;;  %v1921_v34 = vrot.slane %v1920_v26, 2  ;;  %v2192_v35 = vmax.f32 %v1896_v23, 0.0  ;;  %v2193_v36 = vmax.f32 %v1903_v24, 0.0 }
 0x1d0   :  { %v1916_v40 = vrot.slane %v1915_v27, 1  ;;  %v2561_v41 = vsel %vm2411_vm2, %v2191_v22, %v2560_v28  ;;  %v1925_v42 = vsel %vm608_vm0, %v596_v29, -inf  ;;  %v1932_v43 = vsel %vm608_vm0, %v597_v30, -inf }
 0x1d1   :  { %v1922_v47 = vmax.f32 %v1920_v26, %v1921_v34  ;;  %v2194_v48 = vmax.f32 %v1910_v33, 0.0  ;;  %v2562_v49 = vsel %vm2413_vm3, %v2192_v35, %v2561_v41  ;;  %v1926_v50 = vrot.slane %v1925_v42, 4 }
 0x1d2   :  { %v1917_v56 = vmax.f32 %v1915_v27, %v1916_v40  ;;  %v2563_v57 = vsel %vm2415_vm4, %v2193_v36, %v2562_v49  ;;  %v1933_v52 = vrot.slane %v1932_v43, 4  ;;  %v598_v60 = vmax.f32 %v388_v31, %v398_v39 }
 0x1d3   :  { %v1923_v61 = vrot.slane %v1922_v47, 1  ;;  %v2564_v62 = vsel %vm2417_vm5, %v2194_v48, %v2563_v57  ;;  %v1927_v63 = vmax.f32 %v1925_v42, %v1926_v50  ;;  %v599_v3 = vmax.f32 %v389_v32, %v399_v46 }
 0x1d4   :  { %v2195_v4 = vmax.f32 %v1917_v56, 0.0  ;;  %v1934_v5 = vmax.f32 %v1932_v43, %v1933_v52  ;;  %v600_v6 = vmax.f32 %v390_v37, %v400_v54  ;;  %v601_v7 = vmax.f32 %v391_v38, %v401_v55 }
 0x1d5   :  { %v1924_v8 = vmax.f32 %v1922_v47, %v1923_v61  ;;  %v1928_v9 = vrot.slane %v1927_v63, 2  ;;  %v602_v1 = vmax.f32 %v392_v44, %v402_v58  ;;  %v603_v10 = vmax.f32 %v393_v45, %v403_v59 }
 0x1d6   :  { %v2565_v11 = vsel %vm2419_vm6, %v2195_v4, %v2564_v62  ;;  %v1935_v12 = vrot.slane %v1934_v5, 2  ;;  %v604_v13 = vmax.f32 %v4481_v51, %v404_v0  ;;  %v605_v14 = vmax.f32 %v4486_v53, %v4508_v2  ;;  %v396_v4 = vld [vmem:[%s4562_s0 + $0x308] sm:$0x3] }
 0x1d7   :  { %v2196_v15 = vmax.f32 %v1924_v8, 0.0  ;;  %v1929_v16 = vmax.f32 %v1927_v63, %v1928_v9  ;;  %v1939_v17 = vsel %vm608_vm0, %v598_v60, -inf  ;;  %v1946_v18 = vsel %vm608_vm0, %v599_v3, -inf }
 0x1d8   :  { %v1936_v19 = vmax.f32 %v1934_v5, %v1935_v12  ;;  %v1940_v20 = vrot.slane %v1939_v17, 4  ;;  %v1947_v21 = vrot.slane %v1946_v18, 4  ;;  %v1953_v22 = vsel %vm608_vm0, %v600_v6, -inf  ;;  %v406_v5 = vld [vmem:[%s4562_s0 + $0x31c] sm:$0x3] }
 0x1d9   :  { %v2566_v23 = vsel %vm2421_vm7, %v2196_v15, %v2565_v11  ;;  %v1930_v24 = vrot.slane %v1929_v16, 1  ;;  %v1954_v25 = vrot.slane %v1953_v22, 4  ;;  %v1960_v26 = vsel %vm608_vm0, %v601_v7, -inf }
 0x1da   :  { %2653 = vst.msk [vmem:[%s4563_s1 + $0x120] sm:$0xff] %vm2616_vm8, %v2566_v23  ;;  %v1937_v27 = vrot.slane %v1936_v19, 1  ;;  %v1941_v28 = vmax.f32 %v1939_v17, %v1940_v20  ;;  %v1948_v29 = vmax.f32 %v1946_v18, %v1947_v21  ;;  %v1961_v30 = vrot.slane %v1960_v26, 4 }
 0x1db   :  { %v1931_v31 = vmax.f32 %v1929_v16, %v1930_v24  ;;  %v1955_v32 = vmax.f32 %v1953_v22, %v1954_v25  ;;  %v1967_v33 = vsel %vm608_vm0, %v602_v1, -inf  ;;  %v1974_v34 = vsel %vm608_vm0, %v603_v10, -inf  ;;  %v397_v1 = vld [vmem:[%s4562_s0 + $0x30a] sm:$0x3] }
 0x1dc   :  { %v1938_v35 = vmax.f32 %v1936_v19, %v1937_v27  ;;  %v1942_v36 = vrot.slane %v1941_v28, 2  ;;  %v1949_v37 = vrot.slane %v1948_v29, 2  ;;  %v1962_v38 = vmax.f32 %v1960_v26, %v1961_v30 }
 0x1dd   :  { %v2197_v39 = vmax.f32 %v1931_v31, 0.0  ;;  %v1956_v40 = vrot.slane %v1955_v32, 2  ;;  %v1968_v41 = vrot.slane %v1967_v33, 4  ;;  %v1975_v42 = vrot.slane %v1974_v34, 4 }
 0x1de   :  { %v2198_v43 = vmax.f32 %v1938_v35, 0.0  ;;  %v1943_v44 = vmax.f32 %v1941_v28, %v1942_v36  ;;  %v1950_v45 = vmax.f32 %v1948_v29, %v1949_v37  ;;  %v1963_v46 = vrot.slane %v1962_v38, 2 }
 0x1df   :  { %v1957_v47 = vmax.f32 %v1955_v32, %v1956_v40  ;;  %v1969_v48 = vmax.f32 %v1967_v33, %v1968_v41  ;;  %v1976_v49 = vmax.f32 %v1974_v34, %v1975_v42  ;;  %v1981_v50 = vsel %vm608_vm0, %v604_v13, -inf }
 0x1e0   :  { %v2567_v51 = vsel %vm2409_vm1, %v2198_v43, %v2197_v39  ;;  %v1944_v53 = vrot.slane %v1943_v44, 1  ;;  %v1951_v54 = vrot.slane %v1950_v45, 1  ;;  %v1964_v55 = vmax.f32 %v1962_v38, %v1963_v46 }
 0x1e1   :  { %2654 = vst.msk [vmem:[%s4563_s1 + $0x128] sm:$0x3] %vm608_vm0, %v2567_v51  ;;  %v1958_v56 = vrot.slane %v1957_v47, 1  ;;  %v1970_v57 = vrot.slane %v1969_v48, 2  ;;  %v1977_v52 = vrot.slane %v1976_v49, 2  ;;  %v1982_v58 = vrot.slane %v1981_v50, 4 }
 0x1e2   :  { %v1945_v59 = vmax.f32 %v1943_v44, %v1944_v53  ;;  %v1952_v60 = vmax.f32 %v1950_v45, %v1951_v54  ;;  %v1965_v61 = vrot.slane %v1964_v55, 1  ;;  %v1988_v62 = vsel %vm608_vm0, %v605_v14, -inf  ;;  %v407_v14 = vld [vmem:[%s4562_s0 + $0x31e] sm:$0x3] }
 0x1e3   :  { %v1959_v63 = vmax.f32 %v1957_v47, %v1958_v56  ;;  %v1971_v0 = vmax.f32 %v1969_v48, %v1970_v57  ;;  %v1978_v2 = vmax.f32 %v1976_v49, %v1977_v52  ;;  %v1983_v3 = vmax.f32 %v1981_v50, %v1982_v58 }
 0x1e4   :  { %v1966_v6 = vmax.f32 %v1964_v55, %v1965_v61  ;;  %v1989_v7 = vrot.slane %v1988_v62, 4  ;;  %v2199_v8 = vmax.f32 %v1945_v59, 0.0  ;;  %v2200_v9 = vmax.f32 %v1952_v60, 0.0 }
 0x1e5   :  { %v1972_v10 = vrot.slane %v1971_v0, 1  ;;  %v1979_v11 = vrot.slane %v1978_v2, 1  ;;  %v1984_v12 = vrot.slane %v1983_v3, 2  ;;  %v2201_v13 = vmax.f32 %v1959_v63, 0.0 }
 0x1e6   :  { %v1990_v15 = vmax.f32 %v1988_v62, %v1989_v7  ;;  %v2202_v16 = vmax.f32 %v1966_v6, 0.0  ;;  %v2568_v17 = vsel %vm2409_vm1, %v2200_v9, %v2199_v8  ;;  %v606_v18 = vmax.f32 %v396_v4, %v406_v5 }
 0x1e7   :  { %v1973_v19 = vmax.f32 %v1971_v0, %v1972_v10  ;;  %v1980_v20 = vmax.f32 %v1978_v2, %v1979_v11  ;;  %v1985_v21 = vmax.f32 %v1983_v3, %v1984_v12  ;;  %v2569_v22 = vsel %vm2411_vm2, %v2201_v13, %v2568_v17 }
 0x1e8   :  { %v1991_v23 = vrot.slane %v1990_v15, 2  ;;  %v2570_v24 = vsel %vm2413_vm3, %v2202_v16, %v2569_v22  ;;  %v607_v25 = vmax.f32 %v397_v1, %v407_v14  ;;  %v1995_v26 = vsel %vm608_vm0, %v606_v18, -inf }
 0x1e9   :  { %v1986_v27 = vrot.slane %v1985_v21, 1  ;;  %v2203_v28 = vmax.f32 %v1973_v19, 0.0  ;;  %v2204_v29 = vmax.f32 %v1980_v20, 0.0  ;;  %v1996_v30 = vrot.slane %v1995_v26, 4 }
 0x1ea   :  { %v1992_v31 = vmax.f32 %v1990_v15, %v1991_v23  ;;  %v2002_v32 = vsel %vm608_vm0, %v607_v25, -inf }
 0x1eb   :  { %v1987_v33 = vmax.f32 %v1985_v21, %v1986_v27  ;;  %v2571_v34 = vsel %vm2415_vm4, %v2203_v28, %v2570_v24  ;;  %v1997_v35 = vmax.f32 %v1995_v26, %v1996_v30  ;;  %v2003_v36 = vrot.slane %v2002_v32, 4 }
 0x1ec   :  { %v1993_v37 = vrot.slane %v1992_v31, 1  ;;  %v2572_v38 = vsel %vm2417_vm5, %v2204_v29, %v2571_v34 }
 0x1ed   :  { %v2205_v39 = vmax.f32 %v1987_v33, 0.0  ;;  %v1998_v40 = vrot.slane %v1997_v35, 2  ;;  %v2004_v41 = vmax.f32 %v2002_v32, %v2003_v36 }
 0x1ee   :  { %v1994_v42 = vmax.f32 %v1992_v31, %v1993_v37 }
 0x1ef   :  { %v2573_v43 = vsel %vm2419_vm6, %v2205_v39, %v2572_v38  ;;  %v1999_v44 = vmax.f32 %v1997_v35, %v1998_v40  ;;  %v2005_v45 = vrot.slane %v2004_v41, 2 }
 0x1f0   :  { %v2206_v46 = vmax.f32 %v1994_v42, 0.0 }
 0x1f1   :  { %v2000_v47 = vrot.slane %v1999_v44, 1  ;;  %v2006_v48 = vmax.f32 %v2004_v41, %v2005_v45 }
 0x1f2   :  { %v2574_v49 = vsel %vm2421_vm7, %v2206_v46, %v2573_v43 }
 0x1f3   :  { %2655 = vst.msk [vmem:[%s4563_s1 + $0x130] sm:$0xff] %vm2616_vm8, %v2574_v49  ;;  %v2001_v50 = vmax.f32 %v1999_v44, %v2000_v47  ;;  %v2007_v51 = vrot.slane %v2006_v48, 1 }
 0x1f5   :  { %v2008_v53 = vmax.f32 %v2006_v48, %v2007_v51  ;;  %v2207_v54 = vmax.f32 %v2001_v50, 0.0 }
 0x1f7   :  { %v2208_v55 = vmax.f32 %v2008_v53, 0.0 }
 0x1f9   :  { %v2575_v56 = vsel %vm2409_vm1, %v2208_v55, %v2207_v54 }
 0x1fa   :  { %2656 = vst.msk [vmem:[%s4563_s1 + $0x138] sm:$0x3] %vm608_vm0, %v2575_v56 }

// kernel: resnet_forward.17
= control target key start
LH: loop header
LB: loop body
LE: loop exit
PB: predicated region body
PF: predicated region fallthrough
CT: control target
= control target key end

     0   :  { %s807_s1 = inlined_call_operand.vmem [shape: bf16[384,128], index: 1, kind: input, shape index: {}]   ;;  %s808_s0 = inlined_call_operand.vmem [shape: bf16[64,384], index: 0, kind: input, shape index: {}]   ;;  %s809_s2 = inlined_call_operand.vmem [shape: f32[1,128], index: 2, kind: input, shape index: {}]   ;;  %s810_s3 = inlined_call_operand.vmem [shape: f32[64,128], index: 3, kind: output, shape index: {}]  }
   0x1   :  { %v612_v0 = vld [vmem:[%s807_s1 + $0x40] sm:$0xff]   ;;  %v615_v3 = vld [vmem:[%s807_s1 + $0x48] sm:$0xff]   ;;  %v618_v6 = vld [vmem:[%s807_s1 + $0x50] sm:$0xff]  }
   0x2   :  { %v613_v1 = vld [vmem:[%s807_s1] sm:$0xff]   ;;  %536 = vmatprep.subr.bf16.mxu0 %v612_v0  ;;  %v616_v4 = vld [vmem:[%s807_s1 + $0x8] sm:$0xff]   ;;  %v619_v7 = vld [vmem:[%s807_s1 + $0x10] sm:$0xff]  }
   0x3   :  { %v614_v2 = vld [vmem:[%s807_s1 + $0x80] sm:$0xff]   ;;  %537 = vmatpush3.bf16.msra.mxu0 %v613_v1  ;;  %v617_v5 = vld [vmem:[%s807_s1 + $0x88] sm:$0xff]   ;;  %v620_v8 = vld [vmem:[%s807_s1 + $0x90] sm:$0xff]  }
   0x4   :  { %588 = vmatprep.subr.bf16.mxu1 %v614_v2  ;;  %538 = vmatprep.subr.bf16.mxu0 %v615_v3  ;;  %v621_v9 = vld [vmem:[%s807_s1 + $0x58] sm:$0xff]   ;;  %v624_v12 = vld [vmem:[%s807_s1 + $0x60] sm:$0xff]   ;;  %v627_v15 = vld [vmem:[%s807_s1 + $0x68] sm:$0xff]  }
   0x5   :  { %589 = vmatpush3.bf16.msra.mxu1 %v614_v2  ;;  %v622_v10 = vld [vmem:[%s807_s1 + $0x18] sm:$0xff]   ;;  %v626_v13 = vld [vmem:[%s807_s1 + $0xa0] sm:$0xff]   ;;  %v629_v16 = vld [vmem:[%s807_s1 + $0xa8] sm:$0xff]  }
   0x6   :  { %590 = vmatprep.subr.bf16.mxu1 %v617_v5  ;;  %v623_v11 = vld [vmem:[%s807_s1 + $0x98] sm:$0xff]   ;;  %v625_v14 = vld [vmem:[%s807_s1 + $0x20] sm:$0xff]   ;;  %v628_v17 = vld [vmem:[%s807_s1 + $0x28] sm:$0xff]  }
   0x7   :  { %539 = vmatpush3.bf16.msra.mxu0 %v616_v4  ;;  %v630_v18 = vld [vmem:[%s807_s1 + $0x70] sm:$0xff]   ;;  %v633_v21 = vld [vmem:[%s807_s1 + $0x78] sm:$0xff]   ;;  %v636_v26 = vld [vmem:[%s808_s0] ss:$12 sps:$4 sm:$0xff]  }
   0x8   :  { %540 = vmatprep.subr.bf16.mxu0 %v618_v6  ;;  %v631_v19 = vld [vmem:[%s807_s1 + $0x30] sm:$0xff]   ;;  %v635_v22 = vld [vmem:[%s807_s1 + $0xb8] sm:$0xff]   ;;  %v640_v28 = vld [vmem:[%s808_s0 + $0x20] ss:$12 sps:$4 sm:$0xff]  }
   0x9   :  { %591 = vmatpush3.bf16.msra.mxu1 %v617_v5  ;;  %v632_v20 = vld [vmem:[%s807_s1 + $0xb0] sm:$0xff]   ;;  %v634_v25 = vld [vmem:[%s807_s1 + $0x38] sm:$0xff]   ;;  %v535_v43 = vld [vmem:[%s809_s2] ss:$0 sm:$0xff] }
   0xa   :  { %592 = vmatprep.subr.bf16.mxu1 %v620_v8  ;;  %v638_v23 = vld [vmem:[%s808_s0 + $0x4] ss:$12 sps:$4 sm:$0xff]   ;;  %v639_v24 = vld [vmem:[%s808_s0 + $0x8] ss:$12 sps:$4 sm:$0xff]   ;;  %v649_v34 = vld [vmem:[%s808_s0 + $0x4c] ss:$12 sps:$4 sm:$0xff]  }
   0xb   :  { %541 = vmatpush3.bf16.msra.mxu0 %v619_v7  ;;  %339 = vmatprep.mubr.bf16.mxu0 %v638_v23  ;;  %v641_v27 = vld [vmem:[%s808_s0 + $0x1c] ss:$12 sps:$4 sm:$0xff]   ;;  %v647_v29 = vld [vmem:[%s808_s0 + $0x38] ss:$12 sps:$4 sm:$0xff]   ;;  %v644_v31 = vld [vmem:[%s808_s0 + $0x34] ss:$12 sps:$4 sm:$0xff]  }
   0xc   :  { %542 = vmatprep.subr.bf16.mxu0 %v621_v9  ;;  %604 = vmatprep.mubr.bf16.mxu1 %v639_v24  ;;  %v643_v30 = vld [vmem:[%s808_s0 + $0x18] ss:$12 sps:$4 sm:$0xff]   ;;  %v648_v32 = vld [vmem:[%s808_s0 + $0x50] ss:$12 sps:$4 sm:$0xff]   ;;  %v651_v35 = vld [vmem:[%s808_s0 + $0x48] ss:$12 sps:$4 sm:$0xff]  }
   0xd   :  { %593 = vmatpush3.bf16.msra.mxu1 %v620_v8  ;;  %v646_v33 = vld [vmem:[%s808_s0 + $0x30] ss:$12 sps:$4 sm:$0xff]  }
   0xe   :  { %594 = vmatprep.subr.bf16.mxu1 %v623_v11 }
   0xf   :  { %543 = vmatpush3.bf16.msra.mxu0 %v622_v10 }
  0x10   :  { %544 = vmatprep.subr.bf16.mxu0 %v624_v12 }
  0x11   :  { %595 = vmatpush3.bf16.msra.mxu1 %v623_v11 }
  0x12   :  { %596 = vmatprep.subr.bf16.mxu1 %v626_v13 }
  0x13   :  { %545 = vmatpush3.bf16.msra.mxu0 %v625_v14 }
  0x14   :  { %546 = vmatprep.subr.bf16.mxu0 %v627_v15 }
  0x15   :  { %597 = vmatpush3.bf16.msra.mxu1 %v626_v13 }
  0x16   :  { %598 = vmatprep.subr.bf16.mxu1 %v629_v16 }
  0x17   :  { %547 = vmatpush3.bf16.msra.mxu0 %v628_v17 }
  0x18   :  { %548 = vmatprep.subr.bf16.mxu0 %v630_v18 }
  0x19   :  { %599 = vmatpush3.bf16.msra.mxu1 %v629_v16 }
  0x1a   :  { %600 = vmatprep.subr.bf16.mxu1 %v632_v20 }
  0x1b   :  { %549 = vmatpush3.bf16.msra.mxu0 %v631_v19 }
  0x1c   :  { %550 = vmatprep.subr.bf16.mxu0 %v633_v21 }
  0x1d   :  { %601 = vmatpush3.bf16.msra.mxu1 %v632_v20 }
  0x1e   :  { %602 = vmatprep.subr.bf16.mxu1 %v635_v22 }
  0x1f   :  { %551 = vmatpush3.bf16.msra.mxu0 %v634_v25 }
  0x21   :  { %603 = vmatpush3.bf16.msra.mxu1 %v635_v22 }
  0x22   :  { %340 = vmatmul.mubr.bf16.vlgmr.msra.gmra.mrb[0].mxu0 %v636_v26 }
  0x23   :  { %347 = vmatprep.mubr.bf16.mxu0 %v641_v27 }
  0x24   :  { %605 = vmatmul.mubr.bf16.vlgmr.msra.gmra.mrb[0].mxu1 %v640_v28 }
  0x25   :  { %608 = vmatprep.mubr.bf16.mxu1 %v647_v29 }
  0x2a   :  { %348 = vmatmul.mubr.bf16.gmra.mrb[4].mxu0 %v643_v30 }
  0x2b   :  { %355 = vmatprep.mubr.bf16.mxu0 %v644_v31 }
  0x2c   :  { %609 = vmatmul.mubr.bf16.gmra.mrb[4].mxu1 %v648_v32 }
  0x32   :  { %356 = vmatmul.mubr.bf16.gmra.mrb[8].mxu0 %v646_v33 }
  0x33   :  { %363 = vmatprep.mubr.bf16.mxu0 %v649_v34 }
  0x3a   :  { %364 = vmatmul.mubr.bf16.gmra.mrb[12].mxu0 %v651_v35 }
  0xf5   :  { %v552_v36 = vpop.f32.mrb[0].mxu0 }
  0xf6   :  { %v553_v37 = vpop.f32.mrb[1].mxu0 }
  0xf7   :  { %v554_v38 = vadd.f32 %v553_v37, %v552_v36  ;;  %v555_v39 = vpop.f32.mrb[2].mxu0  ;;  %v606_v40 = vpop.f32.mrb[0].mxu1 }
  0xf8   :  { %v556_v41 = vpop.f32.mrb[3].mxu0  ;;  %v406_v42 = vpop.f32.mrb[1].mxu1 }
  0xf9   :  { %v557_v44 = vadd.f32 %v556_v41, %v555_v39  ;;  %v407_v45 = vadd.f32 %v554_v38, %v406_v42  ;;  %v607_v46 = vpop.f32.mrb[2].mxu1 }
  0xfa   :  { %v409_v47 = vpop.f32.mrb[3].mxu1 }
  0xfb   :  { %v471_v48 = vadd.f32 %v535_v43, %v407_v45  ;;  %v410_v49 = vadd.f32 %v557_v44, %v409_v47 }
  0xfd   :  { %v479_v50 = vmax.f32 %v471_v48, 0.0  ;;  %v472_v51 = vadd.f32 %v535_v43, %v410_v49  ;;  %v558_v52 = vpop.f32.mrb[4].mxu0 }
  0xfe   :  { %v559_v53 = vpop.f32.mrb[5].mxu0 }
  0xff   :  { %487 = vst [vmem:[%s810_s3] sm:$0xff] %v479_v50  ;;  %v480_v54 = vmax.f32 %v472_v51, 0.0  ;;  %v560_v55 = vadd.f32 %v559_v53, %v558_v52  ;;  %v561_v56 = vpop.f32.mrb[6].mxu0  ;;  %v610_v57 = vpop.f32.mrb[4].mxu1 }
 0x100   :  { %v562_v58 = vpop.f32.mrb[7].mxu0  ;;  %v422_v59 = vpop.f32.mrb[5].mxu1 }
 0x101   :  { %488 = vst [vmem:[%s810_s3 + $0x8] sm:$0xff] %v480_v54  ;;  %v415_v60 = vadd.f32 %v606_v40, %v560_v55  ;;  %v563_v61 = vadd.f32 %v562_v58, %v561_v56  ;;  %v611_v62 = vpop.f32.mrb[6].mxu1 }
 0x102   :  { %v425_v63 = vpop.f32.mrb[7].mxu1 }
 0x103   :  { %v473_v0 = vadd.f32 %v535_v43, %v415_v60  ;;  %v418_v1 = vadd.f32 %v607_v46, %v563_v61 }
 0x105   :  { %v481_v2 = vmax.f32 %v473_v0, 0.0  ;;  %v474_v3 = vadd.f32 %v535_v43, %v418_v1  ;;  %v564_v4 = vpop.f32.mrb[8].mxu0 }
 0x106   :  { %v565_v5 = vpop.f32.mrb[9].mxu0 }
 0x107   :  { %489 = vst [vmem:[%s810_s3 + $0x10] sm:$0xff] %v481_v2  ;;  %v482_v6 = vmax.f32 %v474_v3, 0.0  ;;  %v566_v7 = vadd.f32 %v565_v5, %v564_v4  ;;  %v567_v8 = vpop.f32.mrb[10].mxu0 }
 0x108   :  { %v568_v9 = vpop.f32.mrb[11].mxu0 }
 0x109   :  { %490 = vst [vmem:[%s810_s3 + $0x18] sm:$0xff] %v482_v6  ;;  %v569_v10 = vadd.f32 %v568_v9, %v567_v8  ;;  %v423_v11 = vadd.f32 %v566_v7, %v422_v59 }
 0x10b   :  { %v475_v12 = vadd.f32 %v535_v43, %v423_v11  ;;  %v426_v13 = vadd.f32 %v569_v10, %v425_v63 }
 0x10d   :  { %v483_v14 = vmax.f32 %v475_v12, 0.0  ;;  %v476_v15 = vadd.f32 %v535_v43, %v426_v13  ;;  %v570_v16 = vpop.f32.mrb[12].mxu0 }
 0x10e   :  { %v571_v17 = vpop.f32.mrb[13].mxu0 }
 0x10f   :  { %491 = vst [vmem:[%s810_s3 + $0x20] sm:$0xff] %v483_v14  ;;  %v484_v18 = vmax.f32 %v476_v15, 0.0  ;;  %v572_v19 = vadd.f32 %v571_v17, %v570_v16  ;;  %v573_v20 = vpop.f32.mrb[14].mxu0 }
 0x110   :  { %v574_v21 = vpop.f32.mrb[15].mxu0 }
 0x111   :  { %492 = vst [vmem:[%s810_s3 + $0x28] sm:$0xff] %v484_v18  ;;  %v431_v22 = vadd.f32 %v610_v57, %v572_v19  ;;  %v575_v23 = vadd.f32 %v574_v21, %v573_v20 }
 0x113   :  { %v477_v24 = vadd.f32 %v535_v43, %v431_v22  ;;  %v434_v25 = vadd.f32 %v611_v62, %v575_v23 }
 0x115   :  { %v485_v26 = vmax.f32 %v477_v24, 0.0  ;;  %v478_v27 = vadd.f32 %v535_v43, %v434_v25 }
 0x117   :  { %493 = vst [vmem:[%s810_s3 + $0x30] sm:$0xff] %v485_v26  ;;  %v486_v28 = vmax.f32 %v478_v27, 0.0 }
 0x119   :  { %494 = vst [vmem:[%s810_s3 + $0x38] sm:$0xff] %v486_v28 }

// kernel: resnet_forward.18
= control target key start
LH: loop header
LB: loop body
LE: loop exit
PB: predicated region body
PF: predicated region fallthrough
CT: control target
= control target key end

     0   :  { %s1381_s15 = smov 0   ;;  %s1383_s16 = smov 0   ;;  %s1569_s0 = inlined_call_operand.vmem [shape: bf16[64,1024], index: 0, kind: input, shape index: {}]   ;;  %s1570_s1 = inlined_call_operand.vmem [shape: bf16[1024,128], index: 1, kind: input, shape index: {}]   ;;  %s1571_s2 = inlined_call_operand.vmem [shape: f32[1,128], index: 2, kind: input, shape index: {}]   ;;  %s1572_s3 = inlined_call_operand.vmem [shape: f32[64,128], index: 3, kind: input, shape index: {}]   ;;  %s1573_s4 = inlined_call_operand.vmem [shape: f32[64,128], index: 4, kind: output, shape index: {}]  }
   0x1   :  { %s1385_s17 = smov 0   ;;  %s1387_s18 = smov 0  }
   0x2   :  { %s1389_s19 = smov 0  }
   0x3 LB: > { %s26_s20 = sadd.s32 1, %s1349_s18  ;;  %p49_p1 = scmp.ne.s32.totalorder %s1341_s16, %s1337_s15  ;;  %s1353_s19 = sphi %s1389_s19, %s14_s19   ;;  %s1349_s18 = sphi %s1387_s18, %s1577_s18   ;;  %s1345_s17 = sphi %s1385_s17, %s1576_s17   ;;  %s1341_s16 = sphi %s1383_s16, %s1575_s16   ;;  %s1337_s15 = sphi %s1381_s15, %s1574_s15  }
   0x4   : > { %p27_p0 = scmp.ge.s32.totalorder %s26_s20, 2  ;;  %p50_p2 = scmp.eq.s32.totalorder %s1353_s19, 0 }
   0x5   : > { %s42_s22 = sadd.s32 1, %s1341_s16  ;;  %p1074_p5 = scmp.ge.s32.totalorder %s1353_s19, 2 }
   0x6   : > { %s1579_s20 = smov (%p27_p0, %s26_s20), 0  ;;  %p51_p3 = por %p50_p2, %p49_p1 }
   0x7   : > { %s38_s21 = ssub.s32 %s1349_s18, %s1579_s20  ;;  %203 = sbr.rel (%p1074_p5) target bundleno = 26 (0x1a), region = 24 }
   0x8   : > { %p40_p4 = scmp.eq.s32.totalorder %s38_s21, 0 }
   0xa   : > { %s1416_s23 = scalar_select %p40_p4, %s1341_s16, %s42_s22  }
   0xe   : > { %206 = sbr.rel (!%p51_p3) target bundleno = 26 (0x1a), region = 28  ;;  %s208_s24 = sand.u32 (%p51_p3), 1, %s1341_s16  }
   0xf   : > { %s1137_s25 = sshll.u32 (%p51_p3), %s1349_s18, 4  ;;  %s1075_s26 = sshll.u32 (%p51_p3), %s208_s24, 7 }
  0x10   : > { %s1424_s29 = scalar_lea.vmem (%p51_p3), %s1569_s0, %s1137_s25  ;;  %s210_s30 = scalar_lea.vmem (%p51_p3), [#allocation3], %s1075_s26 }
  0x11   : > { %v229_v0 = vld [vmem:[%s1424_s29] sm:$0xff] (%p51_p3)  ;;  %v231_v1 = vld [vmem:[%s1424_s29 + $0x8] sm:$0xff] (%p51_p3) }
  0x12   : > { %v233_v2 = vld [vmem:[%s1424_s29 + $0x20] sm:$0xff] (%p51_p3)  ;;  %230 = vst [vmem:[%s210_s30] sm:$0xff] (%p51_p3), %v229_v0  ;;  %232 = vst [vmem:[%s210_s30 + $0x8] sm:$0xff] (%p51_p3), %v231_v1  ;;  %v235_v3 = vld [vmem:[%s1424_s29 + $0x28] sm:$0xff] (%p51_p3) }
  0x13   : > { %234 = vst [vmem:[%s210_s30 + $0x10] sm:$0xff] (%p51_p3), %v233_v2  ;;  %v237_v4 = vld [vmem:[%s1424_s29 + $0x40] sm:$0xff] (%p51_p3)  ;;  %v239_v5 = vld [vmem:[%s1424_s29 + $0x48] sm:$0xff] (%p51_p3)  ;;  %236 = vst [vmem:[%s210_s30 + $0x18] sm:$0xff] (%p51_p3), %v235_v3 }
  0x14   : > { %238 = vst [vmem:[%s210_s30 + $0x20] sm:$0xff] (%p51_p3), %v237_v4  ;;  %240 = vst [vmem:[%s210_s30 + $0x28] sm:$0xff] (%p51_p3), %v239_v5  ;;  %v241_v6 = vld [vmem:[%s1424_s29 + $0x60] sm:$0xff] (%p51_p3)  ;;  %v243_v7 = vld [vmem:[%s1424_s29 + $0x68] sm:$0xff] (%p51_p3) }
  0x15   : > { %v245_v8 = vld [vmem:[%s1424_s29 + $0x80] sm:$0xff]  ;;  %242 = vst [vmem:[%s210_s30 + $0x30] sm:$0xff] %v241_v6  ;;  %244 = vst [vmem:[%s210_s30 + $0x38] sm:$0xff] %v243_v7  ;;  %v247_v9 = vld [vmem:[%s1424_s29 + $0x88] sm:$0xff] }
  0x16   : > { %246 = vst [vmem:[%s210_s30 + $0x40] sm:$0xff] %v245_v8  ;;  %v249_v10 = vld [vmem:[%s1424_s29 + $0xa0] sm:$0xff]  ;;  %v251_v11 = vld [vmem:[%s1424_s29 + $0xa8] sm:$0xff]  ;;  %248 = vst [vmem:[%s210_s30 + $0x48] sm:$0xff] %v247_v9 }
  0x17   : > { %250 = vst [vmem:[%s210_s30 + $0x50] sm:$0xff] %v249_v10  ;;  %252 = vst [vmem:[%s210_s30 + $0x58] sm:$0xff] %v251_v11  ;;  %v253_v12 = vld [vmem:[%s1424_s29 + $0xc0] sm:$0xff]  ;;  %v255_v13 = vld [vmem:[%s1424_s29 + $0xc8] sm:$0xff] }
  0x18   : > { %v257_v14 = vld [vmem:[%s1424_s29 + $0xe0] sm:$0xff]  ;;  %254 = vst [vmem:[%s210_s30 + $0x60] sm:$0xff] %v253_v12  ;;  %256 = vst [vmem:[%s210_s30 + $0x68] sm:$0xff] %v255_v13  ;;  %v259_v15 = vld [vmem:[%s1424_s29 + $0xe8] sm:$0xff] }
  0x19   : > { %258 = vst [vmem:[%s210_s30 + $0x70] sm:$0xff] %v257_v14  ;;  %260 = vst [vmem:[%s210_s30 + $0x78] sm:$0xff] %v259_v15 }
  0x1a PF: > { %p1078_p6 = scmp.ge.s32.totalorder %s1353_s19, 1  ;;  %p277_p7 = scmp.lt.s32.totalorder %s1353_s19, 3 }
  0x1c   : > { %p278_p8 = pnand %p1078_p6, %p277_p7 }
  0x1d   : > { %s284_s5 = sand.u32 (!%p278_p8), 1, %s1337_s15   ;;  %s1080_s6 = sshll.u32 (!%p278_p8), %s1345_s17, 6 }
  0x1e   : > { %281 = sbr.rel (%p278_p8) target bundleno = 339 (0x153), region = 55  ;;  %s1079_s7 = sshll.u32 (!%p278_p8), %s284_s5, 7 }
  0x1f   : > { %p334_p9 = scmp.lt.s32.totalorder (!%p278_p8), %s1080_s6, 127  ;;  %s1451_s12 = scalar_lea.vmem (!%p278_p8), [#allocation3], %s1079_s7 }
  0x20   : > { %p1082_p10 = scmp.ne.s32.totalorder (!%p278_p8), %s1345_s17, 0 }
  0x25   : > { %s1581_s6 = smov (!%p334_p9, %s1080_s6), 127  ;;  %367 = sbr.rel (%p1082_p10) target bundleno = 44 (0x2c), region = 63 }
  0x26   : > { %s1081_s8 = sshll.u32 %s1581_s6, 2  ;;  %v1355_v16 = vmov (!%p1082_p10), 0.0  }
  0x27   : > { %s1449_s11 = scalar_lea.vmem %s1570_s1, %s1081_s8  ;;  %368 = vst [vmem:[#allocation2] sm:$0xff] (!%p1082_p10), %v1355_v16  ;;  %369 = vst [vmem:[#allocation2 + $0x8] sm:$0xff] (!%p1082_p10), %v1355_v16 }
  0x28   : > { %370 = vst [vmem:[#allocation2 + $0x10] sm:$0xff] (!%p1082_p10), %v1355_v16  ;;  %371 = vst [vmem:[#allocation2 + $0x18] sm:$0xff] (!%p1082_p10), %v1355_v16 }
  0x29   : > { %372 = vst [vmem:[#allocation2 + $0x20] sm:$0xff] (!%p1082_p10), %v1355_v16  ;;  %373 = vst [vmem:[#allocation2 + $0x28] sm:$0xff] (!%p1082_p10), %v1355_v16 }
  0x2a   : > { %374 = vst [vmem:[#allocation2 + $0x30] sm:$0xff] (!%p1082_p10), %v1355_v16  ;;  %375 = vst [vmem:[#allocation2 + $0x38] sm:$0xff] (!%p1082_p10), %v1355_v16 }
  0x2c PF: > { %v1259_v17 = vld [vmem:[%s1449_s11 + $0x40] sm:$0xff]   ;;  %v1263_v21 = vld [vmem:[%s1449_s11 + $0x48] sm:$0xff]   ;;  %v1267_v25 = vld [vmem:[%s1449_s11 + $0x50] sm:$0xff]   ;;  %p1131_p11 = scmp.ne.s32.totalorder %s1345_s17, 1 }
  0x2d   : > { %v1260_v18 = vld [vmem:[%s1449_s11 + $0xc0] sm:$0xff]   ;;  %1138 = vmatprep.subr.bf16.mxu0 %v1259_v17  ;;  %v1264_v22 = vld [vmem:[%s1449_s11 + $0xc8] sm:$0xff]   ;;  %v1268_v26 = vld [vmem:[%s1449_s11 + $0xd0] sm:$0xff]  }
  0x2e   : > { %v1261_v19 = vld [vmem:[%s1449_s11] sm:$0xff]   ;;  %1178 = vmatprep.subr.bf16.mxu1 %v1260_v18  ;;  %v1265_v23 = vld [vmem:[%s1449_s11 + $0x8] sm:$0xff]   ;;  %v1269_v27 = vld [vmem:[%s1449_s11 + $0x10] sm:$0xff]  }
  0x2f   : > { %v1262_v20 = vld [vmem:[%s1449_s11 + $0x80] sm:$0xff]   ;;  %1139 = vmatpush3.bf16.msra.mxu0 %v1261_v19  ;;  %v1266_v24 = vld [vmem:[%s1449_s11 + $0x88] sm:$0xff]   ;;  %v1270_v28 = vld [vmem:[%s1449_s11 + $0x90] sm:$0xff]  }
  0x30   : > { %1179 = vmatpush3.bf16.msra.mxu1 %v1262_v20  ;;  %1140 = vmatprep.subr.bf16.mxu0 %v1263_v21  ;;  %v1271_v29 = vld [vmem:[%s1449_s11 + $0x58] sm:$0xff]   ;;  %v1275_v33 = vld [vmem:[%s1449_s11 + $0x60] sm:$0xff]   ;;  %v1279_v37 = vld [vmem:[%s1449_s11 + $0x68] sm:$0xff]  }
  0x31   : > { %1180 = vmatprep.subr.bf16.mxu1 %v1264_v22  ;;  %v1272_v30 = vld [vmem:[%s1449_s11 + $0xd8] sm:$0xff]   ;;  %v1276_v34 = vld [vmem:[%s1449_s11 + $0xe0] sm:$0xff]   ;;  %v1280_v38 = vld [vmem:[%s1449_s11 + $0xe8] sm:$0xff]  }
  0x32   : > { %v1273_v31 = vld [vmem:[%s1449_s11 + $0x18] sm:$0xff]   ;;  %v1277_v35 = vld [vmem:[%s1449_s11 + $0x20] sm:$0xff]   ;;  %v1281_v39 = vld [vmem:[%s1449_s11 + $0x28] sm:$0xff]  }
  0x33   : > { %1141 = vmatpush3.bf16.msra.mxu0 %v1265_v23  ;;  %v1274_v32 = vld [vmem:[%s1449_s11 + $0x98] sm:$0xff]   ;;  %v1278_v36 = vld [vmem:[%s1449_s11 + $0xa0] sm:$0xff]   ;;  %v1282_v40 = vld [vmem:[%s1449_s11 + $0xa8] sm:$0xff]  }
  0x34   : > { %1181 = vmatpush3.bf16.msra.mxu1 %v1266_v24  ;;  %1142 = vmatprep.subr.bf16.mxu0 %v1267_v25  ;;  %v1283_v41 = vld [vmem:[%s1449_s11 + $0x70] sm:$0xff]   ;;  %v1287_v45 = vld [vmem:[%s1449_s11 + $0x78] sm:$0xff]   ;;  %v376_v10 = vld [vmem:[#allocation2] sm:$0xff] }
  0x35   : > { %1182 = vmatprep.subr.bf16.mxu1 %v1268_v26  ;;  %v1284_v42 = vld [vmem:[%s1449_s11 + $0xf0] sm:$0xff]   ;;  %v1288_v46 = vld [vmem:[%s1449_s11 + $0xf8] sm:$0xff]   ;;  %v377_v15 = vld [vmem:[#allocation2 + $0x8] sm:$0xff] }
  0x36   : > { %v1285_v43 = vld [vmem:[%s1449_s11 + $0x30] sm:$0xff]   ;;  %v1289_v47 = vld [vmem:[%s1449_s11 + $0x38] sm:$0xff]  }
  0x37   : > { %1143 = vmatpush3.bf16.msra.mxu0 %v1269_v27  ;;  %v1286_v44 = vld [vmem:[%s1449_s11 + $0xb0] sm:$0xff]   ;;  %v1290_v48 = vld [vmem:[%s1449_s11 + $0xb8] sm:$0xff]  }
  0x38   : > { %1183 = vmatpush3.bf16.msra.mxu1 %v1270_v28  ;;  %1144 = vmatprep.subr.bf16.mxu0 %v1271_v29  ;;  %v1291_v49 = vld [vmem:[%s1451_s12] ss:$16 sps:$4 sm:$0xff]   ;;  %v1293_v50 = vld [vmem:[%s1451_s12 + $0x4] ss:$16 sps:$4 sm:$0xff]   ;;  %v1294_v51 = vld [vmem:[%s1451_s12 + $0x8] ss:$16 sps:$4 sm:$0xff]  }
  0x39   : > { %1184 = vmatprep.subr.bf16.mxu1 %v1272_v30  ;;  %v1296_v52 = vld [vmem:[%s1451_s12 + $0xc] ss:$16 sps:$4 sm:$0xff]   ;;  %768 = vmatprep.mubr.bf16.mxu0 %v1293_v50  ;;  %v1297_v53 = vld [vmem:[%s1451_s12 + $0x24] ss:$16 sps:$4 sm:$0xff]   ;;  %v1301_v55 = vld [vmem:[%s1451_s12 + $0x20] ss:$16 sps:$4 sm:$0xff]  }
  0x3a   : > { %833 = vmatprep.mubr.bf16.mxu1 %v1296_v52  ;;  %v1299_v54 = vld [vmem:[%s1451_s12 + $0x2c] ss:$16 sps:$4 sm:$0xff]   ;;  %v1302_v56 = vld [vmem:[%s1451_s12 + $0x28] ss:$16 sps:$4 sm:$0xff]   ;;  %v1303_v57 = vld [vmem:[%s1451_s12 + $0x44] ss:$16 sps:$4 sm:$0xff]  }
  0x3b   : > { %1145 = vmatpush3.bf16.msra.mxu0 %v1273_v31  ;;  %v1305_v58 = vld [vmem:[%s1451_s12 + $0x4c] ss:$16 sps:$4 sm:$0xff]   ;;  %v1307_v59 = vld [vmem:[%s1451_s12 + $0x40] ss:$16 sps:$4 sm:$0xff]   ;;  %v1308_v60 = vld [vmem:[%s1451_s12 + $0x48] ss:$16 sps:$4 sm:$0xff]  }
  0x3c   : > { %1185 = vmatpush3.bf16.msra.mxu1 %v1274_v32  ;;  %1146 = vmatprep.subr.bf16.mxu0 %v1275_v33  ;;  %v1309_v61 = vld [vmem:[%s1451_s12 + $0x64] ss:$16 sps:$4 sm:$0xff]   ;;  %v1311_v62 = vld [vmem:[%s1451_s12 + $0x6c] ss:$16 sps:$4 sm:$0xff]   ;;  %v1313_v63 = vld [vmem:[%s1451_s12 + $0x60] ss:$16 sps:$4 sm:$0xff]  }
  0x3d   : > { %1186 = vmatprep.subr.bf16.mxu1 %v1276_v34  ;;  %v1314_v0 = vld [vmem:[%s1451_s12 + $0x68] ss:$16 sps:$4 sm:$0xff]   ;;  %v378_v28 = vld [vmem:[#allocation2 + $0x10] sm:$0xff] }
  0x3e   : > { %v379_v33 = vld [vmem:[#allocation2 + $0x18] sm:$0xff] }
  0x3f   : > { %1147 = vmatpush3.bf16.msra.mxu0 %v1277_v35 }
  0x40   : > { %1187 = vmatpush3.bf16.msra.mxu1 %v1278_v36  ;;  %1148 = vmatprep.subr.bf16.mxu0 %v1279_v37 }
  0x41   : > { %1188 = vmatprep.subr.bf16.mxu1 %v1280_v38 }
  0x43   : > { %1149 = vmatpush3.bf16.msra.mxu0 %v1281_v39 }
  0x44   : > { %1189 = vmatpush3.bf16.msra.mxu1 %v1282_v40  ;;  %1150 = vmatprep.subr.bf16.mxu0 %v1283_v41 }
  0x45   : > { %1190 = vmatprep.subr.bf16.mxu1 %v1284_v42 }
  0x47   : > { %1151 = vmatpush3.bf16.msra.mxu0 %v1285_v43 }
  0x48   : > { %1191 = vmatpush3.bf16.msra.mxu1 %v1286_v44  ;;  %1152 = vmatprep.subr.bf16.mxu0 %v1287_v45 }
  0x49   : > { %1192 = vmatprep.subr.bf16.mxu1 %v1288_v46  ;;  %v380_v46 = vld [vmem:[#allocation2 + $0x20] sm:$0xff] }
  0x4b   : > { %1153 = vmatpush3.bf16.msra.mxu0 %v1289_v47 }
  0x4c   : > { %1193 = vmatpush3.bf16.msra.mxu1 %v1290_v48 }
  0x4e   : > { %769 = vmatmul.mubr.bf16.vlgmr.msra.gmra.mrb[0].mxu0 %v1291_v49 }
  0x4f   : > { %834 = vmatmul.mubr.bf16.vlgmr.msra.gmra.mrb[0].mxu1 %v1294_v51  ;;  %776 = vmatprep.mubr.bf16.mxu0 %v1297_v53  ;;  %v381_v51 = vld [vmem:[#allocation2 + $0x28] sm:$0xff] }
  0x50   : > { %841 = vmatprep.mubr.bf16.mxu1 %v1299_v54 }
  0x56   : > { %777 = vmatmul.mubr.bf16.gmra.mrb[4].mxu0 %v1301_v55 }
  0x57   : > { %842 = vmatmul.mubr.bf16.gmra.mrb[4].mxu1 %v1302_v56  ;;  %784 = vmatprep.mubr.bf16.mxu0 %v1303_v57 }
  0x58   : > { %849 = vmatprep.mubr.bf16.mxu1 %v1305_v58 }
  0x5e   : > { %785 = vmatmul.mubr.bf16.gmra.mrb[8].mxu0 %v1307_v59 }
  0x5f   : > { %850 = vmatmul.mubr.bf16.gmra.mrb[8].mxu1 %v1308_v60  ;;  %792 = vmatprep.mubr.bf16.mxu0 %v1309_v61 }
  0x60   : > { %857 = vmatprep.mubr.bf16.mxu1 %v1311_v62 }
  0x66   : > { %793 = vmatmul.mubr.bf16.gmra.mrb[12].mxu0 %v1313_v63 }
  0x67   : > { %858 = vmatmul.mubr.bf16.gmra.mrb[12].mxu1 %v1314_v0  ;;  %v382_v0 = vld [vmem:[#allocation2 + $0x30] sm:$0xff] }
 0x121   : > { %v1154_v1 = vpop.f32.mrb[0].mxu0 }
 0x122   : > { %v1194_v2 = vpop.f32.mrb[0].mxu1  ;;  %v1155_v3 = vpop.f32.mrb[1].mxu0 }
 0x123   : > { %v1156_v4 = vadd.f32 %v1155_v3, %v1154_v1  ;;  %v1195_v5 = vpop.f32.mrb[1].mxu1  ;;  %v1157_v6 = vpop.f32.mrb[2].mxu0 }
 0x124   : > { %v1196_v7 = vadd.f32 %v1195_v5, %v1194_v2  ;;  %v1197_v8 = vpop.f32.mrb[2].mxu1  ;;  %v1158_v9 = vpop.f32.mrb[3].mxu0  ;;  %v383_v5 = vld [vmem:[#allocation2 + $0x38] sm:$0xff] }
 0x125   : > { %v1159_v11 = vadd.f32 %v1158_v9, %v1157_v6  ;;  %v1198_v12 = vpop.f32.mrb[3].mxu1 }
 0x126   : > { %v836_v13 = vadd.f32 %v1196_v7, %v1156_v4  ;;  %v1199_v14 = vadd.f32 %v1198_v12, %v1197_v8 }
 0x128   : > { %v866_v16 = vadd.f32 %v836_v13, %v376_v10  ;;  %v839_v17 = vadd.f32 %v1199_v14, %v1159_v11  ;;  %v1132_v10 = vld [vmem:[%s1571_s2] ss:$0 sm:$0xff] (!%p1131_p11)  ;;  %v910_v14 = vld [vmem:[%s1572_s3 + $0x8] sm:$0xff] (!%p1131_p11) }
 0x129   : > { %v1160_v18 = vpop.f32.mrb[4].mxu0  ;;  %v909_v11 = vld [vmem:[%s1572_s3] sm:$0xff] (!%p1131_p11) }
 0x12a   : > { %874 = vst [vmem:[#allocation2] sm:$0xff] %v866_v16  ;;  %v867_v19 = vadd.f32 %v839_v17, %v377_v15  ;;  %v1200_v20 = vpop.f32.mrb[4].mxu1  ;;  %v1161_v21 = vpop.f32.mrb[5].mxu0 }
 0x12b   : > { %v1162_v22 = vadd.f32 %v1161_v21, %v1160_v18  ;;  %v1201_v23 = vpop.f32.mrb[5].mxu1  ;;  %v1163_v24 = vpop.f32.mrb[6].mxu0  ;;  %v911_v18 = vld [vmem:[%s1572_s3 + $0x10] sm:$0xff] (!%p1131_p11) }
 0x12c   : > { %875 = vst [vmem:[#allocation2 + $0x8] sm:$0xff] %v867_v19  ;;  %v1202_v25 = vadd.f32 %v1201_v23, %v1200_v20  ;;  %v1203_v26 = vpop.f32.mrb[6].mxu1  ;;  %v1164_v27 = vpop.f32.mrb[7].mxu0  ;;  %v912_v20 = vld [vmem:[%s1572_s3 + $0x18] sm:$0xff] (!%p1131_p11) }
 0x12d   : > { %v1165_v29 = vadd.f32 %v1164_v27, %v1163_v24  ;;  %v1204_v30 = vpop.f32.mrb[7].mxu1  ;;  %v913_v24 = vld [vmem:[%s1572_s3 + $0x20] sm:$0xff] (!%p1131_p11) }
 0x12e   : > { %v844_v31 = vadd.f32 %v1202_v25, %v1162_v22  ;;  %v1205_v32 = vadd.f32 %v1204_v30, %v1203_v26  ;;  %v914_v30 = vld [vmem:[%s1572_s3 + $0x28] sm:$0xff] (!%p1131_p11) }
 0x130   : > { %v868_v34 = vadd.f32 %v844_v31, %v378_v28  ;;  %v847_v35 = vadd.f32 %v1205_v32, %v1165_v29  ;;  %v915_v32 = vld [vmem:[%s1572_s3 + $0x30] sm:$0xff] (!%p1131_p11) }
 0x131   : > { %v1166_v36 = vpop.f32.mrb[8].mxu0  ;;  %v886_v9 = vld [vmem:[#allocation2] sm:$0xff] (!%p1131_p11) }
 0x132   : > { %876 = vst [vmem:[#allocation2 + $0x10] sm:$0xff] %v868_v34  ;;  %v869_v37 = vadd.f32 %v847_v35, %v379_v33  ;;  %v1206_v38 = vpop.f32.mrb[8].mxu1  ;;  %v1167_v39 = vpop.f32.mrb[9].mxu0  ;;  %v901_v12 = vadd.f32 (!%p1131_p11), %v1132_v10, %v886_v9 }
 0x133   : > { %v1168_v40 = vadd.f32 %v1167_v39, %v1166_v36  ;;  %v1207_v41 = vpop.f32.mrb[9].mxu1  ;;  %v1169_v42 = vpop.f32.mrb[10].mxu0  ;;  %v887_v13 = vld [vmem:[#allocation2 + $0x8] sm:$0xff] (!%p1131_p11) }
 0x134   : > { %877 = vst [vmem:[#allocation2 + $0x18] sm:$0xff] %v869_v37  ;;  %v1208_v43 = vadd.f32 %v1207_v41, %v1206_v38  ;;  %v1209_v44 = vpop.f32.mrb[10].mxu1  ;;  %v1170_v45 = vpop.f32.mrb[11].mxu0  ;;  %v902_v16 = vadd.f32 (!%p1131_p11), %v1132_v10, %v887_v13  ;;  %v917_v21 = vadd.f32 (!%p1131_p11), %v909_v11, %v901_v12  ;;  %v916_v41 = vld [vmem:[%s1572_s3 + $0x38] sm:$0xff] (!%p1131_p11) }
 0x135   : > { %v1171_v47 = vadd.f32 %v1170_v45, %v1169_v42  ;;  %v1210_v48 = vpop.f32.mrb[11].mxu1 }
 0x136   : > { %v852_v49 = vadd.f32 %v1208_v43, %v1168_v40  ;;  %v1211_v50 = vadd.f32 %v1210_v48, %v1209_v44  ;;  %v918_v26 = vadd.f32 (!%p1131_p11), %v910_v14, %v902_v16  ;;  %v925_v33 = vmax.f32 (!%p1131_p11), %v917_v21, 0.0 }
 0x138   : > { %v870_v52 = vadd.f32 %v852_v49, %v380_v46  ;;  %v855_v53 = vadd.f32 %v1211_v50, %v1171_v47  ;;  %v926_v37 = vmax.f32 (!%p1131_p11), %v918_v26, 0.0  ;;  %933 = vst [vmem:[%s1573_s4] sm:$0xff] (!%p1131_p11), %v925_v33 }
 0x139   : > { %v1172_v54 = vpop.f32.mrb[12].mxu0  ;;  %v888_v15 = vld [vmem:[#allocation2 + $0x10] sm:$0xff] (!%p1131_p11) }
 0x13a   : > { %878 = vst [vmem:[#allocation2 + $0x20] sm:$0xff] %v870_v52  ;;  %v871_v55 = vadd.f32 %v855_v53, %v381_v51  ;;  %v1212_v56 = vpop.f32.mrb[12].mxu1  ;;  %v1173_v57 = vpop.f32.mrb[13].mxu0  ;;  %v903_v17 = vadd.f32 (!%p1131_p11), %v1132_v10, %v888_v15  ;;  %934 = vst [vmem:[%s1573_s4 + $0x8] sm:$0xff] (!%p1131_p11), %v926_v37 }
 0x13b   : > { %v1174_v58 = vadd.f32 %v1173_v57, %v1172_v54  ;;  %v1213_v59 = vpop.f32.mrb[13].mxu1  ;;  %v1175_v60 = vpop.f32.mrb[14].mxu0  ;;  %v889_v19 = vld [vmem:[#allocation2 + $0x18] sm:$0xff] (!%p1131_p11) }
 0x13c   : > { %879 = vst [vmem:[#allocation2 + $0x28] sm:$0xff] %v871_v55  ;;  %v1214_v61 = vadd.f32 %v1213_v59, %v1212_v56  ;;  %v1215_v62 = vpop.f32.mrb[14].mxu1  ;;  %v1176_v63 = vpop.f32.mrb[15].mxu0  ;;  %v904_v22 = vadd.f32 (!%p1131_p11), %v1132_v10, %v889_v19  ;;  %v919_v27 = vadd.f32 (!%p1131_p11), %v911_v18, %v903_v17 }
 0x13d   : > { %v1177_v1 = vadd.f32 %v1176_v63, %v1175_v60  ;;  %v1216_v2 = vpop.f32.mrb[15].mxu1 }
 0x13e   : > { %v860_v3 = vadd.f32 %v1214_v61, %v1174_v58  ;;  %v1217_v4 = vadd.f32 %v1216_v2, %v1215_v62  ;;  %885 = sbr.rel (%p1131_p11) target bundleno = 339 (0x153), region = 67  ;;  %v920_v34 = vadd.f32 (!%p1131_p11), %v912_v20, %v904_v22  ;;  %v927_v38 = vmax.f32 (!%p1131_p11), %v919_v27, 0.0 }
 0x140   : > { %v872_v6 = vadd.f32 %v860_v3, %v382_v0  ;;  %v863_v7 = vadd.f32 %v1217_v4, %v1177_v1  ;;  %v928_v42 = vmax.f32 (!%p1131_p11), %v920_v34, 0.0  ;;  %935 = vst [vmem:[%s1573_s4 + $0x10] sm:$0xff] (!%p1131_p11), %v927_v38 }
 0x141   : > { %v890_v23 = vld [vmem:[#allocation2 + $0x20] sm:$0xff] (!%p1131_p11) }
 0x142   : > { %880 = vst [vmem:[#allocation2 + $0x30] sm:$0xff] %v872_v6  ;;  %v873_v8 = vadd.f32 %v863_v7, %v383_v5  ;;  %v905_v28 = vadd.f32 (!%p1131_p11), %v1132_v10, %v890_v23  ;;  %936 = vst [vmem:[%s1573_s4 + $0x18] sm:$0xff] (!%p1131_p11), %v928_v42 }
 0x143   : > { %v891_v25 = vld [vmem:[#allocation2 + $0x28] sm:$0xff] (!%p1131_p11) }
 0x144   : > { %881 = vst [vmem:[#allocation2 + $0x38] sm:$0xff] %v873_v8  ;;  %v906_v29 = vadd.f32 (!%p1131_p11), %v1132_v10, %v891_v25  ;;  %v921_v39 = vadd.f32 (!%p1131_p11), %v913_v24, %v905_v28 }
 0x146   : > { %v922_v40 = vadd.f32 %v914_v30, %v906_v29  ;;  %v929_v45 = vmax.f32 %v921_v39, 0.0 }
 0x148   : > { %v930_v46 = vmax.f32 %v922_v40, 0.0  ;;  %937 = vst [vmem:[%s1573_s4 + $0x20] sm:$0xff] %v929_v45 }
 0x149   : > { %v892_v31 = vld [vmem:[#allocation2 + $0x30] sm:$0xff] }
 0x14a   : > { %v907_v35 = vadd.f32 %v1132_v10, %v892_v31  ;;  %938 = vst [vmem:[%s1573_s4 + $0x28] sm:$0xff] %v930_v46 }
 0x14b   : > { %v893_v36 = vld [vmem:[#allocation2 + $0x38] sm:$0xff] }
 0x14c   : > { %v923_v43 = vadd.f32 %v915_v32, %v907_v35  ;;  %v908_v44 = vadd.f32 %v1132_v10, %v893_v36 }
 0x14e   : > { %v931_v47 = vmax.f32 %v923_v43, 0.0  ;;  %v924_v48 = vadd.f32 %v916_v41, %v908_v44 }
 0x150   : > { %939 = vst [vmem:[%s1573_s4 + $0x30] sm:$0xff] %v931_v47  ;;  %v932_v49 = vmax.f32 %v924_v48, 0.0 }
 0x152   : > { %940 = vst [vmem:[%s1573_s4 + $0x38] sm:$0xff] %v932_v49 }
 0x153 PF: > { %s14_s19 = sadd.s32 1, %s1353_s19   ;;  %s1574_s15 = smov %s1341_s16 }
 0x154   : > { %p11_p12 = scmp.ge.s32.totalorder %s14_s19, 4   ;;  %s1575_s16 = smov %s1416_s23 }
 0x155   : > { %s1576_s17 = smov %s1349_s18  ;;  %s1577_s18 = smov %s1579_s20 }
 0x156   :  { %13 = sbr.rel (!%p11_p12) target bundleno = 3 (0x3), region = 111 }

// kernel: resnet_forward.20
= control target key start
LH: loop header
LB: loop body
LE: loop exit
PB: predicated region body
PF: predicated region fallthrough
CT: control target
= control target key end

     0   :  { %s1109_s12 = smov 0   ;;  %s1111_s13 = smov 0   ;;  %s1235_s0 = inlined_call_operand.vmem [shape: bf16[32,1024], index: 0, kind: input, shape index: {}]   ;;  %s1236_s1 = inlined_call_operand.vmem [shape: bf16[1024,128], index: 1, kind: input, shape index: {}]   ;;  %s1237_s2 = inlined_call_operand.vmem [shape: f32[1,128], index: 2, kind: input, shape index: {}]   ;;  %s1238_s3 = inlined_call_operand.vmem [shape: f32[32,128], index: 3, kind: output, shape index: {}]  }
   0x1   :  { %s1113_s14 = smov 0   ;;  %s1115_s15 = smov 0  }
   0x2   :  { %s1117_s16 = smov 0  }
   0x3 LB: > { %s25_s17 = sadd.s32 1, %s1082_s15  ;;  %p48_p1 = scmp.ne.s32.totalorder %s1074_s13, %s1070_s12  ;;  %s1086_s16 = sphi %s1117_s16, %s13_s16   ;;  %s1082_s15 = sphi %s1115_s15, %s1242_s15   ;;  %s1078_s14 = sphi %s1113_s14, %s1241_s14   ;;  %s1074_s13 = sphi %s1111_s13, %s1240_s13   ;;  %s1070_s12 = sphi %s1109_s12, %s1239_s12  }
   0x4   : > { %p26_p0 = scmp.ge.s32.totalorder %s25_s17, 2  ;;  %p49_p2 = scmp.eq.s32.totalorder %s1086_s16, 0 }
   0x5   : > { %s41_s19 = sadd.s32 1, %s1074_s13  ;;  %p851_p5 = scmp.ge.s32.totalorder %s1086_s16, 2 }
   0x6   : > { %s1244_s17 = smov (%p26_p0, %s25_s17), 0  ;;  %p50_p3 = por %p49_p2, %p48_p1 }
   0x7   : > { %s37_s18 = ssub.s32 %s1082_s15, %s1244_s17  ;;  %162 = sbr.rel (%p851_p5) target bundleno = 22 (0x16), region = 20 }
   0x8   : > { %p39_p4 = scmp.eq.s32.totalorder %s37_s18, 0 }
   0xa   : > { %s1144_s20 = scalar_select %p39_p4, %s1074_s13, %s41_s19  }
   0xe   : > { %165 = sbr.rel (!%p50_p3) target bundleno = 22 (0x16), region = 24  ;;  %s167_s21 = sand.u32 (%p50_p3), 1, %s1074_s13  }
   0xf   : > { %s906_s22 = sshll.u32 (%p50_p3), %s1082_s15, 4  ;;  %s852_s23 = sshll.u32 (%p50_p3), %s167_s21, 6 }
  0x10   : > { %s175_s26 = scalar_lea.vmem (%p50_p3), %s1235_s0, %s906_s22  ;;  %s169_s27 = scalar_lea.vmem (%p50_p3), [#allocation3], %s852_s23 }
  0x11   : > { %v188_v0 = vld [vmem:[%s175_s26] sm:$0xff] (%p50_p3)  ;;  %v190_v1 = vld [vmem:[%s175_s26 + $0x8] sm:$0xff] (%p50_p3) }
  0x12   : > { %v192_v2 = vld [vmem:[%s175_s26 + $0x20] sm:$0xff] (%p50_p3)  ;;  %189 = vst [vmem:[%s169_s27] sm:$0xff] (%p50_p3), %v188_v0  ;;  %191 = vst [vmem:[%s169_s27 + $0x8] sm:$0xff] (%p50_p3), %v190_v1  ;;  %v194_v3 = vld [vmem:[%s175_s26 + $0x28] sm:$0xff] (%p50_p3) }
  0x13   : > { %193 = vst [vmem:[%s169_s27 + $0x10] sm:$0xff] (%p50_p3), %v192_v2  ;;  %v196_v4 = vld [vmem:[%s175_s26 + $0x40] sm:$0xff] (%p50_p3)  ;;  %v198_v5 = vld [vmem:[%s175_s26 + $0x48] sm:$0xff] (%p50_p3)  ;;  %195 = vst [vmem:[%s169_s27 + $0x18] sm:$0xff] (%p50_p3), %v194_v3 }
  0x14   : > { %197 = vst [vmem:[%s169_s27 + $0x20] sm:$0xff] (%p50_p3), %v196_v4  ;;  %199 = vst [vmem:[%s169_s27 + $0x28] sm:$0xff] (%p50_p3), %v198_v5  ;;  %v200_v6 = vld [vmem:[%s175_s26 + $0x60] sm:$0xff] (%p50_p3)  ;;  %v202_v7 = vld [vmem:[%s175_s26 + $0x68] sm:$0xff] (%p50_p3) }
  0x15   : > { %201 = vst [vmem:[%s169_s27 + $0x30] sm:$0xff] %v200_v6  ;;  %203 = vst [vmem:[%s169_s27 + $0x38] sm:$0xff] %v202_v7 }
  0x16 PF: > { %p855_p6 = scmp.ge.s32.totalorder %s1086_s16, 1  ;;  %p220_p7 = scmp.lt.s32.totalorder %s1086_s16, 3 }
  0x18   : > { %p221_p8 = pnand %p855_p6, %p220_p7 }
  0x19   : > { %s227_s28 = sand.u32 (!%p221_p8), 1, %s1070_s12   ;;  %s857_s29 = sshll.u32 (!%p221_p8), %s1078_s14, 6 }
  0x1a   : > { %224 = sbr.rel (%p221_p8) target bundleno = 317 (0x13d), region = 51  ;;  %s856_s30 = sshll.u32 (!%p221_p8), %s227_s28, 6 }
  0x1b   : > { %p267_p9 = scmp.lt.s32.totalorder (!%p221_p8), %s857_s29, 127  ;;  %s1161_s8 = scalar_lea.vmem (!%p221_p8), [#allocation3], %s856_s30 }
  0x1c   : > { %p859_p10 = scmp.ne.s32.totalorder (!%p221_p8), %s1078_s14, 0 }
  0x21   : > { %s1246_s29 = smov (!%p267_p9, %s857_s29), 127  ;;  %291 = sbr.rel (%p859_p10) target bundleno = 40 (0x28), region = 59 }
  0x22   : > { %s858_s4 = sshll.u32 %s1246_s29, 2  ;;  %v1088_v8 = vmov (!%p859_p10), 0.0  }
  0x23   : > { %s1159_s7 = scalar_lea.vmem %s1236_s1, %s858_s4  ;;  %292 = vst [vmem:[#allocation2] sm:$0xff] (!%p859_p10), %v1088_v8  ;;  %293 = vst [vmem:[#allocation2 + $0x8] sm:$0xff] (!%p859_p10), %v1088_v8 }
  0x24   : > { %294 = vst [vmem:[#allocation2 + $0x10] sm:$0xff] (!%p859_p10), %v1088_v8  ;;  %295 = vst [vmem:[#allocation2 + $0x18] sm:$0xff] (!%p859_p10), %v1088_v8 }
  0x28 PF: > { %v1004_v9 = vld [vmem:[%s1159_s7 + $0x40] sm:$0xff]   ;;  %v1008_v13 = vld [vmem:[%s1159_s7 + $0x48] sm:$0xff]   ;;  %v1012_v17 = vld [vmem:[%s1159_s7 + $0x50] sm:$0xff]   ;;  %p900_p11 = scmp.ne.s32.totalorder %s1078_s14, 1 }
  0x29   : > { %v1005_v10 = vld [vmem:[%s1159_s7 + $0xc0] sm:$0xff]   ;;  %907 = vmatprep.subr.bf16.mxu0 %v1004_v9  ;;  %v1009_v14 = vld [vmem:[%s1159_s7 + $0xc8] sm:$0xff]   ;;  %v1013_v18 = vld [vmem:[%s1159_s7 + $0xd0] sm:$0xff]  }
  0x2a   : > { %v1006_v11 = vld [vmem:[%s1159_s7] sm:$0xff]   ;;  %935 = vmatprep.subr.bf16.mxu1 %v1005_v10  ;;  %v1010_v15 = vld [vmem:[%s1159_s7 + $0x8] sm:$0xff]   ;;  %v1014_v19 = vld [vmem:[%s1159_s7 + $0x10] sm:$0xff]  }
  0x2b   : > { %v1007_v12 = vld [vmem:[%s1159_s7 + $0x80] sm:$0xff]   ;;  %908 = vmatpush3.bf16.msra.mxu0 %v1006_v11  ;;  %v1011_v16 = vld [vmem:[%s1159_s7 + $0x88] sm:$0xff]   ;;  %v1015_v20 = vld [vmem:[%s1159_s7 + $0x90] sm:$0xff]  }
  0x2c   : > { %936 = vmatpush3.bf16.msra.mxu1 %v1007_v12  ;;  %909 = vmatprep.subr.bf16.mxu0 %v1008_v13  ;;  %v1016_v21 = vld [vmem:[%s1159_s7 + $0x58] sm:$0xff]   ;;  %v1020_v25 = vld [vmem:[%s1159_s7 + $0x60] sm:$0xff]   ;;  %v1024_v29 = vld [vmem:[%s1159_s7 + $0x68] sm:$0xff]  }
  0x2d   : > { %937 = vmatprep.subr.bf16.mxu1 %v1009_v14  ;;  %v1017_v22 = vld [vmem:[%s1159_s7 + $0xd8] sm:$0xff]   ;;  %v1021_v26 = vld [vmem:[%s1159_s7 + $0xe0] sm:$0xff]   ;;  %v1025_v30 = vld [vmem:[%s1159_s7 + $0xe8] sm:$0xff]  }
  0x2e   : > { %v1018_v23 = vld [vmem:[%s1159_s7 + $0x18] sm:$0xff]   ;;  %v1022_v27 = vld [vmem:[%s1159_s7 + $0x20] sm:$0xff]   ;;  %v1026_v31 = vld [vmem:[%s1159_s7 + $0x28] sm:$0xff]  }
  0x2f   : > { %910 = vmatpush3.bf16.msra.mxu0 %v1010_v15  ;;  %v1019_v24 = vld [vmem:[%s1159_s7 + $0x98] sm:$0xff]   ;;  %v1023_v28 = vld [vmem:[%s1159_s7 + $0xa0] sm:$0xff]   ;;  %v1027_v32 = vld [vmem:[%s1159_s7 + $0xa8] sm:$0xff]  }
  0x30   : > { %938 = vmatpush3.bf16.msra.mxu1 %v1011_v16  ;;  %911 = vmatprep.subr.bf16.mxu0 %v1012_v17  ;;  %v1028_v33 = vld [vmem:[%s1159_s7 + $0x70] sm:$0xff]   ;;  %v1032_v37 = vld [vmem:[%s1159_s7 + $0x78] sm:$0xff]   ;;  %v296_v58 = vld [vmem:[#allocation2] sm:$0xff] }
  0x31   : > { %939 = vmatprep.subr.bf16.mxu1 %v1013_v18  ;;  %v1029_v34 = vld [vmem:[%s1159_s7 + $0xf0] sm:$0xff]   ;;  %v1033_v38 = vld [vmem:[%s1159_s7 + $0xf8] sm:$0xff]   ;;  %v297_v63 = vld [vmem:[#allocation2 + $0x8] sm:$0xff] }
  0x32   : > { %v1030_v35 = vld [vmem:[%s1159_s7 + $0x30] sm:$0xff]   ;;  %v1034_v39 = vld [vmem:[%s1159_s7 + $0x38] sm:$0xff]  }
  0x33   : > { %912 = vmatpush3.bf16.msra.mxu0 %v1014_v19  ;;  %v1031_v36 = vld [vmem:[%s1159_s7 + $0xb0] sm:$0xff]   ;;  %v1035_v40 = vld [vmem:[%s1159_s7 + $0xb8] sm:$0xff]  }
  0x34   : > { %940 = vmatpush3.bf16.msra.mxu1 %v1015_v20  ;;  %913 = vmatprep.subr.bf16.mxu0 %v1016_v21  ;;  %v1036_v41 = vld [vmem:[%s1161_s8] ss:$16 sps:$4 sm:$0xff]   ;;  %v1038_v42 = vld [vmem:[%s1161_s8 + $0x4] ss:$16 sps:$4 sm:$0xff]   ;;  %v1039_v43 = vld [vmem:[%s1161_s8 + $0x8] ss:$16 sps:$4 sm:$0xff]  }
  0x35   : > { %941 = vmatprep.subr.bf16.mxu1 %v1017_v22  ;;  %v1041_v44 = vld [vmem:[%s1161_s8 + $0xc] ss:$16 sps:$4 sm:$0xff]   ;;  %636 = vmatprep.mubr.bf16.mxu0 %v1038_v42  ;;  %v1042_v45 = vld [vmem:[%s1161_s8 + $0x24] ss:$16 sps:$4 sm:$0xff]   ;;  %v1046_v47 = vld [vmem:[%s1161_s8 + $0x20] ss:$16 sps:$4 sm:$0xff]  }
  0x36   : > { %685 = vmatprep.mubr.bf16.mxu1 %v1041_v44  ;;  %v1044_v46 = vld [vmem:[%s1161_s8 + $0x2c] ss:$16 sps:$4 sm:$0xff]   ;;  %v1047_v48 = vld [vmem:[%s1161_s8 + $0x28] ss:$16 sps:$4 sm:$0xff]   ;;  %v298_v12 = vld [vmem:[#allocation2 + $0x10] sm:$0xff] }
  0x37   : > { %914 = vmatpush3.bf16.msra.mxu0 %v1018_v23  ;;  %v299_v17 = vld [vmem:[#allocation2 + $0x18] sm:$0xff]  ;;  %v901_v22 = vld [vmem:[%s1237_s2] ss:$0 sm:$0xff] (!%p900_p11) }
  0x38   : > { %942 = vmatpush3.bf16.msra.mxu1 %v1019_v24  ;;  %915 = vmatprep.subr.bf16.mxu0 %v1020_v25 }
  0x39   : > { %943 = vmatprep.subr.bf16.mxu1 %v1021_v26 }
  0x3b   : > { %916 = vmatpush3.bf16.msra.mxu0 %v1022_v27 }
  0x3c   : > { %944 = vmatpush3.bf16.msra.mxu1 %v1023_v28  ;;  %917 = vmatprep.subr.bf16.mxu0 %v1024_v29 }
  0x3d   : > { %945 = vmatprep.subr.bf16.mxu1 %v1025_v30 }
  0x3f   : > { %918 = vmatpush3.bf16.msra.mxu0 %v1026_v31 }
  0x40   : > { %946 = vmatpush3.bf16.msra.mxu1 %v1027_v32  ;;  %919 = vmatprep.subr.bf16.mxu0 %v1028_v33 }
  0x41   : > { %947 = vmatprep.subr.bf16.mxu1 %v1029_v34 }
  0x43   : > { %920 = vmatpush3.bf16.msra.mxu0 %v1030_v35 }
  0x44   : > { %948 = vmatpush3.bf16.msra.mxu1 %v1031_v36  ;;  %921 = vmatprep.subr.bf16.mxu0 %v1032_v37 }
  0x45   : > { %949 = vmatprep.subr.bf16.mxu1 %v1033_v38 }
  0x47   : > { %922 = vmatpush3.bf16.msra.mxu0 %v1034_v39 }
  0x48   : > { %950 = vmatpush3.bf16.msra.mxu1 %v1035_v40 }
  0x4a   : > { %637 = vmatmul.mubr.bf16.vlgmr.msra.gmra.mrb[0].mxu0 %v1036_v41 }
  0x4b   : > { %686 = vmatmul.mubr.bf16.vlgmr.msra.gmra.mrb[0].mxu1 %v1039_v43  ;;  %644 = vmatprep.mubr.bf16.mxu0 %v1042_v45 }
  0x4c   : > { %693 = vmatprep.mubr.bf16.mxu1 %v1044_v46 }
  0x52   : > { %645 = vmatmul.mubr.bf16.gmra.mrb[4].mxu0 %v1046_v47 }
  0x53   : > { %694 = vmatmul.mubr.bf16.gmra.mrb[4].mxu1 %v1047_v48 }
 0x11d   : > { %v923_v49 = vpop.f32.mrb[0].mxu0 }
 0x11e   : > { %v951_v50 = vpop.f32.mrb[0].mxu1  ;;  %v924_v51 = vpop.f32.mrb[1].mxu0 }
 0x11f   : > { %v925_v52 = vadd.f32 %v924_v51, %v923_v49  ;;  %v952_v53 = vpop.f32.mrb[1].mxu1  ;;  %v926_v54 = vpop.f32.mrb[2].mxu0 }
 0x120   : > { %v953_v55 = vadd.f32 %v952_v53, %v951_v50  ;;  %v954_v56 = vpop.f32.mrb[2].mxu1  ;;  %v927_v57 = vpop.f32.mrb[3].mxu0 }
 0x121   : > { %v928_v59 = vadd.f32 %v927_v57, %v926_v54  ;;  %v955_v60 = vpop.f32.mrb[3].mxu1 }
 0x122   : > { %v688_v61 = vadd.f32 %v953_v55, %v925_v52  ;;  %v956_v62 = vadd.f32 %v955_v60, %v954_v56 }
 0x124   : > { %v702_v0 = vadd.f32 %v688_v61, %v296_v58  ;;  %v691_v1 = vadd.f32 %v956_v62, %v928_v59 }
 0x125   : > { %v929_v2 = vpop.f32.mrb[4].mxu0 }
 0x126   : > { %706 = vst [vmem:[#allocation2] sm:$0xff] %v702_v0  ;;  %v703_v3 = vadd.f32 %v691_v1, %v297_v63  ;;  %v957_v4 = vpop.f32.mrb[4].mxu1  ;;  %v930_v5 = vpop.f32.mrb[5].mxu0 }
 0x127   : > { %v931_v6 = vadd.f32 %v930_v5, %v929_v2  ;;  %v958_v7 = vpop.f32.mrb[5].mxu1  ;;  %v932_v8 = vpop.f32.mrb[6].mxu0 }
 0x128   : > { %707 = vst [vmem:[#allocation2 + $0x8] sm:$0xff] %v703_v3  ;;  %v959_v9 = vadd.f32 %v958_v7, %v957_v4  ;;  %v960_v10 = vpop.f32.mrb[6].mxu1  ;;  %v933_v11 = vpop.f32.mrb[7].mxu0 }
 0x129   : > { %v934_v13 = vadd.f32 %v933_v11, %v932_v8  ;;  %v961_v14 = vpop.f32.mrb[7].mxu1 }
 0x12a   : > { %v696_v15 = vadd.f32 %v959_v9, %v931_v6  ;;  %v962_v16 = vadd.f32 %v961_v14, %v960_v10  ;;  %713 = sbr.rel (%p900_p11) target bundleno = 317 (0x13d), region = 63 }
 0x12c   : > { %v704_v18 = vadd.f32 %v696_v15, %v298_v12  ;;  %v699_v19 = vadd.f32 %v962_v16, %v934_v13 }
 0x12d   : > { %v714_v21 = vld [vmem:[#allocation2] sm:$0xff] (!%p900_p11) }
 0x12e   : > { %708 = vst [vmem:[#allocation2 + $0x10] sm:$0xff] %v704_v18  ;;  %v705_v20 = vadd.f32 %v699_v19, %v299_v17  ;;  %v725_v24 = vadd.f32 (!%p900_p11), %v901_v22, %v714_v21 }
 0x12f   : > { %v715_v23 = vld [vmem:[#allocation2 + $0x8] sm:$0xff] (!%p900_p11) }
 0x130   : > { %709 = vst [vmem:[#allocation2 + $0x18] sm:$0xff] %v705_v20  ;;  %v726_v25 = vadd.f32 (!%p900_p11), %v901_v22, %v715_v23  ;;  %v729_v30 = vmax.f32 (!%p900_p11), %v725_v24, 0.0 }
 0x132   : > { %v730_v31 = vmax.f32 %v726_v25, 0.0  ;;  %733 = vst [vmem:[%s1238_s3] sm:$0xff] %v729_v30 }
 0x134   : > { %734 = vst [vmem:[%s1238_s3 + $0x8] sm:$0xff] %v730_v31 }
 0x135   : > { %v716_v26 = vld [vmem:[#allocation2 + $0x10] sm:$0xff] }
 0x136   : > { %v727_v28 = vadd.f32 %v901_v22, %v716_v26 }
 0x137   : > { %v717_v27 = vld [vmem:[#allocation2 + $0x18] sm:$0xff] }
 0x138   : > { %v728_v29 = vadd.f32 %v901_v22, %v717_v27  ;;  %v731_v32 = vmax.f32 %v727_v28, 0.0 }
 0x13a   : > { %v732_v33 = vmax.f32 %v728_v29, 0.0  ;;  %735 = vst [vmem:[%s1238_s3 + $0x10] sm:$0xff] %v731_v32 }
 0x13c   : > { %736 = vst [vmem:[%s1238_s3 + $0x18] sm:$0xff] %v732_v33 }
 0x13d PF: > { %s13_s16 = sadd.s32 1, %s1086_s16   ;;  %s1239_s12 = smov %s1074_s13 }
 0x13e   : > { %p10_p12 = scmp.ge.s32.totalorder %s13_s16, 4   ;;  %s1240_s13 = smov %s1144_s20 }
 0x13f   : > { %s1241_s14 = smov %s1082_s15  ;;  %s1242_s15 = smov %s1244_s17 }
 0x140   :  { %12 = sbr.rel (!%p10_p12) target bundleno = 3 (0x3), region = 104 }

// kernel: resnet_forward.19
= control target key start
LH: loop header
LB: loop body
LE: loop exit
PB: predicated region body
PF: predicated region fallthrough
CT: control target
= control target key end

     0   :  { %s1105_s12 = smov 0   ;;  %s1107_s13 = smov 0   ;;  %s1231_s0 = inlined_call_operand.vmem [shape: bf16[32,1024], index: 0, kind: input, shape index: {}]   ;;  %s1232_s1 = inlined_call_operand.vmem [shape: bf16[1024,128], index: 1, kind: input, shape index: {}]   ;;  %s1233_s2 = inlined_call_operand.vmem [shape: f32[1,128], index: 2, kind: input, shape index: {}]   ;;  %s1234_s3 = inlined_call_operand.vmem [shape: f32[32,128], index: 3, kind: output, shape index: {}]  }
   0x1   :  { %s1109_s14 = smov 0   ;;  %s1111_s15 = smov 0  }
   0x2   :  { %s1113_s16 = smov 0  }
   0x3 LB: > { %s25_s17 = sadd.s32 1, %s1078_s15  ;;  %p48_p1 = scmp.ne.s32.totalorder %s1070_s13, %s1066_s12  ;;  %s1082_s16 = sphi %s1113_s16, %s13_s16   ;;  %s1078_s15 = sphi %s1111_s15, %s1238_s15   ;;  %s1074_s14 = sphi %s1109_s14, %s1237_s14   ;;  %s1070_s13 = sphi %s1107_s13, %s1236_s13   ;;  %s1066_s12 = sphi %s1105_s12, %s1235_s12  }
   0x4   : > { %p26_p0 = scmp.ge.s32.totalorder %s25_s17, 2  ;;  %p49_p2 = scmp.eq.s32.totalorder %s1082_s16, 0 }
   0x5   : > { %s41_s19 = sadd.s32 1, %s1070_s13  ;;  %p847_p5 = scmp.ge.s32.totalorder %s1082_s16, 2 }
   0x6   : > { %s1240_s17 = smov (%p26_p0, %s25_s17), 0  ;;  %p50_p3 = por %p49_p2, %p48_p1 }
   0x7   : > { %s37_s18 = ssub.s32 %s1078_s15, %s1240_s17  ;;  %162 = sbr.rel (%p847_p5) target bundleno = 22 (0x16), region = 20 }
   0x8   : > { %p39_p4 = scmp.eq.s32.totalorder %s37_s18, 0 }
   0xa   : > { %s1140_s20 = scalar_select %p39_p4, %s1070_s13, %s41_s19  }
   0xe   : > { %165 = sbr.rel (!%p50_p3) target bundleno = 22 (0x16), region = 24  ;;  %s167_s21 = sand.u32 (%p50_p3), 1, %s1070_s13  }
   0xf   : > { %s902_s22 = sshll.u32 (%p50_p3), %s1078_s15, 4  ;;  %s848_s23 = sshll.u32 (%p50_p3), %s167_s21, 6 }
  0x10   : > { %s175_s26 = scalar_lea.vmem (%p50_p3), %s1231_s0, %s902_s22  ;;  %s169_s27 = scalar_lea.vmem (%p50_p3), [#allocation3], %s848_s23 }
  0x11   : > { %v188_v0 = vld [vmem:[%s175_s26] sm:$0xff] (%p50_p3)  ;;  %v190_v1 = vld [vmem:[%s175_s26 + $0x8] sm:$0xff] (%p50_p3) }
  0x12   : > { %v192_v2 = vld [vmem:[%s175_s26 + $0x20] sm:$0xff] (%p50_p3)  ;;  %189 = vst [vmem:[%s169_s27] sm:$0xff] (%p50_p3), %v188_v0  ;;  %191 = vst [vmem:[%s169_s27 + $0x8] sm:$0xff] (%p50_p3), %v190_v1  ;;  %v194_v3 = vld [vmem:[%s175_s26 + $0x28] sm:$0xff] (%p50_p3) }
  0x13   : > { %193 = vst [vmem:[%s169_s27 + $0x10] sm:$0xff] (%p50_p3), %v192_v2  ;;  %v196_v4 = vld [vmem:[%s175_s26 + $0x40] sm:$0xff] (%p50_p3)  ;;  %v198_v5 = vld [vmem:[%s175_s26 + $0x48] sm:$0xff] (%p50_p3)  ;;  %195 = vst [vmem:[%s169_s27 + $0x18] sm:$0xff] (%p50_p3), %v194_v3 }
  0x14   : > { %197 = vst [vmem:[%s169_s27 + $0x20] sm:$0xff] (%p50_p3), %v196_v4  ;;  %199 = vst [vmem:[%s169_s27 + $0x28] sm:$0xff] (%p50_p3), %v198_v5  ;;  %v200_v6 = vld [vmem:[%s175_s26 + $0x60] sm:$0xff] (%p50_p3)  ;;  %v202_v7 = vld [vmem:[%s175_s26 + $0x68] sm:$0xff] (%p50_p3) }
  0x15   : > { %201 = vst [vmem:[%s169_s27 + $0x30] sm:$0xff] %v200_v6  ;;  %203 = vst [vmem:[%s169_s27 + $0x38] sm:$0xff] %v202_v7 }
  0x16 PF: > { %p851_p6 = scmp.ge.s32.totalorder %s1082_s16, 1  ;;  %p220_p7 = scmp.lt.s32.totalorder %s1082_s16, 3 }
  0x18   : > { %p221_p8 = pnand %p851_p6, %p220_p7 }
  0x19   : > { %s227_s28 = sand.u32 (!%p221_p8), 1, %s1066_s12   ;;  %s853_s29 = sshll.u32 (!%p221_p8), %s1074_s14, 6 }
  0x1a   : > { %224 = sbr.rel (%p221_p8) target bundleno = 315 (0x13b), region = 51  ;;  %s852_s30 = sshll.u32 (!%p221_p8), %s227_s28, 6 }
  0x1b   : > { %p267_p9 = scmp.lt.s32.totalorder (!%p221_p8), %s853_s29, 127  ;;  %s1157_s8 = scalar_lea.vmem (!%p221_p8), [#allocation3], %s852_s30 }
  0x1c   : > { %p855_p10 = scmp.ne.s32.totalorder (!%p221_p8), %s1074_s14, 0 }
  0x21   : > { %s1242_s29 = smov (!%p267_p9, %s853_s29), 127  ;;  %291 = sbr.rel (%p855_p10) target bundleno = 40 (0x28), region = 59 }
  0x22   : > { %s854_s4 = sshll.u32 %s1242_s29, 2  ;;  %v1084_v8 = vmov (!%p855_p10), 0.0  }
  0x23   : > { %s1155_s7 = scalar_lea.vmem %s1232_s1, %s854_s4  ;;  %292 = vst [vmem:[#allocation2] sm:$0xff] (!%p855_p10), %v1084_v8  ;;  %293 = vst [vmem:[#allocation2 + $0x8] sm:$0xff] (!%p855_p10), %v1084_v8 }
  0x24   : > { %294 = vst [vmem:[#allocation2 + $0x10] sm:$0xff] (!%p855_p10), %v1084_v8  ;;  %295 = vst [vmem:[#allocation2 + $0x18] sm:$0xff] (!%p855_p10), %v1084_v8 }
  0x28 PF: > { %v1000_v9 = vld [vmem:[%s1155_s7 + $0x40] sm:$0xff]   ;;  %v1004_v13 = vld [vmem:[%s1155_s7 + $0x48] sm:$0xff]   ;;  %v1008_v17 = vld [vmem:[%s1155_s7 + $0x50] sm:$0xff]   ;;  %p896_p11 = scmp.ne.s32.totalorder %s1074_s14, 1 }
  0x29   : > { %v1001_v10 = vld [vmem:[%s1155_s7 + $0xc0] sm:$0xff]   ;;  %903 = vmatprep.subr.bf16.mxu0 %v1000_v9  ;;  %v1005_v14 = vld [vmem:[%s1155_s7 + $0xc8] sm:$0xff]   ;;  %v1009_v18 = vld [vmem:[%s1155_s7 + $0xd0] sm:$0xff]  }
  0x2a   : > { %v1002_v11 = vld [vmem:[%s1155_s7] sm:$0xff]   ;;  %931 = vmatprep.subr.bf16.mxu1 %v1001_v10  ;;  %v1006_v15 = vld [vmem:[%s1155_s7 + $0x8] sm:$0xff]   ;;  %v1010_v19 = vld [vmem:[%s1155_s7 + $0x10] sm:$0xff]  }
  0x2b   : > { %v1003_v12 = vld [vmem:[%s1155_s7 + $0x80] sm:$0xff]   ;;  %904 = vmatpush3.bf16.msra.mxu0 %v1002_v11  ;;  %v1007_v16 = vld [vmem:[%s1155_s7 + $0x88] sm:$0xff]   ;;  %v1011_v20 = vld [vmem:[%s1155_s7 + $0x90] sm:$0xff]  }
  0x2c   : > { %932 = vmatpush3.bf16.msra.mxu1 %v1003_v12  ;;  %905 = vmatprep.subr.bf16.mxu0 %v1004_v13  ;;  %v1012_v21 = vld [vmem:[%s1155_s7 + $0x58] sm:$0xff]   ;;  %v1016_v25 = vld [vmem:[%s1155_s7 + $0x60] sm:$0xff]   ;;  %v1020_v29 = vld [vmem:[%s1155_s7 + $0x68] sm:$0xff]  }
  0x2d   : > { %933 = vmatprep.subr.bf16.mxu1 %v1005_v14  ;;  %v1013_v22 = vld [vmem:[%s1155_s7 + $0xd8] sm:$0xff]   ;;  %v1017_v26 = vld [vmem:[%s1155_s7 + $0xe0] sm:$0xff]   ;;  %v1021_v30 = vld [vmem:[%s1155_s7 + $0xe8] sm:$0xff]  }
  0x2e   : > { %v1014_v23 = vld [vmem:[%s1155_s7 + $0x18] sm:$0xff]   ;;  %v1018_v27 = vld [vmem:[%s1155_s7 + $0x20] sm:$0xff]   ;;  %v1022_v31 = vld [vmem:[%s1155_s7 + $0x28] sm:$0xff]  }
  0x2f   : > { %906 = vmatpush3.bf16.msra.mxu0 %v1006_v15  ;;  %v1015_v24 = vld [vmem:[%s1155_s7 + $0x98] sm:$0xff]   ;;  %v1019_v28 = vld [vmem:[%s1155_s7 + $0xa0] sm:$0xff]   ;;  %v1023_v32 = vld [vmem:[%s1155_s7 + $0xa8] sm:$0xff]  }
  0x30   : > { %934 = vmatpush3.bf16.msra.mxu1 %v1007_v16  ;;  %907 = vmatprep.subr.bf16.mxu0 %v1008_v17  ;;  %v1024_v33 = vld [vmem:[%s1155_s7 + $0x70] sm:$0xff]   ;;  %v1028_v37 = vld [vmem:[%s1155_s7 + $0x78] sm:$0xff]   ;;  %v296_v58 = vld [vmem:[#allocation2] sm:$0xff] }
  0x31   : > { %935 = vmatprep.subr.bf16.mxu1 %v1009_v18  ;;  %v1025_v34 = vld [vmem:[%s1155_s7 + $0xf0] sm:$0xff]   ;;  %v1029_v38 = vld [vmem:[%s1155_s7 + $0xf8] sm:$0xff]   ;;  %v297_v63 = vld [vmem:[#allocation2 + $0x8] sm:$0xff] }
  0x32   : > { %v1026_v35 = vld [vmem:[%s1155_s7 + $0x30] sm:$0xff]   ;;  %v1030_v39 = vld [vmem:[%s1155_s7 + $0x38] sm:$0xff]  }
  0x33   : > { %908 = vmatpush3.bf16.msra.mxu0 %v1010_v19  ;;  %v1027_v36 = vld [vmem:[%s1155_s7 + $0xb0] sm:$0xff]   ;;  %v1031_v40 = vld [vmem:[%s1155_s7 + $0xb8] sm:$0xff]  }
  0x34   : > { %936 = vmatpush3.bf16.msra.mxu1 %v1011_v20  ;;  %909 = vmatprep.subr.bf16.mxu0 %v1012_v21  ;;  %v1032_v41 = vld [vmem:[%s1157_s8] ss:$16 sps:$4 sm:$0xff]   ;;  %v1034_v42 = vld [vmem:[%s1157_s8 + $0x4] ss:$16 sps:$4 sm:$0xff]   ;;  %v1035_v43 = vld [vmem:[%s1157_s8 + $0x8] ss:$16 sps:$4 sm:$0xff]  }
  0x35   : > { %937 = vmatprep.subr.bf16.mxu1 %v1013_v22  ;;  %v1037_v44 = vld [vmem:[%s1157_s8 + $0xc] ss:$16 sps:$4 sm:$0xff]   ;;  %636 = vmatprep.mubr.bf16.mxu0 %v1034_v42  ;;  %v1038_v45 = vld [vmem:[%s1157_s8 + $0x24] ss:$16 sps:$4 sm:$0xff]   ;;  %v1042_v47 = vld [vmem:[%s1157_s8 + $0x20] ss:$16 sps:$4 sm:$0xff]  }
  0x36   : > { %685 = vmatprep.mubr.bf16.mxu1 %v1037_v44  ;;  %v1040_v46 = vld [vmem:[%s1157_s8 + $0x2c] ss:$16 sps:$4 sm:$0xff]   ;;  %v1043_v48 = vld [vmem:[%s1157_s8 + $0x28] ss:$16 sps:$4 sm:$0xff]   ;;  %v298_v12 = vld [vmem:[#allocation2 + $0x10] sm:$0xff] }
  0x37   : > { %910 = vmatpush3.bf16.msra.mxu0 %v1014_v23  ;;  %v299_v17 = vld [vmem:[#allocation2 + $0x18] sm:$0xff]  ;;  %v897_v22 = vld [vmem:[%s1233_s2] ss:$0 sm:$0xff] (!%p896_p11) }
  0x38   : > { %938 = vmatpush3.bf16.msra.mxu1 %v1015_v24  ;;  %911 = vmatprep.subr.bf16.mxu0 %v1016_v25 }
  0x39   : > { %939 = vmatprep.subr.bf16.mxu1 %v1017_v26 }
  0x3b   : > { %912 = vmatpush3.bf16.msra.mxu0 %v1018_v27 }
  0x3c   : > { %940 = vmatpush3.bf16.msra.mxu1 %v1019_v28  ;;  %913 = vmatprep.subr.bf16.mxu0 %v1020_v29 }
  0x3d   : > { %941 = vmatprep.subr.bf16.mxu1 %v1021_v30 }
  0x3f   : > { %914 = vmatpush3.bf16.msra.mxu0 %v1022_v31 }
  0x40   : > { %942 = vmatpush3.bf16.msra.mxu1 %v1023_v32  ;;  %915 = vmatprep.subr.bf16.mxu0 %v1024_v33 }
  0x41   : > { %943 = vmatprep.subr.bf16.mxu1 %v1025_v34 }
  0x43   : > { %916 = vmatpush3.bf16.msra.mxu0 %v1026_v35 }
  0x44   : > { %944 = vmatpush3.bf16.msra.mxu1 %v1027_v36  ;;  %917 = vmatprep.subr.bf16.mxu0 %v1028_v37 }
  0x45   : > { %945 = vmatprep.subr.bf16.mxu1 %v1029_v38 }
  0x47   : > { %918 = vmatpush3.bf16.msra.mxu0 %v1030_v39 }
  0x48   : > { %946 = vmatpush3.bf16.msra.mxu1 %v1031_v40 }
  0x4a   : > { %637 = vmatmul.mubr.bf16.vlgmr.msra.gmra.mrb[0].mxu0 %v1032_v41 }
  0x4b   : > { %686 = vmatmul.mubr.bf16.vlgmr.msra.gmra.mrb[0].mxu1 %v1035_v43  ;;  %644 = vmatprep.mubr.bf16.mxu0 %v1038_v45 }
  0x4c   : > { %693 = vmatprep.mubr.bf16.mxu1 %v1040_v46 }
  0x52   : > { %645 = vmatmul.mubr.bf16.gmra.mrb[4].mxu0 %v1042_v47 }
  0x53   : > { %694 = vmatmul.mubr.bf16.gmra.mrb[4].mxu1 %v1043_v48 }
 0x11d   : > { %v919_v49 = vpop.f32.mrb[0].mxu0 }
 0x11e   : > { %v947_v50 = vpop.f32.mrb[0].mxu1  ;;  %v920_v51 = vpop.f32.mrb[1].mxu0 }
 0x11f   : > { %v921_v52 = vadd.f32 %v920_v51, %v919_v49  ;;  %v948_v53 = vpop.f32.mrb[1].mxu1  ;;  %v922_v54 = vpop.f32.mrb[2].mxu0 }
 0x120   : > { %v949_v55 = vadd.f32 %v948_v53, %v947_v50  ;;  %v950_v56 = vpop.f32.mrb[2].mxu1  ;;  %v923_v57 = vpop.f32.mrb[3].mxu0 }
 0x121   : > { %v924_v59 = vadd.f32 %v923_v57, %v922_v54  ;;  %v951_v60 = vpop.f32.mrb[3].mxu1 }
 0x122   : > { %v688_v61 = vadd.f32 %v949_v55, %v921_v52  ;;  %v952_v62 = vadd.f32 %v951_v60, %v950_v56 }
 0x124   : > { %v702_v0 = vadd.f32 %v688_v61, %v296_v58  ;;  %v691_v1 = vadd.f32 %v952_v62, %v924_v59 }
 0x125   : > { %v925_v2 = vpop.f32.mrb[4].mxu0 }
 0x126   : > { %706 = vst [vmem:[#allocation2] sm:$0xff] %v702_v0  ;;  %v703_v3 = vadd.f32 %v691_v1, %v297_v63  ;;  %v953_v4 = vpop.f32.mrb[4].mxu1  ;;  %v926_v5 = vpop.f32.mrb[5].mxu0 }
 0x127   : > { %v927_v6 = vadd.f32 %v926_v5, %v925_v2  ;;  %v954_v7 = vpop.f32.mrb[5].mxu1  ;;  %v928_v8 = vpop.f32.mrb[6].mxu0 }
 0x128   : > { %707 = vst [vmem:[#allocation2 + $0x8] sm:$0xff] %v703_v3  ;;  %v955_v9 = vadd.f32 %v954_v7, %v953_v4  ;;  %v956_v10 = vpop.f32.mrb[6].mxu1  ;;  %v929_v11 = vpop.f32.mrb[7].mxu0 }
 0x129   : > { %v930_v13 = vadd.f32 %v929_v11, %v928_v8  ;;  %v957_v14 = vpop.f32.mrb[7].mxu1 }
 0x12a   : > { %v696_v15 = vadd.f32 %v955_v9, %v927_v6  ;;  %v958_v16 = vadd.f32 %v957_v14, %v956_v10  ;;  %713 = sbr.rel (%p896_p11) target bundleno = 315 (0x13b), region = 63 }
 0x12c   : > { %v704_v18 = vadd.f32 %v696_v15, %v298_v12  ;;  %v699_v19 = vadd.f32 %v958_v16, %v930_v13 }
 0x12d   : > { %v714_v21 = vld [vmem:[#allocation2] sm:$0xff] (!%p896_p11) }
 0x12e   : > { %708 = vst [vmem:[#allocation2 + $0x10] sm:$0xff] %v704_v18  ;;  %v705_v20 = vadd.f32 %v699_v19, %v299_v17  ;;  %v725_v24 = vadd.f32 (!%p896_p11), %v897_v22, %v714_v21 }
 0x12f   : > { %v715_v23 = vld [vmem:[#allocation2 + $0x8] sm:$0xff] (!%p896_p11) }
 0x130   : > { %709 = vst [vmem:[#allocation2 + $0x18] sm:$0xff] %v705_v20  ;;  %v726_v25 = vadd.f32 (!%p896_p11), %v897_v22, %v715_v23  ;;  %729 = vst [vmem:[%s1234_s3] sm:$0xff] (!%p896_p11), %v725_v24 }
 0x132   : > { %730 = vst [vmem:[%s1234_s3 + $0x8] sm:$0xff] %v726_v25 }
 0x135   : > { %v716_v26 = vld [vmem:[#allocation2 + $0x10] sm:$0xff] }
 0x136   : > { %v727_v28 = vadd.f32 %v897_v22, %v716_v26 }
 0x137   : > { %v717_v27 = vld [vmem:[#allocation2 + $0x18] sm:$0xff] }
 0x138   : > { %v728_v29 = vadd.f32 %v897_v22, %v717_v27  ;;  %731 = vst [vmem:[%s1234_s3 + $0x10] sm:$0xff] %v727_v28 }
 0x13a   : > { %732 = vst [vmem:[%s1234_s3 + $0x18] sm:$0xff] %v728_v29 }
 0x13b PF: > { %s13_s16 = sadd.s32 1, %s1082_s16   ;;  %s1235_s12 = smov %s1070_s13 }
 0x13c   : > { %p10_p12 = scmp.ge.s32.totalorder %s13_s16, 4   ;;  %s1236_s13 = smov %s1140_s20 }
 0x13d   : > { %s1237_s14 = smov %s1078_s15  ;;  %s1238_s15 = smov %s1240_s17 }
 0x13e   :  { %12 = sbr.rel (!%p10_p12) target bundleno = 3 (0x3), region = 104 }

// kernel: resnet_forward.21
= control target key start
LH: loop header
LB: loop body
LE: loop exit
PB: predicated region body
PF: predicated region fallthrough
CT: control target
= control target key end

     0   :  { %s1201_s15 = smov 0   ;;  %s1203_s16 = smov 0   ;;  %s1339_s0 = inlined_call_operand.vmem [shape: bf16[32,1536], index: 0, kind: input, shape index: {}]   ;;  %s1340_s1 = inlined_call_operand.vmem [shape: bf16[1536,128], index: 1, kind: input, shape index: {}]   ;;  %s1341_s2 = inlined_call_operand.vmem [shape: f32[1,128], index: 2, kind: input, shape index: {}]   ;;  %s1342_s3 = inlined_call_operand.vmem [shape: f32[32,128], index: 3, kind: input, shape index: {}]   ;;  %s1343_s4 = inlined_call_operand.vmem [shape: f32[32,128], index: 4, kind: output, shape index: {}]  }
   0x1   :  { %s1205_s17 = smov 0   ;;  %s1207_s18 = smov 0  }
   0x2   :  { %s1209_s19 = smov 0  }
   0x3 LB: > { %s26_s20 = sadd.s32 1, %s1169_s18  ;;  %p49_p1 = scmp.ne.s32.totalorder %s1161_s16, %s1157_s15  ;;  %s1173_s19 = sphi %s1209_s19, %s14_s19   ;;  %s1169_s18 = sphi %s1207_s18, %s1347_s18   ;;  %s1165_s17 = sphi %s1205_s17, %s1346_s17   ;;  %s1161_s16 = sphi %s1203_s16, %s1345_s16   ;;  %s1157_s15 = sphi %s1201_s15, %s1344_s15  }
   0x4   : > { %p27_p0 = scmp.ge.s32.totalorder %s26_s20, 3  ;;  %p50_p2 = scmp.eq.s32.totalorder %s1173_s19, 0 }
   0x5   : > { %s42_s22 = sadd.s32 1, %s1161_s16  ;;  %p938_p5 = scmp.ge.s32.totalorder %s1173_s19, 3 }
   0x6   : > { %s1349_s20 = smov (%p27_p0, %s26_s20), 0  ;;  %p51_p3 = por %p50_p2, %p49_p1 }
   0x7   : > { %s38_s21 = ssub.s32 %s1169_s18, %s1349_s20  ;;  %203 = sbr.rel (%p938_p5) target bundleno = 22 (0x16), region = 24 }
   0x8   : > { %p40_p4 = scmp.eq.s32.totalorder %s38_s21, 0 }
   0xa   : > { %s1236_s23 = scalar_select %p40_p4, %s1161_s16, %s42_s22  }
   0xe   : > { %206 = sbr.rel (!%p51_p3) target bundleno = 22 (0x16), region = 28  ;;  %s208_s24 = sand.u32 (%p51_p3), 1, %s1161_s16  }
   0xf   : > { %s993_s25 = sshll.u32 (%p51_p3), %s1169_s18, 4  ;;  %s939_s26 = sshll.u32 (%p51_p3), %s208_s24, 6 }
  0x10   : > { %s216_s29 = scalar_lea.vmem (%p51_p3), %s1339_s0, %s993_s25  ;;  %s210_s30 = scalar_lea.vmem (%p51_p3), [#allocation3], %s939_s26 }
  0x11   : > { %v229_v0 = vld [vmem:[%s216_s29] sm:$0xff] (%p51_p3)  ;;  %v231_v1 = vld [vmem:[%s216_s29 + $0x8] sm:$0xff] (%p51_p3)  ;;  %v233_v2 = vld [vmem:[%s216_s29 + $0x30] sm:$0xff] (%p51_p3) }
  0x12   : > { %230 = vst [vmem:[%s210_s30] sm:$0xff] (%p51_p3), %v229_v0  ;;  %232 = vst [vmem:[%s210_s30 + $0x8] sm:$0xff] (%p51_p3), %v231_v1  ;;  %v235_v3 = vld [vmem:[%s216_s29 + $0x38] sm:$0xff] (%p51_p3)  ;;  %v237_v4 = vld [vmem:[%s216_s29 + $0x60] sm:$0xff] (%p51_p3) }
  0x13   : > { %234 = vst [vmem:[%s210_s30 + $0x10] sm:$0xff] (%p51_p3), %v233_v2  ;;  %v239_v5 = vld [vmem:[%s216_s29 + $0x68] sm:$0xff] (%p51_p3)  ;;  %236 = vst [vmem:[%s210_s30 + $0x18] sm:$0xff] (%p51_p3), %v235_v3  ;;  %v241_v6 = vld [vmem:[%s216_s29 + $0x90] sm:$0xff] (%p51_p3) }
  0x14   : > { %238 = vst [vmem:[%s210_s30 + $0x20] sm:$0xff] (%p51_p3), %v237_v4  ;;  %240 = vst [vmem:[%s210_s30 + $0x28] sm:$0xff] (%p51_p3), %v239_v5  ;;  %v243_v7 = vld [vmem:[%s216_s29 + $0x98] sm:$0xff] (%p51_p3) }
  0x15   : > { %242 = vst [vmem:[%s210_s30 + $0x30] sm:$0xff] %v241_v6  ;;  %244 = vst [vmem:[%s210_s30 + $0x38] sm:$0xff] %v243_v7 }
  0x16 PF: > { %p942_p6 = scmp.ge.s32.totalorder %s1173_s19, 1  ;;  %p261_p7 = scmp.lt.s32.totalorder %s1173_s19, 4 }
  0x18   : > { %p262_p8 = pnand %p942_p6, %p261_p7 }
  0x19   : > { %s268_s5 = sand.u32 (!%p262_p8), 1, %s1157_s15   ;;  %s944_s6 = sshll.u32 (!%p262_p8), %s1165_s17, 6 }
  0x1a   : > { %265 = sbr.rel (%p262_p8) target bundleno = 319 (0x13f), region = 55  ;;  %s943_s7 = sshll.u32 (!%p262_p8), %s268_s5, 6 }
  0x1b   : > { %p318_p9 = scmp.lt.s32.totalorder (!%p262_p8), %s944_s6, 191  ;;  %s1253_s12 = scalar_lea.vmem (!%p262_p8), [#allocation3], %s943_s7 }
  0x1c   : > { %p946_p10 = scmp.ne.s32.totalorder (!%p262_p8), %s1165_s17, 0 }
  0x21   : > { %s1351_s6 = smov (!%p318_p9, %s944_s6), 191  ;;  %351 = sbr.rel (%p946_p10) target bundleno = 40 (0x28), region = 63 }
  0x22   : > { %s945_s8 = sshll.u32 %s1351_s6, 2  ;;  %v1175_v8 = vmov (!%p946_p10), 0.0  }
  0x23   : > { %s1251_s11 = scalar_lea.vmem %s1340_s1, %s945_s8  ;;  %352 = vst [vmem:[#allocation2] sm:$0xff] (!%p946_p10), %v1175_v8  ;;  %353 = vst [vmem:[#allocation2 + $0x8] sm:$0xff] (!%p946_p10), %v1175_v8 }
  0x24   : > { %354 = vst [vmem:[#allocation2 + $0x10] sm:$0xff] (!%p946_p10), %v1175_v8  ;;  %355 = vst [vmem:[#allocation2 + $0x18] sm:$0xff] (!%p946_p10), %v1175_v8 }
  0x28 PF: > { %v1091_v9 = vld [vmem:[%s1251_s11 + $0x40] sm:$0xff]   ;;  %v1095_v13 = vld [vmem:[%s1251_s11 + $0x48] sm:$0xff]   ;;  %v1099_v17 = vld [vmem:[%s1251_s11 + $0x50] sm:$0xff]   ;;  %p987_p11 = scmp.ne.s32.totalorder %s1165_s17, 2 }
  0x29   : > { %v1092_v10 = vld [vmem:[%s1251_s11 + $0xc0] sm:$0xff]   ;;  %994 = vmatprep.subr.bf16.mxu0 %v1091_v9  ;;  %v1096_v14 = vld [vmem:[%s1251_s11 + $0xc8] sm:$0xff]   ;;  %v1100_v18 = vld [vmem:[%s1251_s11 + $0xd0] sm:$0xff]  }
  0x2a   : > { %v1093_v11 = vld [vmem:[%s1251_s11] sm:$0xff]   ;;  %1022 = vmatprep.subr.bf16.mxu1 %v1092_v10  ;;  %v1097_v15 = vld [vmem:[%s1251_s11 + $0x8] sm:$0xff]   ;;  %v1101_v19 = vld [vmem:[%s1251_s11 + $0x10] sm:$0xff]  }
  0x2b   : > { %v1094_v12 = vld [vmem:[%s1251_s11 + $0x80] sm:$0xff]   ;;  %995 = vmatpush3.bf16.msra.mxu0 %v1093_v11  ;;  %v1098_v16 = vld [vmem:[%s1251_s11 + $0x88] sm:$0xff]   ;;  %v1102_v20 = vld [vmem:[%s1251_s11 + $0x90] sm:$0xff]  }
  0x2c   : > { %1023 = vmatpush3.bf16.msra.mxu1 %v1094_v12  ;;  %996 = vmatprep.subr.bf16.mxu0 %v1095_v13  ;;  %v1103_v21 = vld [vmem:[%s1251_s11 + $0x58] sm:$0xff]   ;;  %v1107_v25 = vld [vmem:[%s1251_s11 + $0x60] sm:$0xff]   ;;  %v1111_v29 = vld [vmem:[%s1251_s11 + $0x68] sm:$0xff]  }
  0x2d   : > { %1024 = vmatprep.subr.bf16.mxu1 %v1096_v14  ;;  %v1104_v22 = vld [vmem:[%s1251_s11 + $0xd8] sm:$0xff]   ;;  %v1108_v26 = vld [vmem:[%s1251_s11 + $0xe0] sm:$0xff]   ;;  %v1112_v30 = vld [vmem:[%s1251_s11 + $0xe8] sm:$0xff]  }
  0x2e   : > { %v1105_v23 = vld [vmem:[%s1251_s11 + $0x18] sm:$0xff]   ;;  %v1109_v27 = vld [vmem:[%s1251_s11 + $0x20] sm:$0xff]   ;;  %v1113_v31 = vld [vmem:[%s1251_s11 + $0x28] sm:$0xff]  }
  0x2f   : > { %997 = vmatpush3.bf16.msra.mxu0 %v1097_v15  ;;  %v1106_v24 = vld [vmem:[%s1251_s11 + $0x98] sm:$0xff]   ;;  %v1110_v28 = vld [vmem:[%s1251_s11 + $0xa0] sm:$0xff]   ;;  %v1114_v32 = vld [vmem:[%s1251_s11 + $0xa8] sm:$0xff]  }
  0x30   : > { %1025 = vmatpush3.bf16.msra.mxu1 %v1098_v16  ;;  %998 = vmatprep.subr.bf16.mxu0 %v1099_v17  ;;  %v1115_v33 = vld [vmem:[%s1251_s11 + $0x70] sm:$0xff]   ;;  %v1119_v37 = vld [vmem:[%s1251_s11 + $0x78] sm:$0xff]   ;;  %v356_v58 = vld [vmem:[#allocation2] sm:$0xff] }
  0x31   : > { %1026 = vmatprep.subr.bf16.mxu1 %v1100_v18  ;;  %v1116_v34 = vld [vmem:[%s1251_s11 + $0xf0] sm:$0xff]   ;;  %v1120_v38 = vld [vmem:[%s1251_s11 + $0xf8] sm:$0xff]   ;;  %v357_v63 = vld [vmem:[#allocation2 + $0x8] sm:$0xff] }
  0x32   : > { %v1117_v35 = vld [vmem:[%s1251_s11 + $0x30] sm:$0xff]   ;;  %v1121_v39 = vld [vmem:[%s1251_s11 + $0x38] sm:$0xff]  }
  0x33   : > { %999 = vmatpush3.bf16.msra.mxu0 %v1101_v19  ;;  %v1118_v36 = vld [vmem:[%s1251_s11 + $0xb0] sm:$0xff]   ;;  %v1122_v40 = vld [vmem:[%s1251_s11 + $0xb8] sm:$0xff]  }
  0x34   : > { %1027 = vmatpush3.bf16.msra.mxu1 %v1102_v20  ;;  %1000 = vmatprep.subr.bf16.mxu0 %v1103_v21  ;;  %v1123_v41 = vld [vmem:[%s1253_s12] ss:$16 sps:$4 sm:$0xff]   ;;  %v1125_v42 = vld [vmem:[%s1253_s12 + $0x4] ss:$16 sps:$4 sm:$0xff]   ;;  %v1126_v43 = vld [vmem:[%s1253_s12 + $0x8] ss:$16 sps:$4 sm:$0xff]  }
  0x35   : > { %1028 = vmatprep.subr.bf16.mxu1 %v1104_v22  ;;  %v1128_v44 = vld [vmem:[%s1253_s12 + $0xc] ss:$16 sps:$4 sm:$0xff]   ;;  %696 = vmatprep.mubr.bf16.mxu0 %v1125_v42  ;;  %v1129_v45 = vld [vmem:[%s1253_s12 + $0x24] ss:$16 sps:$4 sm:$0xff]   ;;  %v1133_v47 = vld [vmem:[%s1253_s12 + $0x20] ss:$16 sps:$4 sm:$0xff]  }
  0x36   : > { %745 = vmatprep.mubr.bf16.mxu1 %v1128_v44  ;;  %v1131_v46 = vld [vmem:[%s1253_s12 + $0x2c] ss:$16 sps:$4 sm:$0xff]   ;;  %v1134_v48 = vld [vmem:[%s1253_s12 + $0x28] ss:$16 sps:$4 sm:$0xff]   ;;  %v358_v12 = vld [vmem:[#allocation2 + $0x10] sm:$0xff] }
  0x37   : > { %1001 = vmatpush3.bf16.msra.mxu0 %v1105_v23  ;;  %v359_v17 = vld [vmem:[#allocation2 + $0x18] sm:$0xff]  ;;  %v988_v22 = vld [vmem:[%s1341_s2] ss:$0 sm:$0xff] (!%p987_p11) }
  0x38   : > { %1029 = vmatpush3.bf16.msra.mxu1 %v1106_v24  ;;  %1002 = vmatprep.subr.bf16.mxu0 %v1107_v25  ;;  %v789_v23 = vld [vmem:[%s1342_s3] sm:$0xff] (!%p987_p11) }
  0x39   : > { %1030 = vmatprep.subr.bf16.mxu1 %v1108_v26  ;;  %v790_v26 = vld [vmem:[%s1342_s3 + $0x8] sm:$0xff] (!%p987_p11) }
  0x3b   : > { %1003 = vmatpush3.bf16.msra.mxu0 %v1109_v27 }
  0x3c   : > { %1031 = vmatpush3.bf16.msra.mxu1 %v1110_v28  ;;  %1004 = vmatprep.subr.bf16.mxu0 %v1111_v29 }
  0x3d   : > { %1032 = vmatprep.subr.bf16.mxu1 %v1112_v30  ;;  %v791_v30 = vld [vmem:[%s1342_s3 + $0x10] sm:$0xff] (!%p987_p11) }
  0x3f   : > { %1005 = vmatpush3.bf16.msra.mxu0 %v1113_v31 }
  0x40   : > { %1033 = vmatpush3.bf16.msra.mxu1 %v1114_v32  ;;  %1006 = vmatprep.subr.bf16.mxu0 %v1115_v33  ;;  %v792_v32 = vld [vmem:[%s1342_s3 + $0x18] sm:$0xff] (!%p987_p11) }
  0x41   : > { %1034 = vmatprep.subr.bf16.mxu1 %v1116_v34 }
  0x43   : > { %1007 = vmatpush3.bf16.msra.mxu0 %v1117_v35 }
  0x44   : > { %1035 = vmatpush3.bf16.msra.mxu1 %v1118_v36  ;;  %1008 = vmatprep.subr.bf16.mxu0 %v1119_v37 }
  0x45   : > { %1036 = vmatprep.subr.bf16.mxu1 %v1120_v38 }
  0x47   : > { %1009 = vmatpush3.bf16.msra.mxu0 %v1121_v39 }
  0x48   : > { %1037 = vmatpush3.bf16.msra.mxu1 %v1122_v40 }
  0x4a   : > { %697 = vmatmul.mubr.bf16.vlgmr.msra.gmra.mrb[0].mxu0 %v1123_v41 }
  0x4b   : > { %746 = vmatmul.mubr.bf16.vlgmr.msra.gmra.mrb[0].mxu1 %v1126_v43  ;;  %704 = vmatprep.mubr.bf16.mxu0 %v1129_v45 }
  0x4c   : > { %753 = vmatprep.mubr.bf16.mxu1 %v1131_v46 }
  0x52   : > { %705 = vmatmul.mubr.bf16.gmra.mrb[4].mxu0 %v1133_v47 }
  0x53   : > { %754 = vmatmul.mubr.bf16.gmra.mrb[4].mxu1 %v1134_v48 }
 0x11d   : > { %v1010_v49 = vpop.f32.mrb[0].mxu0 }
 0x11e   : > { %v1038_v50 = vpop.f32.mrb[0].mxu1  ;;  %v1011_v51 = vpop.f32.mrb[1].mxu0 }
 0x11f   : > { %v1012_v52 = vadd.f32 %v1011_v51, %v1010_v49  ;;  %v1039_v53 = vpop.f32.mrb[1].mxu1  ;;  %v1013_v54 = vpop.f32.mrb[2].mxu0 }
 0x120   : > { %v1040_v55 = vadd.f32 %v1039_v53, %v1038_v50  ;;  %v1041_v56 = vpop.f32.mrb[2].mxu1  ;;  %v1014_v57 = vpop.f32.mrb[3].mxu0 }
 0x121   : > { %v1015_v59 = vadd.f32 %v1014_v57, %v1013_v54  ;;  %v1042_v60 = vpop.f32.mrb[3].mxu1 }
 0x122   : > { %v748_v61 = vadd.f32 %v1040_v55, %v1012_v52  ;;  %v1043_v62 = vadd.f32 %v1042_v60, %v1041_v56 }
 0x124   : > { %v762_v0 = vadd.f32 %v748_v61, %v356_v58  ;;  %v751_v1 = vadd.f32 %v1043_v62, %v1015_v59 }
 0x125   : > { %v1016_v2 = vpop.f32.mrb[4].mxu0 }
 0x126   : > { %766 = vst [vmem:[#allocation2] sm:$0xff] %v762_v0  ;;  %v763_v3 = vadd.f32 %v751_v1, %v357_v63  ;;  %v1044_v4 = vpop.f32.mrb[4].mxu1  ;;  %v1017_v5 = vpop.f32.mrb[5].mxu0 }
 0x127   : > { %v1018_v6 = vadd.f32 %v1017_v5, %v1016_v2  ;;  %v1045_v7 = vpop.f32.mrb[5].mxu1  ;;  %v1019_v8 = vpop.f32.mrb[6].mxu0 }
 0x128   : > { %767 = vst [vmem:[#allocation2 + $0x8] sm:$0xff] %v763_v3  ;;  %v1046_v9 = vadd.f32 %v1045_v7, %v1044_v4  ;;  %v1047_v10 = vpop.f32.mrb[6].mxu1  ;;  %v1020_v11 = vpop.f32.mrb[7].mxu0 }
 0x129   : > { %v1021_v13 = vadd.f32 %v1020_v11, %v1019_v8  ;;  %v1048_v14 = vpop.f32.mrb[7].mxu1 }
 0x12a   : > { %v756_v15 = vadd.f32 %v1046_v9, %v1018_v6  ;;  %v1049_v16 = vadd.f32 %v1048_v14, %v1047_v10  ;;  %773 = sbr.rel (%p987_p11) target bundleno = 319 (0x13f), region = 67 }
 0x12c   : > { %v764_v18 = vadd.f32 %v756_v15, %v358_v12  ;;  %v759_v19 = vadd.f32 %v1049_v16, %v1021_v13 }
 0x12d   : > { %v774_v21 = vld [vmem:[#allocation2] sm:$0xff] (!%p987_p11) }
 0x12e   : > { %768 = vst [vmem:[#allocation2 + $0x10] sm:$0xff] %v764_v18  ;;  %v765_v20 = vadd.f32 %v759_v19, %v359_v17  ;;  %v785_v24 = vadd.f32 (!%p987_p11), %v988_v22, %v774_v21 }
 0x12f   : > { %v775_v25 = vld [vmem:[#allocation2 + $0x8] sm:$0xff] (!%p987_p11) }
 0x130   : > { %769 = vst [vmem:[#allocation2 + $0x18] sm:$0xff] %v765_v20  ;;  %v786_v28 = vadd.f32 (!%p987_p11), %v988_v22, %v775_v25  ;;  %v793_v33 = vadd.f32 (!%p987_p11), %v789_v23, %v785_v24 }
 0x132   : > { %v794_v35 = vadd.f32 %v790_v26, %v786_v28  ;;  %v797_v37 = vmax.f32 %v793_v33, 0.0 }
 0x134   : > { %v798_v39 = vmax.f32 %v794_v35, 0.0  ;;  %801 = vst [vmem:[%s1343_s4] sm:$0xff] %v797_v37 }
 0x135   : > { %v776_v27 = vld [vmem:[#allocation2 + $0x10] sm:$0xff] }
 0x136   : > { %v787_v29 = vadd.f32 %v988_v22, %v776_v27  ;;  %802 = vst [vmem:[%s1343_s4 + $0x8] sm:$0xff] %v798_v39 }
 0x137   : > { %v777_v31 = vld [vmem:[#allocation2 + $0x18] sm:$0xff] }
 0x138   : > { %v788_v34 = vadd.f32 %v988_v22, %v777_v31  ;;  %v795_v36 = vadd.f32 %v791_v30, %v787_v29 }
 0x13a   : > { %v796_v38 = vadd.f32 %v792_v32, %v788_v34  ;;  %v799_v40 = vmax.f32 %v795_v36, 0.0 }
 0x13c   : > { %v800_v41 = vmax.f32 %v796_v38, 0.0  ;;  %803 = vst [vmem:[%s1343_s4 + $0x10] sm:$0xff] %v799_v40 }
 0x13e   : > { %804 = vst [vmem:[%s1343_s4 + $0x18] sm:$0xff] %v800_v41 }
 0x13f PF: > { %s14_s19 = sadd.s32 1, %s1173_s19   ;;  %s1344_s15 = smov %s1161_s16 }
 0x140   : > { %p11_p12 = scmp.ge.s32.totalorder %s14_s19, 5   ;;  %s1345_s16 = smov %s1236_s23 }
 0x141   : > { %s1346_s17 = smov %s1169_s18  ;;  %s1347_s18 = smov %s1349_s20 }
 0x142   :  { %13 = sbr.rel (!%p11_p12) target bundleno = 3 (0x3), region = 111 }

// kernel: resnet_forward.23
= control target key start
LH: loop header
LB: loop body
LE: loop exit
PB: predicated region body
PF: predicated region fallthrough
CT: control target
= control target key end

     0   :  { %s1262_s12 = smov 0   ;;  %s1264_s13 = smov 0   ;;  %s1416_s0 = inlined_call_operand.vmem [shape: bf16[16,1536], index: 0, kind: input, shape index: {}]   ;;  %s1417_s1 = inlined_call_operand.vmem [shape: bf16[1536,256], index: 1, kind: input, shape index: {}]   ;;  %s1418_s2 = inlined_call_operand.vmem [shape: f32[1,256], index: 2, kind: input, shape index: {}]   ;;  %s1419_s3 = inlined_call_operand.vmem [shape: f32[16,256], index: 3, kind: output, shape index: {}]  }
   0x1   :  { %s1266_s14 = smov 0   ;;  %s1268_s15 = smov 0  }
   0x2   :  { %s1270_s16 = smov 0  }
   0x3 LB: > { %s25_s17 = sadd.s32 1, %s1235_s15  ;;  %p48_p1 = scmp.ne.s32.totalorder %s1227_s13, %s1223_s12  ;;  %s1239_s16 = sphi %s1270_s16, %s13_s16   ;;  %s1235_s15 = sphi %s1268_s15, %s1423_s15   ;;  %s1231_s14 = sphi %s1266_s14, %s1422_s14   ;;  %s1227_s13 = sphi %s1264_s13, %s1421_s13   ;;  %s1223_s12 = sphi %s1262_s12, %s1420_s12  }
   0x4   : > { %p26_p0 = scmp.ge.s32.totalorder %s25_s17, 3  ;;  %p49_p2 = scmp.eq.s32.totalorder %s1239_s16, 0 }
   0x5   : > { %s41_s19 = sadd.s32 1, %s1227_s13  ;;  %p969_p5 = scmp.ge.s32.totalorder %s1239_s16, 3 }
   0x6   : > { %s1425_s17 = smov (%p26_p0, %s25_s17), 0  ;;  %p50_p3 = por %p49_p2, %p48_p1 }
   0x7   : > { %s37_s18 = ssub.s32 %s1235_s15, %s1425_s17  ;;  %164 = sbr.rel (%p969_p5) target bundleno = 21 (0x15), region = 20 }
   0x8   : > { %p39_p4 = scmp.eq.s32.totalorder %s37_s18, 0 }
   0xa   : > { %s1297_s20 = scalar_select %p39_p4, %s1227_s13, %s41_s19  }
   0xe   : > { %167 = sbr.rel (!%p50_p3) target bundleno = 21 (0x15), region = 24  ;;  %s169_s21 = sand.u32 (%p50_p3), 1, %s1227_s13  }
   0xf   : > { %s1052_s22 = sshll.u32 (%p50_p3), %s1235_s15, 4  ;;  %s970_s23 = sshll.u32 (%p50_p3), %s169_s21, 5 }
  0x10   : > { %s177_s26 = scalar_lea.vmem (%p50_p3), %s1416_s0, %s1052_s22  ;;  %s171_s27 = scalar_lea.vmem (%p50_p3), [#allocation3], %s970_s23 }
  0x11   : > { %v190_v0 = vld [vmem:[%s177_s26] sm:$0xff] (%p50_p3)  ;;  %v192_v1 = vld [vmem:[%s177_s26 + $0x8] sm:$0xff] (%p50_p3)  ;;  %v194_v2 = vld [vmem:[%s177_s26 + $0x30] sm:$0xff] (%p50_p3) }
  0x12   : > { %191 = vst [vmem:[%s171_s27] sm:$0xff] (%p50_p3), %v190_v0  ;;  %193 = vst [vmem:[%s171_s27 + $0x8] sm:$0xff] (%p50_p3), %v192_v1  ;;  %v196_v3 = vld [vmem:[%s177_s26 + $0x38] sm:$0xff] (%p50_p3) }
  0x13   : > { %195 = vst [vmem:[%s171_s27 + $0x10] sm:$0xff] (%p50_p3), %v194_v2  ;;  %197 = vst [vmem:[%s171_s27 + $0x18] sm:$0xff] (%p50_p3), %v196_v3 }
  0x15 PF: > { %p973_p6 = scmp.ge.s32.totalorder %s1239_s16, 1  ;;  %p217_p7 = scmp.lt.s32.totalorder %s1239_s16, 4 }
  0x17   : > { %p218_p8 = pnand %p973_p6, %p217_p7 }
  0x18   : > { %s224_s28 = sand.u32 (!%p218_p8), 1, %s1223_s12   ;;  %s975_s29 = sshll.u32 (!%p218_p8), %s1231_s14, 6 }
  0x19   : > { %221 = sbr.rel (%p218_p8) target bundleno = 337 (0x151), region = 51  ;;  %s974_s30 = sshll.u32 (!%p218_p8), %s224_s28, 5 }
  0x1a   : > { %p270_p9 = scmp.lt.s32.totalorder (!%p218_p8), %s975_s29, 191  ;;  %s1314_s8 = scalar_lea.vmem (!%p218_p8), [#allocation3], %s974_s30 }
  0x1b   : > { %p978_p10 = scmp.ne.s32.totalorder (!%p218_p8), %s1231_s14, 0 }
  0x20   : > { %s1427_s29 = smov (!%p270_p9, %s975_s29), 191  ;;  %300 = sbr.rel (%p978_p10) target bundleno = 39 (0x27), region = 59 }
  0x21   : > { %s1053_s4 = sshll.u32 %s1427_s29, 3  ;;  %v1241_v4 = vmov (!%p978_p10), 0.0  }
  0x22   : > { %s1312_s7 = scalar_lea.vmem %s1417_s1, %s1053_s4  ;;  %301 = vst [vmem:[#allocation2] sm:$0xff] (!%p978_p10), %v1241_v4  ;;  %302 = vst [vmem:[#allocation2 + $0x8] sm:$0xff] (!%p978_p10), %v1241_v4 }
  0x23   : > { %303 = vst [vmem:[#allocation2 + $0x10] sm:$0xff] (!%p978_p10), %v1241_v4  ;;  %304 = vst [vmem:[#allocation2 + $0x18] sm:$0xff] (!%p978_p10), %v1241_v4 }
  0x27 PF: > { %v1099_v5 = vld [vmem:[%s1312_s7 + $0x4] ss:$8 sps:$4 sm:$0xff]   ;;  %v1103_v7 = vld [vmem:[%s1312_s7] ss:$8 sps:$4 sm:$0xff]   ;;  %v1105_v9 = vld [vmem:[%s1312_s7 + $0x14] ss:$8 sps:$4 sm:$0xff]  }
  0x28   : > { %v1101_v6 = vld [vmem:[%s1312_s7 + $0x104] ss:$8 sps:$4 sm:$0xff]   ;;  %717 = vmatprep.subr.bf16.mxu1 %v1099_v5  ;;  %v1104_v8 = vld [vmem:[%s1312_s7 + $0x100] ss:$8 sps:$4 sm:$0xff]   ;;  %v1107_v10 = vld [vmem:[%s1312_s7 + $0x114] ss:$8 sps:$4 sm:$0xff]  }
  0x29   : > { %760 = vmatprep.subr.bf16.mxu0 %v1101_v6  ;;  %718 = vmatpush1.bf16.msra.mxu1 %v1103_v7  ;;  %v1109_v11 = vld [vmem:[%s1312_s7 + $0x10] ss:$8 sps:$4 sm:$0xff]   ;;  %v1111_v13 = vld [vmem:[%s1312_s7 + $0x24] ss:$8 sps:$4 sm:$0xff]   ;;  %v1115_v15 = vld [vmem:[%s1312_s7 + $0x20] ss:$8 sps:$4 sm:$0xff]  }
  0x2a   : > { %761 = vmatpush1.bf16.msra.mxu0 %v1104_v8  ;;  %719 = vmatprep.subr.bf16.mxu1 %v1105_v9  ;;  %v1110_v12 = vld [vmem:[%s1312_s7 + $0x110] ss:$8 sps:$4 sm:$0xff]   ;;  %v1113_v14 = vld [vmem:[%s1312_s7 + $0x124] ss:$8 sps:$4 sm:$0xff]   ;;  %v1116_v16 = vld [vmem:[%s1312_s7 + $0x120] ss:$8 sps:$4 sm:$0xff]  }
  0x2b   : > { %762 = vmatprep.subr.bf16.mxu0 %v1107_v10  ;;  %v1117_v17 = vld [vmem:[%s1312_s7 + $0x34] ss:$8 sps:$4 sm:$0xff]   ;;  %v1121_v19 = vld [vmem:[%s1312_s7 + $0x30] ss:$8 sps:$4 sm:$0xff]   ;;  %v1123_v21 = vld [vmem:[%s1312_s7 + $0x44] ss:$8 sps:$4 sm:$0xff]  }
  0x2c   : > { %v1119_v18 = vld [vmem:[%s1312_s7 + $0x134] ss:$8 sps:$4 sm:$0xff]   ;;  %v1122_v20 = vld [vmem:[%s1312_s7 + $0x130] ss:$8 sps:$4 sm:$0xff]   ;;  %v1125_v22 = vld [vmem:[%s1312_s7 + $0x144] ss:$8 sps:$4 sm:$0xff]  }
  0x2d   : > { %720 = vmatpush1.bf16.msra.mxu1 %v1109_v11  ;;  %v1127_v23 = vld [vmem:[%s1312_s7 + $0x40] ss:$8 sps:$4 sm:$0xff]   ;;  %v1129_v25 = vld [vmem:[%s1312_s7 + $0x54] ss:$8 sps:$4 sm:$0xff]   ;;  %v1133_v27 = vld [vmem:[%s1312_s7 + $0x50] ss:$8 sps:$4 sm:$0xff]  }
  0x2e   : > { %763 = vmatpush1.bf16.msra.mxu0 %v1110_v12  ;;  %721 = vmatprep.subr.bf16.mxu1 %v1111_v13  ;;  %v1128_v24 = vld [vmem:[%s1312_s7 + $0x140] ss:$8 sps:$4 sm:$0xff]   ;;  %v1131_v26 = vld [vmem:[%s1312_s7 + $0x154] ss:$8 sps:$4 sm:$0xff]   ;;  %v1134_v28 = vld [vmem:[%s1312_s7 + $0x150] ss:$8 sps:$4 sm:$0xff]  }
  0x2f   : > { %764 = vmatprep.subr.bf16.mxu0 %v1113_v14  ;;  %v1135_v29 = vld [vmem:[%s1312_s7 + $0x64] ss:$8 sps:$4 sm:$0xff]   ;;  %v1139_v31 = vld [vmem:[%s1312_s7 + $0x60] ss:$8 sps:$4 sm:$0xff]   ;;  %v1141_v33 = vld [vmem:[%s1312_s7 + $0x74] ss:$8 sps:$4 sm:$0xff]  }
  0x30   : > { %v1137_v30 = vld [vmem:[%s1312_s7 + $0x164] ss:$8 sps:$4 sm:$0xff]   ;;  %v1140_v32 = vld [vmem:[%s1312_s7 + $0x160] ss:$8 sps:$4 sm:$0xff]   ;;  %v1143_v34 = vld [vmem:[%s1312_s7 + $0x174] ss:$8 sps:$4 sm:$0xff]  }
  0x31   : > { %722 = vmatpush1.bf16.msra.mxu1 %v1115_v15  ;;  %v1145_v35 = vld [vmem:[%s1312_s7 + $0x70] ss:$8 sps:$4 sm:$0xff]   ;;  %v1147_v37 = vld [vmem:[%s1312_s7 + $0x84] ss:$8 sps:$4 sm:$0xff]   ;;  %v1151_v39 = vld [vmem:[%s1312_s7 + $0x80] ss:$8 sps:$4 sm:$0xff]  }
  0x32   : > { %765 = vmatpush1.bf16.msra.mxu0 %v1116_v16  ;;  %723 = vmatprep.subr.bf16.mxu1 %v1117_v17  ;;  %v1146_v36 = vld [vmem:[%s1312_s7 + $0x170] ss:$8 sps:$4 sm:$0xff]   ;;  %v1149_v38 = vld [vmem:[%s1312_s7 + $0x184] ss:$8 sps:$4 sm:$0xff]   ;;  %v1152_v40 = vld [vmem:[%s1312_s7 + $0x180] ss:$8 sps:$4 sm:$0xff]  }
  0x33   : > { %766 = vmatprep.subr.bf16.mxu0 %v1119_v18  ;;  %v1153_v41 = vld [vmem:[%s1312_s7 + $0x94] ss:$8 sps:$4 sm:$0xff]   ;;  %v1157_v43 = vld [vmem:[%s1312_s7 + $0x90] ss:$8 sps:$4 sm:$0xff]   ;;  %v1159_v45 = vld [vmem:[%s1312_s7 + $0xa4] ss:$8 sps:$4 sm:$0xff]  }
  0x34   : > { %v1155_v42 = vld [vmem:[%s1312_s7 + $0x194] ss:$8 sps:$4 sm:$0xff]   ;;  %v1158_v44 = vld [vmem:[%s1312_s7 + $0x190] ss:$8 sps:$4 sm:$0xff]   ;;  %v1161_v46 = vld [vmem:[%s1312_s7 + $0x1a4] ss:$8 sps:$4 sm:$0xff]  }
  0x35   : > { %724 = vmatpush1.bf16.msra.mxu1 %v1121_v19  ;;  %v1163_v47 = vld [vmem:[%s1312_s7 + $0xa0] ss:$8 sps:$4 sm:$0xff]   ;;  %v1165_v49 = vld [vmem:[%s1312_s7 + $0xb4] ss:$8 sps:$4 sm:$0xff]   ;;  %v1169_v51 = vld [vmem:[%s1312_s7 + $0xb0] ss:$8 sps:$4 sm:$0xff]  }
  0x36   : > { %767 = vmatpush1.bf16.msra.mxu0 %v1122_v20  ;;  %725 = vmatprep.subr.bf16.mxu1 %v1123_v21  ;;  %v1164_v48 = vld [vmem:[%s1312_s7 + $0x1a0] ss:$8 sps:$4 sm:$0xff]   ;;  %v1167_v50 = vld [vmem:[%s1312_s7 + $0x1b4] ss:$8 sps:$4 sm:$0xff]   ;;  %v1170_v53 = vld [vmem:[%s1312_s7 + $0x1b0] ss:$8 sps:$4 sm:$0xff]  }
  0x37   : > { %768 = vmatprep.subr.bf16.mxu0 %v1125_v22  ;;  %v1197_v52 = vld [vmem:[%s1314_s8 + $0x4] ss:$16 sps:$4 sm:$0xff]   ;;  %v1200_v56 = vld [vmem:[%s1314_s8 + $0xc] ss:$16 sps:$4 sm:$0xff]   ;;  %v1175_v57 = vld [vmem:[%s1312_s7 + $0xc0] ss:$8 sps:$4 sm:$0xff]  }
  0x38   : > { %v1171_v54 = vld [vmem:[%s1312_s7 + $0xc4] ss:$8 sps:$4 sm:$0xff]   ;;  %749 = vmatprep.mubr.bf16.mxu1 %v1197_v52  ;;  %792 = vmatprep.mubr.bf16.mxu0 %v1200_v56  ;;  %v1176_v58 = vld [vmem:[%s1312_s7 + $0x1c0] ss:$8 sps:$4 sm:$0xff]   ;;  %v1177_v59 = vld [vmem:[%s1312_s7 + $0xd4] ss:$8 sps:$4 sm:$0xff]  }
  0x39   : > { %726 = vmatpush1.bf16.msra.mxu1 %v1127_v23  ;;  %v1173_v55 = vld [vmem:[%s1312_s7 + $0x1c4] ss:$8 sps:$4 sm:$0xff]   ;;  %v1179_v60 = vld [vmem:[%s1312_s7 + $0x1d4] ss:$8 sps:$4 sm:$0xff]   ;;  %v1181_v61 = vld [vmem:[%s1312_s7 + $0xd0] ss:$8 sps:$4 sm:$0xff]  }
  0x3a   : > { %769 = vmatpush1.bf16.msra.mxu0 %v1128_v24  ;;  %727 = vmatprep.subr.bf16.mxu1 %v1129_v25  ;;  %v1182_v62 = vld [vmem:[%s1312_s7 + $0x1d0] ss:$8 sps:$4 sm:$0xff]   ;;  %v1183_v63 = vld [vmem:[%s1312_s7 + $0xe4] ss:$8 sps:$4 sm:$0xff]   ;;  %v1187_v1 = vld [vmem:[%s1312_s7 + $0xe0] ss:$8 sps:$4 sm:$0xff]  }
  0x3b   : > { %770 = vmatprep.subr.bf16.mxu0 %v1131_v26  ;;  %v1185_v0 = vld [vmem:[%s1312_s7 + $0x1e4] ss:$8 sps:$4 sm:$0xff]   ;;  %v1188_v2 = vld [vmem:[%s1312_s7 + $0x1e0] ss:$8 sps:$4 sm:$0xff]   ;;  %v1189_v3 = vld [vmem:[%s1312_s7 + $0xf4] ss:$8 sps:$4 sm:$0xff]  }
  0x3c   : > { %v1191_v4 = vld [vmem:[%s1312_s7 + $0x1f4] ss:$8 sps:$4 sm:$0xff]   ;;  %v1193_v5 = vld [vmem:[%s1312_s7 + $0xf0] ss:$8 sps:$4 sm:$0xff]   ;;  %v305_v10 = vld [vmem:[#allocation2] sm:$0xff]  ;;  %p1047_p11 = scmp.ne.s32.totalorder %s1231_s14, 2 }
  0x3d   : > { %728 = vmatpush1.bf16.msra.mxu1 %v1133_v27  ;;  %v1194_v6 = vld [vmem:[%s1312_s7 + $0x1f0] ss:$8 sps:$4 sm:$0xff]   ;;  %v306_v14 = vld [vmem:[#allocation2 + $0x8] sm:$0xff] }
  0x3e   : > { %771 = vmatpush1.bf16.msra.mxu0 %v1134_v28  ;;  %729 = vmatprep.subr.bf16.mxu1 %v1135_v29  ;;  %v1195_v7 = vld [vmem:[%s1314_s8] ss:$16 sps:$4 sm:$0xff]   ;;  %v1198_v8 = vld [vmem:[%s1314_s8 + $0x8] ss:$16 sps:$4 sm:$0xff]   ;;  %v821_v29 = vlaneseq (!%p1047_p11) }
  0x3f   : > { %772 = vmatprep.subr.bf16.mxu0 %v1137_v30  ;;  %v307_v18 = vld [vmem:[#allocation2 + $0x10] sm:$0xff]  ;;  %v308_v23 = vld [vmem:[#allocation2 + $0x18] sm:$0xff] }
  0x40   : > { %v822_v30 = vshrl.u32 (!%p1047_p11), %v821_v29, 7 }
  0x41   : > { %730 = vmatpush1.bf16.msra.mxu1 %v1139_v31  ;;  %v819_v31 = vld [vmem:[%s1418_s2] sm:$0x3] (!%p1047_p11) }
  0x42   : > { %773 = vmatpush1.bf16.msra.mxu0 %v1140_v32  ;;  %731 = vmatprep.subr.bf16.mxu1 %v1141_v33  ;;  %v823_v33 = vsub.s32 (!%p1047_p11), 0, %v822_v30 }
  0x43   : > { %774 = vmatprep.subr.bf16.mxu0 %v1143_v34  ;;  %v827_v34 = vsub.s32 (!%p1047_p11), 1, %v822_v30 }
  0x45   : > { %732 = vmatpush1.bf16.msra.mxu1 %v1145_v35 }
  0x46   : > { %775 = vmatpush1.bf16.msra.mxu0 %v1146_v36  ;;  %733 = vmatprep.subr.bf16.mxu1 %v1147_v37 }
  0x47   : > { %776 = vmatprep.subr.bf16.mxu0 %v1149_v38  ;;  %v824_v38 = vrot.slane (!%p1047_p11), %v819_v31, %v823_v33 }
  0x49   : > { %734 = vmatpush1.bf16.msra.mxu1 %v1151_v39  ;;  %v828_v39 = vrot.slane (!%p1047_p11), %v819_v31, %v827_v34 }
  0x4a   : > { %777 = vmatpush1.bf16.msra.mxu0 %v1152_v40  ;;  %735 = vmatprep.subr.bf16.mxu1 %v1153_v41 }
  0x4b   : > { %778 = vmatprep.subr.bf16.mxu0 %v1155_v42 }
  0x4d   : > { %736 = vmatpush1.bf16.msra.mxu1 %v1157_v43 }
  0x4e   : > { %779 = vmatpush1.bf16.msra.mxu0 %v1158_v44  ;;  %737 = vmatprep.subr.bf16.mxu1 %v1159_v45 }
  0x4f   : > { %780 = vmatprep.subr.bf16.mxu0 %v1161_v46 }
  0x51   : > { %738 = vmatpush1.bf16.msra.mxu1 %v1163_v47 }
  0x52   : > { %781 = vmatpush1.bf16.msra.mxu0 %v1164_v48  ;;  %739 = vmatprep.subr.bf16.mxu1 %v1165_v49 }
  0x53   : > { %782 = vmatprep.subr.bf16.mxu0 %v1167_v50 }
  0x55   : > { %740 = vmatpush1.bf16.msra.mxu1 %v1169_v51 }
  0x56   : > { %783 = vmatpush1.bf16.msra.mxu0 %v1170_v53  ;;  %741 = vmatprep.subr.bf16.mxu1 %v1171_v54 }
  0x57   : > { %784 = vmatprep.subr.bf16.mxu0 %v1173_v55 }
  0x59   : > { %742 = vmatpush1.bf16.msra.mxu1 %v1175_v57 }
  0x5a   : > { %785 = vmatpush1.bf16.msra.mxu0 %v1176_v58  ;;  %743 = vmatprep.subr.bf16.mxu1 %v1177_v59 }
  0x5b   : > { %786 = vmatprep.subr.bf16.mxu0 %v1179_v60 }
  0x5d   : > { %744 = vmatpush1.bf16.msra.mxu1 %v1181_v61 }
  0x5e   : > { %787 = vmatpush1.bf16.msra.mxu0 %v1182_v62  ;;  %745 = vmatprep.subr.bf16.mxu1 %v1183_v63 }
  0x5f   : > { %788 = vmatprep.subr.bf16.mxu0 %v1185_v0 }
  0x61   : > { %746 = vmatpush1.bf16.msra.mxu1 %v1187_v1 }
  0x62   : > { %789 = vmatpush1.bf16.msra.mxu0 %v1188_v2  ;;  %747 = vmatprep.subr.bf16.mxu1 %v1189_v3 }
  0x63   : > { %790 = vmatprep.subr.bf16.mxu0 %v1191_v4 }
  0x65   : > { %748 = vmatpush1.bf16.msra.mxu1 %v1193_v5 }
  0x66   : > { %791 = vmatpush1.bf16.msra.mxu0 %v1194_v6 }
  0x68   : > { %750 = vmatmul.mubr.bf16.vlgmr.msra.gmra.mrb[0].mxu1 %v1195_v7 }
  0x69   : > { %793 = vmatmul.mubr.bf16.vlgmr.msra.gmra.mrb[0].mxu0 %v1198_v8 }
 0x13b   : > { %v751_v9 = vpop.f32.mrb[0].mxu1 }
 0x13c   : > { %v794_v11 = vpop.f32.mrb[0].mxu0  ;;  %v753_v13 = vpop.f32.mrb[1].mxu1 }
 0x13d   : > { %v795_v12 = vadd.f32 %v794_v11, %v751_v9  ;;  %v796_v15 = vpop.f32.mrb[1].mxu0  ;;  %v755_v17 = vpop.f32.mrb[2].mxu1 }
 0x13e   : > { %v797_v16 = vadd.f32 %v796_v15, %v753_v13  ;;  %v798_v19 = vpop.f32.mrb[2].mxu0  ;;  %v757_v22 = vpop.f32.mrb[3].mxu1  ;;  %814 = sbr.rel (%p1047_p11) target bundleno = 337 (0x151), region = 63 }
 0x13f   : > { %v803_v20 = vadd.f32 %v795_v12, %v305_v10  ;;  %v799_v21 = vadd.f32 %v798_v19, %v755_v17  ;;  %v800_v24 = vpop.f32.mrb[3].mxu0 }
 0x140   : > { %v804_v25 = vadd.f32 %v797_v16, %v306_v14  ;;  %v801_v26 = vadd.f32 %v800_v24, %v757_v22 }
 0x141   : > { %807 = vst [vmem:[#allocation2] sm:$0xff] %v803_v20  ;;  %v805_v27 = vadd.f32 %v799_v21, %v307_v18 }
 0x142   : > { %808 = vst [vmem:[#allocation2 + $0x8] sm:$0xff] %v804_v25  ;;  %v806_v28 = vadd.f32 %v801_v26, %v308_v23 }
 0x143   : > { %809 = vst [vmem:[#allocation2 + $0x10] sm:$0xff] %v805_v27 }
 0x144   : > { %810 = vst [vmem:[#allocation2 + $0x18] sm:$0xff] %v806_v28 }
 0x148   : > { %v815_v32 = vld [vmem:[#allocation2] sm:$0xff] }
 0x149   : > { %v816_v35 = vld [vmem:[#allocation2 + $0x8] sm:$0xff]  ;;  %v831_v40 = vadd.f32 %v824_v38, %v815_v32 }
 0x14a   : > { %v817_v36 = vld [vmem:[#allocation2 + $0x10] sm:$0xff]  ;;  %v832_v41 = vadd.f32 %v828_v39, %v816_v35 }
 0x14b   : > { %v818_v37 = vld [vmem:[#allocation2 + $0x18] sm:$0xff]  ;;  %v833_v42 = vadd.f32 %v824_v38, %v817_v36  ;;  %v835_v44 = vmax.f32 %v831_v40, 0.0 }
 0x14c   : > { %v834_v43 = vadd.f32 %v828_v39, %v818_v37  ;;  %v836_v45 = vmax.f32 %v832_v41, 0.0 }
 0x14d   : > { %v837_v46 = vmax.f32 %v833_v42, 0.0  ;;  %839 = vst [vmem:[%s1419_s3] sm:$0xff] %v835_v44 }
 0x14e   : > { %v838_v47 = vmax.f32 %v834_v43, 0.0  ;;  %840 = vst [vmem:[%s1419_s3 + $0x8] sm:$0xff] %v836_v45 }
 0x14f   : > { %841 = vst [vmem:[%s1419_s3 + $0x10] sm:$0xff] %v837_v46 }
 0x150   : > { %842 = vst [vmem:[%s1419_s3 + $0x18] sm:$0xff] %v838_v47 }
 0x151 PF: > { %s13_s16 = sadd.s32 1, %s1239_s16   ;;  %s1420_s12 = smov %s1227_s13 }
 0x152   : > { %p10_p12 = scmp.ge.s32.totalorder %s13_s16, 5   ;;  %s1421_s13 = smov %s1297_s20 }
 0x153   : > { %s1422_s14 = smov %s1235_s15  ;;  %s1423_s15 = smov %s1425_s17 }
 0x154   :  { %12 = sbr.rel (!%p10_p12) target bundleno = 3 (0x3), region = 104 }

// kernel: resnet_forward.22
= control target key start
LH: loop header
LB: loop body
LE: loop exit
PB: predicated region body
PF: predicated region fallthrough
CT: control target
= control target key end

     0   :  { %s1258_s12 = smov 0   ;;  %s1260_s13 = smov 0   ;;  %s1412_s0 = inlined_call_operand.vmem [shape: bf16[16,1536], index: 0, kind: input, shape index: {}]   ;;  %s1413_s1 = inlined_call_operand.vmem [shape: bf16[1536,256], index: 1, kind: input, shape index: {}]   ;;  %s1414_s2 = inlined_call_operand.vmem [shape: f32[1,256], index: 2, kind: input, shape index: {}]   ;;  %s1415_s3 = inlined_call_operand.vmem [shape: f32[16,256], index: 3, kind: output, shape index: {}]  }
   0x1   :  { %s1262_s14 = smov 0   ;;  %s1264_s15 = smov 0  }
   0x2   :  { %s1266_s16 = smov 0  }
   0x3 LB: > { %s25_s17 = sadd.s32 1, %s1231_s15  ;;  %p48_p1 = scmp.ne.s32.totalorder %s1223_s13, %s1219_s12  ;;  %s1235_s16 = sphi %s1266_s16, %s13_s16   ;;  %s1231_s15 = sphi %s1264_s15, %s1419_s15   ;;  %s1227_s14 = sphi %s1262_s14, %s1418_s14   ;;  %s1223_s13 = sphi %s1260_s13, %s1417_s13   ;;  %s1219_s12 = sphi %s1258_s12, %s1416_s12  }
   0x4   : > { %p26_p0 = scmp.ge.s32.totalorder %s25_s17, 3  ;;  %p49_p2 = scmp.eq.s32.totalorder %s1235_s16, 0 }
   0x5   : > { %s41_s19 = sadd.s32 1, %s1223_s13  ;;  %p965_p5 = scmp.ge.s32.totalorder %s1235_s16, 3 }
   0x6   : > { %s1421_s17 = smov (%p26_p0, %s25_s17), 0  ;;  %p50_p3 = por %p49_p2, %p48_p1 }
   0x7   : > { %s37_s18 = ssub.s32 %s1231_s15, %s1421_s17  ;;  %164 = sbr.rel (%p965_p5) target bundleno = 21 (0x15), region = 20 }
   0x8   : > { %p39_p4 = scmp.eq.s32.totalorder %s37_s18, 0 }
   0xa   : > { %s1293_s20 = scalar_select %p39_p4, %s1223_s13, %s41_s19  }
   0xe   : > { %167 = sbr.rel (!%p50_p3) target bundleno = 21 (0x15), region = 24  ;;  %s169_s21 = sand.u32 (%p50_p3), 1, %s1223_s13  }
   0xf   : > { %s1048_s22 = sshll.u32 (%p50_p3), %s1231_s15, 4  ;;  %s966_s23 = sshll.u32 (%p50_p3), %s169_s21, 5 }
  0x10   : > { %s177_s26 = scalar_lea.vmem (%p50_p3), %s1412_s0, %s1048_s22  ;;  %s171_s27 = scalar_lea.vmem (%p50_p3), [#allocation3], %s966_s23 }
  0x11   : > { %v190_v0 = vld [vmem:[%s177_s26] sm:$0xff] (%p50_p3)  ;;  %v192_v1 = vld [vmem:[%s177_s26 + $0x8] sm:$0xff] (%p50_p3)  ;;  %v194_v2 = vld [vmem:[%s177_s26 + $0x30] sm:$0xff] (%p50_p3) }
  0x12   : > { %191 = vst [vmem:[%s171_s27] sm:$0xff] (%p50_p3), %v190_v0  ;;  %193 = vst [vmem:[%s171_s27 + $0x8] sm:$0xff] (%p50_p3), %v192_v1  ;;  %v196_v3 = vld [vmem:[%s177_s26 + $0x38] sm:$0xff] (%p50_p3) }
  0x13   : > { %195 = vst [vmem:[%s171_s27 + $0x10] sm:$0xff] (%p50_p3), %v194_v2  ;;  %197 = vst [vmem:[%s171_s27 + $0x18] sm:$0xff] (%p50_p3), %v196_v3 }
  0x15 PF: > { %p969_p6 = scmp.ge.s32.totalorder %s1235_s16, 1  ;;  %p217_p7 = scmp.lt.s32.totalorder %s1235_s16, 4 }
  0x17   : > { %p218_p8 = pnand %p969_p6, %p217_p7 }
  0x18   : > { %s224_s28 = sand.u32 (!%p218_p8), 1, %s1219_s12   ;;  %s971_s29 = sshll.u32 (!%p218_p8), %s1227_s14, 6 }
  0x19   : > { %221 = sbr.rel (%p218_p8) target bundleno = 335 (0x14f), region = 51  ;;  %s970_s30 = sshll.u32 (!%p218_p8), %s224_s28, 5 }
  0x1a   : > { %p270_p9 = scmp.lt.s32.totalorder (!%p218_p8), %s971_s29, 191  ;;  %s1310_s8 = scalar_lea.vmem (!%p218_p8), [#allocation3], %s970_s30 }
  0x1b   : > { %p974_p10 = scmp.ne.s32.totalorder (!%p218_p8), %s1227_s14, 0 }
  0x20   : > { %s1423_s29 = smov (!%p270_p9, %s971_s29), 191  ;;  %300 = sbr.rel (%p974_p10) target bundleno = 39 (0x27), region = 59 }
  0x21   : > { %s1049_s4 = sshll.u32 %s1423_s29, 3  ;;  %v1237_v4 = vmov (!%p974_p10), 0.0  }
  0x22   : > { %s1308_s7 = scalar_lea.vmem %s1413_s1, %s1049_s4  ;;  %301 = vst [vmem:[#allocation2] sm:$0xff] (!%p974_p10), %v1237_v4  ;;  %302 = vst [vmem:[#allocation2 + $0x8] sm:$0xff] (!%p974_p10), %v1237_v4 }
  0x23   : > { %303 = vst [vmem:[#allocation2 + $0x10] sm:$0xff] (!%p974_p10), %v1237_v4  ;;  %304 = vst [vmem:[#allocation2 + $0x18] sm:$0xff] (!%p974_p10), %v1237_v4 }
  0x27 PF: > { %v1095_v5 = vld [vmem:[%s1308_s7 + $0x4] ss:$8 sps:$4 sm:$0xff]   ;;  %v1099_v7 = vld [vmem:[%s1308_s7] ss:$8 sps:$4 sm:$0xff]   ;;  %v1101_v9 = vld [vmem:[%s1308_s7 + $0x14] ss:$8 sps:$4 sm:$0xff]  }
  0x28   : > { %v1097_v6 = vld [vmem:[%s1308_s7 + $0x104] ss:$8 sps:$4 sm:$0xff]   ;;  %717 = vmatprep.subr.bf16.mxu1 %v1095_v5  ;;  %v1100_v8 = vld [vmem:[%s1308_s7 + $0x100] ss:$8 sps:$4 sm:$0xff]   ;;  %v1103_v10 = vld [vmem:[%s1308_s7 + $0x114] ss:$8 sps:$4 sm:$0xff]  }
  0x29   : > { %760 = vmatprep.subr.bf16.mxu0 %v1097_v6  ;;  %718 = vmatpush1.bf16.msra.mxu1 %v1099_v7  ;;  %v1105_v11 = vld [vmem:[%s1308_s7 + $0x10] ss:$8 sps:$4 sm:$0xff]   ;;  %v1107_v13 = vld [vmem:[%s1308_s7 + $0x24] ss:$8 sps:$4 sm:$0xff]   ;;  %v1111_v15 = vld [vmem:[%s1308_s7 + $0x20] ss:$8 sps:$4 sm:$0xff]  }
  0x2a   : > { %761 = vmatpush1.bf16.msra.mxu0 %v1100_v8  ;;  %719 = vmatprep.subr.bf16.mxu1 %v1101_v9  ;;  %v1106_v12 = vld [vmem:[%s1308_s7 + $0x110] ss:$8 sps:$4 sm:$0xff]   ;;  %v1109_v14 = vld [vmem:[%s1308_s7 + $0x124] ss:$8 sps:$4 sm:$0xff]   ;;  %v1112_v16 = vld [vmem:[%s1308_s7 + $0x120] ss:$8 sps:$4 sm:$0xff]  }
  0x2b   : > { %762 = vmatprep.subr.bf16.mxu0 %v1103_v10  ;;  %v1113_v17 = vld [vmem:[%s1308_s7 + $0x34] ss:$8 sps:$4 sm:$0xff]   ;;  %v1117_v19 = vld [vmem:[%s1308_s7 + $0x30] ss:$8 sps:$4 sm:$0xff]   ;;  %v1119_v21 = vld [vmem:[%s1308_s7 + $0x44] ss:$8 sps:$4 sm:$0xff]  }
  0x2c   : > { %v1115_v18 = vld [vmem:[%s1308_s7 + $0x134] ss:$8 sps:$4 sm:$0xff]   ;;  %v1118_v20 = vld [vmem:[%s1308_s7 + $0x130] ss:$8 sps:$4 sm:$0xff]   ;;  %v1121_v22 = vld [vmem:[%s1308_s7 + $0x144] ss:$8 sps:$4 sm:$0xff]  }
  0x2d   : > { %720 = vmatpush1.bf16.msra.mxu1 %v1105_v11  ;;  %v1123_v23 = vld [vmem:[%s1308_s7 + $0x40] ss:$8 sps:$4 sm:$0xff]   ;;  %v1125_v25 = vld [vmem:[%s1308_s7 + $0x54] ss:$8 sps:$4 sm:$0xff]   ;;  %v1129_v27 = vld [vmem:[%s1308_s7 + $0x50] ss:$8 sps:$4 sm:$0xff]  }
  0x2e   : > { %763 = vmatpush1.bf16.msra.mxu0 %v1106_v12  ;;  %721 = vmatprep.subr.bf16.mxu1 %v1107_v13  ;;  %v1124_v24 = vld [vmem:[%s1308_s7 + $0x140] ss:$8 sps:$4 sm:$0xff]   ;;  %v1127_v26 = vld [vmem:[%s1308_s7 + $0x154] ss:$8 sps:$4 sm:$0xff]   ;;  %v1130_v28 = vld [vmem:[%s1308_s7 + $0x150] ss:$8 sps:$4 sm:$0xff]  }
  0x2f   : > { %764 = vmatprep.subr.bf16.mxu0 %v1109_v14  ;;  %v1131_v29 = vld [vmem:[%s1308_s7 + $0x64] ss:$8 sps:$4 sm:$0xff]   ;;  %v1135_v31 = vld [vmem:[%s1308_s7 + $0x60] ss:$8 sps:$4 sm:$0xff]   ;;  %v1137_v33 = vld [vmem:[%s1308_s7 + $0x74] ss:$8 sps:$4 sm:$0xff]  }
  0x30   : > { %v1133_v30 = vld [vmem:[%s1308_s7 + $0x164] ss:$8 sps:$4 sm:$0xff]   ;;  %v1136_v32 = vld [vmem:[%s1308_s7 + $0x160] ss:$8 sps:$4 sm:$0xff]   ;;  %v1139_v34 = vld [vmem:[%s1308_s7 + $0x174] ss:$8 sps:$4 sm:$0xff]  }
  0x31   : > { %722 = vmatpush1.bf16.msra.mxu1 %v1111_v15  ;;  %v1141_v35 = vld [vmem:[%s1308_s7 + $0x70] ss:$8 sps:$4 sm:$0xff]   ;;  %v1143_v37 = vld [vmem:[%s1308_s7 + $0x84] ss:$8 sps:$4 sm:$0xff]   ;;  %v1147_v39 = vld [vmem:[%s1308_s7 + $0x80] ss:$8 sps:$4 sm:$0xff]  }
  0x32   : > { %765 = vmatpush1.bf16.msra.mxu0 %v1112_v16  ;;  %723 = vmatprep.subr.bf16.mxu1 %v1113_v17  ;;  %v1142_v36 = vld [vmem:[%s1308_s7 + $0x170] ss:$8 sps:$4 sm:$0xff]   ;;  %v1145_v38 = vld [vmem:[%s1308_s7 + $0x184] ss:$8 sps:$4 sm:$0xff]   ;;  %v1148_v40 = vld [vmem:[%s1308_s7 + $0x180] ss:$8 sps:$4 sm:$0xff]  }
  0x33   : > { %766 = vmatprep.subr.bf16.mxu0 %v1115_v18  ;;  %v1149_v41 = vld [vmem:[%s1308_s7 + $0x94] ss:$8 sps:$4 sm:$0xff]   ;;  %v1153_v43 = vld [vmem:[%s1308_s7 + $0x90] ss:$8 sps:$4 sm:$0xff]   ;;  %v1155_v45 = vld [vmem:[%s1308_s7 + $0xa4] ss:$8 sps:$4 sm:$0xff]  }
  0x34   : > { %v1151_v42 = vld [vmem:[%s1308_s7 + $0x194] ss:$8 sps:$4 sm:$0xff]   ;;  %v1154_v44 = vld [vmem:[%s1308_s7 + $0x190] ss:$8 sps:$4 sm:$0xff]   ;;  %v1157_v46 = vld [vmem:[%s1308_s7 + $0x1a4] ss:$8 sps:$4 sm:$0xff]  }
  0x35   : > { %724 = vmatpush1.bf16.msra.mxu1 %v1117_v19  ;;  %v1159_v47 = vld [vmem:[%s1308_s7 + $0xa0] ss:$8 sps:$4 sm:$0xff]   ;;  %v1161_v49 = vld [vmem:[%s1308_s7 + $0xb4] ss:$8 sps:$4 sm:$0xff]   ;;  %v1165_v51 = vld [vmem:[%s1308_s7 + $0xb0] ss:$8 sps:$4 sm:$0xff]  }
  0x36   : > { %767 = vmatpush1.bf16.msra.mxu0 %v1118_v20  ;;  %725 = vmatprep.subr.bf16.mxu1 %v1119_v21  ;;  %v1160_v48 = vld [vmem:[%s1308_s7 + $0x1a0] ss:$8 sps:$4 sm:$0xff]   ;;  %v1163_v50 = vld [vmem:[%s1308_s7 + $0x1b4] ss:$8 sps:$4 sm:$0xff]   ;;  %v1166_v53 = vld [vmem:[%s1308_s7 + $0x1b0] ss:$8 sps:$4 sm:$0xff]  }
  0x37   : > { %768 = vmatprep.subr.bf16.mxu0 %v1121_v22  ;;  %v1193_v52 = vld [vmem:[%s1310_s8 + $0x4] ss:$16 sps:$4 sm:$0xff]   ;;  %v1196_v56 = vld [vmem:[%s1310_s8 + $0xc] ss:$16 sps:$4 sm:$0xff]   ;;  %v1171_v57 = vld [vmem:[%s1308_s7 + $0xc0] ss:$8 sps:$4 sm:$0xff]  }
  0x38   : > { %v1167_v54 = vld [vmem:[%s1308_s7 + $0xc4] ss:$8 sps:$4 sm:$0xff]   ;;  %749 = vmatprep.mubr.bf16.mxu1 %v1193_v52  ;;  %792 = vmatprep.mubr.bf16.mxu0 %v1196_v56  ;;  %v1172_v58 = vld [vmem:[%s1308_s7 + $0x1c0] ss:$8 sps:$4 sm:$0xff]   ;;  %v1173_v59 = vld [vmem:[%s1308_s7 + $0xd4] ss:$8 sps:$4 sm:$0xff]  }
  0x39   : > { %726 = vmatpush1.bf16.msra.mxu1 %v1123_v23  ;;  %v1169_v55 = vld [vmem:[%s1308_s7 + $0x1c4] ss:$8 sps:$4 sm:$0xff]   ;;  %v1175_v60 = vld [vmem:[%s1308_s7 + $0x1d4] ss:$8 sps:$4 sm:$0xff]   ;;  %v1177_v61 = vld [vmem:[%s1308_s7 + $0xd0] ss:$8 sps:$4 sm:$0xff]  }
  0x3a   : > { %769 = vmatpush1.bf16.msra.mxu0 %v1124_v24  ;;  %727 = vmatprep.subr.bf16.mxu1 %v1125_v25  ;;  %v1178_v62 = vld [vmem:[%s1308_s7 + $0x1d0] ss:$8 sps:$4 sm:$0xff]   ;;  %v1179_v63 = vld [vmem:[%s1308_s7 + $0xe4] ss:$8 sps:$4 sm:$0xff]   ;;  %v1183_v1 = vld [vmem:[%s1308_s7 + $0xe0] ss:$8 sps:$4 sm:$0xff]  }
  0x3b   : > { %770 = vmatprep.subr.bf16.mxu0 %v1127_v26  ;;  %v1181_v0 = vld [vmem:[%s1308_s7 + $0x1e4] ss:$8 sps:$4 sm:$0xff]   ;;  %v1184_v2 = vld [vmem:[%s1308_s7 + $0x1e0] ss:$8 sps:$4 sm:$0xff]   ;;  %v1185_v3 = vld [vmem:[%s1308_s7 + $0xf4] ss:$8 sps:$4 sm:$0xff]  }
  0x3c   : > { %v1187_v4 = vld [vmem:[%s1308_s7 + $0x1f4] ss:$8 sps:$4 sm:$0xff]   ;;  %v1189_v5 = vld [vmem:[%s1308_s7 + $0xf0] ss:$8 sps:$4 sm:$0xff]   ;;  %v305_v10 = vld [vmem:[#allocation2] sm:$0xff]  ;;  %p1043_p11 = scmp.ne.s32.totalorder %s1227_s14, 2 }
  0x3d   : > { %728 = vmatpush1.bf16.msra.mxu1 %v1129_v27  ;;  %v1190_v6 = vld [vmem:[%s1308_s7 + $0x1f0] ss:$8 sps:$4 sm:$0xff]   ;;  %v306_v14 = vld [vmem:[#allocation2 + $0x8] sm:$0xff] }
  0x3e   : > { %771 = vmatpush1.bf16.msra.mxu0 %v1130_v28  ;;  %729 = vmatprep.subr.bf16.mxu1 %v1131_v29  ;;  %v1191_v7 = vld [vmem:[%s1310_s8] ss:$16 sps:$4 sm:$0xff]   ;;  %v1194_v8 = vld [vmem:[%s1310_s8 + $0x8] ss:$16 sps:$4 sm:$0xff]   ;;  %v821_v29 = vlaneseq (!%p1043_p11) }
  0x3f   : > { %772 = vmatprep.subr.bf16.mxu0 %v1133_v30  ;;  %v307_v18 = vld [vmem:[#allocation2 + $0x10] sm:$0xff]  ;;  %v308_v23 = vld [vmem:[#allocation2 + $0x18] sm:$0xff] }
  0x40   : > { %v822_v30 = vshrl.u32 (!%p1043_p11), %v821_v29, 7 }
  0x41   : > { %730 = vmatpush1.bf16.msra.mxu1 %v1135_v31  ;;  %v819_v31 = vld [vmem:[%s1414_s2] sm:$0x3] (!%p1043_p11) }
  0x42   : > { %773 = vmatpush1.bf16.msra.mxu0 %v1136_v32  ;;  %731 = vmatprep.subr.bf16.mxu1 %v1137_v33  ;;  %v823_v33 = vsub.s32 (!%p1043_p11), 0, %v822_v30 }
  0x43   : > { %774 = vmatprep.subr.bf16.mxu0 %v1139_v34  ;;  %v827_v34 = vsub.s32 (!%p1043_p11), 1, %v822_v30 }
  0x45   : > { %732 = vmatpush1.bf16.msra.mxu1 %v1141_v35 }
  0x46   : > { %775 = vmatpush1.bf16.msra.mxu0 %v1142_v36  ;;  %733 = vmatprep.subr.bf16.mxu1 %v1143_v37 }
  0x47   : > { %776 = vmatprep.subr.bf16.mxu0 %v1145_v38  ;;  %v824_v38 = vrot.slane (!%p1043_p11), %v819_v31, %v823_v33 }
  0x49   : > { %734 = vmatpush1.bf16.msra.mxu1 %v1147_v39  ;;  %v828_v39 = vrot.slane (!%p1043_p11), %v819_v31, %v827_v34 }
  0x4a   : > { %777 = vmatpush1.bf16.msra.mxu0 %v1148_v40  ;;  %735 = vmatprep.subr.bf16.mxu1 %v1149_v41 }
  0x4b   : > { %778 = vmatprep.subr.bf16.mxu0 %v1151_v42 }
  0x4d   : > { %736 = vmatpush1.bf16.msra.mxu1 %v1153_v43 }
  0x4e   : > { %779 = vmatpush1.bf16.msra.mxu0 %v1154_v44  ;;  %737 = vmatprep.subr.bf16.mxu1 %v1155_v45 }
  0x4f   : > { %780 = vmatprep.subr.bf16.mxu0 %v1157_v46 }
  0x51   : > { %738 = vmatpush1.bf16.msra.mxu1 %v1159_v47 }
  0x52   : > { %781 = vmatpush1.bf16.msra.mxu0 %v1160_v48  ;;  %739 = vmatprep.subr.bf16.mxu1 %v1161_v49 }
  0x53   : > { %782 = vmatprep.subr.bf16.mxu0 %v1163_v50 }
  0x55   : > { %740 = vmatpush1.bf16.msra.mxu1 %v1165_v51 }
  0x56   : > { %783 = vmatpush1.bf16.msra.mxu0 %v1166_v53  ;;  %741 = vmatprep.subr.bf16.mxu1 %v1167_v54 }
  0x57   : > { %784 = vmatprep.subr.bf16.mxu0 %v1169_v55 }
  0x59   : > { %742 = vmatpush1.bf16.msra.mxu1 %v1171_v57 }
  0x5a   : > { %785 = vmatpush1.bf16.msra.mxu0 %v1172_v58  ;;  %743 = vmatprep.subr.bf16.mxu1 %v1173_v59 }
  0x5b   : > { %786 = vmatprep.subr.bf16.mxu0 %v1175_v60 }
  0x5d   : > { %744 = vmatpush1.bf16.msra.mxu1 %v1177_v61 }
  0x5e   : > { %787 = vmatpush1.bf16.msra.mxu0 %v1178_v62  ;;  %745 = vmatprep.subr.bf16.mxu1 %v1179_v63 }
  0x5f   : > { %788 = vmatprep.subr.bf16.mxu0 %v1181_v0 }
  0x61   : > { %746 = vmatpush1.bf16.msra.mxu1 %v1183_v1 }
  0x62   : > { %789 = vmatpush1.bf16.msra.mxu0 %v1184_v2  ;;  %747 = vmatprep.subr.bf16.mxu1 %v1185_v3 }
  0x63   : > { %790 = vmatprep.subr.bf16.mxu0 %v1187_v4 }
  0x65   : > { %748 = vmatpush1.bf16.msra.mxu1 %v1189_v5 }
  0x66   : > { %791 = vmatpush1.bf16.msra.mxu0 %v1190_v6 }
  0x68   : > { %750 = vmatmul.mubr.bf16.vlgmr.msra.gmra.mrb[0].mxu1 %v1191_v7 }
  0x69   : > { %793 = vmatmul.mubr.bf16.vlgmr.msra.gmra.mrb[0].mxu0 %v1194_v8 }
 0x13b   : > { %v751_v9 = vpop.f32.mrb[0].mxu1 }
 0x13c   : > { %v794_v11 = vpop.f32.mrb[0].mxu0  ;;  %v753_v13 = vpop.f32.mrb[1].mxu1 }
 0x13d   : > { %v795_v12 = vadd.f32 %v794_v11, %v751_v9  ;;  %v796_v15 = vpop.f32.mrb[1].mxu0  ;;  %v755_v17 = vpop.f32.mrb[2].mxu1 }
 0x13e   : > { %v797_v16 = vadd.f32 %v796_v15, %v753_v13  ;;  %v798_v19 = vpop.f32.mrb[2].mxu0  ;;  %v757_v22 = vpop.f32.mrb[3].mxu1  ;;  %814 = sbr.rel (%p1043_p11) target bundleno = 335 (0x14f), region = 63 }
 0x13f   : > { %v803_v20 = vadd.f32 %v795_v12, %v305_v10  ;;  %v799_v21 = vadd.f32 %v798_v19, %v755_v17  ;;  %v800_v24 = vpop.f32.mrb[3].mxu0 }
 0x140   : > { %v804_v25 = vadd.f32 %v797_v16, %v306_v14  ;;  %v801_v26 = vadd.f32 %v800_v24, %v757_v22 }
 0x141   : > { %807 = vst [vmem:[#allocation2] sm:$0xff] %v803_v20  ;;  %v805_v27 = vadd.f32 %v799_v21, %v307_v18 }
 0x142   : > { %808 = vst [vmem:[#allocation2 + $0x8] sm:$0xff] %v804_v25  ;;  %v806_v28 = vadd.f32 %v801_v26, %v308_v23 }
 0x143   : > { %809 = vst [vmem:[#allocation2 + $0x10] sm:$0xff] %v805_v27 }
 0x144   : > { %810 = vst [vmem:[#allocation2 + $0x18] sm:$0xff] %v806_v28 }
 0x148   : > { %v815_v32 = vld [vmem:[#allocation2] sm:$0xff] }
 0x149   : > { %v816_v35 = vld [vmem:[#allocation2 + $0x8] sm:$0xff]  ;;  %v831_v40 = vadd.f32 %v824_v38, %v815_v32 }
 0x14a   : > { %v817_v36 = vld [vmem:[#allocation2 + $0x10] sm:$0xff]  ;;  %v832_v41 = vadd.f32 %v828_v39, %v816_v35 }
 0x14b   : > { %v818_v37 = vld [vmem:[#allocation2 + $0x18] sm:$0xff]  ;;  %v833_v42 = vadd.f32 %v824_v38, %v817_v36  ;;  %835 = vst [vmem:[%s1415_s3] sm:$0xff] %v831_v40 }
 0x14c   : > { %v834_v43 = vadd.f32 %v828_v39, %v818_v37  ;;  %836 = vst [vmem:[%s1415_s3 + $0x8] sm:$0xff] %v832_v41 }
 0x14d   : > { %837 = vst [vmem:[%s1415_s3 + $0x10] sm:$0xff] %v833_v42 }
 0x14e   : > { %838 = vst [vmem:[%s1415_s3 + $0x18] sm:$0xff] %v834_v43 }
 0x14f PF: > { %s13_s16 = sadd.s32 1, %s1235_s16   ;;  %s1416_s12 = smov %s1223_s13 }
 0x150   : > { %p10_p12 = scmp.ge.s32.totalorder %s13_s16, 5   ;;  %s1417_s13 = smov %s1293_s20 }
 0x151   : > { %s1418_s14 = smov %s1231_s15  ;;  %s1419_s15 = smov %s1421_s17 }
 0x152   :  { %12 = sbr.rel (!%p10_p12) target bundleno = 3 (0x3), region = 104 }

// kernel: resnet_forward.24
= control target key start
LH: loop header
LB: loop body
LE: loop exit
PB: predicated region body
PF: predicated region fallthrough
CT: control target
= control target key end

     0   :  { %s1365_s15 = smov 0   ;;  %s1367_s16 = smov 0   ;;  %s1531_s0 = inlined_call_operand.vmem [shape: bf16[16,2560], index: 0, kind: input, shape index: {}]   ;;  %s1532_s1 = inlined_call_operand.vmem [shape: bf16[2560,256], index: 1, kind: input, shape index: {}]   ;;  %s1533_s2 = inlined_call_operand.vmem [shape: f32[1,256], index: 2, kind: input, shape index: {}]   ;;  %s1534_s3 = inlined_call_operand.vmem [shape: f32[16,256], index: 3, kind: input, shape index: {}]   ;;  %s1535_s4 = inlined_call_operand.vmem [shape: f32[16,256], index: 4, kind: output, shape index: {}]  }
   0x1   :  { %s1369_s17 = smov 0   ;;  %s1371_s18 = smov 0  }
   0x2   :  { %s1373_s19 = smov 0  }
   0x3 LB: > { %s26_s20 = sadd.s32 1, %s1333_s18  ;;  %p49_p1 = scmp.ne.s32.totalorder %s1325_s16, %s1321_s15  ;;  %s1337_s19 = sphi %s1373_s19, %s14_s19   ;;  %s1333_s18 = sphi %s1371_s18, %s1539_s18   ;;  %s1329_s17 = sphi %s1369_s17, %s1538_s17   ;;  %s1325_s16 = sphi %s1367_s16, %s1537_s16   ;;  %s1321_s15 = sphi %s1365_s15, %s1536_s15  }
   0x4   : > { %p27_p0 = scmp.ge.s32.totalorder %s26_s20, 5  ;;  %p50_p2 = scmp.eq.s32.totalorder %s1337_s19, 0 }
   0x5   : > { %s42_s22 = sadd.s32 1, %s1325_s16  ;;  %p1067_p5 = scmp.ge.s32.totalorder %s1337_s19, 5 }
   0x6   : > { %s1541_s20 = smov (%p27_p0, %s26_s20), 0  ;;  %p51_p3 = por %p50_p2, %p49_p1 }
   0x7   : > { %s38_s21 = ssub.s32 %s1333_s18, %s1541_s20  ;;  %208 = sbr.rel (%p1067_p5) target bundleno = 21 (0x15), region = 24 }
   0x8   : > { %p40_p4 = scmp.eq.s32.totalorder %s38_s21, 0 }
   0xa   : > { %s1400_s23 = scalar_select %p40_p4, %s1325_s16, %s42_s22  }
   0xe   : > { %211 = sbr.rel (!%p51_p3) target bundleno = 21 (0x15), region = 28  ;;  %s213_s24 = sand.u32 (%p51_p3), 1, %s1325_s16  }
   0xf   : > { %s1150_s25 = sshll.u32 (%p51_p3), %s1333_s18, 4  ;;  %s1068_s26 = sshll.u32 (%p51_p3), %s213_s24, 5 }
  0x10   : > { %s221_s29 = scalar_lea.vmem (%p51_p3), %s1531_s0, %s1150_s25  ;;  %s215_s30 = scalar_lea.vmem (%p51_p3), [#allocation3], %s1068_s26 }
  0x11   : > { %v234_v0 = vld [vmem:[%s221_s29] sm:$0xff] (%p51_p3)  ;;  %v236_v1 = vld [vmem:[%s221_s29 + $0x8] sm:$0xff] (%p51_p3)  ;;  %v238_v2 = vld [vmem:[%s221_s29 + $0x50] sm:$0xff] (%p51_p3) }
  0x12   : > { %235 = vst [vmem:[%s215_s30] sm:$0xff] (%p51_p3), %v234_v0  ;;  %237 = vst [vmem:[%s215_s30 + $0x8] sm:$0xff] (%p51_p3), %v236_v1  ;;  %v240_v3 = vld [vmem:[%s221_s29 + $0x58] sm:$0xff] (%p51_p3) }
  0x13   : > { %239 = vst [vmem:[%s215_s30 + $0x10] sm:$0xff] (%p51_p3), %v238_v2  ;;  %241 = vst [vmem:[%s215_s30 + $0x18] sm:$0xff] (%p51_p3), %v240_v3 }
  0x15 PF: > { %p1071_p6 = scmp.ge.s32.totalorder %s1337_s19, 1  ;;  %p261_p7 = scmp.lt.s32.totalorder %s1337_s19, 6 }
  0x17   : > { %p262_p8 = pnand %p1071_p6, %p261_p7 }
  0x18   : > { %s268_s5 = sand.u32 (!%p262_p8), 1, %s1321_s15   ;;  %s1073_s6 = sshll.u32 (!%p262_p8), %s1329_s17, 6 }
  0x19   : > { %265 = sbr.rel (%p262_p8) target bundleno = 339 (0x153), region = 55  ;;  %s1072_s7 = sshll.u32 (!%p262_p8), %s268_s5, 5 }
  0x1a   : > { %p326_p9 = scmp.lt.s32.totalorder (!%p262_p8), %s1073_s6, 319  ;;  %s1417_s12 = scalar_lea.vmem (!%p262_p8), [#allocation3], %s1072_s7 }
  0x1b   : > { %p1076_p10 = scmp.ne.s32.totalorder (!%p262_p8), %s1329_s17, 0 }
  0x20   : > { %s1543_s6 = smov (!%p326_p9, %s1073_s6), 319  ;;  %368 = sbr.rel (%p1076_p10) target bundleno = 39 (0x27), region = 63 }
  0x21   : > { %s1151_s8 = sshll.u32 %s1543_s6, 3  ;;  %v1339_v4 = vmov (!%p1076_p10), 0.0  }
  0x22   : > { %s1415_s11 = scalar_lea.vmem %s1532_s1, %s1151_s8  ;;  %369 = vst [vmem:[#allocation2] sm:$0xff] (!%p1076_p10), %v1339_v4  ;;  %370 = vst [vmem:[#allocation2 + $0x8] sm:$0xff] (!%p1076_p10), %v1339_v4 }
  0x23   : > { %371 = vst [vmem:[#allocation2 + $0x10] sm:$0xff] (!%p1076_p10), %v1339_v4  ;;  %372 = vst [vmem:[#allocation2 + $0x18] sm:$0xff] (!%p1076_p10), %v1339_v4 }
  0x27 PF: > { %v1197_v5 = vld [vmem:[%s1415_s11 + $0x4] ss:$8 sps:$4 sm:$0xff]   ;;  %v1201_v7 = vld [vmem:[%s1415_s11] ss:$8 sps:$4 sm:$0xff]   ;;  %v1203_v9 = vld [vmem:[%s1415_s11 + $0x14] ss:$8 sps:$4 sm:$0xff]  }
  0x28   : > { %v1199_v6 = vld [vmem:[%s1415_s11 + $0x104] ss:$8 sps:$4 sm:$0xff]   ;;  %785 = vmatprep.subr.bf16.mxu1 %v1197_v5  ;;  %v1202_v8 = vld [vmem:[%s1415_s11 + $0x100] ss:$8 sps:$4 sm:$0xff]   ;;  %v1205_v10 = vld [vmem:[%s1415_s11 + $0x114] ss:$8 sps:$4 sm:$0xff]  }
  0x29   : > { %828 = vmatprep.subr.bf16.mxu0 %v1199_v6  ;;  %786 = vmatpush1.bf16.msra.mxu1 %v1201_v7  ;;  %v1207_v11 = vld [vmem:[%s1415_s11 + $0x10] ss:$8 sps:$4 sm:$0xff]   ;;  %v1209_v13 = vld [vmem:[%s1415_s11 + $0x24] ss:$8 sps:$4 sm:$0xff]   ;;  %v1213_v15 = vld [vmem:[%s1415_s11 + $0x20] ss:$8 sps:$4 sm:$0xff]  }
  0x2a   : > { %829 = vmatpush1.bf16.msra.mxu0 %v1202_v8  ;;  %787 = vmatprep.subr.bf16.mxu1 %v1203_v9  ;;  %v1208_v12 = vld [vmem:[%s1415_s11 + $0x110] ss:$8 sps:$4 sm:$0xff]   ;;  %v1211_v14 = vld [vmem:[%s1415_s11 + $0x124] ss:$8 sps:$4 sm:$0xff]   ;;  %v1214_v16 = vld [vmem:[%s1415_s11 + $0x120] ss:$8 sps:$4 sm:$0xff]  }
  0x2b   : > { %830 = vmatprep.subr.bf16.mxu0 %v1205_v10  ;;  %v1215_v17 = vld [vmem:[%s1415_s11 + $0x34] ss:$8 sps:$4 sm:$0xff]   ;;  %v1219_v19 = vld [vmem:[%s1415_s11 + $0x30] ss:$8 sps:$4 sm:$0xff]   ;;  %v1221_v21 = vld [vmem:[%s1415_s11 + $0x44] ss:$8 sps:$4 sm:$0xff]  }
  0x2c   : > { %v1217_v18 = vld [vmem:[%s1415_s11 + $0x134] ss:$8 sps:$4 sm:$0xff]   ;;  %v1220_v20 = vld [vmem:[%s1415_s11 + $0x130] ss:$8 sps:$4 sm:$0xff]   ;;  %v1223_v22 = vld [vmem:[%s1415_s11 + $0x144] ss:$8 sps:$4 sm:$0xff]  }
  0x2d   : > { %788 = vmatpush1.bf16.msra.mxu1 %v1207_v11  ;;  %v1225_v23 = vld [vmem:[%s1415_s11 + $0x40] ss:$8 sps:$4 sm:$0xff]   ;;  %v1227_v25 = vld [vmem:[%s1415_s11 + $0x54] ss:$8 sps:$4 sm:$0xff]   ;;  %v1231_v27 = vld [vmem:[%s1415_s11 + $0x50] ss:$8 sps:$4 sm:$0xff]  }
  0x2e   : > { %831 = vmatpush1.bf16.msra.mxu0 %v1208_v12  ;;  %789 = vmatprep.subr.bf16.mxu1 %v1209_v13  ;;  %v1226_v24 = vld [vmem:[%s1415_s11 + $0x140] ss:$8 sps:$4 sm:$0xff]   ;;  %v1229_v26 = vld [vmem:[%s1415_s11 + $0x154] ss:$8 sps:$4 sm:$0xff]   ;;  %v1232_v28 = vld [vmem:[%s1415_s11 + $0x150] ss:$8 sps:$4 sm:$0xff]  }
  0x2f   : > { %832 = vmatprep.subr.bf16.mxu0 %v1211_v14  ;;  %v1233_v29 = vld [vmem:[%s1415_s11 + $0x64] ss:$8 sps:$4 sm:$0xff]   ;;  %v1237_v31 = vld [vmem:[%s1415_s11 + $0x60] ss:$8 sps:$4 sm:$0xff]   ;;  %v1239_v33 = vld [vmem:[%s1415_s11 + $0x74] ss:$8 sps:$4 sm:$0xff]  }
  0x30   : > { %v1235_v30 = vld [vmem:[%s1415_s11 + $0x164] ss:$8 sps:$4 sm:$0xff]   ;;  %v1238_v32 = vld [vmem:[%s1415_s11 + $0x160] ss:$8 sps:$4 sm:$0xff]   ;;  %v1241_v34 = vld [vmem:[%s1415_s11 + $0x174] ss:$8 sps:$4 sm:$0xff]  }
  0x31   : > { %790 = vmatpush1.bf16.msra.mxu1 %v1213_v15  ;;  %v1243_v35 = vld [vmem:[%s1415_s11 + $0x70] ss:$8 sps:$4 sm:$0xff]   ;;  %v1245_v37 = vld [vmem:[%s1415_s11 + $0x84] ss:$8 sps:$4 sm:$0xff]   ;;  %v1249_v39 = vld [vmem:[%s1415_s11 + $0x80] ss:$8 sps:$4 sm:$0xff]  }
  0x32   : > { %833 = vmatpush1.bf16.msra.mxu0 %v1214_v16  ;;  %791 = vmatprep.subr.bf16.mxu1 %v1215_v17  ;;  %v1244_v36 = vld [vmem:[%s1415_s11 + $0x170] ss:$8 sps:$4 sm:$0xff]   ;;  %v1247_v38 = vld [vmem:[%s1415_s11 + $0x184] ss:$8 sps:$4 sm:$0xff]   ;;  %v1250_v40 = vld [vmem:[%s1415_s11 + $0x180] ss:$8 sps:$4 sm:$0xff]  }
  0x33   : > { %834 = vmatprep.subr.bf16.mxu0 %v1217_v18  ;;  %v1251_v41 = vld [vmem:[%s1415_s11 + $0x94] ss:$8 sps:$4 sm:$0xff]   ;;  %v1255_v43 = vld [vmem:[%s1415_s11 + $0x90] ss:$8 sps:$4 sm:$0xff]   ;;  %v1257_v45 = vld [vmem:[%s1415_s11 + $0xa4] ss:$8 sps:$4 sm:$0xff]  }
  0x34   : > { %v1253_v42 = vld [vmem:[%s1415_s11 + $0x194] ss:$8 sps:$4 sm:$0xff]   ;;  %v1256_v44 = vld [vmem:[%s1415_s11 + $0x190] ss:$8 sps:$4 sm:$0xff]   ;;  %v1259_v46 = vld [vmem:[%s1415_s11 + $0x1a4] ss:$8 sps:$4 sm:$0xff]  }
  0x35   : > { %792 = vmatpush1.bf16.msra.mxu1 %v1219_v19  ;;  %v1261_v47 = vld [vmem:[%s1415_s11 + $0xa0] ss:$8 sps:$4 sm:$0xff]   ;;  %v1263_v49 = vld [vmem:[%s1415_s11 + $0xb4] ss:$8 sps:$4 sm:$0xff]   ;;  %v1267_v51 = vld [vmem:[%s1415_s11 + $0xb0] ss:$8 sps:$4 sm:$0xff]  }
  0x36   : > { %835 = vmatpush1.bf16.msra.mxu0 %v1220_v20  ;;  %793 = vmatprep.subr.bf16.mxu1 %v1221_v21  ;;  %v1262_v48 = vld [vmem:[%s1415_s11 + $0x1a0] ss:$8 sps:$4 sm:$0xff]   ;;  %v1265_v50 = vld [vmem:[%s1415_s11 + $0x1b4] ss:$8 sps:$4 sm:$0xff]   ;;  %v1268_v53 = vld [vmem:[%s1415_s11 + $0x1b0] ss:$8 sps:$4 sm:$0xff]  }
  0x37   : > { %836 = vmatprep.subr.bf16.mxu0 %v1223_v22  ;;  %v1295_v52 = vld [vmem:[%s1417_s12 + $0x4] ss:$16 sps:$4 sm:$0xff]   ;;  %v1298_v56 = vld [vmem:[%s1417_s12 + $0xc] ss:$16 sps:$4 sm:$0xff]   ;;  %v1273_v57 = vld [vmem:[%s1415_s11 + $0xc0] ss:$8 sps:$4 sm:$0xff]  }
  0x38   : > { %v1269_v54 = vld [vmem:[%s1415_s11 + $0xc4] ss:$8 sps:$4 sm:$0xff]   ;;  %817 = vmatprep.mubr.bf16.mxu1 %v1295_v52  ;;  %860 = vmatprep.mubr.bf16.mxu0 %v1298_v56  ;;  %v1274_v58 = vld [vmem:[%s1415_s11 + $0x1c0] ss:$8 sps:$4 sm:$0xff]   ;;  %v1275_v59 = vld [vmem:[%s1415_s11 + $0xd4] ss:$8 sps:$4 sm:$0xff]  }
  0x39   : > { %794 = vmatpush1.bf16.msra.mxu1 %v1225_v23  ;;  %v1271_v55 = vld [vmem:[%s1415_s11 + $0x1c4] ss:$8 sps:$4 sm:$0xff]   ;;  %v1277_v60 = vld [vmem:[%s1415_s11 + $0x1d4] ss:$8 sps:$4 sm:$0xff]   ;;  %v1279_v61 = vld [vmem:[%s1415_s11 + $0xd0] ss:$8 sps:$4 sm:$0xff]  }
  0x3a   : > { %837 = vmatpush1.bf16.msra.mxu0 %v1226_v24  ;;  %795 = vmatprep.subr.bf16.mxu1 %v1227_v25  ;;  %v1280_v62 = vld [vmem:[%s1415_s11 + $0x1d0] ss:$8 sps:$4 sm:$0xff]   ;;  %v1281_v63 = vld [vmem:[%s1415_s11 + $0xe4] ss:$8 sps:$4 sm:$0xff]   ;;  %v1285_v1 = vld [vmem:[%s1415_s11 + $0xe0] ss:$8 sps:$4 sm:$0xff]  }
  0x3b   : > { %838 = vmatprep.subr.bf16.mxu0 %v1229_v26  ;;  %v1283_v0 = vld [vmem:[%s1415_s11 + $0x1e4] ss:$8 sps:$4 sm:$0xff]   ;;  %v1286_v2 = vld [vmem:[%s1415_s11 + $0x1e0] ss:$8 sps:$4 sm:$0xff]   ;;  %v1287_v3 = vld [vmem:[%s1415_s11 + $0xf4] ss:$8 sps:$4 sm:$0xff]  }
  0x3c   : > { %v1289_v4 = vld [vmem:[%s1415_s11 + $0x1f4] ss:$8 sps:$4 sm:$0xff]   ;;  %v1291_v5 = vld [vmem:[%s1415_s11 + $0xf0] ss:$8 sps:$4 sm:$0xff]   ;;  %v373_v10 = vld [vmem:[#allocation2] sm:$0xff]  ;;  %p1145_p11 = scmp.ne.s32.totalorder %s1329_s17, 4 }
  0x3d   : > { %796 = vmatpush1.bf16.msra.mxu1 %v1231_v27  ;;  %v1292_v6 = vld [vmem:[%s1415_s11 + $0x1f0] ss:$8 sps:$4 sm:$0xff]   ;;  %v374_v14 = vld [vmem:[#allocation2 + $0x8] sm:$0xff] }
  0x3e   : > { %839 = vmatpush1.bf16.msra.mxu0 %v1232_v28  ;;  %797 = vmatprep.subr.bf16.mxu1 %v1233_v29  ;;  %v1293_v7 = vld [vmem:[%s1417_s12] ss:$16 sps:$4 sm:$0xff]   ;;  %v1296_v8 = vld [vmem:[%s1417_s12 + $0x8] ss:$16 sps:$4 sm:$0xff]   ;;  %v889_v29 = vlaneseq (!%p1145_p11) }
  0x3f   : > { %840 = vmatprep.subr.bf16.mxu0 %v1235_v30  ;;  %v375_v18 = vld [vmem:[#allocation2 + $0x10] sm:$0xff]  ;;  %v376_v23 = vld [vmem:[#allocation2 + $0x18] sm:$0xff] }
  0x40   : > { %v890_v30 = vshrl.u32 (!%p1145_p11), %v889_v29, 7 }
  0x41   : > { %798 = vmatpush1.bf16.msra.mxu1 %v1237_v31  ;;  %v887_v31 = vld [vmem:[%s1533_s2] sm:$0x3] (!%p1145_p11) }
  0x42   : > { %841 = vmatpush1.bf16.msra.mxu0 %v1238_v32  ;;  %799 = vmatprep.subr.bf16.mxu1 %v1239_v33  ;;  %v891_v33 = vsub.s32 (!%p1145_p11), 0, %v890_v30 }
  0x43   : > { %842 = vmatprep.subr.bf16.mxu0 %v1241_v34  ;;  %v895_v34 = vsub.s32 (!%p1145_p11), 1, %v890_v30 }
  0x45   : > { %800 = vmatpush1.bf16.msra.mxu1 %v1243_v35 }
  0x46   : > { %843 = vmatpush1.bf16.msra.mxu0 %v1244_v36  ;;  %801 = vmatprep.subr.bf16.mxu1 %v1245_v37 }
  0x47   : > { %844 = vmatprep.subr.bf16.mxu0 %v1247_v38  ;;  %v892_v38 = vrot.slane (!%p1145_p11), %v887_v31, %v891_v33 }
  0x49   : > { %802 = vmatpush1.bf16.msra.mxu1 %v1249_v39  ;;  %v903_v39 = vld [vmem:[%s1534_s3] sm:$0xff] (!%p1145_p11) }
  0x4a   : > { %845 = vmatpush1.bf16.msra.mxu0 %v1250_v40  ;;  %803 = vmatprep.subr.bf16.mxu1 %v1251_v41  ;;  %v896_v40 = vrot.slane (!%p1145_p11), %v887_v31, %v895_v34  ;;  %v904_v41 = vld [vmem:[%s1534_s3 + $0x8] sm:$0xff] (!%p1145_p11) }
  0x4b   : > { %846 = vmatprep.subr.bf16.mxu0 %v1253_v42  ;;  %v905_v42 = vld [vmem:[%s1534_s3 + $0x10] sm:$0xff] (!%p1145_p11) }
  0x4d   : > { %804 = vmatpush1.bf16.msra.mxu1 %v1255_v43  ;;  %v906_v43 = vld [vmem:[%s1534_s3 + $0x18] sm:$0xff] (!%p1145_p11) }
  0x4e   : > { %847 = vmatpush1.bf16.msra.mxu0 %v1256_v44  ;;  %805 = vmatprep.subr.bf16.mxu1 %v1257_v45 }
  0x4f   : > { %848 = vmatprep.subr.bf16.mxu0 %v1259_v46 }
  0x51   : > { %806 = vmatpush1.bf16.msra.mxu1 %v1261_v47 }
  0x52   : > { %849 = vmatpush1.bf16.msra.mxu0 %v1262_v48  ;;  %807 = vmatprep.subr.bf16.mxu1 %v1263_v49 }
  0x53   : > { %850 = vmatprep.subr.bf16.mxu0 %v1265_v50 }
  0x55   : > { %808 = vmatpush1.bf16.msra.mxu1 %v1267_v51 }
  0x56   : > { %851 = vmatpush1.bf16.msra.mxu0 %v1268_v53  ;;  %809 = vmatprep.subr.bf16.mxu1 %v1269_v54 }
  0x57   : > { %852 = vmatprep.subr.bf16.mxu0 %v1271_v55 }
  0x59   : > { %810 = vmatpush1.bf16.msra.mxu1 %v1273_v57 }
  0x5a   : > { %853 = vmatpush1.bf16.msra.mxu0 %v1274_v58  ;;  %811 = vmatprep.subr.bf16.mxu1 %v1275_v59 }
  0x5b   : > { %854 = vmatprep.subr.bf16.mxu0 %v1277_v60 }
  0x5d   : > { %812 = vmatpush1.bf16.msra.mxu1 %v1279_v61 }
  0x5e   : > { %855 = vmatpush1.bf16.msra.mxu0 %v1280_v62  ;;  %813 = vmatprep.subr.bf16.mxu1 %v1281_v63 }
  0x5f   : > { %856 = vmatprep.subr.bf16.mxu0 %v1283_v0 }
  0x61   : > { %814 = vmatpush1.bf16.msra.mxu1 %v1285_v1 }
  0x62   : > { %857 = vmatpush1.bf16.msra.mxu0 %v1286_v2  ;;  %815 = vmatprep.subr.bf16.mxu1 %v1287_v3 }
  0x63   : > { %858 = vmatprep.subr.bf16.mxu0 %v1289_v4 }
  0x65   : > { %816 = vmatpush1.bf16.msra.mxu1 %v1291_v5 }
  0x66   : > { %859 = vmatpush1.bf16.msra.mxu0 %v1292_v6 }
  0x68   : > { %818 = vmatmul.mubr.bf16.vlgmr.msra.gmra.mrb[0].mxu1 %v1293_v7 }
  0x69   : > { %861 = vmatmul.mubr.bf16.vlgmr.msra.gmra.mrb[0].mxu0 %v1296_v8 }
 0x13b   : > { %v819_v9 = vpop.f32.mrb[0].mxu1 }
 0x13c   : > { %v862_v11 = vpop.f32.mrb[0].mxu0  ;;  %v821_v13 = vpop.f32.mrb[1].mxu1 }
 0x13d   : > { %v863_v12 = vadd.f32 %v862_v11, %v819_v9  ;;  %v864_v15 = vpop.f32.mrb[1].mxu0  ;;  %v823_v17 = vpop.f32.mrb[2].mxu1 }
 0x13e   : > { %v865_v16 = vadd.f32 %v864_v15, %v821_v13  ;;  %v866_v19 = vpop.f32.mrb[2].mxu0  ;;  %v825_v22 = vpop.f32.mrb[3].mxu1  ;;  %882 = sbr.rel (%p1145_p11) target bundleno = 339 (0x153), region = 67 }
 0x13f   : > { %v871_v20 = vadd.f32 %v863_v12, %v373_v10  ;;  %v867_v21 = vadd.f32 %v866_v19, %v823_v17  ;;  %v868_v24 = vpop.f32.mrb[3].mxu0 }
 0x140   : > { %v872_v25 = vadd.f32 %v865_v16, %v374_v14  ;;  %v869_v26 = vadd.f32 %v868_v24, %v825_v22 }
 0x141   : > { %875 = vst [vmem:[#allocation2] sm:$0xff] %v871_v20  ;;  %v873_v27 = vadd.f32 %v867_v21, %v375_v18 }
 0x142   : > { %876 = vst [vmem:[#allocation2 + $0x8] sm:$0xff] %v872_v25  ;;  %v874_v28 = vadd.f32 %v869_v26, %v376_v23 }
 0x143   : > { %877 = vst [vmem:[#allocation2 + $0x10] sm:$0xff] %v873_v27 }
 0x144   : > { %878 = vst [vmem:[#allocation2 + $0x18] sm:$0xff] %v874_v28 }
 0x148   : > { %v883_v32 = vld [vmem:[#allocation2] sm:$0xff] }
 0x149   : > { %v884_v35 = vld [vmem:[#allocation2 + $0x8] sm:$0xff]  ;;  %v899_v44 = vadd.f32 %v892_v38, %v883_v32 }
 0x14a   : > { %v885_v36 = vld [vmem:[#allocation2 + $0x10] sm:$0xff]  ;;  %v900_v45 = vadd.f32 %v896_v40, %v884_v35 }
 0x14b   : > { %v886_v37 = vld [vmem:[#allocation2 + $0x18] sm:$0xff]  ;;  %v901_v46 = vadd.f32 %v892_v38, %v885_v36  ;;  %v907_v48 = vadd.f32 %v903_v39, %v899_v44 }
 0x14c   : > { %v902_v47 = vadd.f32 %v896_v40, %v886_v37  ;;  %v908_v49 = vadd.f32 %v904_v41, %v900_v45 }
 0x14d   : > { %v909_v50 = vadd.f32 %v905_v42, %v901_v46  ;;  %v911_v52 = vmax.f32 %v907_v48, 0.0 }
 0x14e   : > { %v910_v51 = vadd.f32 %v906_v43, %v902_v47  ;;  %v912_v53 = vmax.f32 %v908_v49, 0.0 }
 0x14f   : > { %v913_v54 = vmax.f32 %v909_v50, 0.0  ;;  %915 = vst [vmem:[%s1535_s4] sm:$0xff] %v911_v52 }
 0x150   : > { %v914_v55 = vmax.f32 %v910_v51, 0.0  ;;  %916 = vst [vmem:[%s1535_s4 + $0x8] sm:$0xff] %v912_v53 }
 0x151   : > { %917 = vst [vmem:[%s1535_s4 + $0x10] sm:$0xff] %v913_v54 }
 0x152   : > { %918 = vst [vmem:[%s1535_s4 + $0x18] sm:$0xff] %v914_v55 }
 0x153 PF: > { %s14_s19 = sadd.s32 1, %s1337_s19   ;;  %s1536_s15 = smov %s1325_s16 }
 0x154   : > { %p11_p12 = scmp.ge.s32.totalorder %s14_s19, 7   ;;  %s1537_s16 = smov %s1400_s23 }
 0x155   : > { %s1538_s17 = smov %s1333_s18  ;;  %s1539_s18 = smov %s1541_s20 }
 0x156   :  { %13 = sbr.rel (!%p11_p12) target bundleno = 3 (0x3), region = 111 }

// kernel: resnet_forward.26
= control target key start
LH: loop header
LB: loop body
LE: loop exit
PB: predicated region body
PF: predicated region fallthrough
CT: control target
= control target key end

     0   :  { %s2028_s0 = inlined_call_operand.vmem [shape: bf16[16,2560], index: 0, kind: input, shape index: {}]   ;;  %s2029_s1 = inlined_call_operand.vmem [shape: bf16[2560,512], index: 1, kind: input, shape index: {}]   ;;  %s2030_s2 = inlined_call_operand.vmem [shape: f32[1,512], index: 2, kind: input, shape index: {}]   ;;  %s2031_s3 = inlined_call_operand.vmem [shape: f32[16,512], index: 3, kind: output, shape index: {}]  }
   0x1   :  { %2033 = sst [smem:[#allocation7_spill]] %s2028_s0 }
   0x2   :  { %2034 = sst [smem:[#allocation8_spill]] %s2029_s1 }
   0x3   :  { %s1642_s12 = smov 0   ;;  %s1644_s13 = smov 0  }
   0x4   :  { %s1646_s14 = smov 0   ;;  %s1648_s15 = smov 0  }
   0x5   :  { %s1650_s16 = smov 0   ;;  %s1652_s17 = smov 0  }
   0x6   :  { %s1654_s18 = smov 0   ;;  %s1656_s19 = smov 0  }
   0x7   :  { %s1658_s20 = smov 0   ;;  %s1660_s21 = smov 0  }
   0x8   :  { %s1662_s22 = smov 0  }
   0x9 LB: > { %s1243_s23 = sadd.s32 4294967295, %s1619_s22   ;;  %s25_s24 = sadd.s32 1, %s1611_s20  ;;  %s1619_s22 = sphi %s1662_s22, %s13_s22   ;;  %s1615_s21 = sphi %s1660_s21, %s2051_s21   ;;  %s1611_s20 = sphi %s1658_s20, %s2050_s20   ;;  %s1607_s19 = sphi %s1656_s19, %s2049_s19   ;;  %s1603_s18 = sphi %s1654_s18, %s2048_s18   ;;  %s1599_s17 = sphi %s1652_s17, %s2047_s17   ;;  %s1595_s16 = sphi %s1650_s16, %s2046_s16   ;;  %s1591_s15 = sphi %s1648_s15, %s2045_s15   ;;  %s1587_s14 = sphi %s1646_s14, %s2044_s14   ;;  %s1583_s13 = sphi %s1644_s13, %s2043_s13   ;;  %s1579_s12 = sphi %s1642_s12, %s2042_s12  }
   0xa   : > { %p26_p0 = scmp.ge.s32.totalorder %s25_s24, 5  ;;  %s28_s25 = sadd.s32 1, %s1615_s21 }
   0xb   : > { %s41_s26 = sadd.s32 1, %s1599_s17  ;;  %p48_p1 = scmp.ne.s32.totalorder %s1599_s17, %s1595_s16 }
   0xc   : > { %s2053_s24 = smov (%p26_p0, %s25_s24), 0  ;;  %s2055_s25 = smov (!%p26_p0, %s28_s25), %s1615_s21 }
   0xd   : > { %s37_s27 = ssub.s32 %s1611_s20, %s2053_s24  ;;  %p49_p2 = scmp.eq.s32.totalorder %s1619_s22, 0 }
   0xe   : > { %p30_p3 = scmp.ge.s32.totalorder %s2055_s25, 2  ;;  %p39_p4 = scmp.eq.s32.totalorder %s37_s27, 0 }
   0xf   : > { %p1709_p5 = por %p49_p2, %p48_p1  ;;  %s69_s29 = sadd.s32 1, %s1591_s15 }
  0x10   : > { %s2057_s25 = smov (%p30_p3, %s2055_s25), 0  ;;  %p76_p6 = scmp.ne.s32.totalorder %s1591_s15, %s1587_s14 }
  0x11   : > { %2036 = sst [smem:[#allocation6_spill]] %s2057_s25  ;;  %s65_s4 = ssub.s32 %s1615_s21, %s2057_s25 }
  0x12   : > { %s1717_s30 = scalar_select %p39_p4, %s1599_s17, %s41_s26  }
  0x13   : > { %s66_s5 = sor.u32 %s65_s4, %s37_s27  ;;  %p121_p7 = scmp.eq.s32.totalorder %s65_s4, 0 }
  0x14   : > { %p67_p8 = scmp.eq.s32.totalorder %s66_s5, 0  ;;  %p1723_p9 = por %p76_p6, %p49_p2 }
  0x15   : > { %s123_s7 = sadd.s32 1, %s1583_s13  ;;  %p133_p10 = scmp.ne.s32.totalorder %s1583_s13, %s1579_s12 }
  0x16   : > { %s1731_s8 = scalar_select %p67_p8, %s1591_s15, %s69_s29  }
  0x17   : > { %s1734_s9 = scalar_select %p121_p7, %s1583_s13, %s123_s7  }
  0x18   : > { %p134_p11 = scmp.eq.s32.totalorder %s1243_s23, 9  ;;  %p1246_p13 = scmp.ge.s32.totalorder %s1619_s22, 10 }
  0x1a   : > { %p1736_p12 = por %p134_p11, %p133_p10  ;;  %156 = sbr.rel (%p1246_p13) target bundleno = 87 (0x57), region = 16 }
  0x21   : > { %159 = sbr.rel (!%p1709_p5) target bundleno = 45 (0x2d), region = 20  ;;  %s161_s11 = sand.u32 (%p1709_p5), 1, %s1599_s17  }
  0x22   : > { %s1335_s26 = sshll.u32 (%p1709_p5), %s1611_s20, 4  ;;  %s1247_s27 = sshll.u32 (%p1709_p5), %s161_s11, 5 }
  0x23   : > { %s2039_s0 = sld [smem:[#allocation7_spill]] (%p1709_p5)  ;;  %s163_s23 = scalar_lea.vmem (%p1709_p5), [#allocation3], %s1247_s27 }
  0x29   : > { %s169_s5 = scalar_lea.vmem %s2039_s0, %s1335_s26 }
  0x2a   : > { %v182_v0 = vld [vmem:[%s169_s5] sm:$0xff]  ;;  %v184_v1 = vld [vmem:[%s169_s5 + $0x8] sm:$0xff]  ;;  %v186_v2 = vld [vmem:[%s169_s5 + $0x50] sm:$0xff] }
  0x2b   : > { %183 = vst [vmem:[%s163_s23] sm:$0xff] %v182_v0  ;;  %185 = vst [vmem:[%s163_s23 + $0x8] sm:$0xff] %v184_v1  ;;  %v188_v3 = vld [vmem:[%s169_s5 + $0x58] sm:$0xff] }
  0x2c   : > { %187 = vst [vmem:[%s163_s23 + $0x10] sm:$0xff] %v186_v2  ;;  %189 = vst [vmem:[%s163_s23 + $0x18] sm:$0xff] %v188_v3 }
  0x2d PF: > { %195 = sbr.rel (!%p1723_p9) target bundleno = 87 (0x57), region = 43  ;;  %s197_s28 = sand.u32 (%p1723_p9), 1, %s1591_s15  }
  0x2e   : > { %s1252_s7 = sshll.u32 (%p1723_p9), %s1615_s21, 1  ;;  %s1250_s11 = sshll.u32 (%p1723_p9), %s197_s28, 9 }
  0x2f   : > { %s1336_s26 = sshll.u32 (%p1723_p9), %s1611_s20, 8  ;;  %s2040_s1 = sld [smem:[#allocation8_spill]] (%p1723_p9) }
  0x30   : > { %s203_s29 = sadd.s32 (%p1723_p9), %s1336_s26, %s1252_s7  ;;  %s1761_s6 = scalar_lea.vmem (%p1723_p9), [#allocation4], %s1250_s11 }
  0x31   : > { %s1254_s4 = sshll.u32 (%p1723_p9), %s203_s29, 2 }
  0x35   : > { %s1756_s25 = scalar_lea.vmem %s2040_s1, %s1254_s4 }
  0x36   : > { %v359_v4 = vld [vmem:[%s1756_s25] sm:$0xff]  ;;  %v361_v5 = vld [vmem:[%s1756_s25 + $0x10] sm:$0xff] }
  0x37   : > { %v363_v6 = vld [vmem:[%s1756_s25 + $0x20] sm:$0xff]  ;;  %360 = vst [vmem:[%s1761_s6] sm:$0xff] %v359_v4  ;;  %362 = vst [vmem:[%s1761_s6 + $0x8] sm:$0xff] %v361_v5  ;;  %v365_v7 = vld [vmem:[%s1756_s25 + $0x30] sm:$0xff] }
  0x38   : > { %364 = vst [vmem:[%s1761_s6 + $0x10] sm:$0xff] %v363_v6  ;;  %v367_v8 = vld [vmem:[%s1756_s25 + $0x40] sm:$0xff]  ;;  %v369_v9 = vld [vmem:[%s1756_s25 + $0x50] sm:$0xff]  ;;  %366 = vst [vmem:[%s1761_s6 + $0x18] sm:$0xff] %v365_v7 }
  0x39   : > { %368 = vst [vmem:[%s1761_s6 + $0x20] sm:$0xff] %v367_v8  ;;  %370 = vst [vmem:[%s1761_s6 + $0x28] sm:$0xff] %v369_v9  ;;  %v371_v10 = vld [vmem:[%s1756_s25 + $0x60] sm:$0xff]  ;;  %v373_v11 = vld [vmem:[%s1756_s25 + $0x70] sm:$0xff] }
  0x3a   : > { %v375_v12 = vld [vmem:[%s1756_s25 + $0x80] sm:$0xff]  ;;  %372 = vst [vmem:[%s1761_s6 + $0x30] sm:$0xff] %v371_v10  ;;  %374 = vst [vmem:[%s1761_s6 + $0x38] sm:$0xff] %v373_v11  ;;  %v377_v13 = vld [vmem:[%s1756_s25 + $0x90] sm:$0xff] }
  0x3b   : > { %376 = vst [vmem:[%s1761_s6 + $0x40] sm:$0xff] %v375_v12  ;;  %v379_v14 = vld [vmem:[%s1756_s25 + $0xa0] sm:$0xff]  ;;  %v381_v15 = vld [vmem:[%s1756_s25 + $0xb0] sm:$0xff]  ;;  %378 = vst [vmem:[%s1761_s6 + $0x48] sm:$0xff] %v377_v13 }
  0x3c   : > { %380 = vst [vmem:[%s1761_s6 + $0x50] sm:$0xff] %v379_v14  ;;  %382 = vst [vmem:[%s1761_s6 + $0x58] sm:$0xff] %v381_v15  ;;  %v383_v16 = vld [vmem:[%s1756_s25 + $0xc0] sm:$0xff]  ;;  %v385_v17 = vld [vmem:[%s1756_s25 + $0xd0] sm:$0xff] }
  0x3d   : > { %v387_v18 = vld [vmem:[%s1756_s25 + $0xe0] sm:$0xff]  ;;  %384 = vst [vmem:[%s1761_s6 + $0x60] sm:$0xff] %v383_v16  ;;  %386 = vst [vmem:[%s1761_s6 + $0x68] sm:$0xff] %v385_v17  ;;  %v389_v19 = vld [vmem:[%s1756_s25 + $0xf0] sm:$0xff] }
  0x3e   : > { %388 = vst [vmem:[%s1761_s6 + $0x70] sm:$0xff] %v387_v18  ;;  %v391_v20 = vld [vmem:[%s1756_s25 + $0x100] sm:$0xff]  ;;  %v393_v21 = vld [vmem:[%s1756_s25 + $0x110] sm:$0xff]  ;;  %390 = vst [vmem:[%s1761_s6 + $0x78] sm:$0xff] %v389_v19 }
  0x3f   : > { %392 = vst [vmem:[%s1761_s6 + $0x80] sm:$0xff] %v391_v20  ;;  %394 = vst [vmem:[%s1761_s6 + $0x88] sm:$0xff] %v393_v21  ;;  %v395_v22 = vld [vmem:[%s1756_s25 + $0x120] sm:$0xff]  ;;  %v397_v23 = vld [vmem:[%s1756_s25 + $0x130] sm:$0xff] }
  0x40   : > { %v399_v24 = vld [vmem:[%s1756_s25 + $0x140] sm:$0xff]  ;;  %396 = vst [vmem:[%s1761_s6 + $0x90] sm:$0xff] %v395_v22  ;;  %398 = vst [vmem:[%s1761_s6 + $0x98] sm:$0xff] %v397_v23  ;;  %v401_v25 = vld [vmem:[%s1756_s25 + $0x150] sm:$0xff] }
  0x41   : > { %400 = vst [vmem:[%s1761_s6 + $0xa0] sm:$0xff] %v399_v24  ;;  %v403_v26 = vld [vmem:[%s1756_s25 + $0x160] sm:$0xff]  ;;  %v405_v27 = vld [vmem:[%s1756_s25 + $0x170] sm:$0xff]  ;;  %402 = vst [vmem:[%s1761_s6 + $0xa8] sm:$0xff] %v401_v25 }
  0x42   : > { %404 = vst [vmem:[%s1761_s6 + $0xb0] sm:$0xff] %v403_v26  ;;  %406 = vst [vmem:[%s1761_s6 + $0xb8] sm:$0xff] %v405_v27  ;;  %v407_v28 = vld [vmem:[%s1756_s25 + $0x180] sm:$0xff]  ;;  %v409_v29 = vld [vmem:[%s1756_s25 + $0x190] sm:$0xff] }
  0x43   : > { %v411_v30 = vld [vmem:[%s1756_s25 + $0x1a0] sm:$0xff]  ;;  %408 = vst [vmem:[%s1761_s6 + $0xc0] sm:$0xff] %v407_v28  ;;  %410 = vst [vmem:[%s1761_s6 + $0xc8] sm:$0xff] %v409_v29  ;;  %v413_v31 = vld [vmem:[%s1756_s25 + $0x1b0] sm:$0xff] }
  0x44   : > { %412 = vst [vmem:[%s1761_s6 + $0xd0] sm:$0xff] %v411_v30  ;;  %v415_v32 = vld [vmem:[%s1756_s25 + $0x1c0] sm:$0xff]  ;;  %v417_v33 = vld [vmem:[%s1756_s25 + $0x1d0] sm:$0xff]  ;;  %414 = vst [vmem:[%s1761_s6 + $0xd8] sm:$0xff] %v413_v31 }
  0x45   : > { %416 = vst [vmem:[%s1761_s6 + $0xe0] sm:$0xff] %v415_v32  ;;  %418 = vst [vmem:[%s1761_s6 + $0xe8] sm:$0xff] %v417_v33  ;;  %v419_v34 = vld [vmem:[%s1756_s25 + $0x1e0] sm:$0xff]  ;;  %v421_v35 = vld [vmem:[%s1756_s25 + $0x1f0] sm:$0xff] }
  0x46   : > { %v423_v36 = vld [vmem:[%s1756_s25 + $0x200] sm:$0xff]  ;;  %420 = vst [vmem:[%s1761_s6 + $0xf0] sm:$0xff] %v419_v34  ;;  %422 = vst [vmem:[%s1761_s6 + $0xf8] sm:$0xff] %v421_v35  ;;  %v425_v37 = vld [vmem:[%s1756_s25 + $0x210] sm:$0xff] }
  0x47   : > { %424 = vst [vmem:[%s1761_s6 + $0x100] sm:$0xff] %v423_v36  ;;  %v427_v38 = vld [vmem:[%s1756_s25 + $0x220] sm:$0xff]  ;;  %v429_v39 = vld [vmem:[%s1756_s25 + $0x230] sm:$0xff]  ;;  %426 = vst [vmem:[%s1761_s6 + $0x108] sm:$0xff] %v425_v37 }
  0x48   : > { %428 = vst [vmem:[%s1761_s6 + $0x110] sm:$0xff] %v427_v38  ;;  %430 = vst [vmem:[%s1761_s6 + $0x118] sm:$0xff] %v429_v39  ;;  %v431_v40 = vld [vmem:[%s1756_s25 + $0x240] sm:$0xff]  ;;  %v433_v41 = vld [vmem:[%s1756_s25 + $0x250] sm:$0xff] }
  0x49   : > { %v435_v42 = vld [vmem:[%s1756_s25 + $0x260] sm:$0xff]  ;;  %432 = vst [vmem:[%s1761_s6 + $0x120] sm:$0xff] %v431_v40  ;;  %434 = vst [vmem:[%s1761_s6 + $0x128] sm:$0xff] %v433_v41  ;;  %v437_v43 = vld [vmem:[%s1756_s25 + $0x270] sm:$0xff] }
  0x4a   : > { %436 = vst [vmem:[%s1761_s6 + $0x130] sm:$0xff] %v435_v42  ;;  %v439_v44 = vld [vmem:[%s1756_s25 + $0x280] sm:$0xff]  ;;  %v441_v45 = vld [vmem:[%s1756_s25 + $0x290] sm:$0xff]  ;;  %438 = vst [vmem:[%s1761_s6 + $0x138] sm:$0xff] %v437_v43 }
  0x4b   : > { %440 = vst [vmem:[%s1761_s6 + $0x140] sm:$0xff] %v439_v44  ;;  %442 = vst [vmem:[%s1761_s6 + $0x148] sm:$0xff] %v441_v45  ;;  %v443_v46 = vld [vmem:[%s1756_s25 + $0x2a0] sm:$0xff]  ;;  %v445_v47 = vld [vmem:[%s1756_s25 + $0x2b0] sm:$0xff] }
  0x4c   : > { %v447_v48 = vld [vmem:[%s1756_s25 + $0x2c0] sm:$0xff]  ;;  %444 = vst [vmem:[%s1761_s6 + $0x150] sm:$0xff] %v443_v46  ;;  %446 = vst [vmem:[%s1761_s6 + $0x158] sm:$0xff] %v445_v47  ;;  %v449_v49 = vld [vmem:[%s1756_s25 + $0x2d0] sm:$0xff] }
  0x4d   : > { %448 = vst [vmem:[%s1761_s6 + $0x160] sm:$0xff] %v447_v48  ;;  %v451_v50 = vld [vmem:[%s1756_s25 + $0x2e0] sm:$0xff]  ;;  %v453_v51 = vld [vmem:[%s1756_s25 + $0x2f0] sm:$0xff]  ;;  %450 = vst [vmem:[%s1761_s6 + $0x168] sm:$0xff] %v449_v49 }
  0x4e   : > { %452 = vst [vmem:[%s1761_s6 + $0x170] sm:$0xff] %v451_v50  ;;  %454 = vst [vmem:[%s1761_s6 + $0x178] sm:$0xff] %v453_v51  ;;  %v455_v52 = vld [vmem:[%s1756_s25 + $0x300] sm:$0xff]  ;;  %v457_v53 = vld [vmem:[%s1756_s25 + $0x310] sm:$0xff] }
  0x4f   : > { %v459_v54 = vld [vmem:[%s1756_s25 + $0x320] sm:$0xff]  ;;  %456 = vst [vmem:[%s1761_s6 + $0x180] sm:$0xff] %v455_v52  ;;  %458 = vst [vmem:[%s1761_s6 + $0x188] sm:$0xff] %v457_v53  ;;  %v461_v55 = vld [vmem:[%s1756_s25 + $0x330] sm:$0xff] }
  0x50   : > { %460 = vst [vmem:[%s1761_s6 + $0x190] sm:$0xff] %v459_v54  ;;  %v463_v56 = vld [vmem:[%s1756_s25 + $0x340] sm:$0xff]  ;;  %v465_v57 = vld [vmem:[%s1756_s25 + $0x350] sm:$0xff]  ;;  %462 = vst [vmem:[%s1761_s6 + $0x198] sm:$0xff] %v461_v55 }
  0x51   : > { %464 = vst [vmem:[%s1761_s6 + $0x1a0] sm:$0xff] %v463_v56  ;;  %466 = vst [vmem:[%s1761_s6 + $0x1a8] sm:$0xff] %v465_v57  ;;  %v467_v58 = vld [vmem:[%s1756_s25 + $0x360] sm:$0xff]  ;;  %v469_v59 = vld [vmem:[%s1756_s25 + $0x370] sm:$0xff] }
  0x52   : > { %v471_v60 = vld [vmem:[%s1756_s25 + $0x380] sm:$0xff]  ;;  %468 = vst [vmem:[%s1761_s6 + $0x1b0] sm:$0xff] %v467_v58  ;;  %470 = vst [vmem:[%s1761_s6 + $0x1b8] sm:$0xff] %v469_v59  ;;  %v473_v61 = vld [vmem:[%s1756_s25 + $0x390] sm:$0xff] }
  0x53   : > { %472 = vst [vmem:[%s1761_s6 + $0x1c0] sm:$0xff] %v471_v60  ;;  %v475_v62 = vld [vmem:[%s1756_s25 + $0x3a0] sm:$0xff]  ;;  %v477_v63 = vld [vmem:[%s1756_s25 + $0x3b0] sm:$0xff]  ;;  %474 = vst [vmem:[%s1761_s6 + $0x1c8] sm:$0xff] %v473_v61 }
  0x54   : > { %476 = vst [vmem:[%s1761_s6 + $0x1d0] sm:$0xff] %v475_v62  ;;  %478 = vst [vmem:[%s1761_s6 + $0x1d8] sm:$0xff] %v477_v63  ;;  %v479_v0 = vld [vmem:[%s1756_s25 + $0x3c0] sm:$0xff]  ;;  %v481_v1 = vld [vmem:[%s1756_s25 + $0x3d0] sm:$0xff] }
  0x55   : > { %v483_v2 = vld [vmem:[%s1756_s25 + $0x3e0] sm:$0xff]  ;;  %480 = vst [vmem:[%s1761_s6 + $0x1e0] sm:$0xff] %v479_v0  ;;  %482 = vst [vmem:[%s1761_s6 + $0x1e8] sm:$0xff] %v481_v1  ;;  %v485_v3 = vld [vmem:[%s1756_s25 + $0x3f0] sm:$0xff] }
  0x56   : > { %484 = vst [vmem:[%s1761_s6 + $0x1f0] sm:$0xff] %v483_v2  ;;  %486 = vst [vmem:[%s1761_s6 + $0x1f8] sm:$0xff] %v485_v3 }
  0x57 PF: > { %p1255_p0 = scmp.ge.s32.totalorder %s1619_s22, 1  ;;  %p499_p1 = scmp.lt.s32.totalorder %s1619_s22, 11 }
  0x59   : > { %p500_p2 = pnand %p1255_p0, %p499_p1 }
  0x5a   : > { %s506_s0 = sand.u32 (!%p500_p2), 1, %s1595_s16   ;;  %s513_s5 = sand.u32 (!%p500_p2), 1, %s1587_s14  }
  0x5b   : > { %503 = sbr.rel (%p500_p2) target bundleno = 411 (0x19b), region = 85  ;;  %s1256_s23 = sshll.u32 (!%p500_p2), %s506_s0, 5 }
  0x5c   : > { %s1257_s28 = sshll.u32 (!%p500_p2), %s513_s5, 9  ;;  %s540_s7 = sand.u32 (!%p500_p2), 1, %s1579_s12  }
  0x5d   : > { %s1259_s11 = sshll.u32 (!%p500_p2), %s1607_s19, 1  ;;  %s1258_s25 = sshll.u32 (!%p500_p2), %s540_s7, 5 }
  0x5e   : > { %p548_p3 = scmp.lt.s32.totalorder (!%p500_p2), %s1259_s11, 3  ;;  %s1900_s27 = scalar_lea.vmem (!%p500_p2), [#allocation3], %s1256_s23 }
  0x5f   : > { %s1902_s6 = scalar_lea.vmem (!%p500_p2), [#allocation4], %s1257_s28  ;;  %s1904_s1 = scalar_lea.vmem (!%p500_p2), [#allocation5], %s1258_s25 }
  0x60   : > { %p1260_p4 = scmp.ne.s32.totalorder (!%p500_p2), %s1603_s18, 0 }
  0x62   : > { %s2059_s11 = smov (!%p548_p3, %s1259_s11), 3  ;;  %557 = sbr.rel (%p1260_p4) target bundleno = 105 (0x69), region = 97 }
  0x63   : > { %s550_s4 = scalar_lea.vmem %s2030_s2, %s2059_s11  ;;  %v1621_v4 = vmov (!%p1260_p4), 0.0  }
  0x64   : > { %558 = vst [vmem:[#allocation2] sm:$0xff] (!%p1260_p4), %v1621_v4  ;;  %559 = vst [vmem:[#allocation2 + $0x8] sm:$0xff] (!%p1260_p4), %v1621_v4 }
  0x65   : > { %560 = vst [vmem:[#allocation2 + $0x10] sm:$0xff] (!%p1260_p4), %v1621_v4  ;;  %561 = vst [vmem:[#allocation2 + $0x18] sm:$0xff] (!%p1260_p4), %v1621_v4 }
  0x69 PF: > { %v1431_v5 = vld [vmem:[%s1902_s6 + $0x4] ss:$8 sps:$4 sm:$0xff]   ;;  %v1435_v7 = vld [vmem:[%s1902_s6] ss:$8 sps:$4 sm:$0xff]   ;;  %v1437_v9 = vld [vmem:[%s1902_s6 + $0x14] ss:$8 sps:$4 sm:$0xff]  }
  0x6a   : > { %v1433_v6 = vld [vmem:[%s1902_s6 + $0x104] ss:$8 sps:$4 sm:$0xff]   ;;  %974 = vmatprep.subr.bf16.mxu1 %v1431_v5  ;;  %v1436_v8 = vld [vmem:[%s1902_s6 + $0x100] ss:$8 sps:$4 sm:$0xff]   ;;  %v1439_v10 = vld [vmem:[%s1902_s6 + $0x114] ss:$8 sps:$4 sm:$0xff]  }
  0x6b   : > { %1017 = vmatprep.subr.bf16.mxu0 %v1433_v6  ;;  %975 = vmatpush1.bf16.msra.mxu1 %v1435_v7  ;;  %v1441_v11 = vld [vmem:[%s1902_s6 + $0x10] ss:$8 sps:$4 sm:$0xff]   ;;  %v1443_v13 = vld [vmem:[%s1902_s6 + $0x24] ss:$8 sps:$4 sm:$0xff]   ;;  %v1447_v15 = vld [vmem:[%s1902_s6 + $0x20] ss:$8 sps:$4 sm:$0xff]  }
  0x6c   : > { %1018 = vmatpush1.bf16.msra.mxu0 %v1436_v8  ;;  %976 = vmatprep.subr.bf16.mxu1 %v1437_v9  ;;  %v1442_v12 = vld [vmem:[%s1902_s6 + $0x110] ss:$8 sps:$4 sm:$0xff]   ;;  %v1445_v14 = vld [vmem:[%s1902_s6 + $0x124] ss:$8 sps:$4 sm:$0xff]   ;;  %v1448_v16 = vld [vmem:[%s1902_s6 + $0x120] ss:$8 sps:$4 sm:$0xff]  }
  0x6d   : > { %1019 = vmatprep.subr.bf16.mxu0 %v1439_v10  ;;  %v1449_v17 = vld [vmem:[%s1902_s6 + $0x34] ss:$8 sps:$4 sm:$0xff]   ;;  %v1453_v19 = vld [vmem:[%s1902_s6 + $0x30] ss:$8 sps:$4 sm:$0xff]   ;;  %v1455_v21 = vld [vmem:[%s1902_s6 + $0x44] ss:$8 sps:$4 sm:$0xff]  }
  0x6e   : > { %v1451_v18 = vld [vmem:[%s1902_s6 + $0x134] ss:$8 sps:$4 sm:$0xff]   ;;  %v1454_v20 = vld [vmem:[%s1902_s6 + $0x130] ss:$8 sps:$4 sm:$0xff]   ;;  %v1457_v22 = vld [vmem:[%s1902_s6 + $0x144] ss:$8 sps:$4 sm:$0xff]  }
  0x6f   : > { %977 = vmatpush1.bf16.msra.mxu1 %v1441_v11  ;;  %v1459_v23 = vld [vmem:[%s1902_s6 + $0x40] ss:$8 sps:$4 sm:$0xff]   ;;  %v1461_v25 = vld [vmem:[%s1902_s6 + $0x54] ss:$8 sps:$4 sm:$0xff]   ;;  %v1465_v27 = vld [vmem:[%s1902_s6 + $0x50] ss:$8 sps:$4 sm:$0xff]  }
  0x70   : > { %1020 = vmatpush1.bf16.msra.mxu0 %v1442_v12  ;;  %978 = vmatprep.subr.bf16.mxu1 %v1443_v13  ;;  %v1460_v24 = vld [vmem:[%s1902_s6 + $0x140] ss:$8 sps:$4 sm:$0xff]   ;;  %v1463_v26 = vld [vmem:[%s1902_s6 + $0x154] ss:$8 sps:$4 sm:$0xff]   ;;  %v1466_v28 = vld [vmem:[%s1902_s6 + $0x150] ss:$8 sps:$4 sm:$0xff]  }
  0x71   : > { %1021 = vmatprep.subr.bf16.mxu0 %v1445_v14  ;;  %v1467_v29 = vld [vmem:[%s1902_s6 + $0x64] ss:$8 sps:$4 sm:$0xff]   ;;  %v1471_v31 = vld [vmem:[%s1902_s6 + $0x60] ss:$8 sps:$4 sm:$0xff]   ;;  %v1473_v33 = vld [vmem:[%s1902_s6 + $0x74] ss:$8 sps:$4 sm:$0xff]  }
  0x72   : > { %v1469_v30 = vld [vmem:[%s1902_s6 + $0x164] ss:$8 sps:$4 sm:$0xff]   ;;  %v1472_v32 = vld [vmem:[%s1902_s6 + $0x160] ss:$8 sps:$4 sm:$0xff]   ;;  %v1475_v34 = vld [vmem:[%s1902_s6 + $0x174] ss:$8 sps:$4 sm:$0xff]  }
  0x73   : > { %979 = vmatpush1.bf16.msra.mxu1 %v1447_v15  ;;  %v1477_v35 = vld [vmem:[%s1902_s6 + $0x70] ss:$8 sps:$4 sm:$0xff]   ;;  %v1479_v37 = vld [vmem:[%s1902_s6 + $0x84] ss:$8 sps:$4 sm:$0xff]   ;;  %v1483_v39 = vld [vmem:[%s1902_s6 + $0x80] ss:$8 sps:$4 sm:$0xff]  }
  0x74   : > { %1022 = vmatpush1.bf16.msra.mxu0 %v1448_v16  ;;  %980 = vmatprep.subr.bf16.mxu1 %v1449_v17  ;;  %v1478_v36 = vld [vmem:[%s1902_s6 + $0x170] ss:$8 sps:$4 sm:$0xff]   ;;  %v1481_v38 = vld [vmem:[%s1902_s6 + $0x184] ss:$8 sps:$4 sm:$0xff]   ;;  %v1484_v40 = vld [vmem:[%s1902_s6 + $0x180] ss:$8 sps:$4 sm:$0xff]  }
  0x75   : > { %1023 = vmatprep.subr.bf16.mxu0 %v1451_v18  ;;  %v1485_v41 = vld [vmem:[%s1902_s6 + $0x94] ss:$8 sps:$4 sm:$0xff]   ;;  %v1489_v43 = vld [vmem:[%s1902_s6 + $0x90] ss:$8 sps:$4 sm:$0xff]   ;;  %v1491_v45 = vld [vmem:[%s1902_s6 + $0xa4] ss:$8 sps:$4 sm:$0xff]  }
  0x76   : > { %v1487_v42 = vld [vmem:[%s1902_s6 + $0x194] ss:$8 sps:$4 sm:$0xff]   ;;  %v1490_v44 = vld [vmem:[%s1902_s6 + $0x190] ss:$8 sps:$4 sm:$0xff]   ;;  %v1493_v46 = vld [vmem:[%s1902_s6 + $0x1a4] ss:$8 sps:$4 sm:$0xff]  }
  0x77   : > { %981 = vmatpush1.bf16.msra.mxu1 %v1453_v19  ;;  %v1495_v47 = vld [vmem:[%s1902_s6 + $0xa0] ss:$8 sps:$4 sm:$0xff]   ;;  %v1497_v49 = vld [vmem:[%s1902_s6 + $0xb4] ss:$8 sps:$4 sm:$0xff]   ;;  %v1501_v51 = vld [vmem:[%s1902_s6 + $0xb0] ss:$8 sps:$4 sm:$0xff]  }
  0x78   : > { %1024 = vmatpush1.bf16.msra.mxu0 %v1454_v20  ;;  %982 = vmatprep.subr.bf16.mxu1 %v1455_v21  ;;  %v1496_v48 = vld [vmem:[%s1902_s6 + $0x1a0] ss:$8 sps:$4 sm:$0xff]   ;;  %v1499_v50 = vld [vmem:[%s1902_s6 + $0x1b4] ss:$8 sps:$4 sm:$0xff]   ;;  %v1502_v53 = vld [vmem:[%s1902_s6 + $0x1b0] ss:$8 sps:$4 sm:$0xff]  }
  0x79   : > { %1025 = vmatprep.subr.bf16.mxu0 %v1457_v22  ;;  %v1529_v52 = vld [vmem:[%s1900_s27 + $0x4] ss:$16 sps:$4 sm:$0xff]   ;;  %v1532_v56 = vld [vmem:[%s1900_s27 + $0xc] ss:$16 sps:$4 sm:$0xff]   ;;  %v1507_v57 = vld [vmem:[%s1902_s6 + $0xc0] ss:$8 sps:$4 sm:$0xff]  }
  0x7a   : > { %v1503_v54 = vld [vmem:[%s1902_s6 + $0xc4] ss:$8 sps:$4 sm:$0xff]   ;;  %1006 = vmatprep.mubr.bf16.mxu1 %v1529_v52  ;;  %1049 = vmatprep.mubr.bf16.mxu0 %v1532_v56  ;;  %v1508_v58 = vld [vmem:[%s1902_s6 + $0x1c0] ss:$8 sps:$4 sm:$0xff]   ;;  %v1509_v59 = vld [vmem:[%s1902_s6 + $0xd4] ss:$8 sps:$4 sm:$0xff]  }
  0x7b   : > { %983 = vmatpush1.bf16.msra.mxu1 %v1459_v23  ;;  %v1505_v55 = vld [vmem:[%s1902_s6 + $0x1c4] ss:$8 sps:$4 sm:$0xff]   ;;  %v1511_v60 = vld [vmem:[%s1902_s6 + $0x1d4] ss:$8 sps:$4 sm:$0xff]   ;;  %v1513_v61 = vld [vmem:[%s1902_s6 + $0xd0] ss:$8 sps:$4 sm:$0xff]  }
  0x7c   : > { %1026 = vmatpush1.bf16.msra.mxu0 %v1460_v24  ;;  %984 = vmatprep.subr.bf16.mxu1 %v1461_v25  ;;  %v1514_v62 = vld [vmem:[%s1902_s6 + $0x1d0] ss:$8 sps:$4 sm:$0xff]   ;;  %v1515_v63 = vld [vmem:[%s1902_s6 + $0xe4] ss:$8 sps:$4 sm:$0xff]   ;;  %v1519_v1 = vld [vmem:[%s1902_s6 + $0xe0] ss:$8 sps:$4 sm:$0xff]  }
  0x7d   : > { %1027 = vmatprep.subr.bf16.mxu0 %v1463_v26  ;;  %v1517_v0 = vld [vmem:[%s1902_s6 + $0x1e4] ss:$8 sps:$4 sm:$0xff]   ;;  %v1520_v2 = vld [vmem:[%s1902_s6 + $0x1e0] ss:$8 sps:$4 sm:$0xff]   ;;  %v1521_v3 = vld [vmem:[%s1902_s6 + $0xf4] ss:$8 sps:$4 sm:$0xff]  }
  0x7e   : > { %v1523_v4 = vld [vmem:[%s1902_s6 + $0x1f4] ss:$8 sps:$4 sm:$0xff]   ;;  %v1525_v5 = vld [vmem:[%s1902_s6 + $0xf0] ss:$8 sps:$4 sm:$0xff]   ;;  %v562_v10 = vld [vmem:[#allocation2] sm:$0xff]  ;;  %p1329_p5 = scmp.ne.s32.totalorder %s1603_s18, 4 }
  0x7f   : > { %985 = vmatpush1.bf16.msra.mxu1 %v1465_v27  ;;  %v1526_v6 = vld [vmem:[%s1902_s6 + $0x1f0] ss:$8 sps:$4 sm:$0xff]   ;;  %v563_v14 = vld [vmem:[#allocation2 + $0x8] sm:$0xff] }
  0x80   : > { %1028 = vmatpush1.bf16.msra.mxu0 %v1466_v28  ;;  %986 = vmatprep.subr.bf16.mxu1 %v1467_v29  ;;  %v1527_v7 = vld [vmem:[%s1900_s27] ss:$16 sps:$4 sm:$0xff]   ;;  %v1530_v8 = vld [vmem:[%s1900_s27 + $0x8] ss:$16 sps:$4 sm:$0xff]   ;;  %v1078_v29 = vlaneseq (!%p1329_p5) }
  0x81   : > { %1029 = vmatprep.subr.bf16.mxu0 %v1469_v30  ;;  %v564_v18 = vld [vmem:[#allocation2 + $0x10] sm:$0xff]  ;;  %v565_v23 = vld [vmem:[#allocation2 + $0x18] sm:$0xff] }
  0x82   : > { %v1079_v30 = vshrl.u32 (!%p1329_p5), %v1078_v29, 7 }
  0x83   : > { %987 = vmatpush1.bf16.msra.mxu1 %v1471_v31  ;;  %v1076_v31 = vld [vmem:[%s550_s4] sm:$0x3] (!%p1329_p5) }
  0x84   : > { %1030 = vmatpush1.bf16.msra.mxu0 %v1472_v32  ;;  %988 = vmatprep.subr.bf16.mxu1 %v1473_v33  ;;  %v1080_v33 = vsub.s32 (!%p1329_p5), 0, %v1079_v30 }
  0x85   : > { %1031 = vmatprep.subr.bf16.mxu0 %v1475_v34  ;;  %v1084_v34 = vsub.s32 (!%p1329_p5), 1, %v1079_v30 }
  0x87   : > { %989 = vmatpush1.bf16.msra.mxu1 %v1477_v35 }
  0x88   : > { %1032 = vmatpush1.bf16.msra.mxu0 %v1478_v36  ;;  %990 = vmatprep.subr.bf16.mxu1 %v1479_v37 }
  0x89   : > { %1033 = vmatprep.subr.bf16.mxu0 %v1481_v38  ;;  %v1081_v38 = vrot.slane (!%p1329_p5), %v1076_v31, %v1080_v33 }
  0x8b   : > { %991 = vmatpush1.bf16.msra.mxu1 %v1483_v39  ;;  %v1085_v39 = vrot.slane (!%p1329_p5), %v1076_v31, %v1084_v34 }
  0x8c   : > { %1034 = vmatpush1.bf16.msra.mxu0 %v1484_v40  ;;  %992 = vmatprep.subr.bf16.mxu1 %v1485_v41 }
  0x8d   : > { %1035 = vmatprep.subr.bf16.mxu0 %v1487_v42 }
  0x8f   : > { %993 = vmatpush1.bf16.msra.mxu1 %v1489_v43 }
  0x90   : > { %1036 = vmatpush1.bf16.msra.mxu0 %v1490_v44  ;;  %994 = vmatprep.subr.bf16.mxu1 %v1491_v45 }
  0x91   : > { %1037 = vmatprep.subr.bf16.mxu0 %v1493_v46 }
  0x93   : > { %995 = vmatpush1.bf16.msra.mxu1 %v1495_v47 }
  0x94   : > { %1038 = vmatpush1.bf16.msra.mxu0 %v1496_v48  ;;  %996 = vmatprep.subr.bf16.mxu1 %v1497_v49 }
  0x95   : > { %1039 = vmatprep.subr.bf16.mxu0 %v1499_v50 }
  0x97   : > { %997 = vmatpush1.bf16.msra.mxu1 %v1501_v51 }
  0x98   : > { %1040 = vmatpush1.bf16.msra.mxu0 %v1502_v53  ;;  %998 = vmatprep.subr.bf16.mxu1 %v1503_v54 }
  0x99   : > { %1041 = vmatprep.subr.bf16.mxu0 %v1505_v55 }
  0x9b   : > { %999 = vmatpush1.bf16.msra.mxu1 %v1507_v57 }
  0x9c   : > { %1042 = vmatpush1.bf16.msra.mxu0 %v1508_v58  ;;  %1000 = vmatprep.subr.bf16.mxu1 %v1509_v59 }
  0x9d   : > { %1043 = vmatprep.subr.bf16.mxu0 %v1511_v60 }
  0x9f   : > { %1001 = vmatpush1.bf16.msra.mxu1 %v1513_v61 }
  0xa0   : > { %1044 = vmatpush1.bf16.msra.mxu0 %v1514_v62  ;;  %1002 = vmatprep.subr.bf16.mxu1 %v1515_v63 }
  0xa1   : > { %1045 = vmatprep.subr.bf16.mxu0 %v1517_v0 }
  0xa3   : > { %1003 = vmatpush1.bf16.msra.mxu1 %v1519_v1 }
  0xa4   : > { %1046 = vmatpush1.bf16.msra.mxu0 %v1520_v2  ;;  %1004 = vmatprep.subr.bf16.mxu1 %v1521_v3 }
  0xa5   : > { %1047 = vmatprep.subr.bf16.mxu0 %v1523_v4 }
  0xa7   : > { %1005 = vmatpush1.bf16.msra.mxu1 %v1525_v5 }
  0xa8   : > { %1048 = vmatpush1.bf16.msra.mxu0 %v1526_v6 }
  0xaa   : > { %1007 = vmatmul.mubr.bf16.vlgmr.msra.gmra.mrb[0].mxu1 %v1527_v7 }
  0xab   : > { %1050 = vmatmul.mubr.bf16.vlgmr.msra.gmra.mrb[0].mxu0 %v1530_v8 }
 0x17d   : > { %v1008_v9 = vpop.f32.mrb[0].mxu1 }
 0x17e   : > { %v1051_v11 = vpop.f32.mrb[0].mxu0  ;;  %v1010_v13 = vpop.f32.mrb[1].mxu1 }
 0x17f   : > { %v1052_v12 = vadd.f32 %v1051_v11, %v1008_v9  ;;  %v1053_v15 = vpop.f32.mrb[1].mxu0  ;;  %v1012_v17 = vpop.f32.mrb[2].mxu1 }
 0x180   : > { %v1054_v16 = vadd.f32 %v1053_v15, %v1010_v13  ;;  %v1055_v19 = vpop.f32.mrb[2].mxu0  ;;  %v1014_v22 = vpop.f32.mrb[3].mxu1  ;;  %1071 = sbr.rel (%p1329_p5) target bundleno = 403 (0x193), region = 101 }
 0x181   : > { %v1060_v20 = vadd.f32 %v1052_v12, %v562_v10  ;;  %v1056_v21 = vadd.f32 %v1055_v19, %v1012_v17  ;;  %v1057_v24 = vpop.f32.mrb[3].mxu0 }
 0x182   : > { %v1061_v25 = vadd.f32 %v1054_v16, %v563_v14  ;;  %v1058_v26 = vadd.f32 %v1057_v24, %v1014_v22 }
 0x183   : > { %1064 = vst [vmem:[#allocation2] sm:$0xff] %v1060_v20  ;;  %v1062_v27 = vadd.f32 %v1056_v21, %v564_v18 }
 0x184   : > { %1065 = vst [vmem:[#allocation2 + $0x8] sm:$0xff] %v1061_v25  ;;  %v1063_v28 = vadd.f32 %v1058_v26, %v565_v23 }
 0x185   : > { %1066 = vst [vmem:[#allocation2 + $0x10] sm:$0xff] %v1062_v27 }
 0x186   : > { %1067 = vst [vmem:[#allocation2 + $0x18] sm:$0xff] %v1063_v28 }
 0x18a   : > { %v1072_v32 = vld [vmem:[#allocation2] sm:$0xff] }
 0x18b   : > { %v1073_v35 = vld [vmem:[#allocation2 + $0x8] sm:$0xff]  ;;  %v1088_v40 = vadd.f32 %v1081_v38, %v1072_v32 }
 0x18c   : > { %v1074_v36 = vld [vmem:[#allocation2 + $0x10] sm:$0xff]  ;;  %v1089_v41 = vadd.f32 %v1085_v39, %v1073_v35 }
 0x18d   : > { %v1075_v37 = vld [vmem:[#allocation2 + $0x18] sm:$0xff]  ;;  %v1090_v42 = vadd.f32 %v1081_v38, %v1074_v36  ;;  %v1092_v44 = vmax.f32 %v1088_v40, 0.0 }
 0x18e   : > { %v1091_v43 = vadd.f32 %v1085_v39, %v1075_v37  ;;  %v1093_v45 = vmax.f32 %v1089_v41, 0.0 }
 0x18f   : > { %v1094_v46 = vmax.f32 %v1090_v42, 0.0  ;;  %1096 = vst [vmem:[%s1904_s1] sm:$0xff] %v1092_v44 }
 0x190   : > { %v1095_v47 = vmax.f32 %v1091_v43, 0.0  ;;  %1097 = vst [vmem:[%s1904_s1 + $0x8] sm:$0xff] %v1093_v45 }
 0x191   : > { %1098 = vst [vmem:[%s1904_s1 + $0x10] sm:$0xff] %v1094_v46 }
 0x192   : > { %1099 = vst [vmem:[%s1904_s1 + $0x18] sm:$0xff] %v1095_v47 }
 0x193 PF: > { %1106 = sbr.rel (!%p1736_p12) target bundleno = 411 (0x19b), region = 105  ;;  %s1337_s16 = sshll.u32 (%p1736_p12), %s1607_s19, 4 }
 0x194   : > { %s1112_s5 = scalar_lea.vmem (%p1736_p12), %s2031_s3, %s1337_s16 }
 0x196   : > { %v1125_v48 = vld [vmem:[%s1904_s1] sm:$0xff] (%p1736_p12) }
 0x197   : > { %v1127_v49 = vld [vmem:[%s1904_s1 + $0x8] sm:$0xff] (%p1736_p12)  ;;  %1126 = vst [vmem:[%s1112_s5] sm:$0xff] (%p1736_p12), %v1125_v48 }
 0x198   : > { %v1129_v50 = vld [vmem:[%s1904_s1 + $0x10] sm:$0xff] (%p1736_p12)  ;;  %1128 = vst [vmem:[%s1112_s5 + $0x8] sm:$0xff] (%p1736_p12), %v1127_v49 }
 0x199   : > { %v1131_v51 = vld [vmem:[%s1904_s1 + $0x18] sm:$0xff] (%p1736_p12)  ;;  %1130 = vst [vmem:[%s1112_s5 + $0x20] sm:$0xff] (%p1736_p12), %v1129_v50 }
 0x19a   : > { %1132 = vst [vmem:[%s1112_s5 + $0x28] sm:$0xff] %v1131_v51 }
 0x19b PF: > { %s13_s22 = sadd.s32 1, %s1619_s22   ;;  %s2041_s10 = sld [smem:[#allocation6_spill]] }
 0x19c   : > { %p10_p6 = scmp.ge.s32.totalorder %s13_s22, 12   ;;  %s2042_s12 = smov %s1583_s13 }
 0x19d   : > { %s2043_s13 = smov %s1734_s9  ;;  %s2044_s14 = smov %s1591_s15 }
 0x19e   : > { %s2045_s15 = smov %s1731_s8  ;;  %s2046_s16 = smov %s1599_s17 }
 0x19f   : > { %s2047_s17 = smov %s1717_s30  ;;  %s2048_s18 = smov %s1611_s20 }
 0x1a0   : > { %s2049_s19 = smov %s1615_s21  ;;  %s2050_s20 = smov %s2053_s24 }
 0x1a1   : > { %s2051_s21 = smov %s2041_s10  ;;  %12 = sbr.rel (!%p10_p6) target bundleno = 9 (0x9), region = 170 }

// kernel: resnet_forward.25
= control target key start
LH: loop header
LB: loop body
LE: loop exit
PB: predicated region body
PF: predicated region fallthrough
CT: control target
= control target key end

     0   :  { %s2024_s0 = inlined_call_operand.vmem [shape: bf16[16,2560], index: 0, kind: input, shape index: {}]   ;;  %s2025_s1 = inlined_call_operand.vmem [shape: bf16[2560,512], index: 1, kind: input, shape index: {}]   ;;  %s2026_s2 = inlined_call_operand.vmem [shape: f32[1,512], index: 2, kind: input, shape index: {}]   ;;  %s2027_s3 = inlined_call_operand.vmem [shape: f32[16,512], index: 3, kind: output, shape index: {}]  }
   0x1   :  { %2029 = sst [smem:[#allocation7_spill]] %s2024_s0 }
   0x2   :  { %2030 = sst [smem:[#allocation8_spill]] %s2025_s1 }
   0x3   :  { %s1638_s12 = smov 0   ;;  %s1640_s13 = smov 0  }
   0x4   :  { %s1642_s14 = smov 0   ;;  %s1644_s15 = smov 0  }
   0x5   :  { %s1646_s16 = smov 0   ;;  %s1648_s17 = smov 0  }
   0x6   :  { %s1650_s18 = smov 0   ;;  %s1652_s19 = smov 0  }
   0x7   :  { %s1654_s20 = smov 0   ;;  %s1656_s21 = smov 0  }
   0x8   :  { %s1658_s22 = smov 0  }
   0x9 LB: > { %s1239_s23 = sadd.s32 4294967295, %s1615_s22   ;;  %s25_s24 = sadd.s32 1, %s1607_s20  ;;  %s1615_s22 = sphi %s1658_s22, %s13_s22   ;;  %s1611_s21 = sphi %s1656_s21, %s2047_s21   ;;  %s1607_s20 = sphi %s1654_s20, %s2046_s20   ;;  %s1603_s19 = sphi %s1652_s19, %s2045_s19   ;;  %s1599_s18 = sphi %s1650_s18, %s2044_s18   ;;  %s1595_s17 = sphi %s1648_s17, %s2043_s17   ;;  %s1591_s16 = sphi %s1646_s16, %s2042_s16   ;;  %s1587_s15 = sphi %s1644_s15, %s2041_s15   ;;  %s1583_s14 = sphi %s1642_s14, %s2040_s14   ;;  %s1579_s13 = sphi %s1640_s13, %s2039_s13   ;;  %s1575_s12 = sphi %s1638_s12, %s2038_s12  }
   0xa   : > { %p26_p0 = scmp.ge.s32.totalorder %s25_s24, 5  ;;  %s28_s25 = sadd.s32 1, %s1611_s21 }
   0xb   : > { %s41_s26 = sadd.s32 1, %s1595_s17  ;;  %p48_p1 = scmp.ne.s32.totalorder %s1595_s17, %s1591_s16 }
   0xc   : > { %s2049_s24 = smov (%p26_p0, %s25_s24), 0  ;;  %s2051_s25 = smov (!%p26_p0, %s28_s25), %s1611_s21 }
   0xd   : > { %s37_s27 = ssub.s32 %s1607_s20, %s2049_s24  ;;  %p49_p2 = scmp.eq.s32.totalorder %s1615_s22, 0 }
   0xe   : > { %p30_p3 = scmp.ge.s32.totalorder %s2051_s25, 2  ;;  %p39_p4 = scmp.eq.s32.totalorder %s37_s27, 0 }
   0xf   : > { %p1705_p5 = por %p49_p2, %p48_p1  ;;  %s69_s29 = sadd.s32 1, %s1587_s15 }
  0x10   : > { %s2053_s25 = smov (%p30_p3, %s2051_s25), 0  ;;  %p76_p6 = scmp.ne.s32.totalorder %s1587_s15, %s1583_s14 }
  0x11   : > { %2032 = sst [smem:[#allocation6_spill]] %s2053_s25  ;;  %s65_s4 = ssub.s32 %s1611_s21, %s2053_s25 }
  0x12   : > { %s1713_s30 = scalar_select %p39_p4, %s1595_s17, %s41_s26  }
  0x13   : > { %s66_s5 = sor.u32 %s65_s4, %s37_s27  ;;  %p121_p7 = scmp.eq.s32.totalorder %s65_s4, 0 }
  0x14   : > { %p67_p8 = scmp.eq.s32.totalorder %s66_s5, 0  ;;  %p1719_p9 = por %p76_p6, %p49_p2 }
  0x15   : > { %s123_s7 = sadd.s32 1, %s1579_s13  ;;  %p133_p10 = scmp.ne.s32.totalorder %s1579_s13, %s1575_s12 }
  0x16   : > { %s1727_s8 = scalar_select %p67_p8, %s1587_s15, %s69_s29  }
  0x17   : > { %s1730_s9 = scalar_select %p121_p7, %s1579_s13, %s123_s7  }
  0x18   : > { %p134_p11 = scmp.eq.s32.totalorder %s1239_s23, 9  ;;  %p1242_p13 = scmp.ge.s32.totalorder %s1615_s22, 10 }
  0x1a   : > { %p1732_p12 = por %p134_p11, %p133_p10  ;;  %156 = sbr.rel (%p1242_p13) target bundleno = 87 (0x57), region = 16 }
  0x21   : > { %159 = sbr.rel (!%p1705_p5) target bundleno = 45 (0x2d), region = 20  ;;  %s161_s11 = sand.u32 (%p1705_p5), 1, %s1595_s17  }
  0x22   : > { %s1331_s26 = sshll.u32 (%p1705_p5), %s1607_s20, 4  ;;  %s1243_s27 = sshll.u32 (%p1705_p5), %s161_s11, 5 }
  0x23   : > { %s2035_s0 = sld [smem:[#allocation7_spill]] (%p1705_p5)  ;;  %s163_s23 = scalar_lea.vmem (%p1705_p5), [#allocation3], %s1243_s27 }
  0x29   : > { %s169_s5 = scalar_lea.vmem %s2035_s0, %s1331_s26 }
  0x2a   : > { %v182_v0 = vld [vmem:[%s169_s5] sm:$0xff]  ;;  %v184_v1 = vld [vmem:[%s169_s5 + $0x8] sm:$0xff]  ;;  %v186_v2 = vld [vmem:[%s169_s5 + $0x50] sm:$0xff] }
  0x2b   : > { %183 = vst [vmem:[%s163_s23] sm:$0xff] %v182_v0  ;;  %185 = vst [vmem:[%s163_s23 + $0x8] sm:$0xff] %v184_v1  ;;  %v188_v3 = vld [vmem:[%s169_s5 + $0x58] sm:$0xff] }
  0x2c   : > { %187 = vst [vmem:[%s163_s23 + $0x10] sm:$0xff] %v186_v2  ;;  %189 = vst [vmem:[%s163_s23 + $0x18] sm:$0xff] %v188_v3 }
  0x2d PF: > { %195 = sbr.rel (!%p1719_p9) target bundleno = 87 (0x57), region = 43  ;;  %s197_s28 = sand.u32 (%p1719_p9), 1, %s1587_s15  }
  0x2e   : > { %s1248_s7 = sshll.u32 (%p1719_p9), %s1611_s21, 1  ;;  %s1246_s11 = sshll.u32 (%p1719_p9), %s197_s28, 9 }
  0x2f   : > { %s1332_s26 = sshll.u32 (%p1719_p9), %s1607_s20, 8  ;;  %s2036_s1 = sld [smem:[#allocation8_spill]] (%p1719_p9) }
  0x30   : > { %s203_s29 = sadd.s32 (%p1719_p9), %s1332_s26, %s1248_s7  ;;  %s1757_s6 = scalar_lea.vmem (%p1719_p9), [#allocation4], %s1246_s11 }
  0x31   : > { %s1250_s4 = sshll.u32 (%p1719_p9), %s203_s29, 2 }
  0x35   : > { %s1752_s25 = scalar_lea.vmem %s2036_s1, %s1250_s4 }
  0x36   : > { %v359_v4 = vld [vmem:[%s1752_s25] sm:$0xff]  ;;  %v361_v5 = vld [vmem:[%s1752_s25 + $0x10] sm:$0xff] }
  0x37   : > { %v363_v6 = vld [vmem:[%s1752_s25 + $0x20] sm:$0xff]  ;;  %360 = vst [vmem:[%s1757_s6] sm:$0xff] %v359_v4  ;;  %362 = vst [vmem:[%s1757_s6 + $0x8] sm:$0xff] %v361_v5  ;;  %v365_v7 = vld [vmem:[%s1752_s25 + $0x30] sm:$0xff] }
  0x38   : > { %364 = vst [vmem:[%s1757_s6 + $0x10] sm:$0xff] %v363_v6  ;;  %v367_v8 = vld [vmem:[%s1752_s25 + $0x40] sm:$0xff]  ;;  %v369_v9 = vld [vmem:[%s1752_s25 + $0x50] sm:$0xff]  ;;  %366 = vst [vmem:[%s1757_s6 + $0x18] sm:$0xff] %v365_v7 }
  0x39   : > { %368 = vst [vmem:[%s1757_s6 + $0x20] sm:$0xff] %v367_v8  ;;  %370 = vst [vmem:[%s1757_s6 + $0x28] sm:$0xff] %v369_v9  ;;  %v371_v10 = vld [vmem:[%s1752_s25 + $0x60] sm:$0xff]  ;;  %v373_v11 = vld [vmem:[%s1752_s25 + $0x70] sm:$0xff] }
  0x3a   : > { %v375_v12 = vld [vmem:[%s1752_s25 + $0x80] sm:$0xff]  ;;  %372 = vst [vmem:[%s1757_s6 + $0x30] sm:$0xff] %v371_v10  ;;  %374 = vst [vmem:[%s1757_s6 + $0x38] sm:$0xff] %v373_v11  ;;  %v377_v13 = vld [vmem:[%s1752_s25 + $0x90] sm:$0xff] }
  0x3b   : > { %376 = vst [vmem:[%s1757_s6 + $0x40] sm:$0xff] %v375_v12  ;;  %v379_v14 = vld [vmem:[%s1752_s25 + $0xa0] sm:$0xff]  ;;  %v381_v15 = vld [vmem:[%s1752_s25 + $0xb0] sm:$0xff]  ;;  %378 = vst [vmem:[%s1757_s6 + $0x48] sm:$0xff] %v377_v13 }
  0x3c   : > { %380 = vst [vmem:[%s1757_s6 + $0x50] sm:$0xff] %v379_v14  ;;  %382 = vst [vmem:[%s1757_s6 + $0x58] sm:$0xff] %v381_v15  ;;  %v383_v16 = vld [vmem:[%s1752_s25 + $0xc0] sm:$0xff]  ;;  %v385_v17 = vld [vmem:[%s1752_s25 + $0xd0] sm:$0xff] }
  0x3d   : > { %v387_v18 = vld [vmem:[%s1752_s25 + $0xe0] sm:$0xff]  ;;  %384 = vst [vmem:[%s1757_s6 + $0x60] sm:$0xff] %v383_v16  ;;  %386 = vst [vmem:[%s1757_s6 + $0x68] sm:$0xff] %v385_v17  ;;  %v389_v19 = vld [vmem:[%s1752_s25 + $0xf0] sm:$0xff] }
  0x3e   : > { %388 = vst [vmem:[%s1757_s6 + $0x70] sm:$0xff] %v387_v18  ;;  %v391_v20 = vld [vmem:[%s1752_s25 + $0x100] sm:$0xff]  ;;  %v393_v21 = vld [vmem:[%s1752_s25 + $0x110] sm:$0xff]  ;;  %390 = vst [vmem:[%s1757_s6 + $0x78] sm:$0xff] %v389_v19 }
  0x3f   : > { %392 = vst [vmem:[%s1757_s6 + $0x80] sm:$0xff] %v391_v20  ;;  %394 = vst [vmem:[%s1757_s6 + $0x88] sm:$0xff] %v393_v21  ;;  %v395_v22 = vld [vmem:[%s1752_s25 + $0x120] sm:$0xff]  ;;  %v397_v23 = vld [vmem:[%s1752_s25 + $0x130] sm:$0xff] }
  0x40   : > { %v399_v24 = vld [vmem:[%s1752_s25 + $0x140] sm:$0xff]  ;;  %396 = vst [vmem:[%s1757_s6 + $0x90] sm:$0xff] %v395_v22  ;;  %398 = vst [vmem:[%s1757_s6 + $0x98] sm:$0xff] %v397_v23  ;;  %v401_v25 = vld [vmem:[%s1752_s25 + $0x150] sm:$0xff] }
  0x41   : > { %400 = vst [vmem:[%s1757_s6 + $0xa0] sm:$0xff] %v399_v24  ;;  %v403_v26 = vld [vmem:[%s1752_s25 + $0x160] sm:$0xff]  ;;  %v405_v27 = vld [vmem:[%s1752_s25 + $0x170] sm:$0xff]  ;;  %402 = vst [vmem:[%s1757_s6 + $0xa8] sm:$0xff] %v401_v25 }
  0x42   : > { %404 = vst [vmem:[%s1757_s6 + $0xb0] sm:$0xff] %v403_v26  ;;  %406 = vst [vmem:[%s1757_s6 + $0xb8] sm:$0xff] %v405_v27  ;;  %v407_v28 = vld [vmem:[%s1752_s25 + $0x180] sm:$0xff]  ;;  %v409_v29 = vld [vmem:[%s1752_s25 + $0x190] sm:$0xff] }
  0x43   : > { %v411_v30 = vld [vmem:[%s1752_s25 + $0x1a0] sm:$0xff]  ;;  %408 = vst [vmem:[%s1757_s6 + $0xc0] sm:$0xff] %v407_v28  ;;  %410 = vst [vmem:[%s1757_s6 + $0xc8] sm:$0xff] %v409_v29  ;;  %v413_v31 = vld [vmem:[%s1752_s25 + $0x1b0] sm:$0xff] }
  0x44   : > { %412 = vst [vmem:[%s1757_s6 + $0xd0] sm:$0xff] %v411_v30  ;;  %v415_v32 = vld [vmem:[%s1752_s25 + $0x1c0] sm:$0xff]  ;;  %v417_v33 = vld [vmem:[%s1752_s25 + $0x1d0] sm:$0xff]  ;;  %414 = vst [vmem:[%s1757_s6 + $0xd8] sm:$0xff] %v413_v31 }
  0x45   : > { %416 = vst [vmem:[%s1757_s6 + $0xe0] sm:$0xff] %v415_v32  ;;  %418 = vst [vmem:[%s1757_s6 + $0xe8] sm:$0xff] %v417_v33  ;;  %v419_v34 = vld [vmem:[%s1752_s25 + $0x1e0] sm:$0xff]  ;;  %v421_v35 = vld [vmem:[%s1752_s25 + $0x1f0] sm:$0xff] }
  0x46   : > { %v423_v36 = vld [vmem:[%s1752_s25 + $0x200] sm:$0xff]  ;;  %420 = vst [vmem:[%s1757_s6 + $0xf0] sm:$0xff] %v419_v34  ;;  %422 = vst [vmem:[%s1757_s6 + $0xf8] sm:$0xff] %v421_v35  ;;  %v425_v37 = vld [vmem:[%s1752_s25 + $0x210] sm:$0xff] }
  0x47   : > { %424 = vst [vmem:[%s1757_s6 + $0x100] sm:$0xff] %v423_v36  ;;  %v427_v38 = vld [vmem:[%s1752_s25 + $0x220] sm:$0xff]  ;;  %v429_v39 = vld [vmem:[%s1752_s25 + $0x230] sm:$0xff]  ;;  %426 = vst [vmem:[%s1757_s6 + $0x108] sm:$0xff] %v425_v37 }
  0x48   : > { %428 = vst [vmem:[%s1757_s6 + $0x110] sm:$0xff] %v427_v38  ;;  %430 = vst [vmem:[%s1757_s6 + $0x118] sm:$0xff] %v429_v39  ;;  %v431_v40 = vld [vmem:[%s1752_s25 + $0x240] sm:$0xff]  ;;  %v433_v41 = vld [vmem:[%s1752_s25 + $0x250] sm:$0xff] }
  0x49   : > { %v435_v42 = vld [vmem:[%s1752_s25 + $0x260] sm:$0xff]  ;;  %432 = vst [vmem:[%s1757_s6 + $0x120] sm:$0xff] %v431_v40  ;;  %434 = vst [vmem:[%s1757_s6 + $0x128] sm:$0xff] %v433_v41  ;;  %v437_v43 = vld [vmem:[%s1752_s25 + $0x270] sm:$0xff] }
  0x4a   : > { %436 = vst [vmem:[%s1757_s6 + $0x130] sm:$0xff] %v435_v42  ;;  %v439_v44 = vld [vmem:[%s1752_s25 + $0x280] sm:$0xff]  ;;  %v441_v45 = vld [vmem:[%s1752_s25 + $0x290] sm:$0xff]  ;;  %438 = vst [vmem:[%s1757_s6 + $0x138] sm:$0xff] %v437_v43 }
  0x4b   : > { %440 = vst [vmem:[%s1757_s6 + $0x140] sm:$0xff] %v439_v44  ;;  %442 = vst [vmem:[%s1757_s6 + $0x148] sm:$0xff] %v441_v45  ;;  %v443_v46 = vld [vmem:[%s1752_s25 + $0x2a0] sm:$0xff]  ;;  %v445_v47 = vld [vmem:[%s1752_s25 + $0x2b0] sm:$0xff] }
  0x4c   : > { %v447_v48 = vld [vmem:[%s1752_s25 + $0x2c0] sm:$0xff]  ;;  %444 = vst [vmem:[%s1757_s6 + $0x150] sm:$0xff] %v443_v46  ;;  %446 = vst [vmem:[%s1757_s6 + $0x158] sm:$0xff] %v445_v47  ;;  %v449_v49 = vld [vmem:[%s1752_s25 + $0x2d0] sm:$0xff] }
  0x4d   : > { %448 = vst [vmem:[%s1757_s6 + $0x160] sm:$0xff] %v447_v48  ;;  %v451_v50 = vld [vmem:[%s1752_s25 + $0x2e0] sm:$0xff]  ;;  %v453_v51 = vld [vmem:[%s1752_s25 + $0x2f0] sm:$0xff]  ;;  %450 = vst [vmem:[%s1757_s6 + $0x168] sm:$0xff] %v449_v49 }
  0x4e   : > { %452 = vst [vmem:[%s1757_s6 + $0x170] sm:$0xff] %v451_v50  ;;  %454 = vst [vmem:[%s1757_s6 + $0x178] sm:$0xff] %v453_v51  ;;  %v455_v52 = vld [vmem:[%s1752_s25 + $0x300] sm:$0xff]  ;;  %v457_v53 = vld [vmem:[%s1752_s25 + $0x310] sm:$0xff] }
  0x4f   : > { %v459_v54 = vld [vmem:[%s1752_s25 + $0x320] sm:$0xff]  ;;  %456 = vst [vmem:[%s1757_s6 + $0x180] sm:$0xff] %v455_v52  ;;  %458 = vst [vmem:[%s1757_s6 + $0x188] sm:$0xff] %v457_v53  ;;  %v461_v55 = vld [vmem:[%s1752_s25 + $0x330] sm:$0xff] }
  0x50   : > { %460 = vst [vmem:[%s1757_s6 + $0x190] sm:$0xff] %v459_v54  ;;  %v463_v56 = vld [vmem:[%s1752_s25 + $0x340] sm:$0xff]  ;;  %v465_v57 = vld [vmem:[%s1752_s25 + $0x350] sm:$0xff]  ;;  %462 = vst [vmem:[%s1757_s6 + $0x198] sm:$0xff] %v461_v55 }
  0x51   : > { %464 = vst [vmem:[%s1757_s6 + $0x1a0] sm:$0xff] %v463_v56  ;;  %466 = vst [vmem:[%s1757_s6 + $0x1a8] sm:$0xff] %v465_v57  ;;  %v467_v58 = vld [vmem:[%s1752_s25 + $0x360] sm:$0xff]  ;;  %v469_v59 = vld [vmem:[%s1752_s25 + $0x370] sm:$0xff] }
  0x52   : > { %v471_v60 = vld [vmem:[%s1752_s25 + $0x380] sm:$0xff]  ;;  %468 = vst [vmem:[%s1757_s6 + $0x1b0] sm:$0xff] %v467_v58  ;;  %470 = vst [vmem:[%s1757_s6 + $0x1b8] sm:$0xff] %v469_v59  ;;  %v473_v61 = vld [vmem:[%s1752_s25 + $0x390] sm:$0xff] }
  0x53   : > { %472 = vst [vmem:[%s1757_s6 + $0x1c0] sm:$0xff] %v471_v60  ;;  %v475_v62 = vld [vmem:[%s1752_s25 + $0x3a0] sm:$0xff]  ;;  %v477_v63 = vld [vmem:[%s1752_s25 + $0x3b0] sm:$0xff]  ;;  %474 = vst [vmem:[%s1757_s6 + $0x1c8] sm:$0xff] %v473_v61 }
  0x54   : > { %476 = vst [vmem:[%s1757_s6 + $0x1d0] sm:$0xff] %v475_v62  ;;  %478 = vst [vmem:[%s1757_s6 + $0x1d8] sm:$0xff] %v477_v63  ;;  %v479_v0 = vld [vmem:[%s1752_s25 + $0x3c0] sm:$0xff]  ;;  %v481_v1 = vld [vmem:[%s1752_s25 + $0x3d0] sm:$0xff] }
  0x55   : > { %v483_v2 = vld [vmem:[%s1752_s25 + $0x3e0] sm:$0xff]  ;;  %480 = vst [vmem:[%s1757_s6 + $0x1e0] sm:$0xff] %v479_v0  ;;  %482 = vst [vmem:[%s1757_s6 + $0x1e8] sm:$0xff] %v481_v1  ;;  %v485_v3 = vld [vmem:[%s1752_s25 + $0x3f0] sm:$0xff] }
  0x56   : > { %484 = vst [vmem:[%s1757_s6 + $0x1f0] sm:$0xff] %v483_v2  ;;  %486 = vst [vmem:[%s1757_s6 + $0x1f8] sm:$0xff] %v485_v3 }
  0x57 PF: > { %p1251_p0 = scmp.ge.s32.totalorder %s1615_s22, 1  ;;  %p499_p1 = scmp.lt.s32.totalorder %s1615_s22, 11 }
  0x59   : > { %p500_p2 = pnand %p1251_p0, %p499_p1 }
  0x5a   : > { %s506_s0 = sand.u32 (!%p500_p2), 1, %s1591_s16   ;;  %s513_s5 = sand.u32 (!%p500_p2), 1, %s1583_s14  }
  0x5b   : > { %503 = sbr.rel (%p500_p2) target bundleno = 409 (0x199), region = 85  ;;  %s1252_s23 = sshll.u32 (!%p500_p2), %s506_s0, 5 }
  0x5c   : > { %s1253_s28 = sshll.u32 (!%p500_p2), %s513_s5, 9  ;;  %s540_s7 = sand.u32 (!%p500_p2), 1, %s1575_s12  }
  0x5d   : > { %s1255_s11 = sshll.u32 (!%p500_p2), %s1603_s19, 1  ;;  %s1254_s25 = sshll.u32 (!%p500_p2), %s540_s7, 5 }
  0x5e   : > { %p548_p3 = scmp.lt.s32.totalorder (!%p500_p2), %s1255_s11, 3  ;;  %s1896_s27 = scalar_lea.vmem (!%p500_p2), [#allocation3], %s1252_s23 }
  0x5f   : > { %s1898_s6 = scalar_lea.vmem (!%p500_p2), [#allocation4], %s1253_s28  ;;  %s1900_s1 = scalar_lea.vmem (!%p500_p2), [#allocation5], %s1254_s25 }
  0x60   : > { %p1256_p4 = scmp.ne.s32.totalorder (!%p500_p2), %s1599_s18, 0 }
  0x62   : > { %s2055_s11 = smov (!%p548_p3, %s1255_s11), 3  ;;  %557 = sbr.rel (%p1256_p4) target bundleno = 105 (0x69), region = 97 }
  0x63   : > { %s550_s4 = scalar_lea.vmem %s2026_s2, %s2055_s11  ;;  %v1617_v4 = vmov (!%p1256_p4), 0.0  }
  0x64   : > { %558 = vst [vmem:[#allocation2] sm:$0xff] (!%p1256_p4), %v1617_v4  ;;  %559 = vst [vmem:[#allocation2 + $0x8] sm:$0xff] (!%p1256_p4), %v1617_v4 }
  0x65   : > { %560 = vst [vmem:[#allocation2 + $0x10] sm:$0xff] (!%p1256_p4), %v1617_v4  ;;  %561 = vst [vmem:[#allocation2 + $0x18] sm:$0xff] (!%p1256_p4), %v1617_v4 }
  0x69 PF: > { %v1427_v5 = vld [vmem:[%s1898_s6 + $0x4] ss:$8 sps:$4 sm:$0xff]   ;;  %v1431_v7 = vld [vmem:[%s1898_s6] ss:$8 sps:$4 sm:$0xff]   ;;  %v1433_v9 = vld [vmem:[%s1898_s6 + $0x14] ss:$8 sps:$4 sm:$0xff]  }
  0x6a   : > { %v1429_v6 = vld [vmem:[%s1898_s6 + $0x104] ss:$8 sps:$4 sm:$0xff]   ;;  %974 = vmatprep.subr.bf16.mxu1 %v1427_v5  ;;  %v1432_v8 = vld [vmem:[%s1898_s6 + $0x100] ss:$8 sps:$4 sm:$0xff]   ;;  %v1435_v10 = vld [vmem:[%s1898_s6 + $0x114] ss:$8 sps:$4 sm:$0xff]  }
  0x6b   : > { %1017 = vmatprep.subr.bf16.mxu0 %v1429_v6  ;;  %975 = vmatpush1.bf16.msra.mxu1 %v1431_v7  ;;  %v1437_v11 = vld [vmem:[%s1898_s6 + $0x10] ss:$8 sps:$4 sm:$0xff]   ;;  %v1439_v13 = vld [vmem:[%s1898_s6 + $0x24] ss:$8 sps:$4 sm:$0xff]   ;;  %v1443_v15 = vld [vmem:[%s1898_s6 + $0x20] ss:$8 sps:$4 sm:$0xff]  }
  0x6c   : > { %1018 = vmatpush1.bf16.msra.mxu0 %v1432_v8  ;;  %976 = vmatprep.subr.bf16.mxu1 %v1433_v9  ;;  %v1438_v12 = vld [vmem:[%s1898_s6 + $0x110] ss:$8 sps:$4 sm:$0xff]   ;;  %v1441_v14 = vld [vmem:[%s1898_s6 + $0x124] ss:$8 sps:$4 sm:$0xff]   ;;  %v1444_v16 = vld [vmem:[%s1898_s6 + $0x120] ss:$8 sps:$4 sm:$0xff]  }
  0x6d   : > { %1019 = vmatprep.subr.bf16.mxu0 %v1435_v10  ;;  %v1445_v17 = vld [vmem:[%s1898_s6 + $0x34] ss:$8 sps:$4 sm:$0xff]   ;;  %v1449_v19 = vld [vmem:[%s1898_s6 + $0x30] ss:$8 sps:$4 sm:$0xff]   ;;  %v1451_v21 = vld [vmem:[%s1898_s6 + $0x44] ss:$8 sps:$4 sm:$0xff]  }
  0x6e   : > { %v1447_v18 = vld [vmem:[%s1898_s6 + $0x134] ss:$8 sps:$4 sm:$0xff]   ;;  %v1450_v20 = vld [vmem:[%s1898_s6 + $0x130] ss:$8 sps:$4 sm:$0xff]   ;;  %v1453_v22 = vld [vmem:[%s1898_s6 + $0x144] ss:$8 sps:$4 sm:$0xff]  }
  0x6f   : > { %977 = vmatpush1.bf16.msra.mxu1 %v1437_v11  ;;  %v1455_v23 = vld [vmem:[%s1898_s6 + $0x40] ss:$8 sps:$4 sm:$0xff]   ;;  %v1457_v25 = vld [vmem:[%s1898_s6 + $0x54] ss:$8 sps:$4 sm:$0xff]   ;;  %v1461_v27 = vld [vmem:[%s1898_s6 + $0x50] ss:$8 sps:$4 sm:$0xff]  }
  0x70   : > { %1020 = vmatpush1.bf16.msra.mxu0 %v1438_v12  ;;  %978 = vmatprep.subr.bf16.mxu1 %v1439_v13  ;;  %v1456_v24 = vld [vmem:[%s1898_s6 + $0x140] ss:$8 sps:$4 sm:$0xff]   ;;  %v1459_v26 = vld [vmem:[%s1898_s6 + $0x154] ss:$8 sps:$4 sm:$0xff]   ;;  %v1462_v28 = vld [vmem:[%s1898_s6 + $0x150] ss:$8 sps:$4 sm:$0xff]  }
  0x71   : > { %1021 = vmatprep.subr.bf16.mxu0 %v1441_v14  ;;  %v1463_v29 = vld [vmem:[%s1898_s6 + $0x64] ss:$8 sps:$4 sm:$0xff]   ;;  %v1467_v31 = vld [vmem:[%s1898_s6 + $0x60] ss:$8 sps:$4 sm:$0xff]   ;;  %v1469_v33 = vld [vmem:[%s1898_s6 + $0x74] ss:$8 sps:$4 sm:$0xff]  }
  0x72   : > { %v1465_v30 = vld [vmem:[%s1898_s6 + $0x164] ss:$8 sps:$4 sm:$0xff]   ;;  %v1468_v32 = vld [vmem:[%s1898_s6 + $0x160] ss:$8 sps:$4 sm:$0xff]   ;;  %v1471_v34 = vld [vmem:[%s1898_s6 + $0x174] ss:$8 sps:$4 sm:$0xff]  }
  0x73   : > { %979 = vmatpush1.bf16.msra.mxu1 %v1443_v15  ;;  %v1473_v35 = vld [vmem:[%s1898_s6 + $0x70] ss:$8 sps:$4 sm:$0xff]   ;;  %v1475_v37 = vld [vmem:[%s1898_s6 + $0x84] ss:$8 sps:$4 sm:$0xff]   ;;  %v1479_v39 = vld [vmem:[%s1898_s6 + $0x80] ss:$8 sps:$4 sm:$0xff]  }
  0x74   : > { %1022 = vmatpush1.bf16.msra.mxu0 %v1444_v16  ;;  %980 = vmatprep.subr.bf16.mxu1 %v1445_v17  ;;  %v1474_v36 = vld [vmem:[%s1898_s6 + $0x170] ss:$8 sps:$4 sm:$0xff]   ;;  %v1477_v38 = vld [vmem:[%s1898_s6 + $0x184] ss:$8 sps:$4 sm:$0xff]   ;;  %v1480_v40 = vld [vmem:[%s1898_s6 + $0x180] ss:$8 sps:$4 sm:$0xff]  }
  0x75   : > { %1023 = vmatprep.subr.bf16.mxu0 %v1447_v18  ;;  %v1481_v41 = vld [vmem:[%s1898_s6 + $0x94] ss:$8 sps:$4 sm:$0xff]   ;;  %v1485_v43 = vld [vmem:[%s1898_s6 + $0x90] ss:$8 sps:$4 sm:$0xff]   ;;  %v1487_v45 = vld [vmem:[%s1898_s6 + $0xa4] ss:$8 sps:$4 sm:$0xff]  }
  0x76   : > { %v1483_v42 = vld [vmem:[%s1898_s6 + $0x194] ss:$8 sps:$4 sm:$0xff]   ;;  %v1486_v44 = vld [vmem:[%s1898_s6 + $0x190] ss:$8 sps:$4 sm:$0xff]   ;;  %v1489_v46 = vld [vmem:[%s1898_s6 + $0x1a4] ss:$8 sps:$4 sm:$0xff]  }
  0x77   : > { %981 = vmatpush1.bf16.msra.mxu1 %v1449_v19  ;;  %v1491_v47 = vld [vmem:[%s1898_s6 + $0xa0] ss:$8 sps:$4 sm:$0xff]   ;;  %v1493_v49 = vld [vmem:[%s1898_s6 + $0xb4] ss:$8 sps:$4 sm:$0xff]   ;;  %v1497_v51 = vld [vmem:[%s1898_s6 + $0xb0] ss:$8 sps:$4 sm:$0xff]  }
  0x78   : > { %1024 = vmatpush1.bf16.msra.mxu0 %v1450_v20  ;;  %982 = vmatprep.subr.bf16.mxu1 %v1451_v21  ;;  %v1492_v48 = vld [vmem:[%s1898_s6 + $0x1a0] ss:$8 sps:$4 sm:$0xff]   ;;  %v1495_v50 = vld [vmem:[%s1898_s6 + $0x1b4] ss:$8 sps:$4 sm:$0xff]   ;;  %v1498_v53 = vld [vmem:[%s1898_s6 + $0x1b0] ss:$8 sps:$4 sm:$0xff]  }
  0x79   : > { %1025 = vmatprep.subr.bf16.mxu0 %v1453_v22  ;;  %v1525_v52 = vld [vmem:[%s1896_s27 + $0x4] ss:$16 sps:$4 sm:$0xff]   ;;  %v1528_v56 = vld [vmem:[%s1896_s27 + $0xc] ss:$16 sps:$4 sm:$0xff]   ;;  %v1503_v57 = vld [vmem:[%s1898_s6 + $0xc0] ss:$8 sps:$4 sm:$0xff]  }
  0x7a   : > { %v1499_v54 = vld [vmem:[%s1898_s6 + $0xc4] ss:$8 sps:$4 sm:$0xff]   ;;  %1006 = vmatprep.mubr.bf16.mxu1 %v1525_v52  ;;  %1049 = vmatprep.mubr.bf16.mxu0 %v1528_v56  ;;  %v1504_v58 = vld [vmem:[%s1898_s6 + $0x1c0] ss:$8 sps:$4 sm:$0xff]   ;;  %v1505_v59 = vld [vmem:[%s1898_s6 + $0xd4] ss:$8 sps:$4 sm:$0xff]  }
  0x7b   : > { %983 = vmatpush1.bf16.msra.mxu1 %v1455_v23  ;;  %v1501_v55 = vld [vmem:[%s1898_s6 + $0x1c4] ss:$8 sps:$4 sm:$0xff]   ;;  %v1507_v60 = vld [vmem:[%s1898_s6 + $0x1d4] ss:$8 sps:$4 sm:$0xff]   ;;  %v1509_v61 = vld [vmem:[%s1898_s6 + $0xd0] ss:$8 sps:$4 sm:$0xff]  }
  0x7c   : > { %1026 = vmatpush1.bf16.msra.mxu0 %v1456_v24  ;;  %984 = vmatprep.subr.bf16.mxu1 %v1457_v25  ;;  %v1510_v62 = vld [vmem:[%s1898_s6 + $0x1d0] ss:$8 sps:$4 sm:$0xff]   ;;  %v1511_v63 = vld [vmem:[%s1898_s6 + $0xe4] ss:$8 sps:$4 sm:$0xff]   ;;  %v1515_v1 = vld [vmem:[%s1898_s6 + $0xe0] ss:$8 sps:$4 sm:$0xff]  }
  0x7d   : > { %1027 = vmatprep.subr.bf16.mxu0 %v1459_v26  ;;  %v1513_v0 = vld [vmem:[%s1898_s6 + $0x1e4] ss:$8 sps:$4 sm:$0xff]   ;;  %v1516_v2 = vld [vmem:[%s1898_s6 + $0x1e0] ss:$8 sps:$4 sm:$0xff]   ;;  %v1517_v3 = vld [vmem:[%s1898_s6 + $0xf4] ss:$8 sps:$4 sm:$0xff]  }
  0x7e   : > { %v1519_v4 = vld [vmem:[%s1898_s6 + $0x1f4] ss:$8 sps:$4 sm:$0xff]   ;;  %v1521_v5 = vld [vmem:[%s1898_s6 + $0xf0] ss:$8 sps:$4 sm:$0xff]   ;;  %v562_v10 = vld [vmem:[#allocation2] sm:$0xff]  ;;  %p1325_p5 = scmp.ne.s32.totalorder %s1599_s18, 4 }
  0x7f   : > { %985 = vmatpush1.bf16.msra.mxu1 %v1461_v27  ;;  %v1522_v6 = vld [vmem:[%s1898_s6 + $0x1f0] ss:$8 sps:$4 sm:$0xff]   ;;  %v563_v14 = vld [vmem:[#allocation2 + $0x8] sm:$0xff] }
  0x80   : > { %1028 = vmatpush1.bf16.msra.mxu0 %v1462_v28  ;;  %986 = vmatprep.subr.bf16.mxu1 %v1463_v29  ;;  %v1523_v7 = vld [vmem:[%s1896_s27] ss:$16 sps:$4 sm:$0xff]   ;;  %v1526_v8 = vld [vmem:[%s1896_s27 + $0x8] ss:$16 sps:$4 sm:$0xff]   ;;  %v1078_v29 = vlaneseq (!%p1325_p5) }
  0x81   : > { %1029 = vmatprep.subr.bf16.mxu0 %v1465_v30  ;;  %v564_v18 = vld [vmem:[#allocation2 + $0x10] sm:$0xff]  ;;  %v565_v23 = vld [vmem:[#allocation2 + $0x18] sm:$0xff] }
  0x82   : > { %v1079_v30 = vshrl.u32 (!%p1325_p5), %v1078_v29, 7 }
  0x83   : > { %987 = vmatpush1.bf16.msra.mxu1 %v1467_v31  ;;  %v1076_v31 = vld [vmem:[%s550_s4] sm:$0x3] (!%p1325_p5) }
  0x84   : > { %1030 = vmatpush1.bf16.msra.mxu0 %v1468_v32  ;;  %988 = vmatprep.subr.bf16.mxu1 %v1469_v33  ;;  %v1080_v33 = vsub.s32 (!%p1325_p5), 0, %v1079_v30 }
  0x85   : > { %1031 = vmatprep.subr.bf16.mxu0 %v1471_v34  ;;  %v1084_v34 = vsub.s32 (!%p1325_p5), 1, %v1079_v30 }
  0x87   : > { %989 = vmatpush1.bf16.msra.mxu1 %v1473_v35 }
  0x88   : > { %1032 = vmatpush1.bf16.msra.mxu0 %v1474_v36  ;;  %990 = vmatprep.subr.bf16.mxu1 %v1475_v37 }
  0x89   : > { %1033 = vmatprep.subr.bf16.mxu0 %v1477_v38  ;;  %v1081_v38 = vrot.slane (!%p1325_p5), %v1076_v31, %v1080_v33 }
  0x8b   : > { %991 = vmatpush1.bf16.msra.mxu1 %v1479_v39  ;;  %v1085_v39 = vrot.slane (!%p1325_p5), %v1076_v31, %v1084_v34 }
  0x8c   : > { %1034 = vmatpush1.bf16.msra.mxu0 %v1480_v40  ;;  %992 = vmatprep.subr.bf16.mxu1 %v1481_v41 }
  0x8d   : > { %1035 = vmatprep.subr.bf16.mxu0 %v1483_v42 }
  0x8f   : > { %993 = vmatpush1.bf16.msra.mxu1 %v1485_v43 }
  0x90   : > { %1036 = vmatpush1.bf16.msra.mxu0 %v1486_v44  ;;  %994 = vmatprep.subr.bf16.mxu1 %v1487_v45 }
  0x91   : > { %1037 = vmatprep.subr.bf16.mxu0 %v1489_v46 }
  0x93   : > { %995 = vmatpush1.bf16.msra.mxu1 %v1491_v47 }
  0x94   : > { %1038 = vmatpush1.bf16.msra.mxu0 %v1492_v48  ;;  %996 = vmatprep.subr.bf16.mxu1 %v1493_v49 }
  0x95   : > { %1039 = vmatprep.subr.bf16.mxu0 %v1495_v50 }
  0x97   : > { %997 = vmatpush1.bf16.msra.mxu1 %v1497_v51 }
  0x98   : > { %1040 = vmatpush1.bf16.msra.mxu0 %v1498_v53  ;;  %998 = vmatprep.subr.bf16.mxu1 %v1499_v54 }
  0x99   : > { %1041 = vmatprep.subr.bf16.mxu0 %v1501_v55 }
  0x9b   : > { %999 = vmatpush1.bf16.msra.mxu1 %v1503_v57 }
  0x9c   : > { %1042 = vmatpush1.bf16.msra.mxu0 %v1504_v58  ;;  %1000 = vmatprep.subr.bf16.mxu1 %v1505_v59 }
  0x9d   : > { %1043 = vmatprep.subr.bf16.mxu0 %v1507_v60 }
  0x9f   : > { %1001 = vmatpush1.bf16.msra.mxu1 %v1509_v61 }
  0xa0   : > { %1044 = vmatpush1.bf16.msra.mxu0 %v1510_v62  ;;  %1002 = vmatprep.subr.bf16.mxu1 %v1511_v63 }
  0xa1   : > { %1045 = vmatprep.subr.bf16.mxu0 %v1513_v0 }
  0xa3   : > { %1003 = vmatpush1.bf16.msra.mxu1 %v1515_v1 }
  0xa4   : > { %1046 = vmatpush1.bf16.msra.mxu0 %v1516_v2  ;;  %1004 = vmatprep.subr.bf16.mxu1 %v1517_v3 }
  0xa5   : > { %1047 = vmatprep.subr.bf16.mxu0 %v1519_v4 }
  0xa7   : > { %1005 = vmatpush1.bf16.msra.mxu1 %v1521_v5 }
  0xa8   : > { %1048 = vmatpush1.bf16.msra.mxu0 %v1522_v6 }
  0xaa   : > { %1007 = vmatmul.mubr.bf16.vlgmr.msra.gmra.mrb[0].mxu1 %v1523_v7 }
  0xab   : > { %1050 = vmatmul.mubr.bf16.vlgmr.msra.gmra.mrb[0].mxu0 %v1526_v8 }
 0x17d   : > { %v1008_v9 = vpop.f32.mrb[0].mxu1 }
 0x17e   : > { %v1051_v11 = vpop.f32.mrb[0].mxu0  ;;  %v1010_v13 = vpop.f32.mrb[1].mxu1 }
 0x17f   : > { %v1052_v12 = vadd.f32 %v1051_v11, %v1008_v9  ;;  %v1053_v15 = vpop.f32.mrb[1].mxu0  ;;  %v1012_v17 = vpop.f32.mrb[2].mxu1 }
 0x180   : > { %v1054_v16 = vadd.f32 %v1053_v15, %v1010_v13  ;;  %v1055_v19 = vpop.f32.mrb[2].mxu0  ;;  %v1014_v22 = vpop.f32.mrb[3].mxu1  ;;  %1071 = sbr.rel (%p1325_p5) target bundleno = 401 (0x191), region = 101 }
 0x181   : > { %v1060_v20 = vadd.f32 %v1052_v12, %v562_v10  ;;  %v1056_v21 = vadd.f32 %v1055_v19, %v1012_v17  ;;  %v1057_v24 = vpop.f32.mrb[3].mxu0 }
 0x182   : > { %v1061_v25 = vadd.f32 %v1054_v16, %v563_v14  ;;  %v1058_v26 = vadd.f32 %v1057_v24, %v1014_v22 }
 0x183   : > { %1064 = vst [vmem:[#allocation2] sm:$0xff] %v1060_v20  ;;  %v1062_v27 = vadd.f32 %v1056_v21, %v564_v18 }
 0x184   : > { %1065 = vst [vmem:[#allocation2 + $0x8] sm:$0xff] %v1061_v25  ;;  %v1063_v28 = vadd.f32 %v1058_v26, %v565_v23 }
 0x185   : > { %1066 = vst [vmem:[#allocation2 + $0x10] sm:$0xff] %v1062_v27 }
 0x186   : > { %1067 = vst [vmem:[#allocation2 + $0x18] sm:$0xff] %v1063_v28 }
 0x18a   : > { %v1072_v32 = vld [vmem:[#allocation2] sm:$0xff] }
 0x18b   : > { %v1073_v35 = vld [vmem:[#allocation2 + $0x8] sm:$0xff]  ;;  %v1088_v40 = vadd.f32 %v1081_v38, %v1072_v32 }
 0x18c   : > { %v1074_v36 = vld [vmem:[#allocation2 + $0x10] sm:$0xff]  ;;  %v1089_v41 = vadd.f32 %v1085_v39, %v1073_v35 }
 0x18d   : > { %v1075_v37 = vld [vmem:[#allocation2 + $0x18] sm:$0xff]  ;;  %v1090_v42 = vadd.f32 %v1081_v38, %v1074_v36  ;;  %1092 = vst [vmem:[%s1900_s1] sm:$0xff] %v1088_v40 }
 0x18e   : > { %v1091_v43 = vadd.f32 %v1085_v39, %v1075_v37  ;;  %1093 = vst [vmem:[%s1900_s1 + $0x8] sm:$0xff] %v1089_v41 }
 0x18f   : > { %1094 = vst [vmem:[%s1900_s1 + $0x10] sm:$0xff] %v1090_v42 }
 0x190   : > { %1095 = vst [vmem:[%s1900_s1 + $0x18] sm:$0xff] %v1091_v43 }
 0x191 PF: > { %1102 = sbr.rel (!%p1732_p12) target bundleno = 409 (0x199), region = 105  ;;  %s1333_s16 = sshll.u32 (%p1732_p12), %s1603_s19, 4 }
 0x192   : > { %s1108_s5 = scalar_lea.vmem (%p1732_p12), %s2027_s3, %s1333_s16 }
 0x194   : > { %v1121_v44 = vld [vmem:[%s1900_s1] sm:$0xff] (%p1732_p12) }
 0x195   : > { %v1123_v45 = vld [vmem:[%s1900_s1 + $0x8] sm:$0xff] (%p1732_p12)  ;;  %1122 = vst [vmem:[%s1108_s5] sm:$0xff] (%p1732_p12), %v1121_v44 }
 0x196   : > { %v1125_v46 = vld [vmem:[%s1900_s1 + $0x10] sm:$0xff] (%p1732_p12)  ;;  %1124 = vst [vmem:[%s1108_s5 + $0x8] sm:$0xff] (%p1732_p12), %v1123_v45 }
 0x197   : > { %v1127_v47 = vld [vmem:[%s1900_s1 + $0x18] sm:$0xff] (%p1732_p12)  ;;  %1126 = vst [vmem:[%s1108_s5 + $0x20] sm:$0xff] (%p1732_p12), %v1125_v46 }
 0x198   : > { %1128 = vst [vmem:[%s1108_s5 + $0x28] sm:$0xff] %v1127_v47 }
 0x199 PF: > { %s13_s22 = sadd.s32 1, %s1615_s22   ;;  %s2037_s10 = sld [smem:[#allocation6_spill]] }
 0x19a   : > { %p10_p6 = scmp.ge.s32.totalorder %s13_s22, 12   ;;  %s2038_s12 = smov %s1579_s13 }
 0x19b   : > { %s2039_s13 = smov %s1730_s9  ;;  %s2040_s14 = smov %s1587_s15 }
 0x19c   : > { %s2041_s15 = smov %s1727_s8  ;;  %s2042_s16 = smov %s1595_s17 }
 0x19d   : > { %s2043_s17 = smov %s1713_s30  ;;  %s2044_s18 = smov %s1607_s20 }
 0x19e   : > { %s2045_s19 = smov %s1611_s21  ;;  %s2046_s20 = smov %s2049_s24 }
 0x19f   : > { %s2047_s21 = smov %s2037_s10  ;;  %12 = sbr.rel (!%p10_p6) target bundleno = 9 (0x9), region = 170 }

// kernel: resnet_forward.27
= control target key start
LH: loop header
LB: loop body
LE: loop exit
PB: predicated region body
PF: predicated region fallthrough
CT: control target
= control target key end

     0   :  { %s2170_s0 = inlined_call_operand.vmem [shape: bf16[16,4608], index: 0, kind: input, shape index: {}]   ;;  %s2171_s1 = inlined_call_operand.vmem [shape: bf16[4608,512], index: 1, kind: input, shape index: {}]   ;;  %s2172_s2 = inlined_call_operand.vmem [shape: f32[1,512], index: 2, kind: input, shape index: {}]   ;;  %s2173_s3 = inlined_call_operand.vmem [shape: f32[16,512], index: 3, kind: input, shape index: {}]   ;;  %s2174_s4 = inlined_call_operand.vmem [shape: f32[16,512], index: 4, kind: output, shape index: {}]  }
   0x1   :  { %2177 = sst [smem:[#allocation10_spill]] %s2170_s0 }
   0x2   :  { %s1761_s15 = smov 0   ;;  %s1763_s16 = smov 0  }
   0x3   :  { %s1765_s17 = smov 0   ;;  %s1767_s18 = smov 0  }
   0x4   :  { %s1769_s19 = smov 0   ;;  %s1771_s20 = smov 0  }
   0x5   :  { %s1773_s21 = smov 0   ;;  %s1775_s22 = smov 0  }
   0x6   :  { %s1777_s23 = smov 0   ;;  %s1779_s24 = smov 0  }
   0x7   :  { %s1781_s25 = smov 0  }
   0x8 LB: > { %s1352_s26 = sadd.s32 4294967295, %s1733_s25   ;;  %s26_s27 = sadd.s32 1, %s1725_s23  ;;  %s1733_s25 = sphi %s1781_s25, %s14_s25   ;;  %s1729_s24 = sphi %s1779_s24, %s2198_s24   ;;  %s1725_s23 = sphi %s1777_s23, %s2197_s23   ;;  %s1721_s22 = sphi %s1775_s22, %s2196_s22   ;;  %s1717_s21 = sphi %s1773_s21, %s2195_s21   ;;  %s1713_s20 = sphi %s1771_s20, %s2194_s20   ;;  %s1709_s19 = sphi %s1769_s19, %s2193_s19   ;;  %s1705_s18 = sphi %s1767_s18, %s2192_s18   ;;  %s1701_s17 = sphi %s1765_s17, %s2191_s17   ;;  %s1697_s16 = sphi %s1763_s16, %s2190_s16   ;;  %s1693_s15 = sphi %s1761_s15, %s2189_s15  }
   0x9   : > { %p27_p0 = scmp.ge.s32.totalorder %s26_s27, 9  ;;  %s29_s28 = sadd.s32 1, %s1729_s24 }
   0xa   : > { %s42_s29 = sadd.s32 1, %s1713_s20  ;;  %p49_p1 = scmp.ne.s32.totalorder %s1713_s20, %s1709_s19 }
   0xb   : > { %s2200_s27 = smov (%p27_p0, %s26_s27), 0  ;;  %s2202_s28 = smov (!%p27_p0, %s29_s28), %s1729_s24 }
   0xc   : > { %2178 = sst [smem:[#allocation7_spill]] %s2200_s27  ;;  %s38_s30 = ssub.s32 %s1725_s23, %s2200_s27 }
   0xd   : > { %p50_p2 = scmp.eq.s32.totalorder %s1733_s25, 0  ;;  %p31_p3 = scmp.ge.s32.totalorder %s2202_s28, 2 }
   0xe   : > { %p40_p4 = scmp.eq.s32.totalorder %s38_s30, 0  ;;  %s70_s6 = sadd.s32 1, %s1705_s18 }
   0xf   : > { %p1830_p5 = por %p50_p2, %p49_p1  ;;  %s2204_s28 = smov (%p31_p3, %s2202_s28), 0 }
  0x10   : > { %2180 = sst [smem:[#allocation8_spill]] %s2204_s28  ;;  %s66_s8 = ssub.s32 %s1729_s24, %s2204_s28 }
  0x11   : > { %s1838_s7 = scalar_select %p40_p4, %s1713_s20, %s42_s29  }
  0x12   : > { %p77_p6 = scmp.ne.s32.totalorder %s1705_s18, %s1701_s17  ;;  %s67_s9 = sor.u32 %s66_s8, %s38_s30 }
  0x13   : > { %2181 = sst [smem:[#allocation9_spill]] %s1838_s7  ;;  %p122_p7 = scmp.eq.s32.totalorder %s66_s8, 0 }
  0x14   : > { %p68_p8 = scmp.eq.s32.totalorder %s67_s9, 0  ;;  %p1846_p9 = por %p77_p6, %p50_p2 }
  0x15   : > { %s124_s11 = sadd.s32 1, %s1697_s16  ;;  %p131_p10 = scmp.ne.s32.totalorder %s1697_s16, %s1693_s15 }
  0x16   : > { %s1854_s12 = scalar_select %p68_p8, %s1705_s18, %s70_s6  }
  0x17   : > { %s1857_s13 = scalar_select %p122_p7, %s1697_s16, %s124_s11  }
  0x18   : > { %p1861_p11 = por %p131_p10, %p50_p2  ;;  %p163_p12 = scmp.eq.s32.totalorder %s1352_s26, 17 }
  0x19   : > { %p1355_p0 = scmp.ge.s32.totalorder %s1733_s25, 18 }
  0x1a   : > { %p1865_p13 = por %p163_p12, %p131_p10 }
  0x1b   : > { %185 = sbr.rel (%p1355_p0) target bundleno = 92 (0x5c), region = 16 }
  0x22   : > { %188 = sbr.rel (!%p1830_p5) target bundleno = 46 (0x2e), region = 20  ;;  %s190_s30 = sand.u32 (%p1830_p5), 1, %s1713_s20  }
  0x23   : > { %s1448_s6 = sshll.u32 (%p1830_p5), %s1725_s23, 4  ;;  %s1356_s8 = sshll.u32 (%p1830_p5), %s190_s30, 5 }
  0x24   : > { %s2185_s0 = sld [smem:[#allocation10_spill]] (%p1830_p5)  ;;  %s192_s26 = scalar_lea.vmem (%p1830_p5), [#allocation3], %s1356_s8 }
  0x2a   : > { %s198_s28 = scalar_lea.vmem %s2185_s0, %s1448_s6 }
  0x2b   : > { %v211_v0 = vld [vmem:[%s198_s28] sm:$0xff]  ;;  %v213_v1 = vld [vmem:[%s198_s28 + $0x8] sm:$0xff]  ;;  %v215_v2 = vld [vmem:[%s198_s28 + $0x90] sm:$0xff] }
  0x2c   : > { %212 = vst [vmem:[%s192_s26] sm:$0xff] %v211_v0  ;;  %214 = vst [vmem:[%s192_s26 + $0x8] sm:$0xff] %v213_v1  ;;  %v217_v3 = vld [vmem:[%s198_s28 + $0x98] sm:$0xff] }
  0x2d   : > { %216 = vst [vmem:[%s192_s26 + $0x10] sm:$0xff] %v215_v2  ;;  %218 = vst [vmem:[%s192_s26 + $0x18] sm:$0xff] %v217_v3 }
  0x2e PF: > { %224 = sbr.rel (!%p1846_p9) target bundleno = 85 (0x55), region = 43  ;;  %s226_s5 = sand.u32 (%p1846_p9), 1, %s1705_s18  }
  0x2f   : > { %s1361_s30 = sshll.u32 (%p1846_p9), %s1729_s24, 1  ;;  %s1359_s9 = sshll.u32 (%p1846_p9), %s226_s5, 9 }
  0x30   : > { %s1449_s6 = sshll.u32 (%p1846_p9), %s1725_s23, 8  ;;  %s1890_s28 = scalar_lea.vmem (%p1846_p9), [#allocation4], %s1359_s9 }
  0x31   : > { %s232_s11 = sadd.s32 (%p1846_p9), %s1449_s6, %s1361_s30 }
  0x32   : > { %s1363_s0 = sshll.u32 (%p1846_p9), %s232_s11, 2 }
  0x33   : > { %s1885_s7 = scalar_lea.vmem (%p1846_p9), %s2171_s1, %s1363_s0 }
  0x34   : > { %v388_v4 = vld [vmem:[%s1885_s7] sm:$0xff] (%p1846_p9)  ;;  %v390_v5 = vld [vmem:[%s1885_s7 + $0x10] sm:$0xff] (%p1846_p9) }
  0x35   : > { %v392_v6 = vld [vmem:[%s1885_s7 + $0x20] sm:$0xff]  ;;  %389 = vst [vmem:[%s1890_s28] sm:$0xff] %v388_v4  ;;  %391 = vst [vmem:[%s1890_s28 + $0x8] sm:$0xff] %v390_v5  ;;  %v394_v7 = vld [vmem:[%s1885_s7 + $0x30] sm:$0xff] }
  0x36   : > { %393 = vst [vmem:[%s1890_s28 + $0x10] sm:$0xff] %v392_v6  ;;  %v396_v8 = vld [vmem:[%s1885_s7 + $0x40] sm:$0xff]  ;;  %v398_v9 = vld [vmem:[%s1885_s7 + $0x50] sm:$0xff]  ;;  %395 = vst [vmem:[%s1890_s28 + $0x18] sm:$0xff] %v394_v7 }
  0x37   : > { %397 = vst [vmem:[%s1890_s28 + $0x20] sm:$0xff] %v396_v8  ;;  %399 = vst [vmem:[%s1890_s28 + $0x28] sm:$0xff] %v398_v9  ;;  %v400_v10 = vld [vmem:[%s1885_s7 + $0x60] sm:$0xff]  ;;  %v402_v11 = vld [vmem:[%s1885_s7 + $0x70] sm:$0xff] }
  0x38   : > { %v404_v12 = vld [vmem:[%s1885_s7 + $0x80] sm:$0xff]  ;;  %401 = vst [vmem:[%s1890_s28 + $0x30] sm:$0xff] %v400_v10  ;;  %403 = vst [vmem:[%s1890_s28 + $0x38] sm:$0xff] %v402_v11  ;;  %v406_v13 = vld [vmem:[%s1885_s7 + $0x90] sm:$0xff] }
  0x39   : > { %405 = vst [vmem:[%s1890_s28 + $0x40] sm:$0xff] %v404_v12  ;;  %v408_v14 = vld [vmem:[%s1885_s7 + $0xa0] sm:$0xff]  ;;  %v410_v15 = vld [vmem:[%s1885_s7 + $0xb0] sm:$0xff]  ;;  %407 = vst [vmem:[%s1890_s28 + $0x48] sm:$0xff] %v406_v13 }
  0x3a   : > { %409 = vst [vmem:[%s1890_s28 + $0x50] sm:$0xff] %v408_v14  ;;  %411 = vst [vmem:[%s1890_s28 + $0x58] sm:$0xff] %v410_v15  ;;  %v412_v16 = vld [vmem:[%s1885_s7 + $0xc0] sm:$0xff]  ;;  %v414_v17 = vld [vmem:[%s1885_s7 + $0xd0] sm:$0xff] }
  0x3b   : > { %v416_v18 = vld [vmem:[%s1885_s7 + $0xe0] sm:$0xff]  ;;  %413 = vst [vmem:[%s1890_s28 + $0x60] sm:$0xff] %v412_v16  ;;  %415 = vst [vmem:[%s1890_s28 + $0x68] sm:$0xff] %v414_v17  ;;  %v418_v19 = vld [vmem:[%s1885_s7 + $0xf0] sm:$0xff] }
  0x3c   : > { %417 = vst [vmem:[%s1890_s28 + $0x70] sm:$0xff] %v416_v18  ;;  %v420_v20 = vld [vmem:[%s1885_s7 + $0x100] sm:$0xff]  ;;  %v422_v21 = vld [vmem:[%s1885_s7 + $0x110] sm:$0xff]  ;;  %419 = vst [vmem:[%s1890_s28 + $0x78] sm:$0xff] %v418_v19 }
  0x3d   : > { %421 = vst [vmem:[%s1890_s28 + $0x80] sm:$0xff] %v420_v20  ;;  %423 = vst [vmem:[%s1890_s28 + $0x88] sm:$0xff] %v422_v21  ;;  %v424_v22 = vld [vmem:[%s1885_s7 + $0x120] sm:$0xff]  ;;  %v426_v23 = vld [vmem:[%s1885_s7 + $0x130] sm:$0xff] }
  0x3e   : > { %v428_v24 = vld [vmem:[%s1885_s7 + $0x140] sm:$0xff]  ;;  %425 = vst [vmem:[%s1890_s28 + $0x90] sm:$0xff] %v424_v22  ;;  %427 = vst [vmem:[%s1890_s28 + $0x98] sm:$0xff] %v426_v23  ;;  %v430_v25 = vld [vmem:[%s1885_s7 + $0x150] sm:$0xff] }
  0x3f   : > { %429 = vst [vmem:[%s1890_s28 + $0xa0] sm:$0xff] %v428_v24  ;;  %v432_v26 = vld [vmem:[%s1885_s7 + $0x160] sm:$0xff]  ;;  %v434_v27 = vld [vmem:[%s1885_s7 + $0x170] sm:$0xff]  ;;  %431 = vst [vmem:[%s1890_s28 + $0xa8] sm:$0xff] %v430_v25 }
  0x40   : > { %433 = vst [vmem:[%s1890_s28 + $0xb0] sm:$0xff] %v432_v26  ;;  %435 = vst [vmem:[%s1890_s28 + $0xb8] sm:$0xff] %v434_v27  ;;  %v436_v28 = vld [vmem:[%s1885_s7 + $0x180] sm:$0xff]  ;;  %v438_v29 = vld [vmem:[%s1885_s7 + $0x190] sm:$0xff] }
  0x41   : > { %v440_v30 = vld [vmem:[%s1885_s7 + $0x1a0] sm:$0xff]  ;;  %437 = vst [vmem:[%s1890_s28 + $0xc0] sm:$0xff] %v436_v28  ;;  %439 = vst [vmem:[%s1890_s28 + $0xc8] sm:$0xff] %v438_v29  ;;  %v442_v31 = vld [vmem:[%s1885_s7 + $0x1b0] sm:$0xff] }
  0x42   : > { %441 = vst [vmem:[%s1890_s28 + $0xd0] sm:$0xff] %v440_v30  ;;  %v444_v32 = vld [vmem:[%s1885_s7 + $0x1c0] sm:$0xff]  ;;  %v446_v33 = vld [vmem:[%s1885_s7 + $0x1d0] sm:$0xff]  ;;  %443 = vst [vmem:[%s1890_s28 + $0xd8] sm:$0xff] %v442_v31 }
  0x43   : > { %445 = vst [vmem:[%s1890_s28 + $0xe0] sm:$0xff] %v444_v32  ;;  %447 = vst [vmem:[%s1890_s28 + $0xe8] sm:$0xff] %v446_v33  ;;  %v448_v34 = vld [vmem:[%s1885_s7 + $0x1e0] sm:$0xff]  ;;  %v450_v35 = vld [vmem:[%s1885_s7 + $0x1f0] sm:$0xff] }
  0x44   : > { %v452_v36 = vld [vmem:[%s1885_s7 + $0x200] sm:$0xff]  ;;  %449 = vst [vmem:[%s1890_s28 + $0xf0] sm:$0xff] %v448_v34  ;;  %451 = vst [vmem:[%s1890_s28 + $0xf8] sm:$0xff] %v450_v35  ;;  %v454_v37 = vld [vmem:[%s1885_s7 + $0x210] sm:$0xff] }
  0x45   : > { %453 = vst [vmem:[%s1890_s28 + $0x100] sm:$0xff] %v452_v36  ;;  %v456_v38 = vld [vmem:[%s1885_s7 + $0x220] sm:$0xff]  ;;  %v458_v39 = vld [vmem:[%s1885_s7 + $0x230] sm:$0xff]  ;;  %455 = vst [vmem:[%s1890_s28 + $0x108] sm:$0xff] %v454_v37 }
  0x46   : > { %457 = vst [vmem:[%s1890_s28 + $0x110] sm:$0xff] %v456_v38  ;;  %459 = vst [vmem:[%s1890_s28 + $0x118] sm:$0xff] %v458_v39  ;;  %v460_v40 = vld [vmem:[%s1885_s7 + $0x240] sm:$0xff]  ;;  %v462_v41 = vld [vmem:[%s1885_s7 + $0x250] sm:$0xff] }
  0x47   : > { %v464_v42 = vld [vmem:[%s1885_s7 + $0x260] sm:$0xff]  ;;  %461 = vst [vmem:[%s1890_s28 + $0x120] sm:$0xff] %v460_v40  ;;  %463 = vst [vmem:[%s1890_s28 + $0x128] sm:$0xff] %v462_v41  ;;  %v466_v43 = vld [vmem:[%s1885_s7 + $0x270] sm:$0xff] }
  0x48   : > { %465 = vst [vmem:[%s1890_s28 + $0x130] sm:$0xff] %v464_v42  ;;  %v468_v44 = vld [vmem:[%s1885_s7 + $0x280] sm:$0xff]  ;;  %v470_v45 = vld [vmem:[%s1885_s7 + $0x290] sm:$0xff]  ;;  %467 = vst [vmem:[%s1890_s28 + $0x138] sm:$0xff] %v466_v43 }
  0x49   : > { %469 = vst [vmem:[%s1890_s28 + $0x140] sm:$0xff] %v468_v44  ;;  %471 = vst [vmem:[%s1890_s28 + $0x148] sm:$0xff] %v470_v45  ;;  %v472_v46 = vld [vmem:[%s1885_s7 + $0x2a0] sm:$0xff]  ;;  %v474_v47 = vld [vmem:[%s1885_s7 + $0x2b0] sm:$0xff] }
  0x4a   : > { %v476_v48 = vld [vmem:[%s1885_s7 + $0x2c0] sm:$0xff]  ;;  %473 = vst [vmem:[%s1890_s28 + $0x150] sm:$0xff] %v472_v46  ;;  %475 = vst [vmem:[%s1890_s28 + $0x158] sm:$0xff] %v474_v47  ;;  %v478_v49 = vld [vmem:[%s1885_s7 + $0x2d0] sm:$0xff] }
  0x4b   : > { %477 = vst [vmem:[%s1890_s28 + $0x160] sm:$0xff] %v476_v48  ;;  %v480_v50 = vld [vmem:[%s1885_s7 + $0x2e0] sm:$0xff]  ;;  %v482_v51 = vld [vmem:[%s1885_s7 + $0x2f0] sm:$0xff]  ;;  %479 = vst [vmem:[%s1890_s28 + $0x168] sm:$0xff] %v478_v49 }
  0x4c   : > { %481 = vst [vmem:[%s1890_s28 + $0x170] sm:$0xff] %v480_v50  ;;  %483 = vst [vmem:[%s1890_s28 + $0x178] sm:$0xff] %v482_v51  ;;  %v484_v52 = vld [vmem:[%s1885_s7 + $0x300] sm:$0xff]  ;;  %v486_v53 = vld [vmem:[%s1885_s7 + $0x310] sm:$0xff] }
  0x4d   : > { %v488_v54 = vld [vmem:[%s1885_s7 + $0x320] sm:$0xff]  ;;  %485 = vst [vmem:[%s1890_s28 + $0x180] sm:$0xff] %v484_v52  ;;  %487 = vst [vmem:[%s1890_s28 + $0x188] sm:$0xff] %v486_v53  ;;  %v490_v55 = vld [vmem:[%s1885_s7 + $0x330] sm:$0xff] }
  0x4e   : > { %489 = vst [vmem:[%s1890_s28 + $0x190] sm:$0xff] %v488_v54  ;;  %v492_v56 = vld [vmem:[%s1885_s7 + $0x340] sm:$0xff]  ;;  %v494_v57 = vld [vmem:[%s1885_s7 + $0x350] sm:$0xff]  ;;  %491 = vst [vmem:[%s1890_s28 + $0x198] sm:$0xff] %v490_v55 }
  0x4f   : > { %493 = vst [vmem:[%s1890_s28 + $0x1a0] sm:$0xff] %v492_v56  ;;  %495 = vst [vmem:[%s1890_s28 + $0x1a8] sm:$0xff] %v494_v57  ;;  %v496_v58 = vld [vmem:[%s1885_s7 + $0x360] sm:$0xff]  ;;  %v498_v59 = vld [vmem:[%s1885_s7 + $0x370] sm:$0xff] }
  0x50   : > { %v500_v60 = vld [vmem:[%s1885_s7 + $0x380] sm:$0xff]  ;;  %497 = vst [vmem:[%s1890_s28 + $0x1b0] sm:$0xff] %v496_v58  ;;  %499 = vst [vmem:[%s1890_s28 + $0x1b8] sm:$0xff] %v498_v59  ;;  %v502_v61 = vld [vmem:[%s1885_s7 + $0x390] sm:$0xff] }
  0x51   : > { %501 = vst [vmem:[%s1890_s28 + $0x1c0] sm:$0xff] %v500_v60  ;;  %v504_v62 = vld [vmem:[%s1885_s7 + $0x3a0] sm:$0xff]  ;;  %v506_v63 = vld [vmem:[%s1885_s7 + $0x3b0] sm:$0xff]  ;;  %503 = vst [vmem:[%s1890_s28 + $0x1c8] sm:$0xff] %v502_v61 }
  0x52   : > { %505 = vst [vmem:[%s1890_s28 + $0x1d0] sm:$0xff] %v504_v62  ;;  %507 = vst [vmem:[%s1890_s28 + $0x1d8] sm:$0xff] %v506_v63  ;;  %v508_v0 = vld [vmem:[%s1885_s7 + $0x3c0] sm:$0xff]  ;;  %v510_v1 = vld [vmem:[%s1885_s7 + $0x3d0] sm:$0xff] }
  0x53   : > { %v512_v2 = vld [vmem:[%s1885_s7 + $0x3e0] sm:$0xff]  ;;  %509 = vst [vmem:[%s1890_s28 + $0x1e0] sm:$0xff] %v508_v0  ;;  %511 = vst [vmem:[%s1890_s28 + $0x1e8] sm:$0xff] %v510_v1  ;;  %v514_v3 = vld [vmem:[%s1885_s7 + $0x3f0] sm:$0xff] }
  0x54   : > { %513 = vst [vmem:[%s1890_s28 + $0x1f0] sm:$0xff] %v512_v2  ;;  %515 = vst [vmem:[%s1890_s28 + $0x1f8] sm:$0xff] %v514_v3 }
  0x55 PF: > { %529 = sbr.rel (!%p1861_p11) target bundleno = 92 (0x5c), region = 85  ;;  %s531_s0 = sand.u32 (%p1861_p11), 1, %s1697_s16  }
  0x56   : > { %s1450_s27 = sshll.u32 (%p1861_p11), %s1729_s24, 4  ;;  %s1364_s10 = sshll.u32 (%p1861_p11), %s531_s0, 5 }
  0x57   : > { %s539_s30 = scalar_lea.vmem (%p1861_p11), %s2173_s3, %s1450_s27  ;;  %s533_s9 = scalar_lea.vmem (%p1861_p11), [#allocation5], %s1364_s10 }
  0x58   : > { %v552_v4 = vld [vmem:[%s539_s30] sm:$0xff] (%p1861_p11)  ;;  %v554_v5 = vld [vmem:[%s539_s30 + $0x8] sm:$0xff] (%p1861_p11) }
  0x59   : > { %v556_v6 = vld [vmem:[%s539_s30 + $0x20] sm:$0xff] (%p1861_p11)  ;;  %553 = vst [vmem:[%s533_s9] sm:$0xff] (%p1861_p11), %v552_v4  ;;  %555 = vst [vmem:[%s533_s9 + $0x8] sm:$0xff] (%p1861_p11), %v554_v5  ;;  %v558_v7 = vld [vmem:[%s539_s30 + $0x28] sm:$0xff] (%p1861_p11) }
  0x5a   : > { %557 = vst [vmem:[%s533_s9 + $0x10] sm:$0xff] (%p1861_p11), %v556_v6  ;;  %559 = vst [vmem:[%s533_s9 + $0x18] sm:$0xff] (%p1861_p11), %v558_v7 }
  0x5c PF: > { %p1367_p1 = scmp.ge.s32.totalorder %s1733_s25, 1  ;;  %p564_p2 = scmp.lt.s32.totalorder %s1733_s25, 19 }
  0x5e   : > { %p565_p3 = pnand %p1367_p1, %p564_p2 }
  0x5f   : > { %s571_s7 = sand.u32 (!%p565_p3), 1, %s1709_s19   ;;  %s578_s14 = sand.u32 (!%p565_p3), 1, %s1701_s17  }
  0x60   : > { %568 = sbr.rel (%p565_p3) target bundleno = 418 (0x1a2), region = 108  ;;  %s1368_s6 = sshll.u32 (!%p565_p3), %s571_s7, 5 }
  0x61   : > { %s1369_s11 = sshll.u32 (!%p565_p3), %s578_s14, 9  ;;  %s585_s8 = sand.u32 (!%p565_p3), 1, %s1693_s15  }
  0x62   : > { %s1372_s28 = sshll.u32 (!%p565_p3), %s1721_s22, 1  ;;  %s1370_s0 = sshll.u32 (!%p565_p3), %s585_s8, 5 }
  0x63   : > { %p626_p4 = scmp.lt.s32.totalorder (!%p565_p3), %s1372_s28, 3  ;;  %s2036_s5 = scalar_lea.vmem (!%p565_p3), [#allocation3], %s1368_s6 }
  0x64   : > { %s2038_s30 = scalar_lea.vmem (!%p565_p3), [#allocation4], %s1369_s11  ;;  %s2040_s9 = scalar_lea.vmem (!%p565_p3), [#allocation5], %s1370_s0 }
  0x65   : > { %s2042_s17 = scalar_lea.vmem (!%p565_p3), [#allocation6], %s1370_s0  ;;  %p1373_p5 = scmp.ne.s32.totalorder (!%p565_p3), %s1717_s21, 0 }
  0x67   : > { %s2206_s28 = smov (!%p626_p4, %s1372_s28), 3  ;;  %637 = sbr.rel (%p1373_p5) target bundleno = 110 (0x6e), region = 124 }
  0x68   : > { %s628_s26 = scalar_lea.vmem %s2172_s2, %s2206_s28  ;;  %v1735_v8 = vmov (!%p1373_p5), 0.0  }
  0x69   : > { %638 = vst [vmem:[#allocation2] sm:$0xff] (!%p1373_p5), %v1735_v8  ;;  %639 = vst [vmem:[#allocation2 + $0x8] sm:$0xff] (!%p1373_p5), %v1735_v8 }
  0x6a   : > { %640 = vst [vmem:[#allocation2 + $0x10] sm:$0xff] (!%p1373_p5), %v1735_v8  ;;  %641 = vst [vmem:[#allocation2 + $0x18] sm:$0xff] (!%p1373_p5), %v1735_v8 }
  0x6e PF: > { %v1545_v9 = vld [vmem:[%s2038_s30 + $0x4] ss:$8 sps:$4 sm:$0xff]   ;;  %v1549_v11 = vld [vmem:[%s2038_s30] ss:$8 sps:$4 sm:$0xff]   ;;  %v1551_v13 = vld [vmem:[%s2038_s30 + $0x14] ss:$8 sps:$4 sm:$0xff]  }
  0x6f   : > { %v1547_v10 = vld [vmem:[%s2038_s30 + $0x104] ss:$8 sps:$4 sm:$0xff]   ;;  %1054 = vmatprep.subr.bf16.mxu1 %v1545_v9  ;;  %v1550_v12 = vld [vmem:[%s2038_s30 + $0x100] ss:$8 sps:$4 sm:$0xff]   ;;  %v1553_v14 = vld [vmem:[%s2038_s30 + $0x114] ss:$8 sps:$4 sm:$0xff]  }
  0x70   : > { %1097 = vmatprep.subr.bf16.mxu0 %v1547_v10  ;;  %1055 = vmatpush1.bf16.msra.mxu1 %v1549_v11  ;;  %v1555_v15 = vld [vmem:[%s2038_s30 + $0x10] ss:$8 sps:$4 sm:$0xff]   ;;  %v1557_v17 = vld [vmem:[%s2038_s30 + $0x24] ss:$8 sps:$4 sm:$0xff]   ;;  %v1561_v19 = vld [vmem:[%s2038_s30 + $0x20] ss:$8 sps:$4 sm:$0xff]  }
  0x71   : > { %1098 = vmatpush1.bf16.msra.mxu0 %v1550_v12  ;;  %1056 = vmatprep.subr.bf16.mxu1 %v1551_v13  ;;  %v1556_v16 = vld [vmem:[%s2038_s30 + $0x110] ss:$8 sps:$4 sm:$0xff]   ;;  %v1559_v18 = vld [vmem:[%s2038_s30 + $0x124] ss:$8 sps:$4 sm:$0xff]   ;;  %v1562_v20 = vld [vmem:[%s2038_s30 + $0x120] ss:$8 sps:$4 sm:$0xff]  }
  0x72   : > { %1099 = vmatprep.subr.bf16.mxu0 %v1553_v14  ;;  %v1563_v21 = vld [vmem:[%s2038_s30 + $0x34] ss:$8 sps:$4 sm:$0xff]   ;;  %v1567_v23 = vld [vmem:[%s2038_s30 + $0x30] ss:$8 sps:$4 sm:$0xff]   ;;  %v1569_v25 = vld [vmem:[%s2038_s30 + $0x44] ss:$8 sps:$4 sm:$0xff]  }
  0x73   : > { %v1565_v22 = vld [vmem:[%s2038_s30 + $0x134] ss:$8 sps:$4 sm:$0xff]   ;;  %v1568_v24 = vld [vmem:[%s2038_s30 + $0x130] ss:$8 sps:$4 sm:$0xff]   ;;  %v1571_v26 = vld [vmem:[%s2038_s30 + $0x144] ss:$8 sps:$4 sm:$0xff]  }
  0x74   : > { %1057 = vmatpush1.bf16.msra.mxu1 %v1555_v15  ;;  %v1573_v27 = vld [vmem:[%s2038_s30 + $0x40] ss:$8 sps:$4 sm:$0xff]   ;;  %v1575_v29 = vld [vmem:[%s2038_s30 + $0x54] ss:$8 sps:$4 sm:$0xff]   ;;  %v1579_v31 = vld [vmem:[%s2038_s30 + $0x50] ss:$8 sps:$4 sm:$0xff]  }
  0x75   : > { %1100 = vmatpush1.bf16.msra.mxu0 %v1556_v16  ;;  %1058 = vmatprep.subr.bf16.mxu1 %v1557_v17  ;;  %v1574_v28 = vld [vmem:[%s2038_s30 + $0x140] ss:$8 sps:$4 sm:$0xff]   ;;  %v1577_v30 = vld [vmem:[%s2038_s30 + $0x154] ss:$8 sps:$4 sm:$0xff]   ;;  %v1580_v32 = vld [vmem:[%s2038_s30 + $0x150] ss:$8 sps:$4 sm:$0xff]  }
  0x76   : > { %1101 = vmatprep.subr.bf16.mxu0 %v1559_v18  ;;  %v1581_v33 = vld [vmem:[%s2038_s30 + $0x64] ss:$8 sps:$4 sm:$0xff]   ;;  %v1585_v35 = vld [vmem:[%s2038_s30 + $0x60] ss:$8 sps:$4 sm:$0xff]   ;;  %v1587_v37 = vld [vmem:[%s2038_s30 + $0x74] ss:$8 sps:$4 sm:$0xff]  }
  0x77   : > { %v1583_v34 = vld [vmem:[%s2038_s30 + $0x164] ss:$8 sps:$4 sm:$0xff]   ;;  %v1586_v36 = vld [vmem:[%s2038_s30 + $0x160] ss:$8 sps:$4 sm:$0xff]   ;;  %v1589_v38 = vld [vmem:[%s2038_s30 + $0x174] ss:$8 sps:$4 sm:$0xff]  }
  0x78   : > { %1059 = vmatpush1.bf16.msra.mxu1 %v1561_v19  ;;  %v1591_v39 = vld [vmem:[%s2038_s30 + $0x70] ss:$8 sps:$4 sm:$0xff]   ;;  %v1593_v41 = vld [vmem:[%s2038_s30 + $0x84] ss:$8 sps:$4 sm:$0xff]   ;;  %v1597_v43 = vld [vmem:[%s2038_s30 + $0x80] ss:$8 sps:$4 sm:$0xff]  }
  0x79   : > { %1102 = vmatpush1.bf16.msra.mxu0 %v1562_v20  ;;  %1060 = vmatprep.subr.bf16.mxu1 %v1563_v21  ;;  %v1592_v40 = vld [vmem:[%s2038_s30 + $0x170] ss:$8 sps:$4 sm:$0xff]   ;;  %v1595_v42 = vld [vmem:[%s2038_s30 + $0x184] ss:$8 sps:$4 sm:$0xff]   ;;  %v1598_v44 = vld [vmem:[%s2038_s30 + $0x180] ss:$8 sps:$4 sm:$0xff]  }
  0x7a   : > { %1103 = vmatprep.subr.bf16.mxu0 %v1565_v22  ;;  %v1599_v45 = vld [vmem:[%s2038_s30 + $0x94] ss:$8 sps:$4 sm:$0xff]   ;;  %v1603_v47 = vld [vmem:[%s2038_s30 + $0x90] ss:$8 sps:$4 sm:$0xff]   ;;  %v1605_v49 = vld [vmem:[%s2038_s30 + $0xa4] ss:$8 sps:$4 sm:$0xff]  }
  0x7b   : > { %v1601_v46 = vld [vmem:[%s2038_s30 + $0x194] ss:$8 sps:$4 sm:$0xff]   ;;  %v1604_v48 = vld [vmem:[%s2038_s30 + $0x190] ss:$8 sps:$4 sm:$0xff]   ;;  %v1607_v50 = vld [vmem:[%s2038_s30 + $0x1a4] ss:$8 sps:$4 sm:$0xff]  }
  0x7c   : > { %1061 = vmatpush1.bf16.msra.mxu1 %v1567_v23  ;;  %v1609_v51 = vld [vmem:[%s2038_s30 + $0xa0] ss:$8 sps:$4 sm:$0xff]   ;;  %v1611_v53 = vld [vmem:[%s2038_s30 + $0xb4] ss:$8 sps:$4 sm:$0xff]   ;;  %v1615_v55 = vld [vmem:[%s2038_s30 + $0xb0] ss:$8 sps:$4 sm:$0xff]  }
  0x7d   : > { %1104 = vmatpush1.bf16.msra.mxu0 %v1568_v24  ;;  %1062 = vmatprep.subr.bf16.mxu1 %v1569_v25  ;;  %v1610_v52 = vld [vmem:[%s2038_s30 + $0x1a0] ss:$8 sps:$4 sm:$0xff]   ;;  %v1613_v54 = vld [vmem:[%s2038_s30 + $0x1b4] ss:$8 sps:$4 sm:$0xff]   ;;  %v1616_v57 = vld [vmem:[%s2038_s30 + $0x1b0] ss:$8 sps:$4 sm:$0xff]  }
  0x7e   : > { %1105 = vmatprep.subr.bf16.mxu0 %v1571_v26  ;;  %v1643_v56 = vld [vmem:[%s2036_s5 + $0x4] ss:$16 sps:$4 sm:$0xff]   ;;  %v1646_v60 = vld [vmem:[%s2036_s5 + $0xc] ss:$16 sps:$4 sm:$0xff]   ;;  %v1621_v61 = vld [vmem:[%s2038_s30 + $0xc0] ss:$8 sps:$4 sm:$0xff]  }
  0x7f   : > { %v1617_v58 = vld [vmem:[%s2038_s30 + $0xc4] ss:$8 sps:$4 sm:$0xff]   ;;  %1086 = vmatprep.mubr.bf16.mxu1 %v1643_v56  ;;  %1129 = vmatprep.mubr.bf16.mxu0 %v1646_v60  ;;  %v1622_v62 = vld [vmem:[%s2038_s30 + $0x1c0] ss:$8 sps:$4 sm:$0xff]   ;;  %v1623_v63 = vld [vmem:[%s2038_s30 + $0xd4] ss:$8 sps:$4 sm:$0xff]  }
  0x80   : > { %1063 = vmatpush1.bf16.msra.mxu1 %v1573_v27  ;;  %v1619_v59 = vld [vmem:[%s2038_s30 + $0x1c4] ss:$8 sps:$4 sm:$0xff]   ;;  %v1625_v0 = vld [vmem:[%s2038_s30 + $0x1d4] ss:$8 sps:$4 sm:$0xff]   ;;  %v1627_v1 = vld [vmem:[%s2038_s30 + $0xd0] ss:$8 sps:$4 sm:$0xff]  }
  0x81   : > { %1106 = vmatpush1.bf16.msra.mxu0 %v1574_v28  ;;  %1064 = vmatprep.subr.bf16.mxu1 %v1575_v29  ;;  %v1628_v2 = vld [vmem:[%s2038_s30 + $0x1d0] ss:$8 sps:$4 sm:$0xff]   ;;  %v1629_v3 = vld [vmem:[%s2038_s30 + $0xe4] ss:$8 sps:$4 sm:$0xff]   ;;  %v1633_v5 = vld [vmem:[%s2038_s30 + $0xe0] ss:$8 sps:$4 sm:$0xff]  }
  0x82   : > { %1107 = vmatprep.subr.bf16.mxu0 %v1577_v30  ;;  %v1631_v4 = vld [vmem:[%s2038_s30 + $0x1e4] ss:$8 sps:$4 sm:$0xff]   ;;  %v1634_v6 = vld [vmem:[%s2038_s30 + $0x1e0] ss:$8 sps:$4 sm:$0xff]   ;;  %v1635_v7 = vld [vmem:[%s2038_s30 + $0xf4] ss:$8 sps:$4 sm:$0xff]  }
  0x83   : > { %v1637_v8 = vld [vmem:[%s2038_s30 + $0x1f4] ss:$8 sps:$4 sm:$0xff]   ;;  %v1639_v9 = vld [vmem:[%s2038_s30 + $0xf0] ss:$8 sps:$4 sm:$0xff]   ;;  %v642_v14 = vld [vmem:[#allocation2] sm:$0xff]  ;;  %p1442_p6 = scmp.ne.s32.totalorder %s1717_s21, 8 }
  0x84   : > { %1065 = vmatpush1.bf16.msra.mxu1 %v1579_v31  ;;  %v1640_v10 = vld [vmem:[%s2038_s30 + $0x1f0] ss:$8 sps:$4 sm:$0xff]   ;;  %v643_v18 = vld [vmem:[#allocation2 + $0x8] sm:$0xff] }
  0x85   : > { %1108 = vmatpush1.bf16.msra.mxu0 %v1580_v32  ;;  %1066 = vmatprep.subr.bf16.mxu1 %v1581_v33  ;;  %v1641_v11 = vld [vmem:[%s2036_s5] ss:$16 sps:$4 sm:$0xff]   ;;  %v1644_v12 = vld [vmem:[%s2036_s5 + $0x8] ss:$16 sps:$4 sm:$0xff]   ;;  %v1158_v33 = vlaneseq (!%p1442_p6) }
  0x86   : > { %1109 = vmatprep.subr.bf16.mxu0 %v1583_v34  ;;  %v644_v22 = vld [vmem:[#allocation2 + $0x10] sm:$0xff]  ;;  %v645_v27 = vld [vmem:[#allocation2 + $0x18] sm:$0xff] }
  0x87   : > { %v1159_v34 = vshrl.u32 (!%p1442_p6), %v1158_v33, 7 }
  0x88   : > { %1067 = vmatpush1.bf16.msra.mxu1 %v1585_v35  ;;  %v1156_v35 = vld [vmem:[%s628_s26] sm:$0x3] (!%p1442_p6) }
  0x89   : > { %1110 = vmatpush1.bf16.msra.mxu0 %v1586_v36  ;;  %1068 = vmatprep.subr.bf16.mxu1 %v1587_v37  ;;  %v1160_v37 = vsub.s32 (!%p1442_p6), 0, %v1159_v34 }
  0x8a   : > { %1111 = vmatprep.subr.bf16.mxu0 %v1589_v38  ;;  %v1164_v38 = vsub.s32 (!%p1442_p6), 1, %v1159_v34 }
  0x8c   : > { %1069 = vmatpush1.bf16.msra.mxu1 %v1591_v39 }
  0x8d   : > { %1112 = vmatpush1.bf16.msra.mxu0 %v1592_v40  ;;  %1070 = vmatprep.subr.bf16.mxu1 %v1593_v41 }
  0x8e   : > { %1113 = vmatprep.subr.bf16.mxu0 %v1595_v42  ;;  %v1161_v42 = vrot.slane (!%p1442_p6), %v1156_v35, %v1160_v37 }
  0x90   : > { %1071 = vmatpush1.bf16.msra.mxu1 %v1597_v43  ;;  %v1172_v43 = vld [vmem:[%s2040_s9] sm:$0xff] (!%p1442_p6) }
  0x91   : > { %1114 = vmatpush1.bf16.msra.mxu0 %v1598_v44  ;;  %1072 = vmatprep.subr.bf16.mxu1 %v1599_v45  ;;  %v1165_v44 = vrot.slane (!%p1442_p6), %v1156_v35, %v1164_v38  ;;  %v1173_v45 = vld [vmem:[%s2040_s9 + $0x8] sm:$0xff] (!%p1442_p6) }
  0x92   : > { %1115 = vmatprep.subr.bf16.mxu0 %v1601_v46  ;;  %v1174_v46 = vld [vmem:[%s2040_s9 + $0x10] sm:$0xff] (!%p1442_p6) }
  0x94   : > { %1073 = vmatpush1.bf16.msra.mxu1 %v1603_v47  ;;  %v1175_v47 = vld [vmem:[%s2040_s9 + $0x18] sm:$0xff] (!%p1442_p6) }
  0x95   : > { %1116 = vmatpush1.bf16.msra.mxu0 %v1604_v48  ;;  %1074 = vmatprep.subr.bf16.mxu1 %v1605_v49 }
  0x96   : > { %1117 = vmatprep.subr.bf16.mxu0 %v1607_v50 }
  0x98   : > { %1075 = vmatpush1.bf16.msra.mxu1 %v1609_v51 }
  0x99   : > { %1118 = vmatpush1.bf16.msra.mxu0 %v1610_v52  ;;  %1076 = vmatprep.subr.bf16.mxu1 %v1611_v53 }
  0x9a   : > { %1119 = vmatprep.subr.bf16.mxu0 %v1613_v54 }
  0x9c   : > { %1077 = vmatpush1.bf16.msra.mxu1 %v1615_v55 }
  0x9d   : > { %1120 = vmatpush1.bf16.msra.mxu0 %v1616_v57  ;;  %1078 = vmatprep.subr.bf16.mxu1 %v1617_v58 }
  0x9e   : > { %1121 = vmatprep.subr.bf16.mxu0 %v1619_v59 }
  0xa0   : > { %1079 = vmatpush1.bf16.msra.mxu1 %v1621_v61 }
  0xa1   : > { %1122 = vmatpush1.bf16.msra.mxu0 %v1622_v62  ;;  %1080 = vmatprep.subr.bf16.mxu1 %v1623_v63 }
  0xa2   : > { %1123 = vmatprep.subr.bf16.mxu0 %v1625_v0 }
  0xa4   : > { %1081 = vmatpush1.bf16.msra.mxu1 %v1627_v1 }
  0xa5   : > { %1124 = vmatpush1.bf16.msra.mxu0 %v1628_v2  ;;  %1082 = vmatprep.subr.bf16.mxu1 %v1629_v3 }
  0xa6   : > { %1125 = vmatprep.subr.bf16.mxu0 %v1631_v4 }
  0xa8   : > { %1083 = vmatpush1.bf16.msra.mxu1 %v1633_v5 }
  0xa9   : > { %1126 = vmatpush1.bf16.msra.mxu0 %v1634_v6  ;;  %1084 = vmatprep.subr.bf16.mxu1 %v1635_v7 }
  0xaa   : > { %1127 = vmatprep.subr.bf16.mxu0 %v1637_v8 }
  0xac   : > { %1085 = vmatpush1.bf16.msra.mxu1 %v1639_v9 }
  0xad   : > { %1128 = vmatpush1.bf16.msra.mxu0 %v1640_v10 }
  0xaf   : > { %1087 = vmatmul.mubr.bf16.vlgmr.msra.gmra.mrb[0].mxu1 %v1641_v11 }
  0xb0   : > { %1130 = vmatmul.mubr.bf16.vlgmr.msra.gmra.mrb[0].mxu0 %v1644_v12 }
 0x182   : > { %v1088_v13 = vpop.f32.mrb[0].mxu1 }
 0x183   : > { %v1131_v15 = vpop.f32.mrb[0].mxu0  ;;  %v1090_v17 = vpop.f32.mrb[1].mxu1 }
 0x184   : > { %v1132_v16 = vadd.f32 %v1131_v15, %v1088_v13  ;;  %v1133_v19 = vpop.f32.mrb[1].mxu0  ;;  %v1092_v21 = vpop.f32.mrb[2].mxu1 }
 0x185   : > { %v1134_v20 = vadd.f32 %v1133_v19, %v1090_v17  ;;  %v1135_v23 = vpop.f32.mrb[2].mxu0  ;;  %v1094_v26 = vpop.f32.mrb[3].mxu1  ;;  %1151 = sbr.rel (%p1442_p6) target bundleno = 410 (0x19a), region = 128 }
 0x186   : > { %v1140_v24 = vadd.f32 %v1132_v16, %v642_v14  ;;  %v1136_v25 = vadd.f32 %v1135_v23, %v1092_v21  ;;  %v1137_v28 = vpop.f32.mrb[3].mxu0 }
 0x187   : > { %v1141_v29 = vadd.f32 %v1134_v20, %v643_v18  ;;  %v1138_v30 = vadd.f32 %v1137_v28, %v1094_v26 }
 0x188   : > { %1144 = vst [vmem:[#allocation2] sm:$0xff] %v1140_v24  ;;  %v1142_v31 = vadd.f32 %v1136_v25, %v644_v22 }
 0x189   : > { %1145 = vst [vmem:[#allocation2 + $0x8] sm:$0xff] %v1141_v29  ;;  %v1143_v32 = vadd.f32 %v1138_v30, %v645_v27 }
 0x18a   : > { %1146 = vst [vmem:[#allocation2 + $0x10] sm:$0xff] %v1142_v31 }
 0x18b   : > { %1147 = vst [vmem:[#allocation2 + $0x18] sm:$0xff] %v1143_v32 }
 0x18f   : > { %v1152_v36 = vld [vmem:[#allocation2] sm:$0xff] }
 0x190   : > { %v1153_v39 = vld [vmem:[#allocation2 + $0x8] sm:$0xff]  ;;  %v1168_v48 = vadd.f32 %v1161_v42, %v1152_v36 }
 0x191   : > { %v1154_v40 = vld [vmem:[#allocation2 + $0x10] sm:$0xff]  ;;  %v1169_v49 = vadd.f32 %v1165_v44, %v1153_v39 }
 0x192   : > { %v1155_v41 = vld [vmem:[#allocation2 + $0x18] sm:$0xff]  ;;  %v1170_v50 = vadd.f32 %v1161_v42, %v1154_v40  ;;  %v1176_v52 = vadd.f32 %v1172_v43, %v1168_v48 }
 0x193   : > { %v1171_v51 = vadd.f32 %v1165_v44, %v1155_v41  ;;  %v1177_v53 = vadd.f32 %v1173_v45, %v1169_v49 }
 0x194   : > { %v1178_v54 = vadd.f32 %v1174_v46, %v1170_v50  ;;  %v1180_v56 = vmax.f32 %v1176_v52, 0.0 }
 0x195   : > { %v1179_v55 = vadd.f32 %v1175_v47, %v1171_v51  ;;  %v1181_v57 = vmax.f32 %v1177_v53, 0.0 }
 0x196   : > { %v1182_v58 = vmax.f32 %v1178_v54, 0.0  ;;  %1184 = vst [vmem:[%s2042_s17] sm:$0xff] %v1180_v56 }
 0x197   : > { %v1183_v59 = vmax.f32 %v1179_v55, 0.0  ;;  %1185 = vst [vmem:[%s2042_s17 + $0x8] sm:$0xff] %v1181_v57 }
 0x198   : > { %1186 = vst [vmem:[%s2042_s17 + $0x10] sm:$0xff] %v1182_v58 }
 0x199   : > { %1187 = vst [vmem:[%s2042_s17 + $0x18] sm:$0xff] %v1183_v59 }
 0x19a PF: > { %1194 = sbr.rel (!%p1865_p13) target bundleno = 418 (0x1a2), region = 132  ;;  %s1451_s21 = sshll.u32 (%p1865_p13), %s1721_s22, 4 }
 0x19b   : > { %s1200_s6 = scalar_lea.vmem (%p1865_p13), %s2174_s4, %s1451_s21 }
 0x19d   : > { %v1213_v60 = vld [vmem:[%s2042_s17] sm:$0xff] (%p1865_p13) }
 0x19e   : > { %v1215_v61 = vld [vmem:[%s2042_s17 + $0x8] sm:$0xff] (%p1865_p13)  ;;  %1214 = vst [vmem:[%s1200_s6] sm:$0xff] (%p1865_p13), %v1213_v60 }
 0x19f   : > { %v1217_v62 = vld [vmem:[%s2042_s17 + $0x10] sm:$0xff] (%p1865_p13)  ;;  %1216 = vst [vmem:[%s1200_s6 + $0x8] sm:$0xff] (%p1865_p13), %v1215_v61 }
 0x1a0   : > { %v1219_v63 = vld [vmem:[%s2042_s17 + $0x18] sm:$0xff] (%p1865_p13)  ;;  %1218 = vst [vmem:[%s1200_s6 + $0x20] sm:$0xff] (%p1865_p13), %v1217_v62 }
 0x1a1   : > { %1220 = vst [vmem:[%s1200_s6 + $0x28] sm:$0xff] %v1219_v63 }
 0x1a2 PF: > { %s14_s25 = sadd.s32 1, %s1733_s25   ;;  %s2186_s22 = sld [smem:[#allocation9_spill]] }
 0x1a3   : > { %p11_p7 = scmp.ge.s32.totalorder %s14_s25, 20   ;;  %s2187_s29 = sld [smem:[#allocation7_spill]] }
 0x1a4   : > { %s2188_s11 = sld [smem:[#allocation8_spill]]  ;;  %s2189_s15 = smov %s1697_s16 }
 0x1a5   : > { %s2190_s16 = smov %s1857_s13  ;;  %s2191_s17 = smov %s1705_s18 }
 0x1a6   : > { %s2192_s18 = smov %s1854_s12  ;;  %s2193_s19 = smov %s1713_s20 }
 0x1a7   : > { %s2195_s21 = smov %s1725_s23  ;;  %13 = sbr.rel (!%p11_p7) target bundleno = 8 (0x8), region = 205 }
 0x1a8   : > { %s2194_s20 = smov %s2186_s22  ;;  %s2196_s22 = smov %s1729_s24 }
 0x1a9   : > { %s2197_s23 = smov %s2187_s29 }
 0x1aa   : > { %s2198_s24 = smov %s2188_s11 }

</bundles_post_ra>
